<compile_context>
chip_gen: v6e
topology: v6e:2x2x1
jax: 0.10.0
libtpu: 0.0.40
codegen_flags: <defaults>
</compile_context>

<pallas_src>
import functools
import numpy as np
import jax
import jax.numpy as jnp
from jax.experimental import pallas as pl
from jax.experimental.pallas import tpu as pltpu

SAMPLE_RATE = 16000
N_FFT = 400
HOP = 160
N_MELS = 64
N_FREQS = N_FFT // 2 + 1          # 201
FREQ_PAD = 256                    # lane-aligned re / im halves
DFT_PAD = 512                     # DFT contraction padded to a multiple of 128
CONV_CH = 64                      # phi conv channels == GRU input size
HIDDEN = 32
NUM_CLASSES = 10
BP = 8                            # batch-tile size (sublane padding)


# ----------------------------------------------------------------------------
# Fused kernel: mel + dB + norm + phi conv + HighwayGRU + attention + fc2.
# Processes one batch-tile of BP(=8) samples, laid out time-major as
# (T*BP, .) with row index t*BP + b.
# ----------------------------------------------------------------------------
def _fused_kernel(frames_ref, wdft_ref, fb_ref,
                  w1_ref, b1_ref, w2_ref, b2_ref,
                  wih_ref, bih_ref, whh_ref, bhh_ref,
                  wa_ref, ba_ref, wf_ref, bf_ref,
                  o_ref,
                  gir_s, giz_s, gin_s, g_s, gp_s, hs_s,
                  *, T):
    f32 = jnp.float32
    TB = T * BP

    # ---- Mel front-end: one windowed-DFT matmul for all frames in the tile --
    frames = frames_ref[0]                                        # (TB, 512)
    d = jnp.dot(frames, wdft_ref[...], preferred_element_type=f32)  # (TB, 512)
    re = d[:, :FREQ_PAD]
    im = d[:, FREQ_PAD:]           # NOTE: +sin (not -sin); harmless, power only
    power = re * re + im * im                                     # (TB, 256)
    mel = jnp.dot(power, fb_ref[...], preferred_element_type=f32)  # (TB, 64)
    db = (10.0 / np.log(10.0)) * jnp.log(jnp.maximum(mel, 1e-10))

    # ---- per-sample mean / unbiased std over (T, n_mels), all slots at once --
    n = float(T * N_MELS)
    db3 = db.reshape(T, BP, N_MELS)
    mean = jnp.sum(jnp.sum(db3, axis=2, keepdims=True),
                   axis=0, keepdims=True) / n                     # (1, BP, 1)
    cen = db3 - mean
    var = jnp.sum(jnp.sum(cen * cen, axis=2, keepdims=True),
                  axis=0, keepdims=True) / (n - 1.0)              # unbiased
    inv_std = 1.0 / (jnp.sqrt(var) + 1e-5)
    feat = (cen * inv_std).reshape(TB, N_MELS)                    # (TB, 64)

    # ---- phi conv stack (k=3, pad=1, skip) -----------------------------------
    # TODO(synk): MatchboxNetSkip not provided; stand-in = two Conv1d(64->64,k=3)
    # layers with a skip connection (BatchNorm folded / identity at init).
    # Time-major layout -> a one-timestep shift is a shift of BP(=8) rows, so
    # all shifted matmul operands are sublane-aligned and samples never mix.
    zblk = jnp.zeros((BP, CONV_CH), f32)
    xpad = jnp.concatenate([zblk, feat, zblk], axis=0)            # (TB+16, 64)
    a1 = jnp.dot(xpad[0:TB], w1_ref[0], preferred_element_type=f32)
    a1 = a1 + jnp.dot(xpad[BP:BP + TB], w1_ref[1], preferred_element_type=f32)
    a1 = a1 + jnp.dot(xpad[2 * BP:2 * BP + TB], w1_ref[2],
                      preferred_element_type=f32)
    h1 = jnp.maximum(a1 + b1_ref[...], 0.0)                       # (TB, 64)

    hpad = jnp.concatenate([zblk, h1, zblk], axis=0)
    a2 = jnp.dot(hpad[0:TB], w2_ref[0], preferred_element_type=f32)
    a2 = a2 + jnp.dot(hpad[BP:BP + TB], w2_ref[1], preferred_element_type=f32)
    a2 = a2 + jnp.dot(hpad[2 * BP:2 * BP + TB], w2_ref[2],
                      preferred_element_type=f32)
    phi = jnp.maximum(a2 + b2_ref[...] + h1, 0.0)                 # (TB, 64) skip

    # ---- HighwayGRU: all input-only projections hoisted out of the loop -----
    # TODO(synk): HighwayGRU not provided; stand-in = GRU cell + highway gate
    # blending with a linear input projection.
    gir_s[...] = (jnp.dot(phi, wih_ref[0], preferred_element_type=f32)
                  + bih_ref[0] + bhh_ref[0])
    giz_s[...] = (jnp.dot(phi, wih_ref[1], preferred_element_type=f32)
                  + bih_ref[1] + bhh_ref[1])
    gin_s[...] = jnp.dot(phi, wih_ref[2], preferred_element_type=f32) + bih_ref[2]
    gate = jax.nn.sigmoid(
        jnp.dot(phi, wih_ref[3], preferred_element_type=f32) + bih_ref[3])
    proj = jnp.dot(phi, wih_ref[4], preferred_element_type=f32) + bih_ref[4]
    g_s[...] = gate
    gp_s[...] = (1.0 - gate) * proj

    w_hr = whh_ref[0]
    w_hz = whh_ref[1]
    w_hn = whh_ref[2]
    b_hn = bhh_ref[2]

    def step(t, h):                                               # h: (BP, H)
        base = pl.multiple_of(t * BP, BP)                         # aligned rows
        gh_r = jnp.dot(h, w_hr, preferred_element_type=f32)
        gh_z = jnp.dot(h, w_hz, preferred_element_type=f32)
        gh_n = jnp.dot(h, w_hn, preferred_element_type=f32) + b_hn
        r = jax.nn.sigmoid(gir_s[pl.ds(base, BP), :] + gh_r)
        z = jax.nn.sigmoid(giz_s[pl.ds(base, BP), :] + gh_z)
        ng = jnp.tanh(gin_s[pl.ds(base, BP), :] + r * gh_n)
        h_gru = (1.0 - z) * ng + z * h
        h_new = g_s[pl.ds(base, BP), :] * h_gru + gp_s[pl.ds(base, BP), :]
        hs_s[pl.ds(base, BP), :] = h_new                          # stays in VMEM
        return h_new

    jax.lax.fori_loop(0, T, step, jnp.zeros((BP, HIDDEN), f32))

    # ---- attention pooling + fc2 epilogue ------------------------------------
    # TODO(synk): AttentionLayer not provided; stand-in = additive score pooling
    # (Linear(H,1) + softmax over T).  Dropout = eval mode (identity).
    hs = hs_s[...]                                                # (TB, H)
    sc = jnp.dot(hs, wa_ref[...], preferred_element_type=f32) + ba_ref[...]
    sc3 = sc.reshape(T, BP, 1)
    m = jnp.max(sc3, axis=0, keepdims=True)
    e = jnp.exp(sc3 - m)
    denom = jnp.sum(e, axis=0, keepdims=True)
    att = e * pl.reciprocal(denom, approx=True)                   # (T, BP, 1)
    ctx = jnp.sum(att * hs.reshape(T, BP, HIDDEN), axis=0)        # (BP, H)
    logits = jnp.dot(ctx, wf_ref[...], preferred_element_type=f32) + bf_ref[...]
    o_ref[0] = logits                                             # (BP, classes)


def phi_hgru_head(frames_tiled, params, mel_consts, *, T, nt):
    wdft, fbank = mel_consts
    kern = functools.partial(_fused_kernel, T=T)
    z2 = lambda b: (0, 0)
    z3 = lambda b: (0, 0, 0)
    out = pl.pallas_call(
        kern,
        out_shape=jax.ShapeDtypeStruct((nt, BP, NUM_CLASSES), jnp.float32),
        grid=(nt,),
        in_specs=[
            pl.BlockSpec((1, T * BP, DFT_PAD), lambda b: (b, 0, 0)),
            pl.BlockSpec((DFT_PAD, 2 * FREQ_PAD), z2),
            pl.BlockSpec((FREQ_PAD, N_MELS), z2),
            pl.BlockSpec((3, N_MELS, CONV_CH), z3),
            pl.BlockSpec((1, CONV_CH), z2),
            pl.BlockSpec((3, CONV_CH, CONV_CH), z3),
            pl.BlockSpec((1, CONV_CH), z2),
            pl.BlockSpec((5, CONV_CH, HIDDEN), z3),
            pl.BlockSpec((5, 1, HIDDEN), z3),
            pl.BlockSpec((3, HIDDEN, HIDDEN), z3),
            pl.BlockSpec((3, 1, HIDDEN), z3),
            pl.BlockSpec((HIDDEN, 1), z2),
            pl.BlockSpec((1, 1), z2),
            pl.BlockSpec((HIDDEN, NUM_CLASSES), z2),
            pl.BlockSpec((1, NUM_CLASSES), z2),
        ],
        out_specs=pl.BlockSpec((1, BP, NUM_CLASSES), lambda b: (b, 0, 0)),
        scratch_shapes=[pltpu.VMEM((T * BP, HIDDEN), jnp.float32)
                        for _ in range(6)],
        compiler_params=pltpu.CompilerParams(
            dimension_semantics=("parallel",)),
    )(frames_tiled, wdft, fbank,
      params["phi_w1"], params["phi_b1"], params["phi_w2"], params["phi_b2"],
      params["gru_wih"], params["gru_bih"], params["gru_whh"], params["gru_bhh"],
      params["att_w"], params["att_b"], params["fc2_w"], params["fc2_b"])
    return out


# ----------------------------------------------------------------------------
# Constants / parameters (deterministic, synthetic).
# ----------------------------------------------------------------------------
def mel_constants():
    n = np.arange(N_FFT)
    win = 0.5 * (1.0 - np.cos(2.0 * np.pi * n / N_FFT))          # periodic Hann
    k = np.arange(N_FREQS)
    ang = 2.0 * np.pi * np.outer(n, k) / N_FFT
    # Hann window folded into the DFT matrix; K padded to 512, re/im lane-aligned.
    wdft = np.zeros((DFT_PAD, 2 * FREQ_PAD), np.float32)
    wdft[:N_FFT, :N_FREQS] = win[:, None] * np.cos(ang)
    wdft[:N_FFT, FREQ_PAD:FREQ_PAD + N_FREQS] = win[:, None] * np.sin(ang)

    def hz_to_mel(f):
        return 2595.0 * np.log10(1.0 + f / 700.0)

    def mel_to_hz(m):
        return 700.0 * (10.0 ** (m / 2595.0) - 1.0)

    all_freqs = np.linspace(0.0, SAMPLE_RATE / 2.0, N_FREQS)
    m_pts = np.linspace(hz_to_mel(0.0), hz_to_mel(SAMPLE_RATE / 2.0), N_MELS + 2)
    f_pts = mel_to_hz(m_pts)
    f_diff = f_pts[1:] - f_pts[:-1]
    slopes = f_pts[None, :] - all_freqs[:, None]
    down = -slopes[:, :-2] / f_diff[:-1]
    up = slopes[:, 2:] / f_diff[1:]
    fb = np.maximum(0.0, np.minimum(down, up))                   # (N_FREQS, N_MELS)
    fb_pad = np.zeros((FREQ_PAD, N_MELS), np.float32)
    fb_pad[:N_FREQS, :] = fb
    return (jnp.asarray(wdft, jnp.float32), jnp.asarray(fb_pad, jnp.float32))


def init_params(key):
    ks = jax.random.split(key, 8)

    def xavier(k, shape):
        bound = float(np.sqrt(6.0 / (shape[0] + shape[1])))
        return jax.random.uniform(k, shape, jnp.float32, -bound, bound)

    p = {}
    # phi: two Conv1d(64->64, k=3) layers stored as (K, Cin, Cout)
    p["phi_w1"] = (jax.random.normal(ks[0], (3, N_MELS, CONV_CH), jnp.float32)
                   / np.sqrt(3 * N_MELS))
    p["phi_b1"] = jnp.zeros((1, CONV_CH), jnp.float32)
    p["phi_w2"] = (jax.random.normal(ks[1], (3, CONV_CH, CONV_CH), jnp.float32)
                   / np.sqrt(3 * CONV_CH))
    p["phi_b2"] = jnp.zeros((1, CONV_CH), jnp.float32)
    # HighwayGRU: xavier_uniform 2-D weights, zero biases (per _init_weights).
    # Input-side weights stacked as (5, 64, 32): [W_ir, W_iz, W_in, W_gate, W_proj]
    w_ih = xavier(ks[2], (CONV_CH, 3 * HIDDEN))
    w_gate = xavier(ks[3], (CONV_CH, HIDDEN))
    w_proj = xavier(ks[4], (CONV_CH, HIDDEN))
    p["gru_wih"] = jnp.stack([w_ih[:, :HIDDEN], w_ih[:, HIDDEN:2 * HIDDEN],
                              w_ih[:, 2 * HIDDEN:], w_gate, w_proj], axis=0)
    p["gru_bih"] = jnp.zeros((5, 1, HIDDEN), jnp.float32)
    w_hh = xavier(ks[5], (HIDDEN, 3 * HIDDEN))
    p["gru_whh"] = jnp.stack([w_hh[:, :HIDDEN], w_hh[:, HIDDEN:2 * HIDDEN],
                              w_hh[:, 2 * HIDDEN:]], axis=0)      # (3, 32, 32)
    p["gru_bhh"] = jnp.zeros((3, 1, HIDDEN), jnp.float32)
    # attention + fc2
    p["att_w"] = xavier(ks[6], (HIDDEN, 1))
    p["att_b"] = jnp.zeros((1, 1), jnp.float32)
    p["fc2_w"] = xavier(ks[7], (HIDDEN, NUM_CLASSES))
    p["fc2_b"] = jnp.zeros((1, NUM_CLASSES), jnp.float32)
    return p


@jax.jit
def phi_hgru_forward(x, params, mel_consts):
    B, S = x.shape
    pad = N_FFT // 2
    xp = jnp.pad(x, ((0, 0), (pad, pad)), mode="reflect")        # center=True
    T = 1 + (S + 2 * pad - N_FFT) // HOP
    idx = jnp.arange(T)[:, None] * HOP + jnp.arange(N_FFT)[None, :]
    fr = xp[:, idx]                                              # (B, T, n_fft)
    nt = (B + BP - 1) // BP                                      # batch tiles
    # pad batch to tiles of 8 and the DFT contraction to 512, go time-major
    fr = jnp.pad(fr, ((0, nt * BP - B), (0, 0), (0, DFT_PAD - N_FFT)))
    fr = (fr.reshape(nt, BP, T, DFT_PAD)
            .transpose(0, 2, 1, 3)
            .reshape(nt, T * BP, DFT_PAD))                       # (nt, T*8, 512)
    out = phi_hgru_head(fr, params, mel_consts, T=T, nt=nt)      # (nt, 8, C)
    return out.reshape(nt * BP, NUM_CLASSES)[:B]                 # (B, C)


if __name__ == "__main__":
    key = jax.random.PRNGKey(0)
    k_x, k_p = jax.random.split(key)
    B, S = 2, 3200                                               # 0.2 s @ 16 kHz
    x = jax.random.normal(k_x, (B, S), jnp.float32)
    params = init_params(k_p)
    mel_consts = mel_constants()
    out = phi_hgru_forward(x, params, mel_consts)
    jax.block_until_ready(out)
    assert out.shape == (B, NUM_CLASSES) and out.dtype == jnp.float32
    assert bool(jnp.all(jnp.isfinite(out)))
    print("KERNEL_OK")
</pallas_src>

<mosaic_0001>
module attributes {stable_mosaic.version = 11 : i64} {
  func.func @_fused_kernel(%arg0: i32, %arg1: memref<1x168x512xf32, #tpu.memory_space<vmem>>, %arg2: memref<512x512xf32, #tpu.memory_space<vmem>>, %arg3: memref<256x64xf32, #tpu.memory_space<vmem>>, %arg4: memref<3x64x64xf32, #tpu.memory_space<vmem>>, %arg5: memref<1x64xf32, #tpu.memory_space<vmem>>, %arg6: memref<3x64x64xf32, #tpu.memory_space<vmem>>, %arg7: memref<1x64xf32, #tpu.memory_space<vmem>>, %arg8: memref<5x64x32xf32, #tpu.memory_space<vmem>>, %arg9: memref<5x1x32xf32, #tpu.memory_space<vmem>>, %arg10: memref<3x32x32xf32, #tpu.memory_space<vmem>>, %arg11: memref<3x1x32xf32, #tpu.memory_space<vmem>>, %arg12: memref<32x1xf32, #tpu.memory_space<vmem>>, %arg13: memref<1x1xf32, #tpu.memory_space<vmem>>, %arg14: memref<32x10xf32, #tpu.memory_space<vmem>>, %arg15: memref<1x10xf32, #tpu.memory_space<vmem>>, %arg16: memref<1x8x10xf32, #tpu.memory_space<vmem>>, %arg17: memref<168x32xf32, #tpu.memory_space<vmem>>, %arg18: memref<168x32xf32, #tpu.memory_space<vmem>>, %arg19: memref<168x32xf32, #tpu.memory_space<vmem>>, %arg20: memref<168x32xf32, #tpu.memory_space<vmem>>, %arg21: memref<168x32xf32, #tpu.memory_space<vmem>>, %arg22: memref<168x32xf32, #tpu.memory_space<vmem>>) attributes {dimension_semantics = [#tpu.dimension_semantics<parallel>], iteration_bounds = array<i64: 1>, scalar_prefetch = 0 : i64, scratch_operands = 6 : i64, tpu.core_type = #tpu.core_type<tc>, window_params = [{transform_indices = @transform_0, window_bounds = array<i64: 1, 168, 512>}, {pipeline_mode = #tpu.pipeline_mode<synchronous>, transform_indices = @transform_1, window_bounds = array<i64: 512, 512>}, {pipeline_mode = #tpu.pipeline_mode<synchronous>, transform_indices = @transform_2, window_bounds = array<i64: 256, 64>}, {pipeline_mode = #tpu.pipeline_mode<synchronous>, transform_indices = @transform_3, window_bounds = array<i64: 3, 64, 64>}, {pipeline_mode = #tpu.pipeline_mode<synchronous>, transform_indices = @transform_4, window_bounds = array<i64: 1, 64>}, {pipeline_mode = #tpu.pipeline_mode<synchronous>, transform_indices = @transform_5, window_bounds = array<i64: 3, 64, 64>}, {pipeline_mode = #tpu.pipeline_mode<synchronous>, transform_indices = @transform_6, window_bounds = array<i64: 1, 64>}, {pipeline_mode = #tpu.pipeline_mode<synchronous>, transform_indices = @transform_7, window_bounds = array<i64: 5, 64, 32>}, {pipeline_mode = #tpu.pipeline_mode<synchronous>, transform_indices = @transform_8, window_bounds = array<i64: 5, 1, 32>}, {pipeline_mode = #tpu.pipeline_mode<synchronous>, transform_indices = @transform_9, window_bounds = array<i64: 3, 32, 32>}, {pipeline_mode = #tpu.pipeline_mode<synchronous>, transform_indices = @transform_10, window_bounds = array<i64: 3, 1, 32>}, {pipeline_mode = #tpu.pipeline_mode<synchronous>, transform_indices = @transform_11, window_bounds = array<i64: 32, 1>}, {pipeline_mode = #tpu.pipeline_mode<synchronous>, transform_indices = @transform_12, window_bounds = array<i64: 1, 1>}, {pipeline_mode = #tpu.pipeline_mode<synchronous>, transform_indices = @transform_13, window_bounds = array<i64: 32, 10>}, {pipeline_mode = #tpu.pipeline_mode<synchronous>, transform_indices = @transform_14, window_bounds = array<i64: 1, 10>}, {transform_indices = @transform_15, window_bounds = array<i64: 1, 8, 10>}]} {
    %c0 = arith.constant 0 : index
    %c0_0 = arith.constant 0 : index
    %c0_1 = arith.constant 0 : index
    %0 = vector.load %arg1[%c0, %c0_0, %c0_1] : memref<1x168x512xf32, #tpu.memory_space<vmem>>, vector<1x168x512xf32>
    %1 = vector.shape_cast %0 : vector<1x168x512xf32> to vector<168x512xf32>
    %c0_2 = arith.constant 0 : index
    %c0_3 = arith.constant 0 : index
    %2 = vector.load %arg2[%c0_2, %c0_3] : memref<512x512xf32, #tpu.memory_space<vmem>>, vector<512x512xf32>
    %cst = arith.constant dense<0.000000e+00> : vector<168x512xf32>
    %3 = tpu.matmul %1, %2, %cst {dimension_numbers = #tpu.dot_dimension_numbers<[1], [0], [0], [1], [0, 0, 1, 1], [], []>} : vector<168x512xf32>, vector<512x512xf32>, vector<168x512xf32> -> vector<168x512xf32>
    %4 = vector.extract_strided_slice %3 {offsets = [0, 0], sizes = [168, 256], strides = [1, 1]} : vector<168x512xf32> to vector<168x256xf32>
    %5 = vector.extract_strided_slice %3 {offsets = [0, 256], sizes = [168, 256], strides = [1, 1]} : vector<168x512xf32> to vector<168x256xf32>
    %6 = arith.mulf %4, %4 : vector<168x256xf32>
    %7 = arith.mulf %5, %5 : vector<168x256xf32>
    %8 = arith.addf %6, %7 : vector<168x256xf32>
    %c0_4 = arith.constant 0 : index
    %c0_5 = arith.constant 0 : index
    %9 = vector.load %arg3[%c0_4, %c0_5] : memref<256x64xf32, #tpu.memory_space<vmem>>, vector<256x64xf32>
    %cst_6 = arith.constant dense<0.000000e+00> : vector<168x64xf32>
    %10 = tpu.matmul %8, %9, %cst_6 {dimension_numbers = #tpu.dot_dimension_numbers<[1], [0], [0], [1], [0, 0, 1, 1], [], []>} : vector<168x256xf32>, vector<256x64xf32>, vector<168x64xf32> -> vector<168x64xf32>
    %cst_7 = arith.constant 1.000000e-10 : f32
    %11 = vector.broadcast %cst_7 : f32 to vector<168x64xf32>
    %12 = arith.maximumf %10, %11 : vector<168x64xf32>
    %13 = math.log %12 : vector<168x64xf32>
    %cst_8 = arith.constant 4.34294462 : f32
    %14 = vector.broadcast %cst_8 : f32 to vector<168x64xf32>
    %15 = arith.mulf %14, %13 : vector<168x64xf32>
    %16 = vector.shape_cast %15 : vector<168x64xf32> to vector<21x8x64xf32>
    %cst_9 = arith.constant dense<0.000000e+00> : vector<21x8xf32>
    %17 = vector.multi_reduction <add>, %16, %cst_9 [2] : vector<21x8x64xf32> to vector<21x8xf32>
    %18 = vector.shape_cast %17 : vector<21x8xf32> to vector<21x8x1xf32>
    %cst_10 = arith.constant dense<0.000000e+00> : vector<8x1xf32>
    %19 = vector.multi_reduction <add>, %18, %cst_10 [0] : vector<21x8x1xf32> to vector<8x1xf32>
    %20 = vector.shape_cast %19 : vector<8x1xf32> to vector<1x8x1xf32>
    %cst_11 = arith.constant 1.344000e+03 : f32
    %21 = vector.broadcast %cst_11 : f32 to vector<1x8x1xf32>
    %22 = arith.divf %20, %21 : vector<1x8x1xf32>
    %23 = vector.broadcast %22 : vector<1x8x1xf32> to vector<21x8x64xf32>
    %24 = arith.subf %16, %23 : vector<21x8x64xf32>
    %25 = arith.mulf %24, %24 : vector<21x8x64xf32>
    %cst_12 = arith.constant dense<0.000000e+00> : vector<21x8xf32>
    %26 = vector.multi_reduction <add>, %25, %cst_12 [2] : vector<21x8x64xf32> to vector<21x8xf32>
    %27 = vector.shape_cast %26 : vector<21x8xf32> to vector<21x8x1xf32>
    %cst_13 = arith.constant dense<0.000000e+00> : vector<8x1xf32>
    %28 = vector.multi_reduction <add>, %27, %cst_13 [0] : vector<21x8x1xf32> to vector<8x1xf32>
    %29 = vector.shape_cast %28 : vector<8x1xf32> to vector<1x8x1xf32>
    %cst_14 = arith.constant 1.343000e+03 : f32
    %30 = vector.broadcast %cst_14 : f32 to vector<1x8x1xf32>
    %31 = arith.divf %29, %30 : vector<1x8x1xf32>
    %32 = math.sqrt %31 : vector<1x8x1xf32>
    %cst_15 = arith.constant 9.99999974E-6 : f32
    %33 = vector.broadcast %cst_15 : f32 to vector<1x8x1xf32>
    %34 = arith.addf %32, %33 : vector<1x8x1xf32>
    %cst_16 = arith.constant 1.000000e+00 : f32
    %35 = vector.broadcast %cst_16 : f32 to vector<1x8x1xf32>
    %36 = arith.divf %35, %34 : vector<1x8x1xf32>
    %37 = vector.broadcast %36 : vector<1x8x1xf32> to vector<21x8x64xf32>
    %38 = arith.mulf %24, %37 : vector<21x8x64xf32>
    %39 = vector.shape_cast %38 : vector<21x8x64xf32> to vector<168x64xf32>
    %cst_17 = arith.constant 0.000000e+00 : f32
    %40 = vector.broadcast %cst_17 : f32 to vector<8x64xf32>
    %41 = tpu.concatenate %40, %39, %40 in 0 : vector<8x64xf32>, vector<168x64xf32>, vector<8x64xf32> -> vector<184x64xf32>
    %42 = vector.extract_strided_slice %41 {offsets = [0, 0], sizes = [168, 64], strides = [1, 1]} : vector<184x64xf32> to vector<168x64xf32>
    %c0_18 = arith.constant 0 : index
    %c0_19 = arith.constant 0 : index
    %c0_20 = arith.constant 0 : index
    %43 = vector.load %arg4[%c0_18, %c0_19, %c0_20] : memref<3x64x64xf32, #tpu.memory_space<vmem>>, vector<1x64x64xf32>
    %44 = vector.shape_cast %43 : vector<1x64x64xf32> to vector<64x64xf32>
    %cst_21 = arith.constant dense<0.000000e+00> : vector<168x64xf32>
    %45 = tpu.matmul %42, %44, %cst_21 {dimension_numbers = #tpu.dot_dimension_numbers<[1], [0], [0], [1], [0, 0, 1, 1], [], []>} : vector<168x64xf32>, vector<64x64xf32>, vector<168x64xf32> -> vector<168x64xf32>
    %46 = vector.extract_strided_slice %41 {offsets = [8, 0], sizes = [168, 64], strides = [1, 1]} : vector<184x64xf32> to vector<168x64xf32>
    %c1 = arith.constant 1 : index
    %c0_22 = arith.constant 0 : index
    %c0_23 = arith.constant 0 : index
    %47 = vector.load %arg4[%c1, %c0_22, %c0_23] : memref<3x64x64xf32, #tpu.memory_space<vmem>>, vector<1x64x64xf32>
    %48 = vector.shape_cast %47 : vector<1x64x64xf32> to vector<64x64xf32>
    %cst_24 = arith.constant dense<0.000000e+00> : vector<168x64xf32>
    %49 = tpu.matmul %46, %48, %cst_24 {dimension_numbers = #tpu.dot_dimension_numbers<[1], [0], [0], [1], [0, 0, 1, 1], [], []>} : vector<168x64xf32>, vector<64x64xf32>, vector<168x64xf32> -> vector<168x64xf32>
    %50 = arith.addf %45, %49 : vector<168x64xf32>
    %51 = vector.extract_strided_slice %41 {offsets = [16, 0], sizes = [168, 64], strides = [1, 1]} : vector<184x64xf32> to vector<168x64xf32>
    %c2 = arith.constant 2 : index
    %c0_25 = arith.constant 0 : index
    %c0_26 = arith.constant 0 : index
    %52 = vector.load %arg4[%c2, %c0_25, %c0_26] : memref<3x64x64xf32, #tpu.memory_space<vmem>>, vector<1x64x64xf32>
    %53 = vector.shape_cast %52 : vector<1x64x64xf32> to vector<64x64xf32>
    %cst_27 = arith.constant dense<0.000000e+00> : vector<168x64xf32>
    %54 = tpu.matmul %51, %53, %cst_27 {dimension_numbers = #tpu.dot_dimension_numbers<[1], [0], [0], [1], [0, 0, 1, 1], [], []>} : vector<168x64xf32>, vector<64x64xf32>, vector<168x64xf32> -> vector<168x64xf32>
    %55 = arith.addf %50, %54 : vector<168x64xf32>
    %c0_28 = arith.constant 0 : index
    %c0_29 = arith.constant 0 : index
    %56 = vector.load %arg5[%c0_28, %c0_29] : memref<1x64xf32, #tpu.memory_space<vmem>>, vector<1x64xf32>
    %57 = vector.broadcast %56 : vector<1x64xf32> to vector<168x64xf32>
    %58 = arith.addf %55, %57 : vector<168x64xf32>
    %cst_30 = arith.constant 0.000000e+00 : f32
    %59 = vector.broadcast %cst_30 : f32 to vector<168x64xf32>
    %60 = arith.maximumf %58, %59 : vector<168x64xf32>
    %61 = tpu.concatenate %40, %60, %40 in 0 : vector<8x64xf32>, vector<168x64xf32>, vector<8x64xf32> -> vector<184x64xf32>
    %62 = vector.extract_strided_slice %61 {offsets = [0, 0], sizes = [168, 64], strides = [1, 1]} : vector<184x64xf32> to vector<168x64xf32>
    %c0_31 = arith.constant 0 : index
    %c0_32 = arith.constant 0 : index
    %c0_33 = arith.constant 0 : index
    %63 = vector.load %arg6[%c0_31, %c0_32, %c0_33] : memref<3x64x64xf32, #tpu.memory_space<vmem>>, vector<1x64x64xf32>
    %64 = vector.shape_cast %63 : vector<1x64x64xf32> to vector<64x64xf32>
    %cst_34 = arith.constant dense<0.000000e+00> : vector<168x64xf32>
    %65 = tpu.matmul %62, %64, %cst_34 {dimension_numbers = #tpu.dot_dimension_numbers<[1], [0], [0], [1], [0, 0, 1, 1], [], []>} : vector<168x64xf32>, vector<64x64xf32>, vector<168x64xf32> -> vector<168x64xf32>
    %66 = vector.extract_strided_slice %61 {offsets = [8, 0], sizes = [168, 64], strides = [1, 1]} : vector<184x64xf32> to vector<168x64xf32>
    %c1_35 = arith.constant 1 : index
    %c0_36 = arith.constant 0 : index
    %c0_37 = arith.constant 0 : index
    %67 = vector.load %arg6[%c1_35, %c0_36, %c0_37] : memref<3x64x64xf32, #tpu.memory_space<vmem>>, vector<1x64x64xf32>
    %68 = vector.shape_cast %67 : vector<1x64x64xf32> to vector<64x64xf32>
    %cst_38 = arith.constant dense<0.000000e+00> : vector<168x64xf32>
    %69 = tpu.matmul %66, %68, %cst_38 {dimension_numbers = #tpu.dot_dimension_numbers<[1], [0], [0], [1], [0, 0, 1, 1], [], []>} : vector<168x64xf32>, vector<64x64xf32>, vector<168x64xf32> -> vector<168x64xf32>
    %70 = arith.addf %65, %69 : vector<168x64xf32>
    %71 = vector.extract_strided_slice %61 {offsets = [16, 0], sizes = [168, 64], strides = [1, 1]} : vector<184x64xf32> to vector<168x64xf32>
    %c2_39 = arith.constant 2 : index
    %c0_40 = arith.constant 0 : index
    %c0_41 = arith.constant 0 : index
    %72 = vector.load %arg6[%c2_39, %c0_40, %c0_41] : memref<3x64x64xf32, #tpu.memory_space<vmem>>, vector<1x64x64xf32>
    %73 = vector.shape_cast %72 : vector<1x64x64xf32> to vector<64x64xf32>
    %cst_42 = arith.constant dense<0.000000e+00> : vector<168x64xf32>
    %74 = tpu.matmul %71, %73, %cst_42 {dimension_numbers = #tpu.dot_dimension_numbers<[1], [0], [0], [1], [0, 0, 1, 1], [], []>} : vector<168x64xf32>, vector<64x64xf32>, vector<168x64xf32> -> vector<168x64xf32>
    %75 = arith.addf %70, %74 : vector<168x64xf32>
    %c0_43 = arith.constant 0 : index
    %c0_44 = arith.constant 0 : index
    %76 = vector.load %arg7[%c0_43, %c0_44] : memref<1x64xf32, #tpu.memory_space<vmem>>, vector<1x64xf32>
    %77 = vector.broadcast %76 : vector<1x64xf32> to vector<168x64xf32>
    %78 = arith.addf %75, %77 : vector<168x64xf32>
    %79 = arith.addf %78, %60 : vector<168x64xf32>
    %cst_45 = arith.constant 0.000000e+00 : f32
    %80 = vector.broadcast %cst_45 : f32 to vector<168x64xf32>
    %81 = arith.maximumf %79, %80 : vector<168x64xf32>
    %c0_46 = arith.constant 0 : index
    %c0_47 = arith.constant 0 : index
    %c0_48 = arith.constant 0 : index
    %82 = vector.load %arg8[%c0_46, %c0_47, %c0_48] : memref<5x64x32xf32, #tpu.memory_space<vmem>>, vector<1x64x32xf32>
    %83 = vector.shape_cast %82 : vector<1x64x32xf32> to vector<64x32xf32>
    %cst_49 = arith.constant dense<0.000000e+00> : vector<168x32xf32>
    %84 = tpu.matmul %81, %83, %cst_49 {dimension_numbers = #tpu.dot_dimension_numbers<[1], [0], [0], [1], [0, 0, 1, 1], [], []>} : vector<168x64xf32>, vector<64x32xf32>, vector<168x32xf32> -> vector<168x32xf32>
    %c0_50 = arith.constant 0 : index
    %c0_51 = arith.constant 0 : index
    %c0_52 = arith.constant 0 : index
    %85 = vector.load %arg9[%c0_50, %c0_51, %c0_52] : memref<5x1x32xf32, #tpu.memory_space<vmem>>, vector<1x1x32xf32>
    %86 = vector.shape_cast %85 : vector<1x1x32xf32> to vector<1x32xf32>
    %87 = vector.broadcast %86 : vector<1x32xf32> to vector<168x32xf32>
    %88 = arith.addf %84, %87 : vector<168x32xf32>
    %c0_53 = arith.constant 0 : index
    %c0_54 = arith.constant 0 : index
    %c0_55 = arith.constant 0 : index
    %89 = vector.load %arg11[%c0_53, %c0_54, %c0_55] : memref<3x1x32xf32, #tpu.memory_space<vmem>>, vector<1x1x32xf32>
    %90 = vector.shape_cast %89 : vector<1x1x32xf32> to vector<1x32xf32>
    %91 = vector.broadcast %90 : vector<1x32xf32> to vector<168x32xf32>
    %92 = arith.addf %88, %91 : vector<168x32xf32>
    %c0_56 = arith.constant 0 : index
    %c0_57 = arith.constant 0 : index
    %93 = vector.load %arg17[%c0_56, %c0_57] : memref<168x32xf32, #tpu.memory_space<vmem>>, vector<168x32xf32>
    tpu.vector_store %arg17[%c0_56, %c0_57], %92 {strides = array<i32>} : memref<168x32xf32, #tpu.memory_space<vmem>>, vector<168x32xf32>,
    %c1_58 = arith.constant 1 : index
    %c0_59 = arith.constant 0 : index
    %c0_60 = arith.constant 0 : index
    %94 = vector.load %arg8[%c1_58, %c0_59, %c0_60] : memref<5x64x32xf32, #tpu.memory_space<vmem>>, vector<1x64x32xf32>
    %95 = vector.shape_cast %94 : vector<1x64x32xf32> to vector<64x32xf32>
    %cst_61 = arith.constant dense<0.000000e+00> : vector<168x32xf32>
    %96 = tpu.matmul %81, %95, %cst_61 {dimension_numbers = #tpu.dot_dimension_numbers<[1], [0], [0], [1], [0, 0, 1, 1], [], []>} : vector<168x64xf32>, vector<64x32xf32>, vector<168x32xf32> -> vector<168x32xf32>
    %c1_62 = arith.constant 1 : index
    %c0_63 = arith.constant 0 : index
    %c0_64 = arith.constant 0 : index
    %97 = vector.load %arg9[%c1_62, %c0_63, %c0_64] : memref<5x1x32xf32, #tpu.memory_space<vmem>>, vector<1x1x32xf32>
    %98 = vector.shape_cast %97 : vector<1x1x32xf32> to vector<1x32xf32>
    %99 = vector.broadcast %98 : vector<1x32xf32> to vector<168x32xf32>
    %100 = arith.addf %96, %99 : vector<168x32xf32>
    %c1_65 = arith.constant 1 : index
    %c0_66 = arith.constant 0 : index
    %c0_67 = arith.constant 0 : index
    %101 = vector.load %arg11[%c1_65, %c0_66, %c0_67] : memref<3x1x32xf32, #tpu.memory_space<vmem>>, vector<1x1x32xf32>
    %102 = vector.shape_cast %101 : vector<1x1x32xf32> to vector<1x32xf32>
    %103 = vector.broadcast %102 : vector<1x32xf32> to vector<168x32xf32>
    %104 = arith.addf %100, %103 : vector<168x32xf32>
    %c0_68 = arith.constant 0 : index
    %c0_69 = arith.constant 0 : index
    %105 = vector.load %arg18[%c0_68, %c0_69] : memref<168x32xf32, #tpu.memory_space<vmem>>, vector<168x32xf32>
    tpu.vector_store %arg18[%c0_68, %c0_69], %104 {strides = array<i32>} : memref<168x32xf32, #tpu.memory_space<vmem>>, vector<168x32xf32>,
    %c2_70 = arith.constant 2 : index
    %c0_71 = arith.constant 0 : index
    %c0_72 = arith.constant 0 : index
    %106 = vector.load %arg8[%c2_70, %c0_71, %c0_72] : memref<5x64x32xf32, #tpu.memory_space<vmem>>, vector<1x64x32xf32>
    %107 = vector.shape_cast %106 : vector<1x64x32xf32> to vector<64x32xf32>
    %cst_73 = arith.constant dense<0.000000e+00> : vector<168x32xf32>
    %108 = tpu.matmul %81, %107, %cst_73 {dimension_numbers = #tpu.dot_dimension_numbers<[1], [0], [0], [1], [0, 0, 1, 1], [], []>} : vector<168x64xf32>, vector<64x32xf32>, vector<168x32xf32> -> vector<168x32xf32>
    %c2_74 = arith.constant 2 : index
    %c0_75 = arith.constant 0 : index
    %c0_76 = arith.constant 0 : index
    %109 = vector.load %arg9[%c2_74, %c0_75, %c0_76] : memref<5x1x32xf32, #tpu.memory_space<vmem>>, vector<1x1x32xf32>
    %110 = vector.shape_cast %109 : vector<1x1x32xf32> to vector<1x32xf32>
    %111 = vector.broadcast %110 : vector<1x32xf32> to vector<168x32xf32>
    %112 = arith.addf %108, %111 : vector<168x32xf32>
    %c0_77 = arith.constant 0 : index
    %c0_78 = arith.constant 0 : index
    %113 = vector.load %arg19[%c0_77, %c0_78] : memref<168x32xf32, #tpu.memory_space<vmem>>, vector<168x32xf32>
    tpu.vector_store %arg19[%c0_77, %c0_78], %112 {strides = array<i32>} : memref<168x32xf32, #tpu.memory_space<vmem>>, vector<168x32xf32>,
    %c3 = arith.constant 3 : index
    %c0_79 = arith.constant 0 : index
    %c0_80 = arith.constant 0 : index
    %114 = vector.load %arg8[%c3, %c0_79, %c0_80] : memref<5x64x32xf32, #tpu.memory_space<vmem>>, vector<1x64x32xf32>
    %115 = vector.shape_cast %114 : vector<1x64x32xf32> to vector<64x32xf32>
    %cst_81 = arith.constant dense<0.000000e+00> : vector<168x32xf32>
    %116 = tpu.matmul %81, %115, %cst_81 {dimension_numbers = #tpu.dot_dimension_numbers<[1], [0], [0], [1], [0, 0, 1, 1], [], []>} : vector<168x64xf32>, vector<64x32xf32>, vector<168x32xf32> -> vector<168x32xf32>
    %c3_82 = arith.constant 3 : index
    %c0_83 = arith.constant 0 : index
    %c0_84 = arith.constant 0 : index
    %117 = vector.load %arg9[%c3_82, %c0_83, %c0_84] : memref<5x1x32xf32, #tpu.memory_space<vmem>>, vector<1x1x32xf32>
    %118 = vector.shape_cast %117 : vector<1x1x32xf32> to vector<1x32xf32>
    %119 = vector.broadcast %118 : vector<1x32xf32> to vector<168x32xf32>
    %120 = arith.addf %116, %119 : vector<168x32xf32>
    %121 = arith.negf %120 : vector<168x32xf32>
    %122 = math.exp %121 : vector<168x32xf32>
    %cst_85 = arith.constant 1.000000e+00 : f32
    %123 = vector.broadcast %cst_85 : f32 to vector<168x32xf32>
    %124 = arith.addf %123, %122 : vector<168x32xf32>
    %125 = arith.divf %123, %124 : vector<168x32xf32>
    %c4 = arith.constant 4 : index
    %c0_86 = arith.constant 0 : index
    %c0_87 = arith.constant 0 : index
    %126 = vector.load %arg8[%c4, %c0_86, %c0_87] : memref<5x64x32xf32, #tpu.memory_space<vmem>>, vector<1x64x32xf32>
    %127 = vector.shape_cast %126 : vector<1x64x32xf32> to vector<64x32xf32>
    %cst_88 = arith.constant dense<0.000000e+00> : vector<168x32xf32>
    %128 = tpu.matmul %81, %127, %cst_88 {dimension_numbers = #tpu.dot_dimension_numbers<[1], [0], [0], [1], [0, 0, 1, 1], [], []>} : vector<168x64xf32>, vector<64x32xf32>, vector<168x32xf32> -> vector<168x32xf32>
    %c4_89 = arith.constant 4 : index
    %c0_90 = arith.constant 0 : index
    %c0_91 = arith.constant 0 : index
    %129 = vector.load %arg9[%c4_89, %c0_90, %c0_91] : memref<5x1x32xf32, #tpu.memory_space<vmem>>, vector<1x1x32xf32>
    %130 = vector.shape_cast %129 : vector<1x1x32xf32> to vector<1x32xf32>
    %131 = vector.broadcast %130 : vector<1x32xf32> to vector<168x32xf32>
    %132 = arith.addf %128, %131 : vector<168x32xf32>
    %c0_92 = arith.constant 0 : index
    %c0_93 = arith.constant 0 : index
    %133 = vector.load %arg20[%c0_92, %c0_93] : memref<168x32xf32, #tpu.memory_space<vmem>>, vector<168x32xf32>
    tpu.vector_store %arg20[%c0_92, %c0_93], %125 {strides = array<i32>} : memref<168x32xf32, #tpu.memory_space<vmem>>, vector<168x32xf32>,
    %cst_94 = arith.constant 1.000000e+00 : f32
    %134 = vector.broadcast %cst_94 : f32 to vector<168x32xf32>
    %135 = arith.subf %134, %125 : vector<168x32xf32>
    %136 = arith.mulf %135, %132 : vector<168x32xf32>
    %c0_95 = arith.constant 0 : index
    %c0_96 = arith.constant 0 : index
    %137 = vector.load %arg21[%c0_95, %c0_96] : memref<168x32xf32, #tpu.memory_space<vmem>>, vector<168x32xf32>
    tpu.vector_store %arg21[%c0_95, %c0_96], %136 {strides = array<i32>} : memref<168x32xf32, #tpu.memory_space<vmem>>, vector<168x32xf32>,
    %c0_97 = arith.constant 0 : index
    %c0_98 = arith.constant 0 : index
    %c0_99 = arith.constant 0 : index
    %138 = vector.load %arg10[%c0_97, %c0_98, %c0_99] : memref<3x32x32xf32, #tpu.memory_space<vmem>>, vector<1x32x32xf32>
    %139 = vector.shape_cast %138 : vector<1x32x32xf32> to vector<32x32xf32>
    %c1_100 = arith.constant 1 : index
    %c0_101 = arith.constant 0 : index
    %c0_102 = arith.constant 0 : index
    %140 = vector.load %arg10[%c1_100, %c0_101, %c0_102] : memref<3x32x32xf32, #tpu.memory_space<vmem>>, vector<1x32x32xf32>
    %141 = vector.shape_cast %140 : vector<1x32x32xf32> to vector<32x32xf32>
    %c2_103 = arith.constant 2 : index
    %c0_104 = arith.constant 0 : index
    %c0_105 = arith.constant 0 : index
    %142 = vector.load %arg10[%c2_103, %c0_104, %c0_105] : memref<3x32x32xf32, #tpu.memory_space<vmem>>, vector<1x32x32xf32>
    %143 = vector.shape_cast %142 : vector<1x32x32xf32> to vector<32x32xf32>
    %c2_106 = arith.constant 2 : index
    %c0_107 = arith.constant 0 : index
    %c0_108 = arith.constant 0 : index
    %144 = vector.load %arg11[%c2_106, %c0_107, %c0_108] : memref<3x1x32xf32, #tpu.memory_space<vmem>>, vector<1x1x32xf32>
    %145 = vector.shape_cast %144 : vector<1x1x32xf32> to vector<1x32xf32>
    %cst_109 = arith.constant 0.000000e+00 : f32
    %146 = vector.broadcast %cst_109 : f32 to vector<8x32xf32>
    %c0_i32 = arith.constant 0 : i32
    %c21_i32 = arith.constant 21 : i32
    %147 = arith.addi %c0_i32, %c21_i32 : i32
    %c1_i32 = arith.constant 1 : i32
    %148 = scf.for %arg23 = %c0_i32 to %147 step %c1_i32 iter_args(%arg24 = %146) -> (vector<8x32xf32>)  : i32 {
      %c8_i32 = arith.constant 8 : i32
      %178 = arith.muli %arg23, %c8_i32 : i32
      %179 = tpu.assume_multiple %178, 8 : i32
      %cst_129 = arith.constant dense<0.000000e+00> : vector<8x32xf32>
      %180 = tpu.matmul %arg24, %139, %cst_129 {dimension_numbers = #tpu.dot_dimension_numbers<[1], [0], [0], [1], [0, 0, 1, 1], [], []>} : vector<8x32xf32>, vector<32x32xf32>, vector<8x32xf32> -> vector<8x32xf32>
      %cst_130 = arith.constant dense<0.000000e+00> : vector<8x32xf32>
      %181 = tpu.matmul %arg24, %141, %cst_130 {dimension_numbers = #tpu.dot_dimension_numbers<[1], [0], [0], [1], [0, 0, 1, 1], [], []>} : vector<8x32xf32>, vector<32x32xf32>, vector<8x32xf32> -> vector<8x32xf32>
      %cst_131 = arith.constant dense<0.000000e+00> : vector<8x32xf32>
      %182 = tpu.matmul %arg24, %143, %cst_131 {dimension_numbers = #tpu.dot_dimension_numbers<[1], [0], [0], [1], [0, 0, 1, 1], [], []>} : vector<8x32xf32>, vector<32x32xf32>, vector<8x32xf32> -> vector<8x32xf32>
      %183 = vector.broadcast %145 : vector<1x32xf32> to vector<8x32xf32>
      %184 = arith.addf %182, %183 : vector<8x32xf32>
      %185 = arith.index_cast %179 : i32 to index
      %c0_132 = arith.constant 0 : index
      %186 = vector.load %arg17[%185, %c0_132] : memref<168x32xf32, #tpu.memory_space<vmem>>, vector<8x32xf32>
      %187 = arith.addf %186, %180 : vector<8x32xf32>
      %188 = arith.negf %187 : vector<8x32xf32>
      %189 = math.exp %188 : vector<8x32xf32>
      %cst_133 = arith.constant 1.000000e+00 : f32
      %190 = vector.broadcast %cst_133 : f32 to vector<8x32xf32>
      %191 = arith.addf %190, %189 : vector<8x32xf32>
      %192 = arith.divf %190, %191 : vector<8x32xf32>
      %193 = arith.index_cast %179 : i32 to index
      %c0_134 = arith.constant 0 : index
      %194 = vector.load %arg18[%193, %c0_134] : memref<168x32xf32, #tpu.memory_space<vmem>>, vector<8x32xf32>
      %195 = arith.addf %194, %181 : vector<8x32xf32>
      %196 = arith.negf %195 : vector<8x32xf32>
      %197 = math.exp %196 : vector<8x32xf32>
      %cst_135 = arith.constant 1.000000e+00 : f32
      %198 = vector.broadcast %cst_135 : f32 to vector<8x32xf32>
      %199 = arith.addf %198, %197 : vector<8x32xf32>
      %200 = arith.divf %198, %199 : vector<8x32xf32>
      %201 = arith.index_cast %179 : i32 to index
      %c0_136 = arith.constant 0 : index
      %202 = vector.load %arg19[%201, %c0_136] : memref<168x32xf32, #tpu.memory_space<vmem>>, vector<8x32xf32>
      %203 = arith.mulf %192, %184 : vector<8x32xf32>
      %204 = arith.addf %202, %203 : vector<8x32xf32>
      %205 = math.tanh %204 : vector<8x32xf32>
      %cst_137 = arith.constant 1.000000e+00 : f32
      %206 = vector.broadcast %cst_137 : f32 to vector<8x32xf32>
      %207 = arith.subf %206, %200 : vector<8x32xf32>
      %208 = arith.mulf %207, %205 : vector<8x32xf32>
      %209 = arith.mulf %200, %arg24 : vector<8x32xf32>
      %210 = arith.addf %208, %209 : vector<8x32xf32>
      %211 = arith.index_cast %179 : i32 to index
      %c0_138 = arith.constant 0 : index
      %212 = vector.load %arg20[%211, %c0_138] : memref<168x32xf32, #tpu.memory_space<vmem>>, vector<8x32xf32>
      %213 = arith.mulf %212, %210 : vector<8x32xf32>
      %214 = arith.index_cast %179 : i32 to index
      %c0_139 = arith.constant 0 : index
      %215 = vector.load %arg21[%214, %c0_139] : memref<168x32xf32, #tpu.memory_space<vmem>>, vector<8x32xf32>
      %216 = arith.addf %213, %215 : vector<8x32xf32>
      %217 = arith.index_cast %179 : i32 to index
      %c0_140 = arith.constant 0 : index
      %218 = vector.load %arg22[%217, %c0_140] : memref<168x32xf32, #tpu.memory_space<vmem>>, vector<8x32xf32>
      tpu.vector_store %arg22[%217, %c0_140], %216 {strides = array<i32>} : memref<168x32xf32, #tpu.memory_space<vmem>>, vector<8x32xf32>,
      scf.yield %216 : vector<8x32xf32>
    }
    %c21_i32_110 = arith.constant 21 : i32
    %c0_111 = arith.constant 0 : index
    %c0_112 = arith.constant 0 : index
    %149 = vector.load %arg22[%c0_111, %c0_112] : memref<168x32xf32, #tpu.memory_space<vmem>>, vector<168x32xf32>
    %c0_113 = arith.constant 0 : index
    %c0_114 = arith.constant 0 : index
    %150 = vector.load %arg12[%c0_113, %c0_114] : memref<32x1xf32, #tpu.memory_space<vmem>>, vector<32x1xf32>
    %cst_115 = arith.constant dense<0.000000e+00> : vector<168x1xf32>
    %151 = tpu.matmul %149, %150, %cst_115 {dimension_numbers = #tpu.dot_dimension_numbers<[1], [0], [0], [1], [0, 0, 1, 1], [], []>} : vector<168x32xf32>, vector<32x1xf32>, vector<168x1xf32> -> vector<168x1xf32>
    %c0_116 = arith.constant 0 : index
    %c0_117 = arith.constant 0 : index
    %152 = vector.load %arg13[%c0_116, %c0_117] : memref<1x1xf32, #tpu.memory_space<vmem>>, vector<1x1xf32>
    %153 = vector.broadcast %152 : vector<1x1xf32> to vector<168x1xf32>
    %154 = arith.addf %151, %153 : vector<168x1xf32>
    %155 = vector.shape_cast %154 : vector<168x1xf32> to vector<21x8x1xf32>
    %cst_118 = arith.constant dense<0xFF800000> : vector<8x1xf32>
    %156 = vector.multi_reduction <maximumf>, %155, %cst_118 [0] : vector<21x8x1xf32> to vector<8x1xf32>
    %157 = vector.shape_cast %156 : vector<8x1xf32> to vector<1x8x1xf32>
    %158 = vector.broadcast %157 : vector<1x8x1xf32> to vector<21x8x1xf32>
    %159 = arith.subf %155, %158 : vector<21x8x1xf32>
    %160 = math.exp %159 : vector<21x8x1xf32>
    %cst_119 = arith.constant dense<0.000000e+00> : vector<8x1xf32>
    %161 = vector.multi_reduction <add>, %160, %cst_119 [0] : vector<21x8x1xf32> to vector<8x1xf32>
    %162 = vector.shape_cast %161 : vector<8x1xf32> to vector<1x8x1xf32>
    %163 = tpu.reciprocal %162 {approx = true} : vector<1x8x1xf32> -> vector<1x8x1xf32>
    %164 = vector.broadcast %163 : vector<1x8x1xf32> to vector<21x8x1xf32>
    %165 = arith.mulf %160, %164 : vector<21x8x1xf32>
    %166 = vector.shape_cast %149 : vector<168x32xf32> to vector<21x8x32xf32>
    %167 = vector.broadcast %165 : vector<21x8x1xf32> to vector<21x8x32xf32>
    %168 = arith.mulf %167, %166 : vector<21x8x32xf32>
    %cst_120 = arith.constant dense<0.000000e+00> : vector<8x32xf32>
    %169 = vector.multi_reduction <add>, %168, %cst_120 [0] : vector<21x8x32xf32> to vector<8x32xf32>
    %c0_121 = arith.constant 0 : index
    %c0_122 = arith.constant 0 : index
    %170 = vector.load %arg14[%c0_121, %c0_122] : memref<32x10xf32, #tpu.memory_space<vmem>>, vector<32x10xf32>
    %cst_123 = arith.constant dense<0.000000e+00> : vector<8x10xf32>
    %171 = tpu.matmul %169, %170, %cst_123 {dimension_numbers = #tpu.dot_dimension_numbers<[1], [0], [0], [1], [0, 0, 1, 1], [], []>} : vector<8x32xf32>, vector<32x10xf32>, vector<8x10xf32> -> vector<8x10xf32>
    %c0_124 = arith.constant 0 : index
    %c0_125 = arith.constant 0 : index
    %172 = vector.load %arg15[%c0_124, %c0_125] : memref<1x10xf32, #tpu.memory_space<vmem>>, vector<1x10xf32>
    %173 = vector.broadcast %172 : vector<1x10xf32> to vector<8x10xf32>
    %174 = arith.addf %171, %173 : vector<8x10xf32>
    %c0_126 = arith.constant 0 : index
    %c0_127 = arith.constant 0 : index
    %c0_128 = arith.constant 0 : index
    %175 = vector.load %arg16[%c0_126, %c0_127, %c0_128] : memref<1x8x10xf32, #tpu.memory_space<vmem>>, vector<1x8x10xf32>
    %176 = vector.shape_cast %175 : vector<1x8x10xf32> to vector<8x10xf32>
    %177 = vector.shape_cast %174 : vector<8x10xf32> to vector<1x8x10xf32>
    tpu.vector_store %arg16[%c0_126, %c0_127, %c0_128], %177 {strides = array<i32>} : memref<1x8x10xf32, #tpu.memory_space<vmem>>, vector<1x8x10xf32>,
    return
  }
  func.func @transform_0(%arg0: i32) -> (i32, i32, i32) {
    %c0_i32 = arith.constant 0 : i32
    %c0_i32_0 = arith.constant 0 : i32
    %c0_i32_1 = arith.constant 0 : i32
    return %arg0, %c0_i32, %c0_i32_0 : i32, i32, i32
  }
  func.func @transform_1(%arg0: i32) -> (i32, i32) {
    %c0_i32 = arith.constant 0 : i32
    %c0_i32_0 = arith.constant 0 : i32
    %c0_i32_1 = arith.constant 0 : i32
    return %c0_i32, %c0_i32_0 : i32, i32
  }
  func.func @transform_2(%arg0: i32) -> (i32, i32) {
    %c0_i32 = arith.constant 0 : i32
    %c0_i32_0 = arith.constant 0 : i32
    %c0_i32_1 = arith.constant 0 : i32
    return %c0_i32, %c0_i32_0 : i32, i32
  }
  func.func @transform_3(%arg0: i32) -> (i32, i32, i32) {
    %c0_i32 = arith.constant 0 : i32
    %c0_i32_0 = arith.constant 0 : i32
    %c0_i32_1 = arith.constant 0 : i32
    %c0_i32_2 = arith.constant 0 : i32
    return %c0_i32, %c0_i32_0, %c0_i32_1 : i32, i32, i32
  }
  func.func @transform_4(%arg0: i32) -> (i32, i32) {
    %c0_i32 = arith.constant 0 : i32
    %c0_i32_0 = arith.constant 0 : i32
    %c0_i32_1 = arith.constant 0 : i32
    return %c0_i32, %c0_i32_0 : i32, i32
  }
  func.func @transform_5(%arg0: i32) -> (i32, i32, i32) {
    %c0_i32 = arith.constant 0 : i32
    %c0_i32_0 = arith.constant 0 : i32
    %c0_i32_1 = arith.constant 0 : i32
    %c0_i32_2 = arith.constant 0 : i32
    return %c0_i32, %c0_i32_0, %c0_i32_1 : i32, i32, i32
  }
  func.func @transform_6(%arg0: i32) -> (i32, i32) {
    %c0_i32 = arith.constant 0 : i32
    %c0_i32_0 = arith.constant 0 : i32
    %c0_i32_1 = arith.constant 0 : i32
    return %c0_i32, %c0_i32_0 : i32, i32
  }
  func.func @transform_7(%arg0: i32) -> (i32, i32, i32) {
    %c0_i32 = arith.constant 0 : i32
    %c0_i32_0 = arith.constant 0 : i32
    %c0_i32_1 = arith.constant 0 : i32
    %c0_i32_2 = arith.constant 0 : i32
    return %c0_i32, %c0_i32_0, %c0_i32_1 : i32, i32, i32
  }
  func.func @transform_8(%arg0: i32) -> (i32, i32, i32) {
    %c0_i32 = arith.constant 0 : i32
    %c0_i32_0 = arith.constant 0 : i32
    %c0_i32_1 = arith.constant 0 : i32
    %c0_i32_2 = arith.constant 0 : i32
    return %c0_i32, %c0_i32_0, %c0_i32_1 : i32, i32, i32
  }
  func.func @transform_9(%arg0: i32) -> (i32, i32, i32) {
    %c0_i32 = arith.constant 0 : i32
    %c0_i32_0 = arith.constant 0 : i32
    %c0_i32_1 = arith.constant 0 : i32
    %c0_i32_2 = arith.constant 0 : i32
    return %c0_i32, %c0_i32_0, %c0_i32_1 : i32, i32, i32
  }
  func.func @transform_10(%arg0: i32) -> (i32, i32, i32) {
    %c0_i32 = arith.constant 0 : i32
    %c0_i32_0 = arith.constant 0 : i32
    %c0_i32_1 = arith.constant 0 : i32
    %c0_i32_2 = arith.constant 0 : i32
    return %c0_i32, %c0_i32_0, %c0_i32_1 : i32, i32, i32
  }
  func.func @transform_11(%arg0: i32) -> (i32, i32) {
    %c0_i32 = arith.constant 0 : i32
    %c0_i32_0 = arith.constant 0 : i32
    %c0_i32_1 = arith.constant 0 : i32
    return %c0_i32, %c0_i32_0 : i32, i32
  }
  func.func @transform_12(%arg0: i32) -> (i32, i32) {
    %c0_i32 = arith.constant 0 : i32
    %c0_i32_0 = arith.constant 0 : i32
    %c0_i32_1 = arith.constant 0 : i32
    return %c0_i32, %c0_i32_0 : i32, i32
  }
  func.func @transform_13(%arg0: i32) -> (i32, i32) {
    %c0_i32 = arith.constant 0 : i32
    %c0_i32_0 = arith.constant 0 : i32
    %c0_i32_1 = arith.constant 0 : i32
    return %c0_i32, %c0_i32_0 : i32, i32
  }
  func.func @transform_14(%arg0: i32) -> (i32, i32) {
    %c0_i32 = arith.constant 0 : i32
    %c0_i32_0 = arith.constant 0 : i32
    %c0_i32_1 = arith.constant 0 : i32
    return %c0_i32, %c0_i32_0 : i32, i32
  }
  func.func @transform_15(%arg0: i32) -> (i32, i32, i32) {
    %c0_i32 = arith.constant 0 : i32
    %c0_i32_0 = arith.constant 0 : i32
    %c0_i32_1 = arith.constant 0 : i32
    return %arg0, %c0_i32, %c0_i32_0 : i32, i32, i32
  }
}

</mosaic_0001>

<bundles_post_ra>
// kernel: reverse.1
= control target key start
LH: loop header
LB: loop body
LE: loop exit
PB: predicated region body
PF: predicated region fallthrough
CT: control target
= control target key end

     0   :  { %v2_v0 = vlaneseq  ;;  %s318_s0 = inlined_call_operand.vmem [shape: f32[2,256], index: 0, kind: input, shape index: {}]   ;;  %s319_s1 = inlined_call_operand.vmem [shape: f32[2,256], index: 1, kind: output, shape index: {}]  }
   0x2   :  { %v3_v1 = vsub.s32 127, %v2_v0 }
   0x4   :  { %4 = vset.pattern.permute.xlu0 %v3_v1 }
   0x5   :  { %s278_s6 = smov 0   ;;  %s280_s7 = smov 0  }
   0x6   :  { %s282_s8 = smov 0  }
   0x7 LB: > { %s208_s9 = sadd.s32 4294967295, %s266_s8   ;;  %s19_s10 = sadd.s32 1, %s262_s7  ;;  %s266_s8 = sphi %s282_s8, %s10_s8   ;;  %s262_s7 = sphi %s280_s7, %s321_s7   ;;  %s258_s6 = sphi %s278_s6, %s320_s6  }
   0x8   : > { %p20_p0 = scmp.ge.s32.totalorder %s19_s10, 2  ;;  %p210_p1 = scmp.ge.s32.totalorder %s266_s8, 2 }
   0x9   : > { %s38_s11 = sand.u32 (!%p210_p1), 1, %s266_s8   ;;  %s41_s12 = ssub.s32 (!%p210_p1), 1, %s262_s7 }
   0xa   : > { %s323_s10 = smov (%p20_p0, %s19_s10), 0  ;;  %36 = sbr.rel (%p210_p1) target bundleno = 17 (0x11), region = 16 }
   0xb   : > { %s211_s13 = sshll.u32 (!%p210_p1), %s38_s11, 1  ;;  %s212_s14 = sshll.u32 (!%p210_p1), %s41_s12, 1 }
   0xc   : > { %s45_s17 = scalar_lea.vmem (!%p210_p1), %s318_s0, %s212_s14  ;;  %s40_s18 = scalar_lea.vmem (!%p210_p1), [#allocation1], %s211_s13 }
   0xf   : > { %v62_v2 = vld [vmem:[%s45_s17] sm:$0x3] }
  0x10   : > { %63 = vst [vmem:[%s40_s18] sm:$0x3] %v62_v2 }
  0x11 PF: > { %p213_p2 = scmp.ge.s32.totalorder %s266_s8, 1  ;;  %p80_p3 = scmp.lt.s32.totalorder %s266_s8, 3 }
  0x13   : > { %p81_p4 = pnand %p213_p2, %p80_p3 }
  0x14   : > { %s91_s19 = sand.u32 (!%p81_p4), 1, %s208_s9   ;;  %s217_s23 = sshll.u32 (!%p81_p4), %s258_s6, 1 }
  0x15   : > { %84 = sbr.rel (%p81_p4) target bundleno = 176 (0xb0), region = 50  ;;  %s214_s20 = sshll.u32 (!%p81_p4), %s91_s19, 1 }
  0x16   : > { %s93_s21 = scalar_lea.vmem (!%p81_p4), [#allocation1], %s214_s20  ;;  %s97_s22 = scalar_lea.vmem (!%p81_p4), [#allocation3], %s214_s20 }
  0x17   : > { %s123_s26 = scalar_lea.vmem (!%p81_p4), %s319_s1, %s217_s23 }
  0x1a   : > { %v101_v3 = vld [vmem:[%s93_s21] sm:$0x3] }
  0x1b   : > { %102 = vst [vmem:[#allocation0] sm:$0x3] %v101_v3 }
  0x22   : > { %v104_v4 = vld [vmem:[#allocation0] sm:$0xff] }
  0x23   : > { %105 = vperm.xlu0 %4, %v104_v4  }
  0x9e   : > { %v106_v5 = vpop.permute.xlu0 %105 }
  0x9f   : > { %107 = vst [vmem:[#allocation2] sm:$0xff] %v106_v5 }
  0xa6   : > { %v112_v6 = vld [vmem:[#allocation2] sm:$0x3] }
  0xa7   : > { %115 = vst [vmem:[%s97_s22] sm:$0x3] %v112_v6 }
  0xae   : > { %v140_v7 = vld [vmem:[%s97_s22] sm:$0x3] }
  0xaf   : > { %141 = vst [vmem:[%s123_s26] sm:$0x3] %v140_v7 }
  0xb0 PF: > { %s10_s8 = sadd.s32 1, %s266_s8   ;;  %s320_s6 = smov %s262_s7 }
  0xb1   : > { %p7_p5 = scmp.ge.s32.totalorder %s10_s8, 4   ;;  %s321_s7 = smov %s323_s10 }
  0xb3   :  { %9 = sbr.rel (!%p7_p5) target bundleno = 7 (0x7), region = 110 }

// kernel: phi_hgru_forward.1
= control target key start
LH: loop header
LB: loop body
LE: loop exit
PB: predicated region body
PF: predicated region fallthrough
CT: control target
= control target key end

     0   :  { %vm1568_vm0 = vcmask 523264   ;;  %vm7435_vm1 = vmmov 0   ;;  %vm3450_vm4 = vcmask 261120   ;;  %s12009_s1 = inlined_call_operand.vmem [shape: f32[512,512], index: 1, kind: input, shape index: {}]   ;;  %s12010_s11 = inlined_call_operand.vmem [shape: f32[32,1], index: 11, kind: input, shape index: {}]   ;;  %s12011_s12 = inlined_call_operand.<no memory space> [shape: f32[1,1], index: 12, kind: input, shape index: {}]   ;;  %s12012_s13 = inlined_call_operand.vmem [shape: f32[32,10], index: 13, kind: input, shape index: {}]   ;;  %s12013_s14 = inlined_call_operand.vmem [shape: f32[1,10], index: 14, kind: input, shape index: {}]   ;;  %s12014_s15 = inlined_call_operand.vmem [shape: f32[1,8,10], index: 15, kind: output, shape index: {}]   ;;  %s12015_s0 = inlined_call_operand.vmem [shape: f32[1,168,512], index: 0, kind: input, shape index: {}]   ;;  %s12016_s2 = inlined_call_operand.vmem [shape: f32[256,64], index: 2, kind: input, shape index: {}]   ;;  %s12017_s3 = inlined_call_operand.vmem [shape: f32[3,64,64], index: 3, kind: input, shape index: {}]   ;;  %s12018_s5 = inlined_call_operand.vmem [shape: f32[3,64,64], index: 5, kind: input, shape index: {}]   ;;  %s12019_s4 = inlined_call_operand.vmem [shape: f32[1,64], index: 4, kind: input, shape index: {}]   ;;  %s12020_s7 = inlined_call_operand.vmem [shape: f32[5,64,32], index: 7, kind: input, shape index: {}]   ;;  %s12021_s6 = inlined_call_operand.vmem [shape: f32[1,64], index: 6, kind: input, shape index: {}]   ;;  %s12022_s10 = inlined_call_operand.vmem [shape: f32[3,1,32], index: 10, kind: input, shape index: {}]   ;;  %s12023_s8 = inlined_call_operand.vmem [shape: f32[5,1,32], index: 8, kind: input, shape index: {}]   ;;  %s12024_s9 = inlined_call_operand.vmem [shape: f32[3,32,32], index: 9, kind: input, shape index: {}]  }
   0x1   :  { %v20_v0 = vstv %s12011_s12  ;;  %v197_v1 = vld [vmem:[%s12009_s1 + $0x1e8] sm:$0xff]  ;;  %v196_v3 = vld [vmem:[%s12009_s1 + $0x1e0] sm:$0xff] }
   0x2   :  { %v325_v2 = vld [vmem:[%s12009_s1 + $0x5e8] sm:$0xff]  ;;  %21 = vst [vmem:[#allocation8] sm:$0x1] %v20_v0  ;;  %392 = vmatprep.subr.mxu0 %v197_v1  ;;  %v324_v4 = vld [vmem:[%s12009_s1 + $0x5e0] sm:$0xff] }
   0x3   :  { %583 = vmatprep.subr.mxu1 %v325_v2  ;;  %v193_v5 = vld [vmem:[%s12009_s1 + $0x1c8] sm:$0xff]  ;;  %393 = vmatpush1.msra.mxu0 %v196_v3  ;;  %v192_v7 = vld [vmem:[%s12009_s1 + $0x1c0] sm:$0xff] }
   0x4   :  { %v321_v6 = vld [vmem:[%s12009_s1 + $0x5c8] sm:$0xff]  ;;  %584 = vmatpush1.msra.mxu1 %v324_v4  ;;  %v320_v8 = vld [vmem:[%s12009_s1 + $0x5c0] sm:$0xff]  ;;  %394 = vmatprep.subr.mxu0 %v193_v5 }
   0x5   :  { %v189_v9 = vld [vmem:[%s12009_s1 + $0x1a8] sm:$0xff]  ;;  %585 = vmatprep.subr.mxu1 %v321_v6  ;;  %v188_v11 = vld [vmem:[%s12009_s1 + $0x1a0] sm:$0xff]  ;;  %395 = vmatpush1.msra.mxu0 %v192_v7 }
   0x6   :  { %v317_v10 = vld [vmem:[%s12009_s1 + $0x5a8] sm:$0xff]  ;;  %v316_v12 = vld [vmem:[%s12009_s1 + $0x5a0] sm:$0xff]  ;;  %586 = vmatpush1.msra.mxu1 %v320_v8  ;;  %396 = vmatprep.subr.mxu0 %v189_v9 }
   0x7   :  { %v185_v13 = vld [vmem:[%s12009_s1 + $0x188] sm:$0xff]  ;;  %587 = vmatprep.subr.mxu1 %v317_v10  ;;  %v184_v15 = vld [vmem:[%s12009_s1 + $0x180] sm:$0xff]  ;;  %397 = vmatpush1.msra.mxu0 %v188_v11 }
   0x8   :  { %v313_v14 = vld [vmem:[%s12009_s1 + $0x588] sm:$0xff]  ;;  %v312_v16 = vld [vmem:[%s12009_s1 + $0x580] sm:$0xff]  ;;  %588 = vmatpush1.msra.mxu1 %v316_v12  ;;  %398 = vmatprep.subr.mxu0 %v185_v13 }
   0x9   :  { %v181_v17 = vld [vmem:[%s12009_s1 + $0x168] sm:$0xff]  ;;  %589 = vmatprep.subr.mxu1 %v313_v14  ;;  %v180_v19 = vld [vmem:[%s12009_s1 + $0x160] sm:$0xff]  ;;  %399 = vmatpush1.msra.mxu0 %v184_v15 }
   0xa   :  { %v309_v18 = vld [vmem:[%s12009_s1 + $0x568] sm:$0xff]  ;;  %v308_v20 = vld [vmem:[%s12009_s1 + $0x560] sm:$0xff]  ;;  %590 = vmatpush1.msra.mxu1 %v312_v16  ;;  %400 = vmatprep.subr.mxu0 %v181_v17 }
   0xb   :  { %v177_v21 = vld [vmem:[%s12009_s1 + $0x148] sm:$0xff]  ;;  %591 = vmatprep.subr.mxu1 %v309_v18  ;;  %v176_v23 = vld [vmem:[%s12009_s1 + $0x140] sm:$0xff]  ;;  %401 = vmatpush1.msra.mxu0 %v180_v19 }
   0xc   :  { %v305_v22 = vld [vmem:[%s12009_s1 + $0x548] sm:$0xff]  ;;  %v304_v24 = vld [vmem:[%s12009_s1 + $0x540] sm:$0xff]  ;;  %592 = vmatpush1.msra.mxu1 %v308_v20  ;;  %402 = vmatprep.subr.mxu0 %v177_v21 }
   0xd   :  { %v173_v25 = vld [vmem:[%s12009_s1 + $0x128] sm:$0xff]  ;;  %593 = vmatprep.subr.mxu1 %v305_v22  ;;  %v172_v27 = vld [vmem:[%s12009_s1 + $0x120] sm:$0xff]  ;;  %403 = vmatpush1.msra.mxu0 %v176_v23 }
   0xe   :  { %v301_v26 = vld [vmem:[%s12009_s1 + $0x528] sm:$0xff]  ;;  %v300_v28 = vld [vmem:[%s12009_s1 + $0x520] sm:$0xff]  ;;  %594 = vmatpush1.msra.mxu1 %v304_v24  ;;  %404 = vmatprep.subr.mxu0 %v173_v25 }
   0xf   :  { %v169_v29 = vld [vmem:[%s12009_s1 + $0x108] sm:$0xff]  ;;  %595 = vmatprep.subr.mxu1 %v301_v26  ;;  %v168_v31 = vld [vmem:[%s12009_s1 + $0x100] sm:$0xff]  ;;  %405 = vmatpush1.msra.mxu0 %v172_v27 }
  0x10   :  { %v297_v30 = vld [vmem:[%s12009_s1 + $0x508] sm:$0xff]  ;;  %v296_v32 = vld [vmem:[%s12009_s1 + $0x500] sm:$0xff]  ;;  %596 = vmatpush1.msra.mxu1 %v300_v28  ;;  %406 = vmatprep.subr.mxu0 %v169_v29 }
  0x11   :  { %v165_v33 = vld [vmem:[%s12009_s1 + $0xe8] sm:$0xff]  ;;  %597 = vmatprep.subr.mxu1 %v297_v30  ;;  %v164_v35 = vld [vmem:[%s12009_s1 + $0xe0] sm:$0xff]  ;;  %407 = vmatpush1.msra.mxu0 %v168_v31 }
  0x12   :  { %v293_v34 = vld [vmem:[%s12009_s1 + $0x4e8] sm:$0xff]  ;;  %v292_v36 = vld [vmem:[%s12009_s1 + $0x4e0] sm:$0xff]  ;;  %598 = vmatpush1.msra.mxu1 %v296_v32  ;;  %408 = vmatprep.subr.mxu0 %v165_v33 }
  0x13   :  { %v161_v37 = vld [vmem:[%s12009_s1 + $0xc8] sm:$0xff]  ;;  %599 = vmatprep.subr.mxu1 %v293_v34  ;;  %v160_v39 = vld [vmem:[%s12009_s1 + $0xc0] sm:$0xff]  ;;  %409 = vmatpush1.msra.mxu0 %v164_v35 }
  0x14   :  { %v289_v38 = vld [vmem:[%s12009_s1 + $0x4c8] sm:$0xff]  ;;  %v288_v40 = vld [vmem:[%s12009_s1 + $0x4c0] sm:$0xff]  ;;  %600 = vmatpush1.msra.mxu1 %v292_v36  ;;  %410 = vmatprep.subr.mxu0 %v161_v37 }
  0x15   :  { %v157_v41 = vld [vmem:[%s12009_s1 + $0xa8] sm:$0xff]  ;;  %601 = vmatprep.subr.mxu1 %v289_v38  ;;  %v156_v43 = vld [vmem:[%s12009_s1 + $0xa0] sm:$0xff]  ;;  %411 = vmatpush1.msra.mxu0 %v160_v39 }
  0x16   :  { %v285_v42 = vld [vmem:[%s12009_s1 + $0x4a8] sm:$0xff]  ;;  %v284_v44 = vld [vmem:[%s12009_s1 + $0x4a0] sm:$0xff]  ;;  %602 = vmatpush1.msra.mxu1 %v288_v40  ;;  %412 = vmatprep.subr.mxu0 %v157_v41 }
  0x17   :  { %v153_v45 = vld [vmem:[%s12009_s1 + $0x88] sm:$0xff]  ;;  %603 = vmatprep.subr.mxu1 %v285_v42  ;;  %v152_v47 = vld [vmem:[%s12009_s1 + $0x80] sm:$0xff]  ;;  %413 = vmatpush1.msra.mxu0 %v156_v43 }
  0x18   :  { %v281_v46 = vld [vmem:[%s12009_s1 + $0x488] sm:$0xff]  ;;  %v280_v48 = vld [vmem:[%s12009_s1 + $0x480] sm:$0xff]  ;;  %604 = vmatpush1.msra.mxu1 %v284_v44  ;;  %414 = vmatprep.subr.mxu0 %v153_v45 }
  0x19   :  { %v149_v49 = vld [vmem:[%s12009_s1 + $0x68] sm:$0xff]  ;;  %605 = vmatprep.subr.mxu1 %v281_v46  ;;  %v148_v51 = vld [vmem:[%s12009_s1 + $0x60] sm:$0xff]  ;;  %415 = vmatpush1.msra.mxu0 %v152_v47 }
  0x1a   :  { %v277_v50 = vld [vmem:[%s12009_s1 + $0x468] sm:$0xff]  ;;  %v276_v52 = vld [vmem:[%s12009_s1 + $0x460] sm:$0xff]  ;;  %606 = vmatpush1.msra.mxu1 %v280_v48  ;;  %416 = vmatprep.subr.mxu0 %v149_v49 }
  0x1b   :  { %v145_v53 = vld [vmem:[%s12009_s1 + $0x48] sm:$0xff]  ;;  %607 = vmatprep.subr.mxu1 %v277_v50  ;;  %v144_v55 = vld [vmem:[%s12009_s1 + $0x40] sm:$0xff]  ;;  %417 = vmatpush1.msra.mxu0 %v148_v51 }
  0x1c   :  { %v273_v54 = vld [vmem:[%s12009_s1 + $0x448] sm:$0xff]  ;;  %v272_v56 = vld [vmem:[%s12009_s1 + $0x440] sm:$0xff]  ;;  %608 = vmatpush1.msra.mxu1 %v276_v52  ;;  %418 = vmatprep.subr.mxu0 %v145_v53 }
  0x1d   :  { %v141_v57 = vld [vmem:[%s12009_s1 + $0x28] sm:$0xff]  ;;  %609 = vmatprep.subr.mxu1 %v273_v54  ;;  %v140_v59 = vld [vmem:[%s12009_s1 + $0x20] sm:$0xff]  ;;  %419 = vmatpush1.msra.mxu0 %v144_v55 }
  0x1e   :  { %v269_v58 = vld [vmem:[%s12009_s1 + $0x428] sm:$0xff]  ;;  %v268_v60 = vld [vmem:[%s12009_s1 + $0x420] sm:$0xff]  ;;  %610 = vmatpush1.msra.mxu1 %v272_v56  ;;  %420 = vmatprep.subr.mxu0 %v141_v57 }
  0x1f   :  { %v137_v61 = vld [vmem:[%s12009_s1 + $0x8] sm:$0xff]  ;;  %611 = vmatprep.subr.mxu1 %v269_v58  ;;  %v136_v63 = vld [vmem:[%s12009_s1] sm:$0xff]  ;;  %421 = vmatpush1.msra.mxu0 %v140_v59 }
  0x20   :  { %v265_v62 = vld [vmem:[%s12009_s1 + $0x408] sm:$0xff]  ;;  %v264_v0 = vld [vmem:[%s12009_s1 + $0x400] sm:$0xff]  ;;  %612 = vmatpush1.msra.mxu1 %v268_v60  ;;  %422 = vmatprep.subr.mxu0 %v137_v61 }
  0x21   :  { %v261_v1 = vld [vmem:[%s12009_s1 + $0x3e8] sm:$0xff]  ;;  %613 = vmatprep.subr.mxu1 %v265_v62  ;;  %v260_v3 = vld [vmem:[%s12009_s1 + $0x3e0] sm:$0xff]  ;;  %423 = vmatpush1.msra.mxu0 %v136_v63 }
  0x22   :  { %v389_v2 = vld [vmem:[%s12009_s1 + $0x7e8] sm:$0xff]  ;;  %v388_v4 = vld [vmem:[%s12009_s1 + $0x7e0] sm:$0xff]  ;;  %614 = vmatpush1.msra.mxu1 %v264_v0  ;;  %424 = vmatprep.subr.mxu0 %v261_v1 }
  0x23   :  { %v257_v5 = vld [vmem:[%s12009_s1 + $0x3c8] sm:$0xff]  ;;  %615 = vmatprep.subr.mxu1 %v389_v2  ;;  %v256_v7 = vld [vmem:[%s12009_s1 + $0x3c0] sm:$0xff]  ;;  %425 = vmatpush2.msra.mxu0 %v260_v3  ;;  %v7914_v2 = vld [vmem:[%s12015_s0 + $0x18] sm:$0xff] }
  0x24   :  { %v385_v6 = vld [vmem:[%s12009_s1 + $0x7c8] sm:$0xff]  ;;  %v384_v8 = vld [vmem:[%s12009_s1 + $0x7c0] sm:$0xff]  ;;  %616 = vmatpush2.msra.mxu1 %v388_v4  ;;  %426 = vmatprep.subr.mxu0 %v257_v5  ;;  %v7924_v4 = vld [vmem:[%s12015_s0 + $0x10] sm:$0xff] }
  0x25   :  { %v253_v9 = vld [vmem:[%s12009_s1 + $0x3a8] sm:$0xff]  ;;  %617 = vmatprep.subr.mxu1 %v385_v6  ;;  %v252_v11 = vld [vmem:[%s12009_s1 + $0x3a0] sm:$0xff]  ;;  %427 = vmatpush2.msra.mxu0 %v256_v7  ;;  %v199_v5 = vld [vmem:[%s12009_s1 + $0x1f8] sm:$0xff] }
  0x26   :  { %v381_v10 = vld [vmem:[%s12009_s1 + $0x7a8] sm:$0xff]  ;;  %v380_v12 = vld [vmem:[%s12009_s1 + $0x7a0] sm:$0xff]  ;;  %618 = vmatpush2.msra.mxu1 %v384_v8  ;;  %428 = vmatprep.subr.mxu0 %v253_v9  ;;  %v327_v6 = vld [vmem:[%s12009_s1 + $0x5f8] sm:$0xff] }
  0x27   :  { %v249_v13 = vld [vmem:[%s12009_s1 + $0x388] sm:$0xff]  ;;  %619 = vmatprep.subr.mxu1 %v381_v10  ;;  %v248_v15 = vld [vmem:[%s12009_s1 + $0x380] sm:$0xff]  ;;  %429 = vmatpush2.msra.mxu0 %v252_v11  ;;  %v198_v7 = vld [vmem:[%s12009_s1 + $0x1f0] sm:$0xff] }
  0x28   :  { %v377_v14 = vld [vmem:[%s12009_s1 + $0x788] sm:$0xff]  ;;  %v376_v16 = vld [vmem:[%s12009_s1 + $0x780] sm:$0xff]  ;;  %620 = vmatpush2.msra.mxu1 %v380_v12  ;;  %430 = vmatprep.subr.mxu0 %v249_v13  ;;  %v326_v8 = vld [vmem:[%s12009_s1 + $0x5f0] sm:$0xff] }
  0x29   :  { %v245_v17 = vld [vmem:[%s12009_s1 + $0x368] sm:$0xff]  ;;  %621 = vmatprep.subr.mxu1 %v377_v14  ;;  %v244_v19 = vld [vmem:[%s12009_s1 + $0x360] sm:$0xff]  ;;  %431 = vmatpush2.msra.mxu0 %v248_v15  ;;  %v7950_v10 = vld [vmem:[%s12015_s0 + $0x38] sm:$0xff] }
  0x2a   :  { %v373_v18 = vld [vmem:[%s12009_s1 + $0x768] sm:$0xff]  ;;  %v372_v20 = vld [vmem:[%s12009_s1 + $0x760] sm:$0xff]  ;;  %622 = vmatpush2.msra.mxu1 %v376_v16  ;;  %432 = vmatprep.subr.mxu0 %v245_v17  ;;  %v195_v11 = vld [vmem:[%s12009_s1 + $0x1d8] sm:$0xff] }
  0x2b   :  { %v241_v21 = vld [vmem:[%s12009_s1 + $0x348] sm:$0xff]  ;;  %623 = vmatprep.subr.mxu1 %v373_v18  ;;  %v240_v23 = vld [vmem:[%s12009_s1 + $0x340] sm:$0xff]  ;;  %433 = vmatpush2.msra.mxu0 %v244_v19  ;;  %v323_v12 = vld [vmem:[%s12009_s1 + $0x5d8] sm:$0xff] }
  0x2c   :  { %v369_v22 = vld [vmem:[%s12009_s1 + $0x748] sm:$0xff]  ;;  %v368_v24 = vld [vmem:[%s12009_s1 + $0x740] sm:$0xff]  ;;  %624 = vmatpush2.msra.mxu1 %v372_v20  ;;  %434 = vmatprep.subr.mxu0 %v241_v21  ;;  %v7966_v14 = vld [vmem:[%s12015_s0 + $0x30] sm:$0xff] }
  0x2d   :  { %v237_v25 = vld [vmem:[%s12009_s1 + $0x328] sm:$0xff]  ;;  %625 = vmatprep.subr.mxu1 %v369_v22  ;;  %v236_v27 = vld [vmem:[%s12009_s1 + $0x320] sm:$0xff]  ;;  %435 = vmatpush2.msra.mxu0 %v240_v23  ;;  %v194_v15 = vld [vmem:[%s12009_s1 + $0x1d0] sm:$0xff] }
  0x2e   :  { %v365_v26 = vld [vmem:[%s12009_s1 + $0x728] sm:$0xff]  ;;  %v364_v28 = vld [vmem:[%s12009_s1 + $0x720] sm:$0xff]  ;;  %626 = vmatpush2.msra.mxu1 %v368_v24  ;;  %436 = vmatprep.subr.mxu0 %v237_v25  ;;  %v322_v16 = vld [vmem:[%s12009_s1 + $0x5d0] sm:$0xff] }
  0x2f   :  { %v233_v29 = vld [vmem:[%s12009_s1 + $0x308] sm:$0xff]  ;;  %627 = vmatprep.subr.mxu1 %v365_v26  ;;  %v232_v31 = vld [vmem:[%s12009_s1 + $0x300] sm:$0xff]  ;;  %437 = vmatpush2.msra.mxu0 %v236_v27  ;;  %v191_v17 = vld [vmem:[%s12009_s1 + $0x1b8] sm:$0xff] }
  0x30   :  { %v361_v30 = vld [vmem:[%s12009_s1 + $0x708] sm:$0xff]  ;;  %v360_v32 = vld [vmem:[%s12009_s1 + $0x700] sm:$0xff]  ;;  %628 = vmatpush2.msra.mxu1 %v364_v28  ;;  %438 = vmatprep.subr.mxu0 %v233_v29  ;;  %v319_v18 = vld [vmem:[%s12009_s1 + $0x5b8] sm:$0xff] }
  0x31   :  { %v229_v33 = vld [vmem:[%s12009_s1 + $0x2e8] sm:$0xff]  ;;  %629 = vmatprep.subr.mxu1 %v361_v30  ;;  %v228_v35 = vld [vmem:[%s12009_s1 + $0x2e0] sm:$0xff]  ;;  %439 = vmatpush2.msra.mxu0 %v232_v31  ;;  %v7992_v20 = vld [vmem:[%s12015_s0 + $0x58] sm:$0xff] }
  0x32   :  { %v357_v34 = vld [vmem:[%s12009_s1 + $0x6e8] sm:$0xff]  ;;  %v356_v36 = vld [vmem:[%s12009_s1 + $0x6e0] sm:$0xff]  ;;  %630 = vmatpush2.msra.mxu1 %v360_v32  ;;  %440 = vmatprep.subr.mxu0 %v229_v33  ;;  %v190_v21 = vld [vmem:[%s12009_s1 + $0x1b0] sm:$0xff] }
  0x33   :  { %v225_v37 = vld [vmem:[%s12009_s1 + $0x2c8] sm:$0xff]  ;;  %631 = vmatprep.subr.mxu1 %v357_v34  ;;  %v224_v39 = vld [vmem:[%s12009_s1 + $0x2c0] sm:$0xff]  ;;  %441 = vmatpush2.msra.mxu0 %v228_v35  ;;  %v318_v22 = vld [vmem:[%s12009_s1 + $0x5b0] sm:$0xff] }
  0x34   :  { %v353_v38 = vld [vmem:[%s12009_s1 + $0x6c8] sm:$0xff]  ;;  %v352_v40 = vld [vmem:[%s12009_s1 + $0x6c0] sm:$0xff]  ;;  %632 = vmatpush2.msra.mxu1 %v356_v36  ;;  %442 = vmatprep.subr.mxu0 %v225_v37  ;;  %v8008_v24 = vld [vmem:[%s12015_s0 + $0x50] sm:$0xff] }
  0x35   :  { %v221_v41 = vld [vmem:[%s12009_s1 + $0x2a8] sm:$0xff]  ;;  %633 = vmatprep.subr.mxu1 %v353_v38  ;;  %v220_v43 = vld [vmem:[%s12009_s1 + $0x2a0] sm:$0xff]  ;;  %443 = vmatpush2.msra.mxu0 %v224_v39  ;;  %v187_v25 = vld [vmem:[%s12009_s1 + $0x198] sm:$0xff] }
  0x36   :  { %v349_v42 = vld [vmem:[%s12009_s1 + $0x6a8] sm:$0xff]  ;;  %v348_v44 = vld [vmem:[%s12009_s1 + $0x6a0] sm:$0xff]  ;;  %634 = vmatpush2.msra.mxu1 %v352_v40  ;;  %444 = vmatprep.subr.mxu0 %v221_v41  ;;  %v315_v26 = vld [vmem:[%s12009_s1 + $0x598] sm:$0xff] }
  0x37   :  { %v217_v45 = vld [vmem:[%s12009_s1 + $0x288] sm:$0xff]  ;;  %635 = vmatprep.subr.mxu1 %v349_v42  ;;  %v216_v47 = vld [vmem:[%s12009_s1 + $0x280] sm:$0xff]  ;;  %445 = vmatpush2.msra.mxu0 %v220_v43  ;;  %v186_v27 = vld [vmem:[%s12009_s1 + $0x190] sm:$0xff] }
  0x38   :  { %v345_v46 = vld [vmem:[%s12009_s1 + $0x688] sm:$0xff]  ;;  %v344_v48 = vld [vmem:[%s12009_s1 + $0x680] sm:$0xff]  ;;  %636 = vmatpush2.msra.mxu1 %v348_v44  ;;  %446 = vmatprep.subr.mxu0 %v217_v45  ;;  %v314_v28 = vld [vmem:[%s12009_s1 + $0x590] sm:$0xff] }
  0x39   :  { %v213_v49 = vld [vmem:[%s12009_s1 + $0x268] sm:$0xff]  ;;  %637 = vmatprep.subr.mxu1 %v345_v46  ;;  %v212_v51 = vld [vmem:[%s12009_s1 + $0x260] sm:$0xff]  ;;  %447 = vmatpush2.msra.mxu0 %v216_v47  ;;  %v8034_v30 = vld [vmem:[%s12015_s0 + $0x78] sm:$0xff] }
  0x3a   :  { %v341_v50 = vld [vmem:[%s12009_s1 + $0x668] sm:$0xff]  ;;  %v340_v52 = vld [vmem:[%s12009_s1 + $0x660] sm:$0xff]  ;;  %638 = vmatpush2.msra.mxu1 %v344_v48  ;;  %448 = vmatprep.subr.mxu0 %v213_v49  ;;  %v183_v31 = vld [vmem:[%s12009_s1 + $0x178] sm:$0xff] }
  0x3b   :  { %v209_v53 = vld [vmem:[%s12009_s1 + $0x248] sm:$0xff]  ;;  %639 = vmatprep.subr.mxu1 %v341_v50  ;;  %v208_v55 = vld [vmem:[%s12009_s1 + $0x240] sm:$0xff]  ;;  %449 = vmatpush2.msra.mxu0 %v212_v51  ;;  %v311_v32 = vld [vmem:[%s12009_s1 + $0x578] sm:$0xff] }
  0x3c   :  { %v337_v54 = vld [vmem:[%s12009_s1 + $0x648] sm:$0xff]  ;;  %v336_v56 = vld [vmem:[%s12009_s1 + $0x640] sm:$0xff]  ;;  %640 = vmatpush2.msra.mxu1 %v340_v52  ;;  %450 = vmatprep.subr.mxu0 %v209_v53  ;;  %v8050_v34 = vld [vmem:[%s12015_s0 + $0x70] sm:$0xff] }
  0x3d   :  { %v205_v57 = vld [vmem:[%s12009_s1 + $0x228] sm:$0xff]  ;;  %641 = vmatprep.subr.mxu1 %v337_v54  ;;  %v204_v59 = vld [vmem:[%s12009_s1 + $0x220] sm:$0xff]  ;;  %451 = vmatpush2.msra.mxu0 %v208_v55  ;;  %v182_v35 = vld [vmem:[%s12009_s1 + $0x170] sm:$0xff] }
  0x3e   :  { %v333_v58 = vld [vmem:[%s12009_s1 + $0x628] sm:$0xff]  ;;  %v332_v60 = vld [vmem:[%s12009_s1 + $0x620] sm:$0xff]  ;;  %642 = vmatpush2.msra.mxu1 %v336_v56  ;;  %452 = vmatprep.subr.mxu0 %v205_v57  ;;  %v310_v36 = vld [vmem:[%s12009_s1 + $0x570] sm:$0xff] }
  0x3f   :  { %v201_v61 = vld [vmem:[%s12009_s1 + $0x208] sm:$0xff]  ;;  %643 = vmatprep.subr.mxu1 %v333_v58  ;;  %v200_v63 = vld [vmem:[%s12009_s1 + $0x200] sm:$0xff]  ;;  %453 = vmatpush2.msra.mxu0 %v204_v59  ;;  %v179_v37 = vld [vmem:[%s12009_s1 + $0x158] sm:$0xff] }
  0x40   :  { %v329_v62 = vld [vmem:[%s12009_s1 + $0x608] sm:$0xff]  ;;  %644 = vmatpush2.msra.mxu1 %v332_v60  ;;  %v328_v1 = vld [vmem:[%s12009_s1 + $0x600] sm:$0xff]  ;;  %454 = vmatprep.subr.mxu0 %v201_v61  ;;  %v307_v38 = vld [vmem:[%s12009_s1 + $0x558] sm:$0xff] }
  0x41   :  { %v7906_v0 = vld [vmem:[%s12015_s0 + $0x8] sm:$0xff]  ;;  %645 = vmatprep.subr.mxu1 %v329_v62  ;;  %v7919_v3 = vld [vmem:[%s12015_s0] sm:$0xff]  ;;  %455 = vmatpush2.msra.mxu0 %v200_v63  ;;  %v8076_v40 = vld [vmem:[%s12015_s0 + $0x98] sm:$0xff] }
  0x42   :  { %456 = vmatprep.mubr.f32.mxu0 %v7906_v0  ;;  %646 = vmatpush2.msra.mxu1 %v328_v1  ;;  %v7945_v9 = vld [vmem:[%s12015_s0 + $0x28] sm:$0xff]  ;;  %v7961_v13 = vld [vmem:[%s12015_s0 + $0x20] sm:$0xff]  ;;  %v178_v41 = vld [vmem:[%s12009_s1 + $0x150] sm:$0xff] }
  0x43   :  { %647 = vmatprep.mubr.f32.mxu1 %v7914_v2  ;;  %457 = vmatmul.mubr.f32.vlgmr.msra.gmra.mxu0 %v7919_v3  ;;  %v7987_v19 = vld [vmem:[%s12015_s0 + $0x48] sm:$0xff]  ;;  %v8003_v23 = vld [vmem:[%s12015_s0 + $0x40] sm:$0xff]  ;;  %v306_v42 = vld [vmem:[%s12009_s1 + $0x550] sm:$0xff] }
  0x44   :  { %648 = vmatmul.mubr.f32.vlgmr.msra.gmra.mxu1 %v7924_v4  ;;  %774 = vmatprep.subr.mxu0 %v199_v5  ;;  %v8029_v29 = vld [vmem:[%s12015_s0 + $0x68] sm:$0xff]  ;;  %v8045_v33 = vld [vmem:[%s12015_s0 + $0x60] sm:$0xff]  ;;  %v8092_v44 = vld [vmem:[%s12015_s0 + $0x90] sm:$0xff] }
  0x45   :  { %965 = vmatprep.subr.mxu1 %v327_v6  ;;  %775 = vmatpush1.msra.mxu0 %v198_v7  ;;  %v8071_v39 = vld [vmem:[%s12015_s0 + $0x88] sm:$0xff]  ;;  %v8087_v43 = vld [vmem:[%s12015_s0 + $0x80] sm:$0xff]  ;;  %v175_v45 = vld [vmem:[%s12009_s1 + $0x138] sm:$0xff] }
  0x46   :  { %966 = vmatpush1.msra.mxu1 %v326_v8  ;;  %462 = vmatprep.mubr.f32.mxu0 %v7945_v9  ;;  %v303_v46 = vld [vmem:[%s12009_s1 + $0x538] sm:$0xff]  ;;  %v174_v47 = vld [vmem:[%s12009_s1 + $0x130] sm:$0xff]  ;;  %v8113_v49 = vld [vmem:[%s12015_s0 + $0xa8] sm:$0xff] }
  0x47   :  { %653 = vmatprep.mubr.f32.mxu1 %v7950_v10  ;;  %776 = vmatprep.subr.mxu0 %v195_v11  ;;  %v302_v48 = vld [vmem:[%s12009_s1 + $0x530] sm:$0xff]  ;;  %v8118_v50 = vld [vmem:[%s12015_s0 + $0xb8] sm:$0xff]  ;;  %v8129_v53 = vld [vmem:[%s12015_s0 + $0xa0] sm:$0xff] }
  0x48   :  { %967 = vmatprep.subr.mxu1 %v323_v12  ;;  %463 = vmatmul.mubr.f32.gmra.mxu0 %v7961_v13  ;;  %v171_v51 = vld [vmem:[%s12009_s1 + $0x118] sm:$0xff]  ;;  %v8134_v54 = vld [vmem:[%s12015_s0 + $0xb0] sm:$0xff]  ;;  %v8161_v61 = vld [vmem:[%s12015_s0 + $0xc8] sm:$0xff] }
  0x49   :  { %654 = vmatmul.mubr.f32.gmra.mxu1 %v7966_v14  ;;  %777 = vmatpush1.msra.mxu0 %v194_v15  ;;  %v299_v52 = vld [vmem:[%s12009_s1 + $0x518] sm:$0xff]  ;;  %v170_v55 = vld [vmem:[%s12009_s1 + $0x110] sm:$0xff]  ;;  %v8171_v63 = vld [vmem:[%s12015_s0 + $0xc0] sm:$0xff] }
  0x4a   :  { %968 = vmatpush1.msra.mxu1 %v322_v16  ;;  %778 = vmatprep.subr.mxu0 %v191_v17  ;;  %v298_v56 = vld [vmem:[%s12009_s1 + $0x510] sm:$0xff]  ;;  %v167_v57 = vld [vmem:[%s12009_s1 + $0xf8] sm:$0xff]  ;;  %v8197_v11 = vld [vmem:[%s12015_s0 + $0xe8] sm:$0xff] }
  0x4b   :  { %969 = vmatprep.subr.mxu1 %v319_v18  ;;  %468 = vmatprep.mubr.f32.mxu0 %v7987_v19  ;;  %v295_v58 = vld [vmem:[%s12009_s1 + $0x4f8] sm:$0xff]  ;;  %v166_v59 = vld [vmem:[%s12009_s1 + $0xf0] sm:$0xff]  ;;  %v8213_v17 = vld [vmem:[%s12015_s0 + $0xe0] sm:$0xff] }
  0x4c   :  { %659 = vmatprep.mubr.f32.mxu1 %v7992_v20  ;;  %779 = vmatpush1.msra.mxu0 %v190_v21  ;;  %v294_v60 = vld [vmem:[%s12009_s1 + $0x4f0] sm:$0xff]  ;;  %v8166_v62 = vld [vmem:[%s12015_s0 + $0xd8] sm:$0xff] }
  0x4d   :  { %970 = vmatpush1.msra.mxu1 %v318_v22  ;;  %469 = vmatmul.mubr.f32.gmra.mxu0 %v8003_v23  ;;  %v8176_v1 = vld [vmem:[%s12015_s0 + $0xd0] sm:$0xff]  ;;  %v163_v5 = vld [vmem:[%s12009_s1 + $0xd8] sm:$0xff] }
  0x4e   :  { %660 = vmatmul.mubr.f32.gmra.mxu1 %v8008_v24  ;;  %780 = vmatprep.subr.mxu0 %v187_v25  ;;  %v291_v6 = vld [vmem:[%s12009_s1 + $0x4d8] sm:$0xff]  ;;  %v162_v7 = vld [vmem:[%s12009_s1 + $0xd0] sm:$0xff] }
  0x4f   :  { %971 = vmatprep.subr.mxu1 %v315_v26  ;;  %781 = vmatpush1.msra.mxu0 %v186_v27  ;;  %v290_v8 = vld [vmem:[%s12009_s1 + $0x4d0] sm:$0xff]  ;;  %v8202_v12 = vld [vmem:[%s12015_s0 + $0xf8] sm:$0xff] }
  0x50   :  { %972 = vmatpush1.msra.mxu1 %v314_v28  ;;  %474 = vmatprep.mubr.f32.mxu0 %v8029_v29  ;;  %v159_v15 = vld [vmem:[%s12009_s1 + $0xb8] sm:$0xff]  ;;  %v8218_v18 = vld [vmem:[%s12015_s0 + $0xf0] sm:$0xff] }
  0x51   :  { %665 = vmatprep.mubr.f32.mxu1 %v8034_v30  ;;  %782 = vmatprep.subr.mxu0 %v183_v31  ;;  %v287_v16 = vld [vmem:[%s12009_s1 + $0x4b8] sm:$0xff]  ;;  %v158_v21 = vld [vmem:[%s12009_s1 + $0xb0] sm:$0xff]  ;;  %v8245_v31 = vld [vmem:[%s12015_s0 + $0x108] sm:$0xff] }
  0x52   :  { %973 = vmatprep.subr.mxu1 %v311_v32  ;;  %475 = vmatmul.mubr.f32.gmra.mxu0 %v8045_v33  ;;  %v286_v22 = vld [vmem:[%s12009_s1 + $0x4b0] sm:$0xff]  ;;  %v155_v25 = vld [vmem:[%s12009_s1 + $0x98] sm:$0xff] }
  0x53   :  { %666 = vmatmul.mubr.f32.gmra.mxu1 %v8050_v34  ;;  %783 = vmatpush1.msra.mxu0 %v182_v35  ;;  %v283_v26 = vld [vmem:[%s12009_s1 + $0x498] sm:$0xff]  ;;  %v154_v27 = vld [vmem:[%s12009_s1 + $0x90] sm:$0xff]  ;;  %v8255_v35 = vld [vmem:[%s12015_s0 + $0x100] sm:$0xff] }
  0x54   :  { %974 = vmatpush1.msra.mxu1 %v310_v36  ;;  %784 = vmatprep.subr.mxu0 %v179_v37  ;;  %v282_v28 = vld [vmem:[%s12009_s1 + $0x490] sm:$0xff]  ;;  %v8250_v32 = vld [vmem:[%s12015_s0 + $0x118] sm:$0xff] }
  0x55   :  { %975 = vmatprep.subr.mxu1 %v307_v38  ;;  %480 = vmatprep.mubr.f32.mxu0 %v8071_v39  ;;  %v8260_v36 = vld [vmem:[%s12015_s0 + $0x110] sm:$0xff]  ;;  %v151_v37 = vld [vmem:[%s12009_s1 + $0x78] sm:$0xff] }
  0x56   :  { %671 = vmatprep.mubr.f32.mxu1 %v8076_v40  ;;  %785 = vmatpush1.msra.mxu0 %v178_v41  ;;  %v279_v38 = vld [vmem:[%s12009_s1 + $0x478] sm:$0xff]  ;;  %v150_v41 = vld [vmem:[%s12009_s1 + $0x70] sm:$0xff] }
  0x57   :  { %976 = vmatpush1.msra.mxu1 %v306_v42  ;;  %481 = vmatmul.mubr.f32.gmra.mxu0 %v8087_v43  ;;  %v278_v42 = vld [vmem:[%s12009_s1 + $0x470] sm:$0xff] }
  0x58   :  { %672 = vmatmul.mubr.f32.gmra.mxu1 %v8092_v44  ;;  %786 = vmatprep.subr.mxu0 %v175_v45  ;;  %v8281_v45 = vld [vmem:[%s12015_s0 + $0x128] sm:$0xff] }
  0x59   :  { %977 = vmatprep.subr.mxu1 %v303_v46  ;;  %787 = vmatpush1.msra.mxu0 %v174_v47  ;;  %v8286_v46 = vld [vmem:[%s12015_s0 + $0x138] sm:$0xff] }
  0x5a   :  { %978 = vmatpush1.msra.mxu1 %v302_v48  ;;  %486 = vmatprep.mubr.f32.mxu0 %v8113_v49  ;;  %v147_v47 = vld [vmem:[%s12009_s1 + $0x58] sm:$0xff] }
  0x5b   :  { %677 = vmatprep.mubr.f32.mxu1 %v8118_v50  ;;  %788 = vmatprep.subr.mxu0 %v171_v51  ;;  %v275_v48 = vld [vmem:[%s12009_s1 + $0x458] sm:$0xff]  ;;  %v8297_v51 = vld [vmem:[%s12015_s0 + $0x120] sm:$0xff] }
  0x5c   :  { %979 = vmatprep.subr.mxu1 %v299_v52  ;;  %487 = vmatmul.mubr.f32.gmra.mxu0 %v8129_v53  ;;  %v8302_v52 = vld [vmem:[%s12015_s0 + $0x130] sm:$0xff] }
  0x5d   :  { %678 = vmatmul.mubr.f32.gmra.mxu1 %v8134_v54  ;;  %789 = vmatpush1.msra.mxu0 %v170_v55  ;;  %v146_v55 = vld [vmem:[%s12009_s1 + $0x50] sm:$0xff] }
  0x5e   :  { %980 = vmatpush1.msra.mxu1 %v298_v56  ;;  %790 = vmatprep.subr.mxu0 %v167_v57  ;;  %v274_v56 = vld [vmem:[%s12009_s1 + $0x450] sm:$0xff]  ;;  %v143_v57 = vld [vmem:[%s12009_s1 + $0x38] sm:$0xff] }
  0x5f   :  { %981 = vmatprep.subr.mxu1 %v295_v58  ;;  %791 = vmatpush1.msra.mxu0 %v166_v59  ;;  %v271_v58 = vld [vmem:[%s12009_s1 + $0x438] sm:$0xff]  ;;  %v142_v59 = vld [vmem:[%s12009_s1 + $0x30] sm:$0xff] }
  0x60   :  { %982 = vmatpush1.msra.mxu1 %v294_v60  ;;  %492 = vmatprep.mubr.f32.mxu0 %v8161_v61  ;;  %v270_v60 = vld [vmem:[%s12009_s1 + $0x430] sm:$0xff] }
  0x61   :  { %683 = vmatprep.mubr.f32.mxu1 %v8166_v62  ;;  %493 = vmatmul.mubr.f32.gmra.mxu0 %v8171_v63 }
  0x62   :  { %684 = vmatmul.mubr.f32.gmra.mxu1 %v8176_v1  ;;  %792 = vmatprep.subr.mxu0 %v163_v5  ;;  %v8329_v5 = vld [vmem:[%s12015_s0 + $0x148] sm:$0xff] }
  0x63   :  { %983 = vmatprep.subr.mxu1 %v291_v6  ;;  %793 = vmatpush1.msra.mxu0 %v162_v7  ;;  %v8334_v6 = vld [vmem:[%s12015_s0 + $0x158] sm:$0xff]  ;;  %v8339_v7 = vld [vmem:[%s12015_s0 + $0x140] sm:$0xff] }
  0x64   :  { %984 = vmatpush1.msra.mxu1 %v290_v8  ;;  %498 = vmatprep.mubr.f32.mxu0 %v8197_v11  ;;  %v8344_v8 = vld [vmem:[%s12015_s0 + $0x150] sm:$0xff] }
  0x65   :  { %689 = vmatprep.mubr.f32.mxu1 %v8202_v12  ;;  %794 = vmatprep.subr.mxu0 %v159_v15  ;;  %v139_v15 = vld [vmem:[%s12009_s1 + $0x18] sm:$0xff] }
  0x66   :  { %985 = vmatprep.subr.mxu1 %v287_v16  ;;  %499 = vmatmul.mubr.f32.gmra.mxu0 %v8213_v17  ;;  %v267_v16 = vld [vmem:[%s12009_s1 + $0x418] sm:$0xff] }
  0x67   :  { %690 = vmatmul.mubr.f32.gmra.mxu1 %v8218_v18  ;;  %795 = vmatpush1.msra.mxu0 %v158_v21  ;;  %v138_v21 = vld [vmem:[%s12009_s1 + $0x10] sm:$0xff] }
  0x68   :  { %986 = vmatpush1.msra.mxu1 %v286_v22  ;;  %796 = vmatprep.subr.mxu0 %v155_v25  ;;  %v266_v22 = vld [vmem:[%s12009_s1 + $0x410] sm:$0xff]  ;;  %v263_v25 = vld [vmem:[%s12009_s1 + $0x3f8] sm:$0xff] }
  0x69   :  { %987 = vmatprep.subr.mxu1 %v283_v26  ;;  %797 = vmatpush1.msra.mxu0 %v154_v27  ;;  %v391_v26 = vld [vmem:[%s12009_s1 + $0x7f8] sm:$0xff]  ;;  %v8371_v27 = vld [vmem:[%s12015_s0 + $0x168] sm:$0xff] }
  0x6a   :  { %988 = vmatpush1.msra.mxu1 %v282_v28  ;;  %504 = vmatprep.mubr.f32.mxu0 %v8245_v31  ;;  %v8376_v28 = vld [vmem:[%s12015_s0 + $0x178] sm:$0xff] }
  0x6b   :  { %695 = vmatprep.mubr.f32.mxu1 %v8250_v32  ;;  %505 = vmatmul.mubr.f32.gmra.mxu0 %v8255_v35 }
  0x6c   :  { %696 = vmatmul.mubr.f32.gmra.mxu1 %v8260_v36  ;;  %798 = vmatprep.subr.mxu0 %v151_v37  ;;  %v262_v37 = vld [vmem:[%s12009_s1 + $0x3f0] sm:$0xff] }
  0x6d   :  { %989 = vmatprep.subr.mxu1 %v279_v38  ;;  %799 = vmatpush1.msra.mxu0 %v150_v41  ;;  %v390_v38 = vld [vmem:[%s12009_s1 + $0x7f0] sm:$0xff]  ;;  %v8387_v41 = vld [vmem:[%s12015_s0 + $0x160] sm:$0xff] }
  0x6e   :  { %990 = vmatpush1.msra.mxu1 %v278_v42  ;;  %510 = vmatprep.mubr.f32.mxu0 %v8281_v45  ;;  %v8392_v42 = vld [vmem:[%s12015_s0 + $0x170] sm:$0xff] }
  0x6f   :  { %701 = vmatprep.mubr.f32.mxu1 %v8286_v46  ;;  %800 = vmatprep.subr.mxu0 %v147_v47  ;;  %v259_v47 = vld [vmem:[%s12009_s1 + $0x3d8] sm:$0xff] }
  0x70   :  { %991 = vmatprep.subr.mxu1 %v275_v48  ;;  %511 = vmatmul.mubr.f32.gmra.mxu0 %v8297_v51  ;;  %v387_v48 = vld [vmem:[%s12009_s1 + $0x7d8] sm:$0xff] }
  0x71   :  { %702 = vmatmul.mubr.f32.gmra.mxu1 %v8302_v52  ;;  %801 = vmatpush1.msra.mxu0 %v146_v55  ;;  %v258_v55 = vld [vmem:[%s12009_s1 + $0x3d0] sm:$0xff] }
  0x72   :  { %992 = vmatpush1.msra.mxu1 %v274_v56  ;;  %802 = vmatprep.subr.mxu0 %v143_v57  ;;  %v386_v56 = vld [vmem:[%s12009_s1 + $0x7d0] sm:$0xff]  ;;  %v8413_v57 = vld [vmem:[%s12015_s0 + $0x188] sm:$0xff] }
  0x73   :  { %993 = vmatprep.subr.mxu1 %v271_v58  ;;  %803 = vmatpush1.msra.mxu0 %v142_v59  ;;  %v8418_v58 = vld [vmem:[%s12015_s0 + $0x198] sm:$0xff]  ;;  %v8423_v59 = vld [vmem:[%s12015_s0 + $0x180] sm:$0xff] }
  0x74   :  { %994 = vmatpush1.msra.mxu1 %v270_v60  ;;  %516 = vmatprep.mubr.f32.mxu0 %v8329_v5  ;;  %v8428_v60 = vld [vmem:[%s12015_s0 + $0x190] sm:$0xff] }
  0x75   :  { %707 = vmatprep.mubr.f32.mxu1 %v8334_v6  ;;  %517 = vmatmul.mubr.f32.gmra.mxu0 %v8339_v7 }
  0x76   :  { %708 = vmatmul.mubr.f32.gmra.mxu1 %v8344_v8  ;;  %804 = vmatprep.subr.mxu0 %v139_v15  ;;  %v255_v15 = vld [vmem:[%s12009_s1 + $0x3b8] sm:$0xff] }
  0x77   :  { %995 = vmatprep.subr.mxu1 %v267_v16  ;;  %805 = vmatpush1.msra.mxu0 %v138_v21  ;;  %v383_v16 = vld [vmem:[%s12009_s1 + $0x7b8] sm:$0xff]  ;;  %v254_v21 = vld [vmem:[%s12009_s1 + $0x3b0] sm:$0xff] }
  0x78   :  { %996 = vmatpush1.msra.mxu1 %v266_v22  ;;  %806 = vmatprep.subr.mxu0 %v263_v25  ;;  %v382_v22 = vld [vmem:[%s12009_s1 + $0x7b0] sm:$0xff]  ;;  %v251_v25 = vld [vmem:[%s12009_s1 + $0x398] sm:$0xff] }
  0x79   :  { %997 = vmatprep.subr.mxu1 %v391_v26  ;;  %522 = vmatprep.mubr.f32.mxu0 %v8371_v27  ;;  %v379_v26 = vld [vmem:[%s12009_s1 + $0x798] sm:$0xff] }
  0x7a   :  { %713 = vmatprep.mubr.f32.mxu1 %v8376_v28  ;;  %807 = vmatpush2.msra.mxu0 %v262_v37  ;;  %v8455_v37 = vld [vmem:[%s12015_s0 + $0x1a8] sm:$0xff] }
  0x7b   :  { %998 = vmatpush2.msra.mxu1 %v390_v38  ;;  %523 = vmatmul.mubr.f32.gmra.mxu0 %v8387_v41  ;;  %v8460_v38 = vld [vmem:[%s12015_s0 + $0x1b8] sm:$0xff] }
  0x7c   :  { %714 = vmatmul.mubr.f32.gmra.mxu1 %v8392_v42  ;;  %808 = vmatprep.subr.mxu0 %v259_v47  ;;  %v250_v47 = vld [vmem:[%s12009_s1 + $0x390] sm:$0xff] }
  0x7d   :  { %999 = vmatprep.subr.mxu1 %v387_v48  ;;  %809 = vmatpush2.msra.mxu0 %v258_v55  ;;  %v378_v48 = vld [vmem:[%s12009_s1 + $0x790] sm:$0xff]  ;;  %v8471_v55 = vld [vmem:[%s12015_s0 + $0x1a0] sm:$0xff] }
  0x7e   :  { %1000 = vmatpush2.msra.mxu1 %v386_v56  ;;  %528 = vmatprep.mubr.f32.mxu0 %v8413_v57  ;;  %v8476_v56 = vld [vmem:[%s12015_s0 + $0x1b0] sm:$0xff] }
  0x7f   :  { %719 = vmatprep.mubr.f32.mxu1 %v8418_v58  ;;  %529 = vmatmul.mubr.f32.gmra.mxu0 %v8423_v59  ;;  %12055 = vst [vmem:[#allocation9_spill] sm:$0xff] %v8476_v56 }
  0x80   :  { %720 = vmatmul.mubr.f32.gmra.mxu1 %v8428_v60  ;;  %810 = vmatprep.subr.mxu0 %v255_v15  ;;  %v247_v15 = vld [vmem:[%s12009_s1 + $0x378] sm:$0xff] }
  0x81   :  { %1001 = vmatprep.subr.mxu1 %v383_v16  ;;  %811 = vmatpush2.msra.mxu0 %v254_v21  ;;  %v375_v16 = vld [vmem:[%s12009_s1 + $0x778] sm:$0xff]  ;;  %v246_v21 = vld [vmem:[%s12009_s1 + $0x370] sm:$0xff] }
  0x82   :  { %1002 = vmatpush2.msra.mxu1 %v382_v22  ;;  %812 = vmatprep.subr.mxu0 %v251_v25  ;;  %v374_v22 = vld [vmem:[%s12009_s1 + $0x770] sm:$0xff]  ;;  %v8497_v25 = vld [vmem:[%s12015_s0 + $0x1c8] sm:$0xff] }
  0x83   :  { %1003 = vmatprep.subr.mxu1 %v379_v26  ;;  %534 = vmatprep.mubr.f32.mxu0 %v8455_v37  ;;  %12056 = vst [vmem:[#allocation10_spill] sm:$0xff] %v8497_v25  ;;  %v8502_v26 = vld [vmem:[%s12015_s0 + $0x1d8] sm:$0xff] }
  0x84   :  { %725 = vmatprep.mubr.f32.mxu1 %v8460_v38  ;;  %813 = vmatpush2.msra.mxu0 %v250_v47  ;;  %12057 = vst [vmem:[#allocation11_spill] sm:$0xff] %v8502_v26  ;;  %v8507_v47 = vld [vmem:[%s12015_s0 + $0x1c0] sm:$0xff] }
  0x85   :  { %1004 = vmatpush2.msra.mxu1 %v378_v48  ;;  %535 = vmatmul.mubr.f32.gmra.mxu0 %v8471_v55  ;;  %12058 = vst [vmem:[#allocation12_spill] sm:$0xff] %v8507_v47  ;;  %v8512_v48 = vld [vmem:[%s12015_s0 + $0x1d0] sm:$0xff] }
  0x86   :  { %726 = vmatmul.mubr.f32.gmra.mxu1 %v8476_v56  ;;  %814 = vmatprep.subr.mxu0 %v247_v15  ;;  %12059 = vst [vmem:[#allocation13_spill] sm:$0xff] %v8512_v48  ;;  %v243_v56 = vld [vmem:[%s12009_s1 + $0x358] sm:$0xff] }
  0x87   :  { %1005 = vmatprep.subr.mxu1 %v375_v16  ;;  %815 = vmatpush2.msra.mxu0 %v246_v21  ;;  %v371_v15 = vld [vmem:[%s12009_s1 + $0x758] sm:$0xff]  ;;  %v242_v16 = vld [vmem:[%s12009_s1 + $0x350] sm:$0xff] }
  0x88   :  { %1006 = vmatpush2.msra.mxu1 %v374_v22  ;;  %540 = vmatprep.mubr.f32.mxu0 %v8497_v25  ;;  %v370_v21 = vld [vmem:[%s12009_s1 + $0x750] sm:$0xff]  ;;  %v239_v22 = vld [vmem:[%s12009_s1 + $0x338] sm:$0xff]  ;;  %v8539_v25 = vld [vmem:[%s12015_s0 + $0x1e8] sm:$0xff] }
  0x89   :  { %731 = vmatprep.mubr.f32.mxu1 %v8502_v26  ;;  %541 = vmatmul.mubr.f32.gmra.mxu0 %v8507_v47  ;;  %v367_v26 = vld [vmem:[%s12009_s1 + $0x738] sm:$0xff]  ;;  %12060 = vst [vmem:[#allocation14_spill] sm:$0xff] %v8539_v25 }
  0x8a   :  { %732 = vmatmul.mubr.f32.gmra.mxu1 %v8512_v48  ;;  %816 = vmatprep.subr.mxu0 %v243_v56  ;;  %v8544_v47 = vld [vmem:[%s12015_s0 + $0x1f8] sm:$0xff]  ;;  %v238_v48 = vld [vmem:[%s12009_s1 + $0x330] sm:$0xff] }
  0x8b   :  { %1007 = vmatprep.subr.mxu1 %v371_v15  ;;  %12061 = vst [vmem:[#allocation15_spill] sm:$0xff] %v8544_v47  ;;  %817 = vmatpush2.msra.mxu0 %v242_v16  ;;  %v366_v56 = vld [vmem:[%s12009_s1 + $0x730] sm:$0xff]  ;;  %v8555_v15 = vld [vmem:[%s12015_s0 + $0x1e0] sm:$0xff] }
  0x8c   :  { %1008 = vmatpush2.msra.mxu1 %v370_v21  ;;  %818 = vmatprep.subr.mxu0 %v239_v22  ;;  %12062 = vst [vmem:[#allocation16_spill] sm:$0xff] %v8555_v15  ;;  %v8560_v16 = vld [vmem:[%s12015_s0 + $0x1f0] sm:$0xff]  ;;  %v235_v21 = vld [vmem:[%s12009_s1 + $0x318] sm:$0xff] }
  0x8d   :  { %1009 = vmatprep.subr.mxu1 %v367_v26  ;;  %12063 = vst [vmem:[#allocation17_spill] sm:$0xff] %v8560_v16  ;;  %546 = vmatprep.mubr.f32.mxu0 %v8539_v25  ;;  %v363_v26 = vld [vmem:[%s12009_s1 + $0x718] sm:$0xff]  ;;  %v234_v22 = vld [vmem:[%s12009_s1 + $0x310] sm:$0xff] }
  0x8e   :  { %737 = vmatprep.mubr.f32.mxu1 %v8544_v47  ;;  %819 = vmatpush2.msra.mxu0 %v238_v48  ;;  %v362_v25 = vld [vmem:[%s12009_s1 + $0x710] sm:$0xff]  ;;  %v8581_v47 = vld [vmem:[%s12015_s0 + $0x208] sm:$0xff]  ;;  %v8586_v48 = vld [vmem:[%s12015_s0 + $0x218] sm:$0xff] }
  0x8f   :  { %1010 = vmatpush2.msra.mxu1 %v366_v56  ;;  %547 = vmatmul.mubr.f32.gmra.mxu0 %v8555_v15  ;;  %12064 = vst [vmem:[#allocation18_spill] sm:$0xff] %v8581_v47  ;;  %12065 = vst [vmem:[#allocation19_spill] sm:$0xff] %v8586_v48  ;;  %v231_v56 = vld [vmem:[%s12009_s1 + $0x2f8] sm:$0xff]  ;;  %v8597_v15 = vld [vmem:[%s12015_s0 + $0x200] sm:$0xff] }
  0x90   :  { %738 = vmatmul.mubr.f32.gmra.mxu1 %v8560_v16  ;;  %820 = vmatprep.subr.mxu0 %v235_v21  ;;  %v359_v16 = vld [vmem:[%s12009_s1 + $0x6f8] sm:$0xff]  ;;  %12066 = vst [vmem:[#allocation20_spill] sm:$0xff] %v8597_v15  ;;  %v8602_v21 = vld [vmem:[%s12015_s0 + $0x210] sm:$0xff] }
  0x91   :  { %1011 = vmatprep.subr.mxu1 %v363_v26  ;;  %821 = vmatpush2.msra.mxu0 %v234_v22  ;;  %12067 = vst [vmem:[#allocation21_spill] sm:$0xff] %v8602_v21  ;;  %v230_v26 = vld [vmem:[%s12009_s1 + $0x2f0] sm:$0xff]  ;;  %v227_v22 = vld [vmem:[%s12009_s1 + $0x2d8] sm:$0xff] }
  0x92   :  { %1012 = vmatpush2.msra.mxu1 %v362_v25  ;;  %552 = vmatprep.mubr.f32.mxu0 %v8581_v47  ;;  %v358_v25 = vld [vmem:[%s12009_s1 + $0x6f0] sm:$0xff]  ;;  %v355_v47 = vld [vmem:[%s12009_s1 + $0x6d8] sm:$0xff] }
  0x93   :  { %743 = vmatprep.mubr.f32.mxu1 %v8586_v48  ;;  %822 = vmatprep.subr.mxu0 %v231_v56  ;;  %v8623_v48 = vld [vmem:[%s12015_s0 + $0x228] sm:$0xff]  ;;  %v226_v56 = vld [vmem:[%s12009_s1 + $0x2d0] sm:$0xff] }
  0x94   :  { %1013 = vmatprep.subr.mxu1 %v359_v16  ;;  %553 = vmatmul.mubr.f32.gmra.mxu0 %v8597_v15  ;;  %12068 = vst [vmem:[#allocation22_spill] sm:$0xff] %v8623_v48  ;;  %v8628_v16 = vld [vmem:[%s12015_s0 + $0x238] sm:$0xff]  ;;  %v8639_v15 = vld [vmem:[%s12015_s0 + $0x220] sm:$0xff] }
  0x95   :  { %744 = vmatmul.mubr.f32.gmra.mxu1 %v8602_v21  ;;  %12069 = vst [vmem:[#allocation23_spill] sm:$0xff] %v8628_v16  ;;  %823 = vmatpush2.msra.mxu0 %v230_v26  ;;  %v354_v21 = vld [vmem:[%s12009_s1 + $0x6d0] sm:$0xff]  ;;  %12070 = vst [vmem:[#allocation24_spill] sm:$0xff] %v8639_v15 }
  0x96   :  { %1014 = vmatpush2.msra.mxu1 %v358_v25  ;;  %824 = vmatprep.subr.mxu0 %v227_v22  ;;  %v8644_v26 = vld [vmem:[%s12015_s0 + $0x230] sm:$0xff]  ;;  %v223_v25 = vld [vmem:[%s12009_s1 + $0x2b8] sm:$0xff] }
  0x97   :  { %1015 = vmatprep.subr.mxu1 %v355_v47  ;;  %12071 = vst [vmem:[#allocation25_spill] sm:$0xff] %v8644_v26  ;;  %558 = vmatprep.mubr.f32.mxu0 %v8623_v48  ;;  %v351_v47 = vld [vmem:[%s12009_s1 + $0x6b8] sm:$0xff]  ;;  %v222_v22 = vld [vmem:[%s12009_s1 + $0x2b0] sm:$0xff] }
  0x98   :  { %749 = vmatprep.mubr.f32.mxu1 %v8628_v16  ;;  %825 = vmatpush2.msra.mxu0 %v226_v56  ;;  %v350_v48 = vld [vmem:[%s12009_s1 + $0x6b0] sm:$0xff]  ;;  %v8665_v16 = vld [vmem:[%s12015_s0 + $0x248] sm:$0xff]  ;;  %v219_v56 = vld [vmem:[%s12009_s1 + $0x298] sm:$0xff] }
  0x99   :  { %1016 = vmatpush2.msra.mxu1 %v354_v21  ;;  %559 = vmatmul.mubr.f32.gmra.mxu0 %v8639_v15  ;;  %12072 = vst [vmem:[#allocation26_spill] sm:$0xff] %v8665_v16  ;;  %v8670_v21 = vld [vmem:[%s12015_s0 + $0x258] sm:$0xff]  ;;  %v8681_v15 = vld [vmem:[%s12015_s0 + $0x240] sm:$0xff] }
  0x9a   :  { %750 = vmatmul.mubr.f32.gmra.mxu1 %v8644_v26  ;;  %12073 = vst [vmem:[#allocation27_spill] sm:$0xff] %v8670_v21  ;;  %826 = vmatprep.subr.mxu0 %v223_v25  ;;  %v347_v26 = vld [vmem:[%s12009_s1 + $0x698] sm:$0xff]  ;;  %12074 = vst [vmem:[#allocation28_spill] sm:$0xff] %v8681_v15  ;;  %v8686_v25 = vld [vmem:[%s12015_s0 + $0x250] sm:$0xff] }
  0x9b   :  { %1017 = vmatprep.subr.mxu1 %v351_v47  ;;  %827 = vmatpush2.msra.mxu0 %v222_v22  ;;  %12075 = vst [vmem:[#allocation29_spill] sm:$0xff] %v8686_v25  ;;  %v218_v47 = vld [vmem:[%s12009_s1 + $0x290] sm:$0xff]  ;;  %v215_v22 = vld [vmem:[%s12009_s1 + $0x278] sm:$0xff] }
  0x9c   :  { %1018 = vmatpush2.msra.mxu1 %v350_v48  ;;  %564 = vmatprep.mubr.f32.mxu0 %v8665_v16  ;;  %v346_v48 = vld [vmem:[%s12009_s1 + $0x690] sm:$0xff]  ;;  %v343_v16 = vld [vmem:[%s12009_s1 + $0x678] sm:$0xff] }
  0x9d   :  { %755 = vmatprep.mubr.f32.mxu1 %v8670_v21  ;;  %828 = vmatprep.subr.mxu0 %v219_v56  ;;  %v8707_v21 = vld [vmem:[%s12015_s0 + $0x268] sm:$0xff]  ;;  %v214_v56 = vld [vmem:[%s12009_s1 + $0x270] sm:$0xff] }
  0x9e   :  { %1019 = vmatprep.subr.mxu1 %v347_v26  ;;  %565 = vmatmul.mubr.f32.gmra.mxu0 %v8681_v15  ;;  %12076 = vst [vmem:[#allocation30_spill] sm:$0xff] %v8707_v21  ;;  %v8712_v26 = vld [vmem:[%s12015_s0 + $0x278] sm:$0xff]  ;;  %v8723_v15 = vld [vmem:[%s12015_s0 + $0x260] sm:$0xff] }
  0x9f   :  { %756 = vmatmul.mubr.f32.gmra.mxu1 %v8686_v25  ;;  %12077 = vst [vmem:[#allocation31_spill] sm:$0xff] %v8712_v26  ;;  %829 = vmatpush2.msra.mxu0 %v218_v47  ;;  %v342_v25 = vld [vmem:[%s12009_s1 + $0x670] sm:$0xff]  ;;  %12078 = vst [vmem:[#allocation32_spill] sm:$0xff] %v8723_v15 }
  0xa0   :  { %1020 = vmatpush2.msra.mxu1 %v346_v48  ;;  %830 = vmatprep.subr.mxu0 %v215_v22  ;;  %v8728_v47 = vld [vmem:[%s12015_s0 + $0x270] sm:$0xff]  ;;  %v211_v48 = vld [vmem:[%s12009_s1 + $0x258] sm:$0xff] }
  0xa1   :  { %1021 = vmatprep.subr.mxu1 %v343_v16  ;;  %12079 = vst [vmem:[#allocation33_spill] sm:$0xff] %v8728_v47  ;;  %570 = vmatprep.mubr.f32.mxu0 %v8707_v21  ;;  %v339_v16 = vld [vmem:[%s12009_s1 + $0x658] sm:$0xff]  ;;  %v210_v22 = vld [vmem:[%s12009_s1 + $0x250] sm:$0xff] }
  0xa2   :  { %761 = vmatprep.mubr.f32.mxu1 %v8712_v26  ;;  %831 = vmatpush2.msra.mxu0 %v214_v56  ;;  %v338_v21 = vld [vmem:[%s12009_s1 + $0x650] sm:$0xff]  ;;  %v8749_v26 = vld [vmem:[%s12015_s0 + $0x288] sm:$0xff]  ;;  %v207_v56 = vld [vmem:[%s12009_s1 + $0x238] sm:$0xff] }
  0xa3   :  { %1022 = vmatpush2.msra.mxu1 %v342_v25  ;;  %571 = vmatmul.mubr.f32.gmra.mxu0 %v8723_v15  ;;  %12080 = vst [vmem:[#allocation34_spill] sm:$0xff] %v8749_v26  ;;  %v8754_v25 = vld [vmem:[%s12015_s0 + $0x298] sm:$0xff]  ;;  %v8765_v15 = vld [vmem:[%s12015_s0 + $0x280] sm:$0xff] }
  0xa4   :  { %762 = vmatmul.mubr.f32.gmra.mxu1 %v8728_v47  ;;  %12081 = vst [vmem:[#allocation35_spill] sm:$0xff] %v8754_v25  ;;  %832 = vmatprep.subr.mxu0 %v211_v48  ;;  %v335_v47 = vld [vmem:[%s12009_s1 + $0x638] sm:$0xff]  ;;  %v8770_v48 = vld [vmem:[%s12015_s0 + $0x290] sm:$0xff] }
  0xa5   :  { %1023 = vmatprep.subr.mxu1 %v339_v16  ;;  %833 = vmatpush2.msra.mxu0 %v210_v22  ;;  %v206_v16 = vld [vmem:[%s12009_s1 + $0x230] sm:$0xff]  ;;  %v203_v22 = vld [vmem:[%s12009_s1 + $0x218] sm:$0xff] }
  0xa6   :  { %1024 = vmatpush2.msra.mxu1 %v338_v21  ;;  %576 = vmatprep.mubr.f32.mxu0 %v8749_v26  ;;  %v334_v21 = vld [vmem:[%s12009_s1 + $0x630] sm:$0xff]  ;;  %v331_v26 = vld [vmem:[%s12009_s1 + $0x618] sm:$0xff] }
  0xa7   :  { %767 = vmatprep.mubr.f32.mxu1 %v8754_v25  ;;  %834 = vmatprep.subr.mxu0 %v207_v56  ;;  %v202_v25 = vld [vmem:[%s12009_s1 + $0x210] sm:$0xff]  ;;  %v1297_v56 = vld [vmem:[%s12016_s2 + $0x78] sm:$0xff] }
  0xa8   :  { %1025 = vmatprep.subr.mxu1 %v335_v47  ;;  %577 = vmatmul.mubr.f32.gmra.mxu0 %v8765_v15  ;;  %v330_v47 = vld [vmem:[%s12009_s1 + $0x610] sm:$0xff] }
  0xa9   :  { %768 = vmatmul.mubr.f32.gmra.mxu1 %v8770_v48  ;;  %835 = vmatpush2.msra.mxu0 %v206_v16  ;;  %v12052_v16 = vmov 0.0  }
  0xaa   :  { %1026 = vmatpush2.msra.mxu1 %v334_v21  ;;  %836 = vmatprep.subr.mxu0 %v203_v22  ;;  %v1303_v21 = vld [vmem:[%s12016_s2 + $0xa8] sm:$0xff] }
  0xab   :  { %1027 = vmatprep.subr.mxu1 %v331_v26  ;;  %837 = vmatpush2.msra.mxu0 %v202_v25  ;;  %v1304_v26 = vld [vmem:[%s12016_s2 + $0xb0] sm:$0xff] }
  0xac   :  { %838 = vmatprep.mubr.f32.mxu0 %v7906_v0  ;;  %1028 = vmatpush2.msra.mxu1 %v330_v47  ;;  %v1296_v0 = vld [vmem:[%s12016_s2 + $0x70] sm:$0xff] }
  0xad   :  { %1029 = vmatprep.mubr.f32.mxu1 %v7914_v2  ;;  %839 = vmatmul.mubr.f32.vlgmr.msra.gmra.mxu0 %v7919_v3  ;;  %v1295_v2 = vld [vmem:[%s12016_s2 + $0x68] sm:$0xff]  ;;  %v1294_v3 = vld [vmem:[%s12016_s2 + $0x60] sm:$0xff] }
  0xae   :  { %1030 = vmatmul.mubr.f32.vlgmr.msra.gmra.mxu1 %v7924_v4  ;;  %844 = vmatprep.mubr.f32.mxu0 %v7945_v9  ;;  %v1293_v4 = vld [vmem:[%s12016_s2 + $0x58] sm:$0xff]  ;;  %v1292_v9 = vld [vmem:[%s12016_s2 + $0x50] sm:$0xff] }
  0xaf   :  { %1035 = vmatprep.mubr.f32.mxu1 %v7950_v10  ;;  %1314 = vmatprep.subr.mxu0 %v12052_v16  ;;  %v1291_v10 = vld [vmem:[%s12016_s2 + $0x48] sm:$0xff] }
  0xb0   :  { %6219 = vmatprep.subr.mxu1 %v12052_v16  ;;  %1315 = vmatpush1.msra.mxu0 %v1297_v56 }
  0xb1   :  { %845 = vmatmul.mubr.f32.gmra.mxu0 %v7961_v13  ;;  %1316 = vmatprep.subr.mxu0 %v12052_v16  ;;  %v1290_v13 = vld [vmem:[%s12016_s2 + $0x40] sm:$0xff] }
  0xb2   :  { %1036 = vmatmul.mubr.f32.gmra.mxu1 %v7966_v14  ;;  %850 = vmatprep.mubr.f32.mxu0 %v7987_v19  ;;  %v1289_v14 = vld [vmem:[%s12016_s2 + $0x38] sm:$0xff]  ;;  %v1288_v19 = vld [vmem:[%s12016_s2 + $0x30] sm:$0xff] }
  0xb3   :  { %1041 = vmatprep.mubr.f32.mxu1 %v7992_v20  ;;  %1317 = vmatpush1.msra.mxu0 %v1296_v0  ;;  %v1287_v20 = vld [vmem:[%s12016_s2 + $0x28] sm:$0xff]  ;;  %v1302_v0 = vld [vmem:[%s12016_s2 + $0xa0] sm:$0xff] }
  0xb4   :  { %1318 = vmatprep.subr.mxu0 %v12052_v16 }
  0xb5   :  { %851 = vmatmul.mubr.f32.gmra.mxu0 %v8003_v23  ;;  %v1286_v23 = vld [vmem:[%s12016_s2 + $0x20] sm:$0xff] }
  0xb6   :  { %1042 = vmatmul.mubr.f32.gmra.mxu1 %v8008_v24  ;;  %856 = vmatprep.mubr.f32.mxu0 %v8029_v29  ;;  %v1285_v24 = vld [vmem:[%s12016_s2 + $0x18] sm:$0xff] }
  0xb7   :  { %1047 = vmatprep.mubr.f32.mxu1 %v8034_v30  ;;  %1319 = vmatpush1.msra.mxu0 %v1295_v2  ;;  %v12082_v29 = vld [vmem:[#allocation9_spill] sm:$0xff] }
  0xb8   :  { %1320 = vmatprep.subr.mxu0 %v12052_v16  ;;  %v1284_v30 = vld [vmem:[%s12016_s2 + $0x10] sm:$0xff]  ;;  %v1301_v2 = vld [vmem:[%s12016_s2 + $0x98] sm:$0xff] }
  0xb9   :  { %857 = vmatmul.mubr.f32.gmra.mxu0 %v8045_v33  ;;  %v12083_v33 = vld [vmem:[#allocation10_spill] sm:$0xff] }
  0xba   :  { %1048 = vmatmul.mubr.f32.gmra.mxu1 %v8050_v34  ;;  %862 = vmatprep.mubr.f32.mxu0 %v8071_v39  ;;  %v12084_v34 = vld [vmem:[#allocation11_spill] sm:$0xff]  ;;  %v12085_v39 = vld [vmem:[#allocation12_spill] sm:$0xff] }
  0xbb   :  { %1053 = vmatprep.mubr.f32.mxu1 %v8076_v40  ;;  %1321 = vmatpush1.msra.mxu0 %v1294_v3  ;;  %v12086_v40 = vld [vmem:[#allocation13_spill] sm:$0xff] }
  0xbc   :  { %1322 = vmatprep.subr.mxu0 %v12052_v16 }
  0xbd   :  { %863 = vmatmul.mubr.f32.gmra.mxu0 %v8087_v43  ;;  %v1283_v43 = vld [vmem:[%s12016_s2 + $0x8] sm:$0xff] }
  0xbe   :  { %1054 = vmatmul.mubr.f32.gmra.mxu1 %v8092_v44  ;;  %868 = vmatprep.mubr.f32.mxu0 %v8113_v49  ;;  %v12087_v44 = vld [vmem:[#allocation14_spill] sm:$0xff]  ;;  %v12088_v49 = vld [vmem:[#allocation15_spill] sm:$0xff] }
  0xbf   :  { %1059 = vmatprep.mubr.f32.mxu1 %v8118_v50  ;;  %1323 = vmatpush1.msra.mxu0 %v1293_v4  ;;  %v12089_v50 = vld [vmem:[#allocation16_spill] sm:$0xff] }
  0xc0   :  { %1324 = vmatprep.subr.mxu0 %v12052_v16 }
  0xc1   :  { %869 = vmatmul.mubr.f32.gmra.mxu0 %v8129_v53  ;;  %v12090_v53 = vld [vmem:[#allocation17_spill] sm:$0xff] }
  0xc2   :  { %1060 = vmatmul.mubr.f32.gmra.mxu1 %v8134_v54  ;;  %874 = vmatprep.mubr.f32.mxu0 %v8161_v61  ;;  %v1282_v54 = vld [vmem:[%s12016_s2] sm:$0xff] }
  0xc3   :  { %1065 = vmatprep.mubr.f32.mxu1 %v8166_v62  ;;  %1325 = vmatpush1.msra.mxu0 %v1292_v9  ;;  %v12091_v61 = vld [vmem:[#allocation18_spill] sm:$0xff]  ;;  %v12092_v62 = vld [vmem:[#allocation19_spill] sm:$0xff] }
  0xc4   :  { %1326 = vmatprep.subr.mxu0 %v12052_v16 }
  0xc5   :  { %875 = vmatmul.mubr.f32.gmra.mxu0 %v8171_v63  ;;  %v12093_v63 = vld [vmem:[#allocation20_spill] sm:$0xff] }
  0xc6   :  { %1066 = vmatmul.mubr.f32.gmra.mxu1 %v8176_v1  ;;  %880 = vmatprep.mubr.f32.mxu0 %v8197_v11  ;;  %v12094_v1 = vld [vmem:[#allocation21_spill] sm:$0xff] }
  0xc7   :  { %1071 = vmatprep.mubr.f32.mxu1 %v8202_v12  ;;  %1327 = vmatpush1.msra.mxu0 %v1291_v10  ;;  %v1313_v11 = vld [vmem:[%s12016_s2 + $0xf8] sm:$0xff]  ;;  %v1300_v10 = vld [vmem:[%s12016_s2 + $0x90] sm:$0xff] }
  0xc8   :  { %1328 = vmatprep.subr.mxu0 %v12052_v16  ;;  %v12095_v12 = vld [vmem:[#allocation22_spill] sm:$0xff] }
  0xc9   :  { %881 = vmatmul.mubr.f32.gmra.mxu0 %v8213_v17  ;;  %v12096_v17 = vld [vmem:[#allocation23_spill] sm:$0xff] }
  0xca   :  { %1072 = vmatmul.mubr.f32.gmra.mxu1 %v8218_v18  ;;  %886 = vmatprep.mubr.f32.mxu0 %v8245_v31  ;;  %v12097_v18 = vld [vmem:[#allocation24_spill] sm:$0xff]  ;;  %v12098_v31 = vld [vmem:[#allocation25_spill] sm:$0xff] }
  0xcb   :  { %1077 = vmatprep.mubr.f32.mxu1 %v8250_v32  ;;  %1329 = vmatpush1.msra.mxu0 %v1290_v13  ;;  %v1312_v32 = vld [vmem:[%s12016_s2 + $0xf0] sm:$0xff] }
  0xcc   :  { %1330 = vmatprep.subr.mxu0 %v12052_v16 }
  0xcd   :  { %887 = vmatmul.mubr.f32.gmra.mxu0 %v8255_v35  ;;  %v12099_v35 = vld [vmem:[#allocation26_spill] sm:$0xff] }
  0xce   :  { %1078 = vmatmul.mubr.f32.gmra.mxu1 %v8260_v36  ;;  %892 = vmatprep.mubr.f32.mxu0 %v8281_v45  ;;  %v12100_v36 = vld [vmem:[#allocation27_spill] sm:$0xff]  ;;  %v12101_v45 = vld [vmem:[#allocation28_spill] sm:$0xff] }
  0xcf   :  { %1083 = vmatprep.mubr.f32.mxu1 %v8286_v46  ;;  %1331 = vmatpush1.msra.mxu0 %v1289_v14  ;;  %v12102_v46 = vld [vmem:[#allocation29_spill] sm:$0xff] }
  0xd0   :  { %1332 = vmatprep.subr.mxu0 %v12052_v16 }
  0xd1   :  { %893 = vmatmul.mubr.f32.gmra.mxu0 %v8297_v51  ;;  %v1311_v51 = vld [vmem:[%s12016_s2 + $0xe8] sm:$0xff] }
  0xd2   :  { %1084 = vmatmul.mubr.f32.gmra.mxu1 %v8302_v52  ;;  %898 = vmatprep.mubr.f32.mxu0 %v8329_v5  ;;  %v12103_v52 = vld [vmem:[#allocation30_spill] sm:$0xff]  ;;  %v12104_v5 = vld [vmem:[#allocation31_spill] sm:$0xff] }
  0xd3   :  { %1089 = vmatprep.mubr.f32.mxu1 %v8334_v6  ;;  %1333 = vmatpush1.msra.mxu0 %v1288_v19  ;;  %v12105_v6 = vld [vmem:[#allocation32_spill] sm:$0xff] }
  0xd4   :  { %1334 = vmatprep.subr.mxu0 %v12052_v16  ;;  %v1299_v19 = vld [vmem:[%s12016_s2 + $0x88] sm:$0xff] }
  0xd5   :  { %899 = vmatmul.mubr.f32.gmra.mxu0 %v8339_v7  ;;  %v12106_v7 = vld [vmem:[#allocation33_spill] sm:$0xff] }
  0xd6   :  { %1090 = vmatmul.mubr.f32.gmra.mxu1 %v8344_v8  ;;  %904 = vmatprep.mubr.f32.mxu0 %v8371_v27  ;;  %v1310_v8 = vld [vmem:[%s12016_s2 + $0xe0] sm:$0xff] }
  0xd7   :  { %1095 = vmatprep.mubr.f32.mxu1 %v8376_v28  ;;  %1335 = vmatpush1.msra.mxu0 %v1287_v20  ;;  %v12107_v27 = vld [vmem:[#allocation34_spill] sm:$0xff]  ;;  %v12108_v28 = vld [vmem:[#allocation35_spill] sm:$0xff] }
  0xd8   :  { %1336 = vmatprep.subr.mxu0 %v12052_v16 }
  0xd9   :  { %905 = vmatmul.mubr.f32.gmra.mxu0 %v8387_v41  ;;  %v1309_v41 = vld [vmem:[%s12016_s2 + $0xd8] sm:$0xff] }
  0xda   :  { %1096 = vmatmul.mubr.f32.gmra.mxu1 %v8392_v42  ;;  %910 = vmatprep.mubr.f32.mxu0 %v8413_v57  ;;  %v1308_v42 = vld [vmem:[%s12016_s2 + $0xd0] sm:$0xff]  ;;  %v1307_v57 = vld [vmem:[%s12016_s2 + $0xc8] sm:$0xff] }
  0xdb   :  { %1101 = vmatprep.mubr.f32.mxu1 %v8418_v58  ;;  %1337 = vmatpush1.msra.mxu0 %v1286_v23  ;;  %v1306_v58 = vld [vmem:[%s12016_s2 + $0xc0] sm:$0xff] }
  0xdc   :  { %1338 = vmatprep.subr.mxu0 %v12052_v16 }
  0xdd   :  { %911 = vmatmul.mubr.f32.gmra.mxu0 %v8423_v59 }
  0xde   :  { %1102 = vmatmul.mubr.f32.gmra.mxu1 %v8428_v60  ;;  %916 = vmatprep.mubr.f32.mxu0 %v8455_v37 }
  0xdf   :  { %1107 = vmatprep.mubr.f32.mxu1 %v8460_v38  ;;  %1339 = vmatpush1.msra.mxu0 %v1285_v24  ;;  %v1305_v38 = vld [vmem:[%s12016_s2 + $0xb8] sm:$0xff]  ;;  %v1298_v24 = vld [vmem:[%s12016_s2 + $0x80] sm:$0xff] }
  0xe0   :  { %1340 = vmatprep.subr.mxu0 %v12052_v16 }
  0xe1   :  { %917 = vmatmul.mubr.f32.gmra.mxu0 %v8471_v55 }
  0xe2   :  { %1108 = vmatmul.mubr.f32.gmra.mxu1 %v12082_v29  ;;  %922 = vmatprep.mubr.f32.mxu0 %v12083_v33 }
  0xe3   :  { %1113 = vmatprep.mubr.f32.mxu1 %v12084_v34  ;;  %1341 = vmatpush1.msra.mxu0 %v1284_v30 }
  0xe4   :  { %1342 = vmatprep.subr.mxu0 %v12052_v16 }
  0xe5   :  { %923 = vmatmul.mubr.f32.gmra.mxu0 %v12085_v39 }
  0xe6   :  { %1114 = vmatmul.mubr.f32.gmra.mxu1 %v12086_v40  ;;  %928 = vmatprep.mubr.f32.mxu0 %v12087_v44 }
  0xe7   :  { %1119 = vmatprep.mubr.f32.mxu1 %v12088_v49  ;;  %1343 = vmatpush1.msra.mxu0 %v1283_v43 }
  0xe8   :  { %1344 = vmatprep.subr.mxu0 %v12052_v16 }
  0xe9   :  { %929 = vmatmul.mubr.f32.gmra.mxu0 %v12089_v50 }
  0xea   :  { %1120 = vmatmul.mubr.f32.gmra.mxu1 %v12090_v53  ;;  %934 = vmatprep.mubr.f32.mxu0 %v12091_v61 }
  0xeb   :  { %1125 = vmatprep.mubr.f32.mxu1 %v12092_v62  ;;  %1345 = vmatpush1.msra.mxu0 %v1282_v54 }
  0xec   :  { %1346 = vmatprep.subr.mxu0 %v12052_v16 }
  0xed   :  { %935 = vmatmul.mubr.f32.gmra.mxu0 %v12093_v63 }
  0xee   :  { %1126 = vmatmul.mubr.f32.gmra.mxu1 %v12094_v1  ;;  %940 = vmatprep.mubr.f32.mxu0 %v12095_v12 }
  0xef   :  { %1131 = vmatprep.mubr.f32.mxu1 %v12096_v17  ;;  %1347 = vmatpush2.msra.mxu0 %v1313_v11 }
  0xf0   :  { %1348 = vmatprep.subr.mxu0 %v12052_v16 }
  0xf1   :  { %941 = vmatmul.mubr.f32.gmra.mxu0 %v12097_v18 }
  0xf2   :  { %1132 = vmatmul.mubr.f32.gmra.mxu1 %v12098_v31  ;;  %946 = vmatprep.mubr.f32.mxu0 %v12099_v35 }
  0xf3   :  { %1137 = vmatprep.mubr.f32.mxu1 %v12100_v36  ;;  %1349 = vmatpush2.msra.mxu0 %v1312_v32 }
  0xf4   :  { %1350 = vmatprep.subr.mxu0 %v12052_v16 }
  0xf5   :  { %947 = vmatmul.mubr.f32.gmra.mxu0 %v12101_v45 }
  0xf6   :  { %1138 = vmatmul.mubr.f32.gmra.mxu1 %v12102_v46  ;;  %952 = vmatprep.mubr.f32.mxu0 %v12103_v52 }
  0xf7   :  { %1143 = vmatprep.mubr.f32.mxu1 %v12104_v5  ;;  %1351 = vmatpush2.msra.mxu0 %v1311_v51 }
  0xf8   :  { %1352 = vmatprep.subr.mxu0 %v12052_v16 }
  0xf9   :  { %953 = vmatmul.mubr.f32.gmra.mxu0 %v12105_v6 }
  0xfa   :  { %1144 = vmatmul.mubr.f32.gmra.mxu1 %v12106_v7  ;;  %958 = vmatprep.mubr.f32.mxu0 %v12107_v27 }
  0xfb   :  { %1149 = vmatprep.mubr.f32.mxu1 %v12108_v28  ;;  %1353 = vmatpush2.msra.mxu0 %v1310_v8 }
  0xfc   :  { %1354 = vmatprep.subr.mxu0 %v12052_v16 }
  0xfd   :  { %959 = vmatmul.mubr.f32.gmra.mxu0 %v8765_v15 }
  0xfe   :  { %1150 = vmatmul.mubr.f32.gmra.mxu1 %v8770_v48  ;;  %1355 = vmatpush2.msra.mxu0 %v1309_v41 }
  0xff   :  { %1356 = vmatprep.subr.mxu0 %v12052_v16 }
 0x100   :  { %1357 = vmatpush2.msra.mxu0 %v1308_v42 }
 0x101   :  { %1358 = vmatprep.subr.mxu0 %v12052_v16 }
 0x102   :  { %1359 = vmatpush2.msra.mxu0 %v1307_v57 }
 0x103   :  { %v458_v59 = vpop.f32.mrf.mxu0  ;;  %1360 = vmatprep.subr.mxu0 %v12052_v16 }
 0x104   :  { %v649_v60 = vpop.f32.mrf.mxu1  ;;  %1361 = vmatpush2.msra.mxu0 %v1306_v58 }
 0x105   :  { %v8974_v37 = vadd.f32 %v649_v60, %v458_v59  ;;  %v8980_v55 = vpop.f32.mrf.mxu0  ;;  %1362 = vmatprep.subr.mxu0 %v12052_v16 }
 0x106   :  { %v8982_v15 = vpop.f32.mrf.mxu1  ;;  %1363 = vmatpush2.msra.mxu0 %v1305_v38 }
 0x107   :  { %1364 = vmatprep.subr.mxu0 %v12052_v16 }
 0x108   :  { %v464_v25 = vpop.f32.mrf.mxu0  ;;  %1365 = vmatpush2.msra.mxu0 %v1304_v26 }
 0x109   :  { %v655_v48 = vpop.f32.mrf.mxu1  ;;  %1366 = vmatprep.subr.mxu0 %v12052_v16 }
 0x10a   :  { %v8992_v22 = vadd.f32 %v655_v48, %v464_v25  ;;  %v8994_v47 = vpop.f32.mrf.mxu0  ;;  %1367 = vmatpush2.msra.mxu0 %v1303_v21 }
 0x10b   :  { %v8996_v56 = vpop.f32.mrf.mxu1  ;;  %1368 = vmatprep.subr.mxu0 %v12052_v16 }
 0x10c   :  { %1369 = vmatpush2.msra.mxu0 %v1302_v0 }
 0x10d   :  { %v470_v3 = vpop.f32.mrf.mxu0  ;;  %1370 = vmatprep.subr.mxu0 %v12052_v16 }
 0x10e   :  { %v661_v4 = vpop.f32.mrf.mxu1  ;;  %1371 = vmatpush2.msra.mxu0 %v1301_v2 }
 0x10f   :  { %v9006_v9 = vadd.f32 %v661_v4, %v470_v3  ;;  %v9012_v13 = vpop.f32.mrf.mxu0  ;;  %1372 = vmatprep.subr.mxu0 %v12052_v16 }
 0x110   :  { %v9014_v14 = vpop.f32.mrf.mxu1  ;;  %1373 = vmatpush2.msra.mxu0 %v1300_v10 }
 0x111   :  { %1374 = vmatprep.subr.mxu0 %v12052_v16 }
 0x112   :  { %v476_v20 = vpop.f32.mrf.mxu0  ;;  %1375 = vmatpush2.msra.mxu0 %v1299_v19 }
 0x113   :  { %v667_v23 = vpop.f32.mrf.mxu1  ;;  %1376 = vmatprep.subr.mxu0 %v12052_v16 }
 0x114   :  { %v9024_v29 = vadd.f32 %v667_v23, %v476_v20  ;;  %v9026_v30 = vpop.f32.mrf.mxu0  ;;  %1377 = vmatpush2.msra.mxu0 %v1298_v24 }
 0x115   :  { %v9028_v33 = vpop.f32.mrf.mxu1  ;;  %6298 = vmatprep.subr.mxu0 %v12052_v16 }
 0x117   :  { %v482_v34 = vpop.f32.mrf.mxu0 }
 0x118   :  { %v673_v39 = vpop.f32.mrf.mxu1 }
 0x119   :  { %v9032_v40 = vadd.f32 %v673_v39, %v482_v34  ;;  %v9034_v43 = vpop.f32.mrf.mxu0 }
 0x11a   :  { %v9036_v44 = vpop.f32.mrf.mxu1 }
 0x11c   :  { %v488_v49 = vpop.f32.mrf.mxu0 }
 0x11d   :  { %v679_v50 = vpop.f32.mrf.mxu1 }
 0x11e   :  { %v9038_v53 = vadd.f32 %v679_v50, %v488_v49  ;;  %v9040_v54 = vpop.f32.mrf.mxu0 }
 0x11f   :  { %v9042_v61 = vpop.f32.mrf.mxu1 }
 0x121   :  { %v494_v62 = vpop.f32.mrf.mxu0 }
 0x122   :  { %v685_v63 = vpop.f32.mrf.mxu1 }
 0x123   :  { %v9044_v1 = vadd.f32 %v685_v63, %v494_v62  ;;  %v9046_v11 = vpop.f32.mrf.mxu0 }
 0x124   :  { %v9048_v12 = vpop.f32.mrf.mxu1 }
 0x126   :  { %v500_v17 = vpop.f32.mrf.mxu0 }
 0x127   :  { %v691_v18 = vpop.f32.mrf.mxu1 }
 0x128   :  { %v9050_v31 = vadd.f32 %v691_v18, %v500_v17  ;;  %v9052_v32 = vpop.f32.mrf.mxu0 }
 0x129   :  { %v9054_v35 = vpop.f32.mrf.mxu1 }
 0x12b   :  { %v506_v36 = vpop.f32.mrf.mxu0 }
 0x12c   :  { %v697_v45 = vpop.f32.mrf.mxu1 }
 0x12d   :  { %v9056_v46 = vadd.f32 %v697_v45, %v506_v36  ;;  %v9058_v51 = vpop.f32.mrf.mxu0 }
 0x12e   :  { %v9060_v52 = vpop.f32.mrf.mxu1 }
 0x130   :  { %v512_v5 = vpop.f32.mrf.mxu0 }
 0x131   :  { %v703_v6 = vpop.f32.mrf.mxu1 }
 0x132   :  { %v9062_v7 = vadd.f32 %v703_v6, %v512_v5  ;;  %v9064_v8 = vpop.f32.mrf.mxu0 }
 0x133   :  { %v9066_v27 = vpop.f32.mrf.mxu1 }
 0x135   :  { %v518_v28 = vpop.f32.mrf.mxu0 }
 0x136   :  { %v709_v41 = vpop.f32.mrf.mxu1 }
 0x137   :  { %v9068_v42 = vadd.f32 %v709_v41, %v518_v28  ;;  %v9070_v57 = vpop.f32.mrf.mxu0 }
 0x138   :  { %v9072_v58 = vpop.f32.mrf.mxu1 }
 0x13b   :  { %v524_v59 = vpop.f32.mrf.mxu0 }
 0x13c   :  { %v715_v60 = vpop.f32.mrf.mxu1 }
 0x13d   :  { %v9074_v38 = vadd.f32 %v715_v60, %v524_v59  ;;  %v9076_v26 = vpop.f32.mrf.mxu0 }
 0x13e   :  { %v9078_v25 = vpop.f32.mrf.mxu1 }
 0x13f   :  { %v530_v48 = vpop.f32.mrf.mxu0 }
 0x140   :  { %v721_v21 = vpop.f32.mrf.mxu1 }
 0x141   :  { %v9080_v0 = vadd.f32 %v721_v21, %v530_v48  ;;  %v9082_v2 = vpop.f32.mrf.mxu0 }
 0x142   :  { %v9084_v3 = vpop.f32.mrf.mxu1 }
 0x145   :  { %v536_v4 = vpop.f32.mrf.mxu0 }
 0x146   :  { %v727_v10 = vpop.f32.mrf.mxu1 }
 0x147   :  { %v9086_v19 = vadd.f32 %v727_v10, %v536_v4  ;;  %v9088_v20 = vpop.f32.mrf.mxu0 }
 0x148   :  { %v9090_v23 = vpop.f32.mrf.mxu1 }
 0x149   :  { %v542_v24 = vpop.f32.mrf.mxu0 }
 0x14a   :  { %v733_v34 = vpop.f32.mrf.mxu1 }
 0x14b   :  { %v9092_v39 = vadd.f32 %v733_v34, %v542_v24  ;;  %v9094_v49 = vpop.f32.mrf.mxu0 }
 0x14c   :  { %v9096_v50 = vpop.f32.mrf.mxu1 }
 0x14d   :  { %12109 = vst [vmem:[#allocation9_spill] sm:$0xff] %v9092_v39 }
 0x14f   :  { %v548_v62 = vpop.f32.mrf.mxu0 }
 0x150   :  { %v739_v63 = vpop.f32.mrf.mxu1 }
 0x151   :  { %v9098_v17 = vadd.f32 %v739_v63, %v548_v62  ;;  %v9100_v18 = vpop.f32.mrf.mxu0 }
 0x152   :  { %v9102_v36 = vpop.f32.mrf.mxu1 }
 0x153   :  { %12110 = vst [vmem:[#allocation10_spill] sm:$0xff] %v9098_v17  ;;  %12111 = vst [vmem:[#allocation11_spill] sm:$0xff] %v9102_v36 }
 0x154   :  { %v554_v45 = vpop.f32.mrf.mxu0 }
 0x155   :  { %v745_v5 = vpop.f32.mrf.mxu1 }
 0x156   :  { %v9104_v6 = vadd.f32 %v745_v5, %v554_v45  ;;  %v9106_v28 = vpop.f32.mrf.mxu0 }
 0x157   :  { %12113 = vst [vmem:[#allocation13_spill] sm:$0xff] %v9106_v28  ;;  %v9108_v41 = vpop.f32.mrf.mxu1 }
 0x158   :  { %12112 = vst [vmem:[#allocation12_spill] sm:$0xff] %v9104_v6  ;;  %12114 = vst [vmem:[#allocation14_spill] sm:$0xff] %v9108_v41 }
 0x159   :  { %v560_v59 = vpop.f32.mrf.mxu0 }
 0x15a   :  { %v751_v60 = vpop.f32.mrf.mxu1 }
 0x15b   :  { %v9110_v48 = vadd.f32 %v751_v60, %v560_v59  ;;  %v9112_v21 = vpop.f32.mrf.mxu0 }
 0x15c   :  { %12116 = vst [vmem:[#allocation16_spill] sm:$0xff] %v9112_v21  ;;  %v9114_v4 = vpop.f32.mrf.mxu1 }
 0x15d   :  { %12115 = vst [vmem:[#allocation15_spill] sm:$0xff] %v9110_v48  ;;  %12117 = vst [vmem:[#allocation17_spill] sm:$0xff] %v9114_v4 }
 0x15e   :  { %v566_v10 = vpop.f32.mrf.mxu0 }
 0x15f   :  { %v757_v24 = vpop.f32.mrf.mxu1 }
 0x160   :  { %v9116_v34 = vadd.f32 %v757_v24, %v566_v10  ;;  %v9118_v62 = vpop.f32.mrf.mxu0 }
 0x161   :  { %12119 = vst [vmem:[#allocation19_spill] sm:$0xff] %v9118_v62  ;;  %v9120_v63 = vpop.f32.mrf.mxu1 }
 0x162   :  { %12118 = vst [vmem:[#allocation18_spill] sm:$0xff] %v9116_v34  ;;  %12120 = vst [vmem:[#allocation20_spill] sm:$0xff] %v9120_v63  ;;  %v652_v63 = vadd.f32 %v8982_v15, %v8980_v55 }
 0x163   :  { %v572_v45 = vpop.f32.mrf.mxu0 }
 0x164   :  { %v763_v5 = vpop.f32.mrf.mxu1  ;;  %v1157_v41 = vmul.f32 %v652_v63, %v652_v63  ;;  %v664_v63 = vadd.f32 %v9014_v14, %v9012_v13 }
 0x165   :  { %v9122_v16 = vadd.f32 %v763_v5, %v572_v45  ;;  %v9124_v6 = vpop.f32.mrf.mxu0 }
 0x166   :  { %12122 = vst [vmem:[#allocation22_spill] sm:$0xff] %v9124_v6  ;;  %v9126_v59 = vpop.f32.mrf.mxu1 }
 0x167   :  { %12121 = vst [vmem:[#allocation21_spill] sm:$0xff] %v9122_v16  ;;  %12123 = vst [vmem:[#allocation23_spill] sm:$0xff] %v9126_v59 }
 0x168   :  { %v578_v60 = vpop.f32.mrf.mxu0 }
 0x169   :  { %v769_v48 = vpop.f32.mrf.mxu1 }
 0x16a   :  { %v9128_v21 = vadd.f32 %v769_v48, %v578_v60  ;;  %v9130_v4 = vpop.f32.mrf.mxu0  ;;  %v658_v48 = vadd.f32 %v8996_v56, %v8994_v47 }
 0x16b   :  { %12125 = vst [vmem:[#allocation25_spill] sm:$0xff] %v9130_v4  ;;  %v9132_v10 = vpop.f32.mrf.mxu1 }
 0x16c   :  { %12124 = vst [vmem:[#allocation24_spill] sm:$0xff] %v9128_v21  ;;  %12126 = vst [vmem:[#allocation26_spill] sm:$0xff] %v9132_v10  ;;  %v1156_v10 = vmul.f32 %v8974_v37, %v8974_v37 }
 0x16d   :  { %v840_v24 = vpop.f32.mrf.mxu0 }
 0x16e   :  { %v1031_v34 = vpop.f32.mrf.mxu1 }
 0x16f   :  { %v1032_v62 = vadd.f32 %v1031_v34, %v840_v24  ;;  %v842_v45 = vpop.f32.mrf.mxu0 }
 0x170   :  { %v1033_v5 = vpop.f32.mrf.mxu1 }
 0x171   :  { %v1034_v16 = vadd.f32 %v1033_v5, %v842_v45  ;;  %v1198_v6 = vmul.f32 %v1032_v62, %v1032_v62  ;;  %v846_v17 = vpop.f32.mrf.mxu0  ;;  %v1159_v62 = vmul.f32 %v658_v48, %v658_v48 }
 0x172   :  { %v1037_v59 = vpop.f32.mrf.mxu1 }
 0x173   :  { %v1199_v60 = vmul.f32 %v1034_v16, %v1034_v16  ;;  %v1038_v21 = vadd.f32 %v1037_v59, %v846_v17  ;;  %v848_v4 = vpop.f32.mrf.mxu0  ;;  %v1240_v15 = vadd.f32 %v1198_v6, %v1156_v10  ;;  %v1158_v16 = vmul.f32 %v8992_v22, %v8992_v22 }
 0x174   :  { %v1039_v28 = vpop.f32.mrf.mxu1  ;;  %v670_v59 = vadd.f32 %v9028_v33, %v9026_v30 }
 0x175   :  { %v1040_v39 = vadd.f32 %v1039_v28, %v848_v4  ;;  %v1241_v55 = vadd.f32 %v1199_v60, %v1157_v41  ;;  %v1200_v34 = vmul.f32 %v1038_v21, %v1038_v21  ;;  %v852_v24 = vpop.f32.mrf.mxu0  ;;  %v1161_v4 = vmul.f32 %v664_v63, %v664_v63 }
 0x176   :  { %v1043_v45 = vpop.f32.mrf.mxu1 }
 0x177   :  { %v1201_v5 = vmul.f32 %v1040_v39, %v1040_v39  ;;  %v1044_v36 = vadd.f32 %v1043_v45, %v852_v24  ;;  %1378 = vmatprep.mubr.f32.mxu0 %v1241_v55  ;;  %v854_v47 = vpop.f32.mrf.mxu0  ;;  %v1242_v28 = vadd.f32 %v1200_v34, %v1158_v16  ;;  %v1160_v39 = vmul.f32 %v9006_v9, %v9006_v9 }
 0x178   :  { %v1045_v37 = vpop.f32.mrf.mxu1  ;;  %1379 = vmatmul.mubr.f32.vlgmr.msra.gmra.mxu0 %v1240_v15  ;;  %v1163_v24 = vmul.f32 %v670_v59, %v670_v59  ;;  %v676_v45 = vadd.f32 %v9036_v44, %v9034_v43 }
 0x179   :  { %v1046_v56 = vadd.f32 %v1045_v37, %v854_v47  ;;  %v1243_v17 = vadd.f32 %v1201_v5, %v1159_v62  ;;  %v1202_v6 = vmul.f32 %v1044_v36, %v1044_v36  ;;  %v858_v41 = vpop.f32.mrf.mxu0  ;;  %v1162_v62 = vmul.f32 %v9024_v29, %v9024_v29 }
 0x17a   :  { %v1049_v21 = vpop.f32.mrf.mxu1 }
 0x17b   :  { %v1203_v13 = vmul.f32 %v1046_v56, %v1046_v56  ;;  %v1050_v14 = vadd.f32 %v1049_v21, %v858_v41  ;;  %1383 = vmatprep.mubr.f32.mxu0 %v1243_v17  ;;  %v860_v22 = vpop.f32.mrf.mxu0  ;;  %v1244_v55 = vadd.f32 %v1202_v6, %v1160_v39  ;;  %v682_v6 = vadd.f32 %v9042_v61, %v9040_v54 }
 0x17c   :  { %v1051_v10 = vpop.f32.mrf.mxu1  ;;  %1384 = vmatmul.mubr.f32.gmra.mxu0 %v1242_v28  ;;  %v1165_v28 = vmul.f32 %v676_v45, %v676_v45  ;;  %v1164_v41 = vmul.f32 %v9032_v40, %v9032_v40 }
 0x17d   :  { %v1052_v48 = vadd.f32 %v1051_v10, %v860_v22  ;;  %v1245_v60 = vadd.f32 %v1203_v13, %v1161_v4  ;;  %v1204_v15 = vmul.f32 %v1050_v14, %v1050_v14  ;;  %v864_v36 = vpop.f32.mrf.mxu0  ;;  %v1167_v10 = vmul.f32 %v682_v6, %v682_v6 }
 0x17e   :  { %v1055_v34 = vpop.f32.mrf.mxu1  ;;  %v700_v6 = vadd.f32 %v9060_v52, %v9058_v51 }
 0x17f   :  { %v1205_v30 = vmul.f32 %v1052_v48, %v1052_v48  ;;  %v1056_v33 = vadd.f32 %v1055_v34, %v864_v36  ;;  %1388 = vmatprep.mubr.f32.mxu0 %v1245_v60  ;;  %v866_v9 = vpop.f32.mrf.mxu0  ;;  %v1246_v47 = vadd.f32 %v1204_v15, %v1162_v62  ;;  %v688_v48 = vadd.f32 %v9048_v12, %v9046_v11 }
 0x180   :  { %v1057_v63 = vpop.f32.mrf.mxu1  ;;  %1389 = vmatmul.mubr.f32.gmra.mxu0 %v1244_v55  ;;  %v1166_v60 = vmul.f32 %v9038_v53, %v9038_v53  ;;  %v694_v62 = vadd.f32 %v9054_v35, %v9052_v32 }
 0x181   :  { %v1058_v5 = vadd.f32 %v1057_v63, %v866_v9  ;;  %v1247_v16 = vadd.f32 %v1205_v30, %v1163_v24  ;;  %v1206_v37 = vmul.f32 %v1056_v33, %v1056_v33  ;;  %v870_v56 = vpop.f32.mrf.mxu0  ;;  %v1169_v33 = vmul.f32 %v688_v48, %v688_v48 }
 0x182   :  { %v1061_v17 = vpop.f32.mrf.mxu1  ;;  %v1168_v9 = vmul.f32 %v9044_v1, %v9044_v1 }
 0x183   :  { %v1207_v43 = vmul.f32 %v1058_v5, %v1058_v5  ;;  %v1062_v44 = vadd.f32 %v1061_v17, %v870_v56  ;;  %1393 = vmatprep.mubr.f32.mxu0 %v1247_v16  ;;  %v872_v29 = vpop.f32.mrf.mxu0  ;;  %v1248_v13 = vadd.f32 %v1206_v37, %v1164_v41 }
 0x184   :  { %v1063_v21 = vpop.f32.mrf.mxu1  ;;  %1394 = vmatmul.mubr.f32.gmra.mxu0 %v1246_v47 }
 0x185   :  { %v1064_v4 = vadd.f32 %v1063_v21, %v872_v29  ;;  %v1249_v59 = vadd.f32 %v1207_v43, %v1165_v28  ;;  %v1208_v14 = vmul.f32 %v1062_v44, %v1062_v44  ;;  %v876_v39 = vpop.f32.mrf.mxu0  ;;  %v1171_v28 = vmul.f32 %v694_v62, %v694_v62 }
 0x186   :  { %v1067_v22 = vpop.f32.mrf.mxu1  ;;  %v1170_v43 = vmul.f32 %v9050_v31, %v9050_v31 }
 0x187   :  { %v1209_v54 = vmul.f32 %v1064_v4, %v1064_v4  ;;  %v1068_v61 = vadd.f32 %v1067_v22, %v876_v39  ;;  %1398 = vmatprep.mubr.f32.mxu0 %v1249_v59  ;;  %v878_v40 = vpop.f32.mrf.mxu0  ;;  %v1250_v34 = vadd.f32 %v1208_v14, %v1166_v60  ;;  %v1173_v14 = vmul.f32 %v700_v6, %v700_v6 }
 0x188   :  { %v1069_v55 = vpop.f32.mrf.mxu1  ;;  %1399 = vmatmul.mubr.f32.gmra.mxu0 %v1248_v13  ;;  %v706_v39 = vadd.f32 %v9066_v27, %v9064_v8  ;;  %v1172_v22 = vmul.f32 %v9056_v46, %v9056_v46 }
 0x189   :  { %v1070_v15 = vadd.f32 %v1069_v55, %v878_v40  ;;  %v1251_v36 = vadd.f32 %v1209_v54, %v1167_v10  ;;  %v1210_v24 = vmul.f32 %v1068_v61, %v1068_v61  ;;  %v882_v45 = vpop.f32.mrf.mxu0 }
 0x18a   :  { %v1073_v30 = vpop.f32.mrf.mxu1 }
 0x18b   :  { %v1211_v11 = vmul.f32 %v1070_v15, %v1070_v15  ;;  %v1074_v12 = vadd.f32 %v1073_v30, %v882_v45  ;;  %1403 = vmatprep.mubr.f32.mxu0 %v1251_v36  ;;  %v884_v53 = vpop.f32.mrf.mxu0  ;;  %v1252_v47 = vadd.f32 %v1210_v24, %v1168_v9  ;;  %v1175_v15 = vmul.f32 %v706_v39, %v706_v39 }
 0x18c   :  { %v1075_v63 = vpop.f32.mrf.mxu1  ;;  %1404 = vmatmul.mubr.f32.gmra.mxu0 %v1250_v34  ;;  %v712_v36 = vadd.f32 %v9072_v58, %v9070_v57  ;;  %v1174_v34 = vmul.f32 %v9062_v7, %v9062_v7 }
 0x18d   :  { %v1076_v5 = vadd.f32 %v1075_v63, %v884_v53  ;;  %v1253_v16 = vadd.f32 %v1211_v11, %v1169_v33  ;;  %v1212_v37 = vmul.f32 %v1074_v12, %v1074_v12  ;;  %v888_v56 = vpop.f32.mrf.mxu0  ;;  %v718_v53 = vadd.f32 %v9078_v25, %v9076_v26 }
 0x18e   :  { %v1079_v17 = vpop.f32.mrf.mxu1  ;;  %v1177_v9 = vmul.f32 %v712_v36, %v712_v36  ;;  %v1176_v63 = vmul.f32 %v9068_v42, %v9068_v42 }
 0x18f   :  { %v1213_v32 = vmul.f32 %v1076_v5, %v1076_v5  ;;  %v1080_v35 = vadd.f32 %v1079_v17, %v888_v56  ;;  %1408 = vmatprep.mubr.f32.mxu0 %v1253_v16  ;;  %v890_v1 = vpop.f32.mrf.mxu0  ;;  %v1254_v21 = vadd.f32 %v1212_v37, %v1170_v43  ;;  %v1179_v6 = vmul.f32 %v718_v53, %v718_v53 }
 0x190   :  { %v1081_v44 = vpop.f32.mrf.mxu1  ;;  %1409 = vmatmul.mubr.f32.gmra.mxu0 %v1252_v47 }
 0x191   :  { %v1082_v41 = vadd.f32 %v1081_v44, %v890_v1  ;;  %v1255_v29 = vadd.f32 %v1213_v32, %v1171_v28  ;;  %v1214_v4 = vmul.f32 %v1080_v35, %v1080_v35  ;;  %v894_v59 = vpop.f32.mrf.mxu0  ;;  %v724_v32 = vadd.f32 %v9084_v3, %v9082_v2 }
 0x192   :  { %v1085_v13 = vpop.f32.mrf.mxu1  ;;  %v1178_v35 = vmul.f32 %v9074_v38, %v9074_v38 }
 0x193   :  { %v1215_v51 = vmul.f32 %v1082_v41, %v1082_v41  ;;  %v1086_v52 = vadd.f32 %v1085_v13, %v894_v59  ;;  %1413 = vmatprep.mubr.f32.mxu0 %v1255_v29  ;;  %v896_v31 = vpop.f32.mrf.mxu0  ;;  %v1256_v61 = vadd.f32 %v1214_v4, %v1172_v22  ;;  %v1181_v59 = vmul.f32 %v724_v32, %v724_v32 }
 0x194   :  { %v1087_v10 = vpop.f32.mrf.mxu1  ;;  %1414 = vmatmul.mubr.f32.gmra.mxu0 %v1254_v21  ;;  %v730_v13 = vadd.f32 %v9090_v23, %v9088_v20 }
 0x195   :  { %v1088_v48 = vadd.f32 %v1087_v10, %v896_v31  ;;  %v1257_v54 = vadd.f32 %v1215_v51, %v1173_v14  ;;  %v1216_v60 = vmul.f32 %v1086_v52, %v1086_v52  ;;  %v900_v40 = vpop.f32.mrf.mxu0  ;;  %v1180_v14 = vmul.f32 %v9080_v0, %v9080_v0 }
 0x196   :  { %v1091_v55 = vpop.f32.mrf.mxu1 }
 0x197   :  { %v1217_v8 = vmul.f32 %v1088_v48, %v1088_v48  ;;  %v1092_v27 = vadd.f32 %v1091_v55, %v900_v40  ;;  %1418 = vmatprep.mubr.f32.mxu0 %v1257_v54  ;;  %v902_v46 = vpop.f32.mrf.mxu0  ;;  %v1258_v33 = vadd.f32 %v1216_v60, %v1174_v34  ;;  %v1183_v54 = vmul.f32 %v730_v13, %v730_v13 }
 0x198   :  { %v1093_v24 = vpop.f32.mrf.mxu1  ;;  %1419 = vmatmul.mubr.f32.gmra.mxu0 %v1256_v61  ;;  %v736_v61 = vadd.f32 %v9096_v50, %v9094_v49  ;;  %v1182_v60 = vmul.f32 %v9086_v19, %v9086_v19 }
 0x199   :  { %v1094_v45 = vadd.f32 %v1093_v24, %v902_v46  ;;  %v1259_v30 = vadd.f32 %v1217_v8, %v1175_v15  ;;  %v1218_v62 = vmul.f32 %v1092_v27, %v1092_v27  ;;  %v906_v11 = vpop.f32.mrf.mxu0  ;;  %v12127_v24 = vld [vmem:[#allocation11_spill] sm:$0xff] }
 0x19a   :  { %v1097_v12 = vpop.f32.mrf.mxu1  ;;  %v1185_v46 = vmul.f32 %v736_v61, %v736_v61 }
 0x19b   :  { %v1219_v57 = vmul.f32 %v1094_v45, %v1094_v45  ;;  %v1098_v58 = vadd.f32 %v1097_v12, %v906_v11  ;;  %1423 = vmatprep.mubr.f32.mxu0 %v1259_v30  ;;  %v908_v7 = vpop.f32.mrf.mxu0  ;;  %v1260_v37 = vadd.f32 %v1218_v62, %v1176_v63  ;;  %v742_v45 = vadd.f32 %v12127_v24, %v9100_v18  ;;  %v12128_v30 = vld [vmem:[#allocation9_spill] sm:$0xff]  ;;  %v12139_v24 = vld [vmem:[#allocation23_spill] sm:$0xff] }
 0x19c   :  { %v1099_v5 = vpop.f32.mrf.mxu1  ;;  %1424 = vmatmul.mubr.f32.gmra.mxu0 %v1258_v33  ;;  %v1184_v33 = vmul.f32 %v12128_v30, %v12128_v30  ;;  %v12140_v30 = vld [vmem:[#allocation18_spill] sm:$0xff] }
 0x19d   :  { %v1100_v16 = vadd.f32 %v1099_v5, %v908_v7  ;;  %v1261_v47 = vadd.f32 %v1219_v57, %v1177_v9  ;;  %v1220_v56 = vmul.f32 %v1098_v58, %v1098_v58  ;;  %v912_v17 = vpop.f32.mrf.mxu0  ;;  %v1187_v63 = vmul.f32 %v742_v45, %v742_v45  ;;  %v12129_v7 = vld [vmem:[#allocation13_spill] sm:$0xff]  ;;  %v12130_v5 = vld [vmem:[#allocation14_spill] sm:$0xff] }
 0x19e   :  { %v1103_v28 = vpop.f32.mrf.mxu1 }
 0x19f   :  { %v1221_v26 = vmul.f32 %v1100_v16, %v1100_v16  ;;  %v1104_v25 = vadd.f32 %v1103_v28, %v912_v17  ;;  %1428 = vmatprep.mubr.f32.mxu0 %v1261_v47  ;;  %v914_v42 = vpop.f32.mrf.mxu0  ;;  %v1262_v41 = vadd.f32 %v1220_v56, %v1178_v35  ;;  %v748_v16 = vadd.f32 %v12130_v5, %v12129_v7  ;;  %v12141_v7 = vld [vmem:[#allocation25_spill] sm:$0xff]  ;;  %v12142_v5 = vld [vmem:[#allocation26_spill] sm:$0xff] }
 0x1a0   :  { %v1105_v43 = vpop.f32.mrf.mxu1  ;;  %1429 = vmatmul.mubr.f32.gmra.mxu0 %v1260_v37  ;;  %v12131_v37 = vld [vmem:[#allocation10_spill] sm:$0xff] }
 0x1a1   :  { %v1106_v1 = vadd.f32 %v1105_v43, %v914_v42  ;;  %v1263_v44 = vadd.f32 %v1221_v26, %v1179_v6  ;;  %v1222_v29 = vmul.f32 %v1104_v25, %v1104_v25  ;;  %v918_v21 = vpop.f32.mrf.mxu0  ;;  %v1186_v56 = vmul.f32 %v12131_v37, %v12131_v37  ;;  %v12143_v37 = vld [vmem:[#allocation21_spill] sm:$0xff] }
 0x1a2   :  { %v1109_v4 = vpop.f32.mrf.mxu1  ;;  %v1189_v43 = vmul.f32 %v748_v16, %v748_v16  ;;  %v772_v16 = vadd.f32 %v12142_v5, %v12141_v7 }
 0x1a3   :  { %v1223_v2 = vmul.f32 %v1106_v1, %v1106_v1  ;;  %v1110_v3 = vadd.f32 %v1109_v4, %v918_v21  ;;  %1433 = vmatprep.mubr.f32.mxu0 %v1263_v44  ;;  %v920_v38 = vpop.f32.mrf.mxu0  ;;  %v1264_v22 = vadd.f32 %v1222_v29, %v1180_v14  ;;  %v12132_v1 = vld [vmem:[#allocation16_spill] sm:$0xff]  ;;  %v12133_v44 = vld [vmem:[#allocation17_spill] sm:$0xff] }
 0x1a4   :  { %v1111_v39 = vpop.f32.mrf.mxu1  ;;  %1434 = vmatmul.mubr.f32.gmra.mxu0 %v1262_v41  ;;  %v754_v41 = vadd.f32 %v12133_v44, %v12132_v1  ;;  %v12134_v4 = vld [vmem:[#allocation12_spill] sm:$0xff] }
 0x1a5   :  { %v1112_v51 = vadd.f32 %v1111_v39, %v920_v38  ;;  %v1265_v52 = vadd.f32 %v1223_v2, %v1181_v59  ;;  %v1224_v31 = vmul.f32 %v1110_v3, %v1110_v3  ;;  %v924_v10 = vpop.f32.mrf.mxu0  ;;  %v1188_v59 = vmul.f32 %v12134_v4, %v12134_v4 }
 0x1a6   :  { %v1115_v48 = vpop.f32.mrf.mxu1 }
 0x1a7   :  { %v1225_v20 = vmul.f32 %v1112_v51, %v1112_v51  ;;  %v1116_v23 = vadd.f32 %v1115_v48, %v924_v10  ;;  %1438 = vmatprep.mubr.f32.mxu0 %v1265_v52  ;;  %v926_v0 = vpop.f32.mrf.mxu0  ;;  %v1266_v36 = vadd.f32 %v1224_v31, %v1182_v60  ;;  %v12135_v31 = vld [vmem:[#allocation19_spill] sm:$0xff]  ;;  %v12136_v10 = vld [vmem:[#allocation20_spill] sm:$0xff] }
 0x1a8   :  { %v1117_v40 = vpop.f32.mrf.mxu1  ;;  %1439 = vmatmul.mubr.f32.gmra.mxu0 %v1264_v22  ;;  %v1191_v22 = vmul.f32 %v754_v41, %v754_v41  ;;  %v760_v48 = vadd.f32 %v12136_v10, %v12135_v31 }
 0x1a9   :  { %v1118_v55 = vadd.f32 %v1117_v40, %v926_v0  ;;  %v1267_v15 = vadd.f32 %v1225_v20, %v1183_v54  ;;  %v1226_v8 = vmul.f32 %v1116_v23, %v1116_v23  ;;  %v930_v27 = vpop.f32.mrf.mxu0  ;;  %v12137_v20 = vld [vmem:[#allocation15_spill] sm:$0xff] }
 0x1aa   :  { %v1121_v34 = vpop.f32.mrf.mxu1  ;;  %v1190_v23 = vmul.f32 %v12137_v20, %v12137_v20 }
 0x1ab   :  { %v1227_v49 = vmul.f32 %v1118_v55, %v1118_v55  ;;  %v1122_v50 = vadd.f32 %v1121_v34, %v930_v27  ;;  %1443 = vmatprep.mubr.f32.mxu0 %v1267_v15  ;;  %v932_v19 = vpop.f32.mrf.mxu0  ;;  %v1268_v9 = vadd.f32 %v1226_v8, %v1184_v33  ;;  %v1193_v34 = vmul.f32 %v760_v48, %v760_v48 }
 0x1ac   :  { %v1123_v62 = vpop.f32.mrf.mxu1  ;;  %1444 = vmatmul.mubr.f32.gmra.mxu0 %v1266_v36  ;;  %v1192_v33 = vmul.f32 %v12140_v30, %v12140_v30 }
 0x1ad   :  { %v1124_v11 = vadd.f32 %v1123_v62, %v932_v19  ;;  %v1269_v12 = vadd.f32 %v1227_v49, %v1185_v46  ;;  %v1228_v53 = vmul.f32 %v1122_v50, %v1122_v50  ;;  %v936_v57 = vpop.f32.mrf.mxu0  ;;  %v12138_v46 = vld [vmem:[#allocation22_spill] sm:$0xff] }
 0x1ae   :  { %v1127_v58 = vpop.f32.mrf.mxu1  ;;  %v766_v45 = vadd.f32 %v12139_v24, %v12138_v46 }
 0x1af   :  { %v1229_v18 = vmul.f32 %v1124_v11, %v1124_v11  ;;  %v1128_v47 = vadd.f32 %v1127_v58, %v936_v57  ;;  %1448 = vmatprep.mubr.f32.mxu0 %v1269_v12  ;;  %v938_v17 = vpop.f32.mrf.mxu0  ;;  %v1270_v26 = vadd.f32 %v1228_v53, %v1186_v56  ;;  %v1194_v56 = vmul.f32 %v12143_v37, %v12143_v37 }
 0x1b0   :  { %v1129_v28 = vpop.f32.mrf.mxu1  ;;  %1449 = vmatmul.mubr.f32.gmra.mxu0 %v1268_v9 }
 0x1b1   :  { %v1130_v6 = vadd.f32 %v1129_v28, %v938_v17  ;;  %v1271_v32 = vadd.f32 %v1229_v18, %v1187_v63  ;;  %v1230_v25 = vmul.f32 %v1128_v47, %v1128_v47  ;;  %v942_v35 = vpop.f32.mrf.mxu0  ;;  %v1195_v63 = vmul.f32 %v766_v45, %v766_v45 }
 0x1b2   :  { %v1133_v42 = vpop.f32.mrf.mxu1 }
 0x1b3   :  { %v1231_v29 = vmul.f32 %v1130_v6, %v1130_v6  ;;  %v1134_v21 = vadd.f32 %v1133_v42, %v942_v35  ;;  %1453 = vmatprep.mubr.f32.mxu0 %v1271_v32  ;;  %v944_v13 = vpop.f32.mrf.mxu0  ;;  %v1272_v38 = vadd.f32 %v1230_v25, %v1188_v59  ;;  %v1197_v35 = vmul.f32 %v772_v16, %v772_v16 }
 0x1b4   :  { %v1135_v2 = vpop.f32.mrf.mxu1  ;;  %1454 = vmatmul.mubr.f32.gmra.mxu0 %v1270_v26 }
 0x1b5   :  { %v1136_v3 = vadd.f32 %v1135_v2, %v944_v13  ;;  %v1273_v14 = vadd.f32 %v1231_v29, %v1189_v43  ;;  %v1232_v39 = vmul.f32 %v1134_v21, %v1134_v21  ;;  %v948_v51 = vpop.f32.mrf.mxu0  ;;  %v12144_v43 = vld [vmem:[#allocation24_spill] sm:$0xff] }
 0x1b6   :  { %v1139_v52 = vpop.f32.mrf.mxu1  ;;  %v1196_v1 = vmul.f32 %v12144_v43, %v12144_v43 }
 0x1b7   :  { %v1233_v54 = vmul.f32 %v1136_v3, %v1136_v3  ;;  %v1140_v61 = vadd.f32 %v1139_v52, %v948_v51  ;;  %1458 = vmatprep.mubr.f32.mxu0 %v1273_v14  ;;  %v950_v60 = vpop.f32.mrf.mxu0  ;;  %v1274_v15 = vadd.f32 %v1232_v39, %v1190_v23 }
 0x1b8   :  { %v1141_v0 = vpop.f32.mrf.mxu1  ;;  %1459 = vmatmul.mubr.f32.gmra.mxu0 %v1272_v38 }
 0x1b9   :  { %v1142_v40 = vadd.f32 %v1141_v0, %v950_v60  ;;  %v1275_v55 = vadd.f32 %v1233_v54, %v1191_v22  ;;  %v1234_v36 = vmul.f32 %v1140_v61, %v1140_v61  ;;  %v954_v8 = vpop.f32.mrf.mxu0 }
 0x1ba   :  { %v1145_v27 = vpop.f32.mrf.mxu1 }
 0x1bb   :  { %v1235_v49 = vmul.f32 %v1142_v40, %v1142_v40  ;;  %v1146_v50 = vadd.f32 %v1145_v27, %v954_v8  ;;  %1463 = vmatprep.mubr.f32.mxu0 %v1275_v55  ;;  %v956_v19 = vpop.f32.mrf.mxu0  ;;  %v1276_v9 = vadd.f32 %v1234_v36, %v1192_v33 }
 0x1bc   :  { %v1147_v62 = vpop.f32.mrf.mxu1  ;;  %1464 = vmatmul.mubr.f32.gmra.mxu0 %v1274_v15 }
 0x1bd   :  { %v1148_v11 = vadd.f32 %v1147_v62, %v956_v19  ;;  %v1277_v12 = vadd.f32 %v1235_v49, %v1193_v34  ;;  %v1236_v53 = vmul.f32 %v1146_v50, %v1146_v50  ;;  %v960_v57 = vpop.f32.mrf.mxu0 }
 0x1be   :  { %v1151_v58 = vpop.f32.mrf.mxu1 }
 0x1bf   :  { %v1237_v18 = vmul.f32 %v1148_v11, %v1148_v11  ;;  %v1152_v47 = vadd.f32 %v1151_v58, %v960_v57  ;;  %1468 = vmatprep.mubr.f32.mxu0 %v1277_v12  ;;  %v962_v17 = vpop.f32.mrf.mxu0  ;;  %v1278_v26 = vadd.f32 %v1236_v53, %v1194_v56 }
 0x1c0   :  { %v1153_v28 = vpop.f32.mrf.mxu1  ;;  %1469 = vmatmul.mubr.f32.gmra.mxu0 %v1276_v9 }
 0x1c1   :  { %v1154_v6 = vadd.f32 %v1153_v28, %v962_v17  ;;  %v1279_v32 = vadd.f32 %v1237_v18, %v1195_v63  ;;  %v1238_v25 = vmul.f32 %v1152_v47, %v1152_v47 }
 0x1c3   :  { %v1239_v42 = vmul.f32 %v1154_v6, %v1154_v6  ;;  %1473 = vmatprep.mubr.f32.mxu0 %v1279_v32  ;;  %v1280_v41 = vadd.f32 %v1238_v25, %v1196_v1 }
 0x1c4   :  { %1474 = vmatmul.mubr.f32.gmra.mxu0 %v1278_v26 }
 0x1c5   :  { %v1281_v44 = vadd.f32 %v1239_v42, %v1197_v35 }
 0x1c7   :  { %1478 = vmatprep.mubr.f32.mxu0 %v1281_v44 }
 0x1c8   :  { %1479 = vmatmul.mubr.f32.gmra.mxu0 %v1280_v41 }
 0x238   :  { %v1380_v29 = vpop.f32.mrf.mxu0 }
 0x239   :  { %v1484_v21 = vmax.f32 %v1380_v29, 1e-10 }
 0x23a   :  { %v1382_v4 = vpop.f32.mrf.mxu0 }
 0x23b   :  { %7232 = vlog2.f32 %v1484_v21 }
 0x23c   :  { %v1385_v59 = vpop.f32.mrf.mxu0 }
 0x23d   :  { %v1485_v13 = vmax.f32 %v1385_v59, 1e-10 }
 0x23e   :  { %v1387_v2 = vpop.f32.mrf.mxu0 }
 0x23f   :  { %7234 = vlog2.f32 %v1485_v13 }
 0x240   :  { %v1390_v3 = vpop.f32.mrf.mxu0 }
 0x241   :  { %v1486_v14 = vmax.f32 %v1390_v3, 1e-10 }
 0x242   :  { %v1392_v38 = vpop.f32.mrf.mxu0 }
 0x243   :  { %7236 = vlog2.f32 %v1486_v14 }
 0x244   :  { %v1395_v39 = vpop.f32.mrf.mxu0 }
 0x245   :  { %v1487_v51 = vmax.f32 %v1395_v39, 1e-10 }
 0x246   :  { %v1397_v52 = vpop.f32.mrf.mxu0 }
 0x247   :  { %7238 = vlog2.f32 %v1487_v51 }
 0x248   :  { %v7233_v22 = vpop.eup %7232  ;;  %v1400_v31 = vpop.f32.mrf.mxu0 }
 0x249   :  { %v1488_v10 = vmax.f32 %v1400_v31, 1e-10  ;;  %v1506_v48 = vmul.f32 0.6931472, %v7233_v22 }
 0x24a   :  { %v1402_v54 = vpop.f32.mrf.mxu0 }
 0x24b   :  { %7240 = vlog2.f32 %v1488_v10  ;;  %v9218_v61 = vmul.f32 4.3429446, %v1506_v48 }
 0x24c   :  { %v7235_v20 = vpop.eup %7234  ;;  %v1405_v23 = vpop.f32.mrf.mxu0 }
 0x24d   :  { %v1489_v60 = vmax.f32 %v1405_v23, 1e-10  ;;  %v1569_v0 = vsel %vm1568_vm0, %v9218_v61, 0.0  ;;  %v1508_v40 = vmul.f32 0.6931472, %v7235_v20 }
 0x24e   :  { %1570 = vadd.xlane.f32.xlu0 %v1569_v0  ;;  %v1407_v55 = vpop.f32.mrf.mxu0 }
 0x24f   :  { %7242 = vlog2.f32 %v1489_v60  ;;  %v9222_v15 = vmul.f32 4.3429446, %v1508_v40 }
 0x250   :  { %v7237_v36 = vpop.eup %7236  ;;  %v1410_v8 = vpop.f32.mrf.mxu0 }
 0x251   :  { %v1490_v27 = vmax.f32 %v1410_v8, 1e-10  ;;  %v1572_v34 = vsel %vm1568_vm0, %v9222_v15, 0.0  ;;  %v1510_v46 = vmul.f32 0.6931472, %v7237_v36 }
 0x252   :  { %1573 = vadd.xlane.f32.xlu0 %v1572_v34  ;;  %v1412_v24 = vpop.f32.mrf.mxu0 }
 0x253   :  { %7244 = vlog2.f32 %v1490_v27  ;;  %v9226_v45 = vmul.f32 4.3429446, %v1510_v46 }
 0x254   :  { %v7239_v49 = vpop.eup %7238  ;;  %v1415_v50 = vpop.f32.mrf.mxu0 }
 0x255   :  { %v1491_v30 = vmax.f32 %v1415_v50, 1e-10  ;;  %v1575_v33 = vsel %vm1568_vm0, %v9226_v45, 0.0  ;;  %v1512_v19 = vmul.f32 0.6931472, %v7239_v49 }
 0x256   :  { %1576 = vadd.xlane.f32.xlu1 %v1575_v33  ;;  %v1417_v62 = vpop.f32.mrf.mxu0 }
 0x257   :  { %7246 = vlog2.f32 %v1491_v30  ;;  %v9230_v11 = vmul.f32 4.3429446, %v1512_v19 }
 0x258   :  { %v7241_v12 = vpop.eup %7240  ;;  %v1420_v9 = vpop.f32.mrf.mxu0 }
 0x259   :  { %v1492_v53 = vmax.f32 %v1420_v9, 1e-10  ;;  %v1578_v57 = vsel %vm1568_vm0, %v9230_v11, 0.0  ;;  %v1514_v58 = vmul.f32 0.6931472, %v7241_v12 }
 0x25a   :  { %1579 = vadd.xlane.f32.xlu1 %v1578_v57  ;;  %v1422_v63 = vpop.f32.mrf.mxu0 }
 0x25b   :  { %7248 = vlog2.f32 %v1492_v53  ;;  %v9234_v7 = vmul.f32 4.3429446, %v1514_v58 }
 0x25c   :  { %v7243_v5 = vpop.eup %7242  ;;  %v1425_v16 = vpop.f32.mrf.mxu0 }
 0x25d   :  { %v1493_v18 = vmax.f32 %v1425_v16, 1e-10  ;;  %v1581_v47 = vsel %vm1568_vm0, %v9234_v7, 0.0  ;;  %v1516_v37 = vmul.f32 0.6931472, %v7243_v5 }
 0x25e   :  { %1582 = vadd.xlane.f32.xlu0 %v1581_v47  ;;  %v1427_v56 = vpop.f32.mrf.mxu0 }
 0x25f   :  { %7250 = vlog2.f32 %v1493_v18  ;;  %v9238_v17 = vmul.f32 4.3429446, %v1516_v37 }
 0x260   :  { %v7245_v28 = vpop.eup %7244  ;;  %v1430_v6 = vpop.f32.mrf.mxu0 }
 0x261   :  { %v1494_v32 = vmax.f32 %v1430_v6, 1e-10  ;;  %v1584_v26 = vsel %vm1568_vm0, %v9238_v17, 0.0  ;;  %v1518_v25 = vmul.f32 0.6931472, %v7245_v28 }
 0x262   :  { %1585 = vadd.xlane.f32.xlu1 %v1584_v26  ;;  %v1432_v35 = vpop.f32.mrf.mxu0 }
 0x263   :  { %7252 = vlog2.f32 %v1494_v32  ;;  %v9242_v42 = vmul.f32 4.3429446, %v1518_v25 }
 0x264   :  { %v7247_v43 = vpop.eup %7246  ;;  %v1435_v1 = vpop.f32.mrf.mxu0 }
 0x265   :  { %v1495_v44 = vmax.f32 %v1435_v1, 1e-10  ;;  %v1587_v41 = vsel %vm1568_vm0, %v9242_v42, 0.0  ;;  %v1520_v29 = vmul.f32 0.6931472, %v7247_v43 }
 0x266   :  { %1588 = vadd.xlane.f32.xlu0 %v1587_v41  ;;  %v1437_v21 = vpop.f32.mrf.mxu0 }
 0x267   :  { %7254 = vlog2.f32 %v1495_v44  ;;  %v9246_v4 = vmul.f32 4.3429446, %v1520_v29 }
 0x268   :  { %v7249_v59 = vpop.eup %7248  ;;  %v1440_v13 = vpop.f32.mrf.mxu0 }
 0x269   :  { %v1496_v2 = vmax.f32 %v1440_v13, 1e-10  ;;  %v1590_v3 = vsel %vm1568_vm0, %v9246_v4, 0.0  ;;  %v1522_v14 = vmul.f32 0.6931472, %v7249_v59 }
 0x26a   :  { %1591 = vadd.xlane.f32.xlu1 %v1590_v3  ;;  %v1442_v38 = vpop.f32.mrf.mxu0 }
 0x26b   :  { %7256 = vlog2.f32 %v1496_v2  ;;  %v9250_v39 = vmul.f32 4.3429446, %v1522_v14 }
 0x26c   :  { %v7251_v51 = vpop.eup %7250  ;;  %v1445_v52 = vpop.f32.mrf.mxu0 }
 0x26d   :  { %v1497_v22 = vmax.f32 %v1445_v52, 1e-10  ;;  %v1593_v31 = vsel %vm1568_vm0, %v9250_v39, 0.0  ;;  %v1524_v10 = vmul.f32 0.6931472, %v7251_v51 }
 0x26e   :  { %1594 = vadd.xlane.f32.xlu0 %v1593_v31  ;;  %v1447_v48 = vpop.f32.mrf.mxu0 }
 0x26f   :  { %7258 = vlog2.f32 %v1497_v22  ;;  %v9254_v54 = vmul.f32 4.3429446, %v1524_v10 }
 0x270   :  { %v7253_v20 = vpop.eup %7252  ;;  %v1450_v23 = vpop.f32.mrf.mxu0 }
 0x271   :  { %v1498_v60 = vmax.f32 %v1450_v23, 1e-10  ;;  %v1596_v0 = vsel %vm1568_vm0, %v9254_v54, 0.0  ;;  %v1526_v40 = vmul.f32 0.6931472, %v7253_v20 }
 0x272   :  { %1597 = vadd.xlane.f32.xlu1 %v1596_v0  ;;  %v1452_v55 = vpop.f32.mrf.mxu0 }
 0x273   :  { %7260 = vlog2.f32 %v1498_v60  ;;  %v9258_v36 = vmul.f32 4.3429446, %v1526_v40 }
 0x274   :  { %v7255_v8 = vpop.eup %7254  ;;  %v1455_v27 = vpop.f32.mrf.mxu0 }
 0x275   :  { %v1499_v34 = vmax.f32 %v1455_v27, 1e-10  ;;  %v1599_v46 = vsel %vm1568_vm0, %v9258_v36, 0.0  ;;  %v1528_v24 = vmul.f32 0.6931472, %v7255_v8 }
 0x276   :  { %1600 = vadd.xlane.f32.xlu0 %v1599_v46  ;;  %v1457_v49 = vpop.f32.mrf.mxu0 }
 0x277   :  { %7262 = vlog2.f32 %v1499_v34  ;;  %v9262_v50 = vmul.f32 4.3429446, %v1528_v24 }
 0x278   :  { %v7257_v30 = vpop.eup %7256  ;;  %v1460_v33 = vpop.f32.mrf.mxu0 }
 0x279   :  { %v1500_v19 = vmax.f32 %v1460_v33, 1e-10  ;;  %v1602_v62 = vsel %vm1568_vm0, %v9262_v50, 0.0  ;;  %v1530_v12 = vmul.f32 0.6931472, %v7257_v30  ;;  %v5496_v30 = vld [vmem:[%s12017_s3 + $0x78] sm:$0xff] }
 0x27a   :  { %1603 = vadd.xlane.f32.xlu1 %v1602_v62  ;;  %v1462_v9 = vpop.f32.mrf.mxu0  ;;  %6220 = vmatpush3.msra.mxu1 %v5496_v30  ;;  %v12145_v33 = vmov 0.0  }
 0x27b   :  { %7264 = vlog2.f32 %v1500_v19  ;;  %v9266_v53 = vmul.f32 4.3429446, %v1530_v12  ;;  %6221 = vmatprep.subr.mxu1 %v12145_v33  ;;  %6314 = vmatprep.mubr.msk.f32.mxu0 %vm7435_vm1, %v12145_v33 }
 0x27c   :  { %v7259_v57 = vpop.eup %7258  ;;  %v1465_v58 = vpop.f32.mrf.mxu0  ;;  %6235 = vmatprep.mubr.msk.f32.mxu1 %vm7435_vm1, %v12145_v33 }
 0x27d   :  { %v1501_v63 = vmax.f32 %v1465_v58, 1e-10  ;;  %v1605_v5 = vsel %vm1568_vm0, %v9266_v53, 0.0  ;;  %v1532_v16 = vmul.f32 0.6931472, %v7259_v57 }
 0x27e   :  { %1606 = vadd.xlane.f32.xlu0 %v1605_v5  ;;  %v1467_v18 = vpop.f32.mrf.mxu0 }
 0x27f   :  { %7266 = vlog2.f32 %v1501_v63  ;;  %v9270_v47 = vmul.f32 4.3429446, %v1532_v16 }
 0x280   :  { %v7261_v37 = vpop.eup %7260  ;;  %v1470_v56 = vpop.f32.mrf.mxu0 }
 0x281   :  { %v1502_v28 = vmax.f32 %v1470_v56, 1e-10  ;;  %v1608_v6 = vsel %vm1568_vm0, %v9270_v47, 0.0  ;;  %v1534_v32 = vmul.f32 0.6931472, %v7261_v37 }
 0x282   :  { %1609 = vadd.xlane.f32.xlu1 %v1608_v6  ;;  %v1472_v26 = vpop.f32.mrf.mxu0 }
 0x283   :  { %7268 = vlog2.f32 %v1502_v28  ;;  %v9274_v25 = vmul.f32 4.3429446, %v1534_v32 }
 0x284   :  { %v7263_v35 = vpop.eup %7262  ;;  %v1475_v43 = vpop.f32.mrf.mxu0 }
 0x285   :  { %v1503_v1 = vmax.f32 %v1475_v43, 1e-10  ;;  %v1611_v44 = vsel %vm1568_vm0, %v9274_v25, 0.0  ;;  %v1536_v41 = vmul.f32 0.6931472, %v7263_v35 }
 0x286   :  { %1612 = vadd.xlane.f32.xlu0 %v1611_v44  ;;  %v1477_v29 = vpop.f32.mrf.mxu0 }
 0x287   :  { %7270 = vlog2.f32 %v1503_v1  ;;  %v9278_v21 = vmul.f32 4.3429446, %v1536_v41 }
 0x288   :  { %v7265_v59 = vpop.eup %7264  ;;  %v1480_v13 = vpop.f32.mrf.mxu0 }
 0x289   :  { %v1504_v2 = vmax.f32 %v1480_v13, 1e-10  ;;  %v1614_v3 = vsel %vm1568_vm0, %v9278_v21, 0.0  ;;  %v1538_v14 = vmul.f32 0.6931472, %v7265_v59 }
 0x28a   :  { %1615 = vadd.xlane.f32.xlu1 %v1614_v3  ;;  %v1482_v38 = vpop.f32.mrf.mxu0 }
 0x28b   :  { %7272 = vlog2.f32 %v1504_v2  ;;  %v9282_v51 = vmul.f32 4.3429446, %v1538_v14 }
 0x28c   :  { %v7267_v52 = vpop.eup %7266 }
 0x28d   :  { %v1617_v22 = vsel %vm1568_vm0, %v9282_v51, 0.0  ;;  %v1540_v31 = vmul.f32 0.6931472, %v7267_v52 }
 0x28e   :  { %1618 = vadd.xlane.f32.xlu0 %v1617_v22 }
 0x28f   :  { %v9286_v10 = vmul.f32 4.3429446, %v1540_v31 }
 0x290   :  { %v7269_v48 = vpop.eup %7268 }
 0x291   :  { %v1620_v20 = vsel %vm1568_vm0, %v9286_v10, 0.0  ;;  %v1542_v23 = vmul.f32 0.6931472, %v7269_v48 }
 0x292   :  { %1621 = vadd.xlane.f32.xlu1 %v1620_v20 }
 0x293   :  { %v9290_v60 = vmul.f32 4.3429446, %v1542_v23 }
 0x294   :  { %v7271_v0 = vpop.eup %7270 }
 0x295   :  { %v1623_v40 = vsel %vm1568_vm0, %v9290_v60, 0.0  ;;  %v1544_v55 = vmul.f32 0.6931472, %v7271_v0 }
 0x296   :  { %1624 = vadd.xlane.f32.xlu0 %v1623_v40 }
 0x297   :  { %v9294_v8 = vmul.f32 4.3429446, %v1544_v55 }
 0x298   :  { %v7273_v27 = vpop.eup %7272 }
 0x299   :  { %v1626_v34 = vsel %vm1568_vm0, %v9294_v8, 0.0  ;;  %v1546_v46 = vmul.f32 0.6931472, %v7273_v27 }
 0x29a   :  { %1627 = vadd.xlane.f32.xlu1 %v1626_v34 }
 0x29b   :  { %v9298_v24 = vmul.f32 4.3429446, %v1546_v46 }
 0x29d   :  { %v1629_v49 = vsel %vm1568_vm0, %v9298_v24, 0.0 }
 0x29e   :  { %1630 = vadd.xlane.f32.xlu0 %v1629_v49 }
 0x2d7   :  { %v1571_v19 = vpop.xlane.xlu0 %1570 }
 0x2db   :  { %v1574_v12 = vpop.xlane.xlu0 %1573 }
 0x2dc   :  { %v1632_v9 = vadd.f32 %v1574_v12, %v1571_v19 }
 0x2df   :  { %v1577_v62 = vpop.xlane.xlu1 %1576 }
 0x2e0   :  { %v1633_v58 = vadd.f32 %v1632_v9, %v1577_v62 }
 0x2e3   :  { %v1580_v57 = vpop.xlane.xlu1 %1579 }
 0x2e4   :  { %v1634_v5 = vadd.f32 %v1633_v58, %v1580_v57 }
 0x2e7   :  { %v1583_v63 = vpop.xlane.xlu0 %1582 }
 0x2e8   :  { %v1635_v18 = vadd.f32 %v1634_v5, %v1583_v63 }
 0x2eb   :  { %v1586_v16 = vpop.xlane.xlu1 %1585 }
 0x2ec   :  { %v1636_v56 = vadd.f32 %v1635_v18, %v1586_v16 }
 0x2ef   :  { %v1589_v37 = vpop.xlane.xlu0 %1588 }
 0x2f0   :  { %v1637_v6 = vadd.f32 %v1636_v56, %v1589_v37 }
 0x2f3   :  { %v1592_v28 = vpop.xlane.xlu1 %1591 }
 0x2f4   :  { %v1638_v26 = vadd.f32 %v1637_v6, %v1592_v28 }
 0x2f7   :  { %v1595_v32 = vpop.xlane.xlu0 %1594 }
 0x2f8   :  { %v1639_v43 = vadd.f32 %v1638_v26, %v1595_v32 }
 0x2fb   :  { %v1598_v35 = vpop.xlane.xlu1 %1597 }
 0x2fc   :  { %v1640_v44 = vadd.f32 %v1639_v43, %v1598_v35 }
 0x2ff   :  { %v1601_v1 = vpop.xlane.xlu0 %1600 }
 0x300   :  { %v1641_v29 = vadd.f32 %v1640_v44, %v1601_v1 }
 0x303   :  { %v1604_v41 = vpop.xlane.xlu1 %1603 }
 0x304   :  { %v1642_v13 = vadd.f32 %v1641_v29, %v1604_v41 }
 0x307   :  { %v1607_v59 = vpop.xlane.xlu0 %1606 }
 0x308   :  { %v1643_v3 = vadd.f32 %v1642_v13, %v1607_v59 }
 0x30b   :  { %v1610_v2 = vpop.xlane.xlu1 %1609 }
 0x30c   :  { %v1644_v38 = vadd.f32 %v1643_v3, %v1610_v2 }
 0x30f   :  { %v1613_v14 = vpop.xlane.xlu0 %1612 }
 0x310   :  { %v1645_v22 = vadd.f32 %v1644_v38, %v1613_v14 }
 0x313   :  { %v1616_v52 = vpop.xlane.xlu1 %1615 }
 0x314   :  { %v1646_v48 = vadd.f32 %v1645_v22, %v1616_v52 }
 0x317   :  { %v1619_v31 = vpop.xlane.xlu0 %1618 }
 0x318   :  { %v1647_v23 = vadd.f32 %v1646_v48, %v1619_v31 }
 0x31b   :  { %v1622_v20 = vpop.xlane.xlu1 %1621 }
 0x31c   :  { %v1648_v40 = vadd.f32 %v1647_v23, %v1622_v20 }
 0x31f   :  { %v1625_v0 = vpop.xlane.xlu0 %1624 }
 0x320   :  { %v1649_v27 = vadd.f32 %v1648_v40, %v1625_v0  ;;  %v5494_v40 = vld [vmem:[%s12017_s3 + $0x68] sm:$0xff] }
 0x323   :  { %v1628_v55 = vpop.xlane.xlu1 %1627 }
 0x324   :  { %v1650_v34 = vadd.f32 %v1649_v27, %v1628_v55 }
 0x327   :  { %v1631_v46 = vpop.xlane.xlu0 %1630 }
 0x328   :  { %v1651_v49 = vadd.f32 %v1650_v34, %v1631_v46 }
 0x32a   :  { %v9306_v30 = vmul.f32 0.00074404763, %v1651_v49 }
 0x32c   :  { %v9310_v19 = vsub.f32 %v9222_v15, %v9306_v30  ;;  %v9314_v62 = vsub.f32 %v9218_v61, %v9306_v30  ;;  %v9318_v12 = vsub.f32 %v9230_v11, %v9306_v30  ;;  %v9322_v9 = vsub.f32 %v9226_v45, %v9306_v30 }
 0x32d   :  { %v9330_v15 = vsub.f32 %v9238_v17, %v9306_v30  ;;  %v9334_v61 = vsub.f32 %v9234_v7, %v9306_v30  ;;  %v9344_v17 = vsub.f32 %v9246_v4, %v9306_v30  ;;  %v9348_v7 = vsub.f32 %v9242_v42, %v9306_v30 }
 0x32e   :  { %v1676_v57 = vmul.f32 %v9310_v19, %v9310_v19  ;;  %v1675_v58 = vmul.f32 %v9314_v62, %v9314_v62  ;;  %v1678_v45 = vmul.f32 %v9318_v12, %v9318_v12  ;;  %v1677_v5 = vmul.f32 %v9322_v9, %v9322_v9 }
 0x32f   :  { %v1680_v37 = vmul.f32 %v9330_v15, %v9330_v15  ;;  %v1679_v56 = vmul.f32 %v9334_v61, %v9334_v61  ;;  %v1682_v4 = vmul.f32 %v9344_v17, %v9344_v17  ;;  %v1681_v28 = vmul.f32 %v9348_v7, %v9348_v7 }
 0x330   :  { %v1699_v11 = vsel %vm1568_vm0, %v1676_v57, 0.0  ;;  %v1696_v63 = vsel %vm1568_vm0, %v1675_v58, 0.0  ;;  %v1705_v16 = vsel %vm1568_vm0, %v1678_v45, 0.0  ;;  %v1702_v18 = vsel %vm1568_vm0, %v1677_v5, 0.0  ;;  %v5491_v45 = vld [vmem:[%s12017_s3 + $0x50] sm:$0xff]  ;;  %v5490_v5 = vld [vmem:[%s12017_s3 + $0x48] sm:$0xff] }
 0x331   :  { %1700 = vadd.xlane.f32.xlu0 %v1699_v11  ;;  %1697 = vadd.xlane.f32.xlu1 %v1696_v63  ;;  %v1711_v42 = vsel %vm1568_vm0, %v1680_v37, 0.0  ;;  %v1708_v6 = vsel %vm1568_vm0, %v1679_v56, 0.0  ;;  %v9364_v32 = vsub.f32 %v9254_v54, %v9306_v30  ;;  %v9368_v26 = vsub.f32 %v9250_v39, %v9306_v30  ;;  %v5492_v63 = vld [vmem:[%s12017_s3 + $0x58] sm:$0xff]  ;;  %v1817_v37 = vld [vmem:[%s12017_s3 + $0x28] sm:$0xff]  ;;  %v5489_v56 = vld [vmem:[%s12017_s3 + $0x40] sm:$0xff] }
 0x332   :  { %v1717_v35 = vsel %vm1568_vm0, %v1682_v4, 0.0  ;;  %v1714_v43 = vsel %vm1568_vm0, %v1681_v28, 0.0  ;;  %v9378_v54 = vsub.f32 %v9262_v50, %v9306_v30  ;;  %v9382_v39 = vsub.f32 %v9258_v36, %v9306_v30  ;;  %v1816_v4 = vld [vmem:[%s12017_s3 + $0x20] sm:$0xff]  ;;  %v1815_v28 = vld [vmem:[%s12017_s3 + $0x18] sm:$0xff] }
 0x333   :  { %v1684_v1 = vmul.f32 %v9364_v32, %v9364_v32  ;;  %v1683_v44 = vmul.f32 %v9368_v26, %v9368_v26  ;;  %v9386_v41 = vsub.f32 %v9270_v47, %v9306_v30  ;;  %v9390_v29 = vsub.f32 %v9266_v53, %v9306_v30  ;;  %v5495_v53 = vld [vmem:[%s12017_s3 + $0x70] sm:$0xff] }
 0x334   :  { %v1686_v50 = vmul.f32 %v9378_v54, %v9378_v54  ;;  %v1685_v36 = vmul.f32 %v9382_v39, %v9382_v39  ;;  %v9402_v2 = vsub.f32 %v9278_v21, %v9306_v30  ;;  %v9413_v52 = vsub.f32 %v9274_v25, %v9306_v30  ;;  %6222 = vmatpush3.msra.mxu1 %v5495_v53 }
 0x335   :  { %1706 = vadd.xlane.f32.xlu0 %v1705_v16  ;;  %1703 = vadd.xlane.f32.xlu1 %v1702_v18  ;;  %v1723_v59 = vsel %vm1568_vm0, %v1684_v1, 0.0  ;;  %v1720_v13 = vsel %vm1568_vm0, %v1683_v44, 0.0  ;;  %v1688_v47 = vmul.f32 %v9386_v41, %v9386_v41  ;;  %v1687_v38 = vmul.f32 %v9390_v29, %v9390_v29  ;;  %v1819_v16 = vld [vmem:[%s12017_s3 + $0x38] sm:$0xff]  ;;  %v1818_v18 = vld [vmem:[%s12017_s3 + $0x30] sm:$0xff] }
 0x336   :  { %v1729_v3 = vsel %vm1568_vm0, %v1686_v50, 0.0  ;;  %v1726_v14 = vsel %vm1568_vm0, %v1685_v36, 0.0  ;;  %6223 = vmatprep.subr.mxu1 %v12145_v33  ;;  %v1690_v22 = vmul.f32 %v9402_v2, %v9402_v2  ;;  %v1689_v48 = vmul.f32 %v9413_v52, %v9413_v52  ;;  %6299 = vmatpush3.msra.mxu0 %v1819_v16 }
 0x337   :  { %v1735_v21 = vsel %vm1568_vm0, %v1688_v47, 0.0  ;;  %v1732_v31 = vsel %vm1568_vm0, %v1687_v38, 0.0  ;;  %v9424_v20 = vsub.f32 %v9286_v10, %v9306_v30  ;;  %v9428_v25 = vsub.f32 %v9282_v51, %v9306_v30  ;;  %6224 = vmatpush3.msra.mxu1 %v5494_v40  ;;  %6300 = vmatprep.subr.mxu0 %v12145_v33 }
 0x338   :  { %v1741_v23 = vsel %vm1568_vm0, %v1690_v22, 0.0  ;;  %v9433_v0 = vsub.f32 %v9294_v8, %v9306_v30  ;;  %v1738_v55 = vsel %vm1568_vm0, %v1689_v48, 0.0  ;;  %v9445_v27 = vsub.f32 %v9290_v60, %v9306_v30  ;;  %6225 = vmatprep.subr.mxu1 %v12145_v33  ;;  %6301 = vmatpush3.msra.mxu0 %v1818_v18 }
 0x339   :  { %1712 = vadd.xlane.f32.xlu0 %v1711_v42  ;;  %1709 = vadd.xlane.f32.xlu1 %v1708_v6  ;;  %v1692_v10 = vmul.f32 %v9424_v20, %v9424_v20  ;;  %v1691_v51 = vmul.f32 %v9428_v25, %v9428_v25  ;;  %v9450_v8 = vsub.f32 %v9298_v24, %v9306_v30  ;;  %v5493_v30 = vld [vmem:[%s12017_s3 + $0x60] sm:$0xff]  ;;  %v1814_v42 = vld [vmem:[%s12017_s3 + $0x10] sm:$0xff]  ;;  %v1813_v6 = vld [vmem:[%s12017_s3 + $0x8] sm:$0xff] }
 0x33a   :  { %v1694_v49 = vmul.f32 %v9433_v0, %v9433_v0  ;;  %v1693_v60 = vmul.f32 %v9445_v27, %v9445_v27  ;;  %6226 = vmatpush3.msra.mxu1 %v5493_v30  ;;  %6302 = vmatprep.subr.mxu0 %v12145_v33 }
 0x33b   :  { %v1747_v34 = vsel %vm1568_vm0, %v1692_v10, 0.0  ;;  %v1744_v46 = vsel %vm1568_vm0, %v1691_v51, 0.0  ;;  %v1695_v24 = vmul.f32 %v9450_v8, %v9450_v8  ;;  %6227 = vmatprep.subr.mxu1 %v12145_v33  ;;  %6303 = vmatpush3.msra.mxu0 %v1817_v37 }
 0x33c   :  { %v1753_v57 = vsel %vm1568_vm0, %v1694_v49, 0.0  ;;  %v1750_v58 = vsel %vm1568_vm0, %v1693_v60, 0.0  ;;  %6228 = vmatpush3.msra.mxu1 %v5492_v63  ;;  %6304 = vmatprep.subr.mxu0 %v12145_v33 }
 0x33d   :  { %1718 = vadd.xlane.f32.xlu0 %v1717_v35  ;;  %1715 = vadd.xlane.f32.xlu1 %v1714_v43  ;;  %v1756_v11 = vsel %vm1568_vm0, %v1695_v24, 0.0  ;;  %v1812_v35 = vld [vmem:[%s12017_s3] sm:$0xff] }
 0x33e   :  { %6229 = vmatprep.subr.mxu1 %v12145_v33  ;;  %6305 = vmatpush3.msra.mxu0 %v1816_v4 }
 0x33f   :  { %6230 = vmatpush3.msra.mxu1 %v5491_v45  ;;  %6306 = vmatprep.subr.mxu0 %v12145_v33 }
 0x340   :  { %6231 = vmatprep.subr.mxu1 %v12145_v33  ;;  %6307 = vmatpush3.msra.mxu0 %v1815_v28 }
 0x341   :  { %1724 = vadd.xlane.f32.xlu0 %v1723_v59  ;;  %1721 = vadd.xlane.f32.xlu1 %v1720_v13 }
 0x342   :  { %6232 = vmatpush3.msra.mxu1 %v5490_v5  ;;  %6308 = vmatprep.subr.mxu0 %v12145_v33 }
 0x343   :  { %6233 = vmatprep.subr.mxu1 %v12145_v33  ;;  %6309 = vmatpush3.msra.mxu0 %v1814_v42 }
 0x344   :  { %6234 = vmatpush3.msra.mxu1 %v5489_v56  ;;  %6310 = vmatprep.subr.mxu0 %v12145_v33 }
 0x345   :  { %1730 = vadd.xlane.f32.xlu0 %v1729_v3  ;;  %1727 = vadd.xlane.f32.xlu1 %v1726_v14 }
 0x346   :  { %6377 = vmatprep.subr.mxu1 %v12145_v33  ;;  %6311 = vmatpush3.msra.mxu0 %v1813_v6 }
 0x347   :  { %6312 = vmatprep.subr.mxu0 %v12145_v33 }
 0x348   :  { %6313 = vmatpush3.msra.mxu0 %v1812_v35 }
 0x349   :  { %1736 = vadd.xlane.f32.xlu0 %v1735_v21  ;;  %1733 = vadd.xlane.f32.xlu1 %v1732_v31 }
 0x34a   :  { %6315 = vmatmul.mubr.f32.vlgmr.msra.gmra.mxu0 %v12145_v33  ;;  %6456 = vmatprep.subr.mxu0 %v12145_v33 }
 0x34b   :  { %6317 = vmatprep.mubr.msk.f32.mxu0 %vm7435_vm1, %v12145_v33 }
 0x34d   :  { %1742 = vadd.xlane.f32.xlu0 %v1741_v23  ;;  %1739 = vadd.xlane.f32.xlu1 %v1738_v55 }
 0x351   :  { %1748 = vadd.xlane.f32.xlu0 %v1747_v34  ;;  %1745 = vadd.xlane.f32.xlu1 %v1744_v46 }
 0x355   :  { %1754 = vadd.xlane.f32.xlu0 %v1753_v57  ;;  %1751 = vadd.xlane.f32.xlu1 %v1750_v58 }
 0x359   :  { %1757 = vadd.xlane.f32.xlu1 %v1756_v11 }
 0x3ba   :  { %v1701_v43 = vpop.xlane.xlu0 %1700  ;;  %v1698_v1 = vpop.xlane.xlu1 %1697 }
 0x3bb   :  { %v1759_v44 = vadd.f32 %v1701_v43, %v1698_v1 }
 0x3be   :  { %v1707_v59 = vpop.xlane.xlu0 %1706  ;;  %v1704_v13 = vpop.xlane.xlu1 %1703 }
 0x3bf   :  { %v1760_v50 = vadd.f32 %v1759_v44, %v1704_v13 }
 0x3c1   :  { %v1761_v36 = vadd.f32 %v1760_v50, %v1707_v59 }
 0x3c2   :  { %v1713_v47 = vpop.xlane.xlu0 %1712  ;;  %v1710_v53 = vpop.xlane.xlu1 %1709 }
 0x3c3   :  { %v1762_v3 = vadd.f32 %v1761_v36, %v1710_v53  ;;  %v5545_v53 = vld [vmem:[%s12017_s3 + $0xb8] sm:$0xff] }
 0x3c5   :  { %v1763_v14 = vadd.f32 %v1762_v3, %v1713_v47  ;;  %v5544_v3 = vld [vmem:[%s12017_s3 + $0xb0] sm:$0xff] }
 0x3c6   :  { %v1719_v38 = vpop.xlane.xlu0 %1718  ;;  %v1716_v21 = vpop.xlane.xlu1 %1715 }
 0x3c7   :  { %v1764_v22 = vadd.f32 %v1763_v14, %v1716_v21  ;;  %v5543_v14 = vld [vmem:[%s12017_s3 + $0xa8] sm:$0xff]  ;;  %v5541_v21 = vld [vmem:[%s12017_s3 + $0x98] sm:$0xff] }
 0x3c9   :  { %v1765_v31 = vadd.f32 %v1764_v22, %v1719_v38  ;;  %v5542_v38 = vld [vmem:[%s12017_s3 + $0xa0] sm:$0xff]  ;;  %v5540_v22 = vld [vmem:[%s12017_s3 + $0x90] sm:$0xff] }
 0x3ca   :  { %v1725_v48 = vpop.xlane.xlu0 %1724  ;;  %v1722_v23 = vpop.xlane.xlu1 %1721 }
 0x3cb   :  { %v1766_v40 = vadd.f32 %v1765_v31, %v1722_v23  ;;  %v5539_v31 = vld [vmem:[%s12017_s3 + $0x88] sm:$0xff] }
 0x3cd   :  { %v1767_v55 = vadd.f32 %v1766_v40, %v1725_v48  ;;  %v5538_v48 = vld [vmem:[%s12017_s3 + $0x80] sm:$0xff] }
 0x3ce   :  { %v1731_v10 = vpop.xlane.xlu0 %1730  ;;  %v1728_v51 = vpop.xlane.xlu1 %1727 }
 0x3cf   :  { %v1768_v34 = vadd.f32 %v1767_v55, %v1728_v51  ;;  %v5571_v51 = vld [vmem:[%s12018_s5 + $0x60] sm:$0xff] }
 0x3d1   :  { %v1769_v46 = vadd.f32 %v1768_v34, %v1731_v10  ;;  %v5573_v10 = vld [vmem:[%s12018_s5 + $0x70] sm:$0xff]  ;;  %v5570_v34 = vld [vmem:[%s12018_s5 + $0x58] sm:$0xff] }
 0x3d2   :  { %v1737_v49 = vpop.xlane.xlu0 %1736  ;;  %v1734_v60 = vpop.xlane.xlu1 %1733 }
 0x3d3   :  { %v1770_v57 = vadd.f32 %v1769_v46, %v1734_v60  ;;  %v5569_v46 = vld [vmem:[%s12018_s5 + $0x50] sm:$0xff]  ;;  %v2491_v60 = vld [vmem:[%s12018_s5 + $0x38] sm:$0xff] }
 0x3d5   :  { %v1771_v58 = vadd.f32 %v1770_v57, %v1737_v49  ;;  %v5568_v49 = vld [vmem:[%s12018_s5 + $0x48] sm:$0xff]  ;;  %v2490_v57 = vld [vmem:[%s12018_s5 + $0x30] sm:$0xff] }
 0x3d6   :  { %v1743_v24 = vpop.xlane.xlu0 %1742  ;;  %v1740_v30 = vpop.xlane.xlu1 %1739 }
 0x3d7   :  { %v1772_v11 = vadd.f32 %v1771_v58, %v1740_v30  ;;  %v2489_v58 = vld [vmem:[%s12018_s5 + $0x28] sm:$0xff]  ;;  %v2487_v30 = vld [vmem:[%s12018_s5 + $0x18] sm:$0xff] }
 0x3d9   :  { %v1773_v63 = vadd.f32 %v1772_v11, %v1743_v24  ;;  %v2488_v24 = vld [vmem:[%s12018_s5 + $0x20] sm:$0xff] }
 0x3da   :  { %v1749_v45 = vpop.xlane.xlu0 %1748  ;;  %v1746_v5 = vpop.xlane.xlu1 %1745  ;;  %v5567_v11 = vld [vmem:[%s12018_s5 + $0x40] sm:$0xff] }
 0x3db   :  { %v1774_v16 = vadd.f32 %v1773_v63, %v1746_v5  ;;  %v2486_v63 = vld [vmem:[%s12018_s5 + $0x10] sm:$0xff]  ;;  %v2484_v5 = vld [vmem:[%s12018_s5] sm:$0xff] }
 0x3dd   :  { %v1775_v18 = vadd.f32 %v1774_v16, %v1749_v45  ;;  %v2485_v45 = vld [vmem:[%s12018_s5 + $0x8] sm:$0xff] }
 0x3de   :  { %v1752_v37 = vpop.xlane.xlu1 %1751  ;;  %v1755_v4 = vpop.xlane.xlu0 %1754 }
 0x3df   :  { %v1776_v56 = vadd.f32 %v1775_v18, %v1752_v37 }
 0x3e1   :  { %v1777_v28 = vadd.f32 %v1776_v56, %v1755_v4 }
 0x3e2   :  { %v1758_v42 = vpop.xlane.xlu1 %1757 }
 0x3e3   :  { %v1778_v6 = vadd.f32 %v1777_v28, %v1758_v42 }
 0x3e5   :  { %v1780_v35 = vmul.f32 0.00074460165, %v1778_v6 }
 0x3e7   :  { %7274 = vrsqrt.f32 %v1780_v35  ;;  %vm1783_vm2 = vcmp.eq.f32.partialorder %v1780_v35, inf  ;;  %v1786_v44 = vand.u32 2147483648, %v1780_v35  ;;  %vm1785_vm3 = vcmp.eq.f32.partialorder %v1780_v35, 0.0 }
 0x3f4   :  { %v7275_v43 = vpop.eup %7274 }
 0x3f5   :  { %v1782_v1 = vmul.f32 %v7275_v43, %v1780_v35 }
 0x3f7   :  { %v1784_v59 = vsel %vm1783_vm2, %v1780_v35, %v1782_v1 }
 0x3f8   :  { %v1787_v13 = vsel %vm1785_vm3, %v1786_v44, %v1784_v59 }
 0x3f9   :  { %v1788_v50 = vadd.f32 1e-05, %v1787_v13 }
 0x3fb   :  { %7276 = vrcp.f32 %v1788_v50 }
 0x408   :  { %v9522_v36 = vpop.eup %7276 }
 0x409   :  { %v1791_v47 = vmul.f32 %v9522_v36, %v9314_v62  ;;  %v9540_v62 = vmul.f32 %v9522_v36, %v9310_v19  ;;  %v9556_v19 = vmul.f32 %v9522_v36, %v9322_v9  ;;  %v9572_v9 = vmul.f32 %v9522_v36, %v9318_v12 }
 0x40a   :  { %v9588_v12 = vmul.f32 %v9522_v36, %v9334_v61  ;;  %v9604_v61 = vmul.f32 %v9522_v36, %v9330_v15  ;;  %v9620_v15 = vmul.f32 %v9522_v36, %v9348_v7  ;;  %v9636_v7 = vmul.f32 %v9522_v36, %v9344_v17 }
 0x40b   :  { %6236 = vmatmul.mubr.msk.f32.vlgmr.msra.gmra.mxu1 %vm1568_vm0, %v1791_v47  ;;  %6318 = vmatmul.mubr.msk.f32.gmra.mxu0 %vm1568_vm0, %v1791_v47  ;;  %v9649_v23 = vmul.f32 %v9522_v36, %v9368_v26  ;;  %v9662_v17 = vmul.f32 %v9522_v36, %v9364_v32  ;;  %v9674_v26 = vmul.f32 %v9522_v36, %v9382_v39 }
 0x40c   :  { %6378 = vmatpush3.msra.mxu1 %v5545_v53  ;;  %6238 = vmatprep.mubr.msk.f32.mxu1 %vm7435_vm1, %v12145_v33  ;;  %v9686_v32 = vmul.f32 %v9522_v36, %v9378_v54  ;;  %v9698_v39 = vmul.f32 %v9522_v36, %v9390_v29  ;;  %v9710_v54 = vmul.f32 %v9522_v36, %v9386_v41 }
 0x40d   :  { %6320 = vmatprep.mubr.msk.f32.mxu0 %vm7435_vm1, %v12145_v33  ;;  %6379 = vmatprep.subr.mxu1 %v12145_v33  ;;  %v9722_v29 = vmul.f32 %v9522_v36, %v9413_v52  ;;  %v9734_v41 = vmul.f32 %v9522_v36, %v9402_v2  ;;  %v9746_v52 = vmul.f32 %v9522_v36, %v9428_v25  ;;  %v9752_v2 = vpop.f32.mrf.mxu0 }
 0x40e   :  { %6380 = vmatpush3.msra.mxu1 %v5544_v3  ;;  %v9760_v40 = vmul.f32 %v9522_v36, %v9424_v20  ;;  %v9772_v55 = vmul.f32 %v9522_v36, %v9445_v27  ;;  %v9784_v20 = vmul.f32 %v9522_v36, %v9433_v0  ;;  %v5574_v27 = vld [vmem:[%s12018_s5 + $0x78] sm:$0xff]  ;;  %v9798_v0 = vmul.f32 %v9522_v36, %v9450_v8  ;;  %v5572_v8 = vld [vmem:[%s12018_s5 + $0x68] sm:$0xff] }
 0x40f   :  { %6239 = vmatmul.mubr.msk.f32.gmra.mxu1 %vm1568_vm0, %v9540_v62  ;;  %6321 = vmatmul.mubr.msk.f32.gmra.mxu0 %vm1568_vm0, %v9540_v62  ;;  %v6316_v25 = vpop.f32.mrf.mxu0 }
 0x410   :  { %6241 = vmatprep.mubr.msk.f32.mxu1 %vm7435_vm1, %v12145_v33  ;;  %6323 = vmatprep.mubr.msk.f32.mxu0 %vm7435_vm1, %v12145_v33 }
 0x411   :  { %6381 = vmatprep.subr.mxu1 %v12145_v33  ;;  %6457 = vmatpush3.msra.mxu0 %v5574_v27 }
 0x412   :  { %6382 = vmatpush3.msra.mxu1 %v5543_v14  ;;  %6458 = vmatprep.subr.mxu0 %v12145_v33 }
 0x413   :  { %6242 = vmatmul.mubr.msk.f32.gmra.mxu1 %vm1568_vm0, %v9556_v19  ;;  %6324 = vmatmul.mubr.msk.f32.gmra.mxu0 %vm1568_vm0, %v9556_v19 }
 0x414   :  { %6244 = vmatprep.mubr.msk.f32.mxu1 %vm7435_vm1, %v12145_v33  ;;  %6326 = vmatprep.mubr.msk.f32.mxu0 %vm7435_vm1, %v12145_v33 }
 0x415   :  { %6383 = vmatprep.subr.mxu1 %v12145_v33  ;;  %6459 = vmatpush3.msra.mxu0 %v5573_v10 }
 0x416   :  { %6384 = vmatpush3.msra.mxu1 %v5542_v38  ;;  %6460 = vmatprep.subr.mxu0 %v12145_v33 }
 0x417   :  { %6245 = vmatmul.mubr.msk.f32.gmra.mxu1 %vm1568_vm0, %v9572_v9  ;;  %6327 = vmatmul.mubr.msk.f32.gmra.mxu0 %vm1568_vm0, %v9572_v9 }
 0x418   :  { %6247 = vmatprep.mubr.msk.f32.mxu1 %vm7435_vm1, %v12145_v33  ;;  %6329 = vmatprep.mubr.msk.f32.mxu0 %vm7435_vm1, %v12145_v33 }
 0x419   :  { %6385 = vmatprep.subr.mxu1 %v12145_v33  ;;  %6461 = vmatpush3.msra.mxu0 %v5572_v8 }
 0x41a   :  { %6386 = vmatpush3.msra.mxu1 %v5541_v21  ;;  %6462 = vmatprep.subr.mxu0 %v12145_v33 }
 0x41b   :  { %6248 = vmatmul.mubr.msk.f32.gmra.mxu1 %vm1568_vm0, %v9588_v12  ;;  %6330 = vmatmul.mubr.msk.f32.gmra.mxu0 %vm1568_vm0, %v9588_v12 }
 0x41c   :  { %6250 = vmatprep.mubr.msk.f32.mxu1 %vm7435_vm1, %v12145_v33  ;;  %6332 = vmatprep.mubr.msk.f32.mxu0 %vm7435_vm1, %v12145_v33 }
 0x41d   :  { %6387 = vmatprep.subr.mxu1 %v12145_v33  ;;  %6463 = vmatpush3.msra.mxu0 %v5571_v51 }
 0x41e   :  { %6388 = vmatpush3.msra.mxu1 %v5540_v22  ;;  %6464 = vmatprep.subr.mxu0 %v12145_v33 }
 0x41f   :  { %6251 = vmatmul.mubr.msk.f32.gmra.mxu1 %vm1568_vm0, %v9604_v61  ;;  %6333 = vmatmul.mubr.msk.f32.gmra.mxu0 %vm1568_vm0, %v9604_v61 }
 0x420   :  { %6253 = vmatprep.mubr.msk.f32.mxu1 %vm7435_vm1, %v12145_v33  ;;  %6335 = vmatprep.mubr.msk.f32.mxu0 %vm7435_vm1, %v12145_v33 }
 0x421   :  { %6389 = vmatprep.subr.mxu1 %v12145_v33  ;;  %6465 = vmatpush3.msra.mxu0 %v5570_v34 }
 0x422   :  { %6390 = vmatpush3.msra.mxu1 %v5539_v31  ;;  %6466 = vmatprep.subr.mxu0 %v12145_v33 }
 0x423   :  { %6254 = vmatmul.mubr.msk.f32.gmra.mxu1 %vm1568_vm0, %v9620_v15  ;;  %6336 = vmatmul.mubr.msk.f32.gmra.mxu0 %vm1568_vm0, %v9620_v15 }
 0x424   :  { %6256 = vmatprep.mubr.msk.f32.mxu1 %vm7435_vm1, %v12145_v33  ;;  %6338 = vmatprep.mubr.msk.f32.mxu0 %vm7435_vm1, %v12145_v33 }
 0x425   :  { %6391 = vmatprep.subr.mxu1 %v12145_v33  ;;  %6467 = vmatpush3.msra.mxu0 %v5569_v46 }
 0x426   :  { %6392 = vmatpush3.msra.mxu1 %v5538_v48  ;;  %6468 = vmatprep.subr.mxu0 %v12145_v33 }
 0x427   :  { %6257 = vmatmul.mubr.msk.f32.gmra.mxu1 %vm1568_vm0, %v9636_v7  ;;  %6339 = vmatmul.mubr.msk.f32.gmra.mxu0 %vm1568_vm0, %v9636_v7 }
 0x428   :  { %6259 = vmatprep.mubr.msk.f32.mxu1 %vm7435_vm1, %v12145_v33  ;;  %6341 = vmatprep.mubr.msk.f32.mxu0 %vm7435_vm1, %v12145_v33 }
 0x429   :  { %6535 = vmatprep.subr.mxu1 %v12145_v33  ;;  %6469 = vmatpush3.msra.mxu0 %v5568_v49 }
 0x42a   :  { %6470 = vmatprep.subr.mxu0 %v12145_v33 }
 0x42b   :  { %6260 = vmatmul.mubr.msk.f32.gmra.mxu1 %vm1568_vm0, %v9649_v23  ;;  %6342 = vmatmul.mubr.msk.f32.gmra.mxu0 %vm1568_vm0, %v9649_v23 }
 0x42c   :  { %6262 = vmatprep.mubr.msk.f32.mxu1 %vm7435_vm1, %v12145_v33  ;;  %6344 = vmatprep.mubr.msk.f32.mxu0 %vm7435_vm1, %v12145_v33 }
 0x42d   :  { %6471 = vmatpush3.msra.mxu0 %v5567_v11 }
 0x42e   :  { %6614 = vmatprep.subr.mxu0 %v12145_v33 }
 0x42f   :  { %6263 = vmatmul.mubr.msk.f32.gmra.mxu1 %vm1568_vm0, %v9662_v17  ;;  %6345 = vmatmul.mubr.msk.f32.gmra.mxu0 %vm1568_vm0, %v9662_v17 }
 0x430   :  { %6265 = vmatprep.mubr.msk.f32.mxu1 %vm7435_vm1, %v12145_v33  ;;  %6347 = vmatprep.mubr.msk.f32.mxu0 %vm7435_vm1, %v12145_v33 }
 0x433   :  { %6266 = vmatmul.mubr.msk.f32.gmra.mxu1 %vm1568_vm0, %v9674_v26  ;;  %6348 = vmatmul.mubr.msk.f32.gmra.mxu0 %vm1568_vm0, %v9674_v26 }
 0x434   :  { %6268 = vmatprep.mubr.msk.f32.mxu1 %vm7435_vm1, %v12145_v33  ;;  %6350 = vmatprep.mubr.msk.f32.mxu0 %vm7435_vm1, %v12145_v33 }
 0x437   :  { %6269 = vmatmul.mubr.msk.f32.gmra.mxu1 %vm1568_vm0, %v9686_v32  ;;  %6351 = vmatmul.mubr.msk.f32.gmra.mxu0 %vm1568_vm0, %v9686_v32 }
 0x438   :  { %6271 = vmatprep.mubr.msk.f32.mxu1 %vm7435_vm1, %v12145_v33  ;;  %6353 = vmatprep.mubr.msk.f32.mxu0 %vm7435_vm1, %v12145_v33 }
 0x43b   :  { %6272 = vmatmul.mubr.msk.f32.gmra.mxu1 %vm1568_vm0, %v9698_v39  ;;  %6354 = vmatmul.mubr.msk.f32.gmra.mxu0 %vm1568_vm0, %v9698_v39 }
 0x43c   :  { %6274 = vmatprep.mubr.msk.f32.mxu1 %vm7435_vm1, %v12145_v33  ;;  %6356 = vmatprep.mubr.msk.f32.mxu0 %vm7435_vm1, %v12145_v33 }
 0x43f   :  { %6275 = vmatmul.mubr.msk.f32.gmra.mxu1 %vm1568_vm0, %v9710_v54  ;;  %6357 = vmatmul.mubr.msk.f32.gmra.mxu0 %vm1568_vm0, %v9710_v54 }
 0x440   :  { %6277 = vmatprep.mubr.msk.f32.mxu1 %vm7435_vm1, %v12145_v33  ;;  %6359 = vmatprep.mubr.msk.f32.mxu0 %vm7435_vm1, %v12145_v33 }
 0x443   :  { %6278 = vmatmul.mubr.msk.f32.gmra.mxu1 %vm1568_vm0, %v9722_v29  ;;  %6360 = vmatmul.mubr.msk.f32.gmra.mxu0 %vm1568_vm0, %v9722_v29 }
 0x444   :  { %6280 = vmatprep.mubr.msk.f32.mxu1 %vm7435_vm1, %v12145_v33  ;;  %6362 = vmatprep.mubr.msk.f32.mxu0 %vm7435_vm1, %v12145_v33 }
 0x447   :  { %6281 = vmatmul.mubr.msk.f32.gmra.mxu1 %vm1568_vm0, %v9734_v41  ;;  %6363 = vmatmul.mubr.msk.f32.gmra.mxu0 %vm1568_vm0, %v9734_v41 }
 0x448   :  { %6283 = vmatprep.mubr.msk.f32.mxu1 %vm7435_vm1, %v12145_v33  ;;  %6365 = vmatprep.mubr.msk.f32.mxu0 %vm7435_vm1, %v12145_v33 }
 0x44b   :  { %6284 = vmatmul.mubr.msk.f32.gmra.mxu1 %vm1568_vm0, %v9746_v52  ;;  %6366 = vmatmul.mubr.msk.f32.gmra.mxu0 %vm1568_vm0, %v9746_v52 }
 0x44c   :  { %6286 = vmatprep.mubr.msk.f32.mxu1 %vm7435_vm1, %v12145_v33  ;;  %6368 = vmatprep.mubr.msk.f32.mxu0 %vm7435_vm1, %v12145_v33 }
 0x44f   :  { %6287 = vmatmul.mubr.msk.f32.gmra.mxu1 %vm1568_vm0, %v9760_v40  ;;  %6369 = vmatmul.mubr.msk.f32.gmra.mxu0 %vm1568_vm0, %v9760_v40 }
 0x450   :  { %6289 = vmatprep.mubr.msk.f32.mxu1 %vm7435_vm1, %v12145_v33  ;;  %6371 = vmatprep.mubr.msk.f32.mxu0 %vm7435_vm1, %v12145_v33 }
 0x453   :  { %6290 = vmatmul.mubr.msk.f32.gmra.mxu1 %vm1568_vm0, %v9772_v55  ;;  %6372 = vmatmul.mubr.msk.f32.gmra.mxu0 %vm1568_vm0, %v9772_v55 }
 0x454   :  { %6292 = vmatprep.mubr.msk.f32.mxu1 %vm7435_vm1, %v12145_v33  ;;  %6374 = vmatprep.mubr.msk.f32.mxu0 %vm7435_vm1, %v12145_v33 }
 0x457   :  { %6293 = vmatmul.mubr.msk.f32.gmra.mxu1 %vm1568_vm0, %v9784_v20  ;;  %6375 = vmatmul.mubr.msk.f32.gmra.mxu0 %vm1568_vm0, %v9784_v20 }
 0x458   :  { %6295 = vmatprep.mubr.msk.f32.mxu1 %vm7435_vm1, %v12145_v33  ;;  %6472 = vmatprep.mubr.msk.f32.mxu0 %vm7435_vm1, %v12145_v33 }
 0x45b   :  { %6296 = vmatmul.mubr.msk.f32.gmra.mxu1 %vm1568_vm0, %v9798_v0 }
 0x45c   :  { %6393 = vmatprep.mubr.msk.f32.mxu1 %vm7435_vm1, %v12145_v33 }
 0x45f   :  { %6394 = vmatmul.mubr.msk.f32.vlgmr.msra.gmra.mxu1 %vm1568_vm0, %v9540_v62 }
 0x460   :  { %6396 = vmatprep.mubr.msk.f32.mxu1 %vm7435_vm1, %v12145_v33  ;;  %6536 = vmatpush3.msra.mxu1 %v2491_v60 }
 0x461   :  { %6537 = vmatprep.subr.mxu1 %v12145_v33 }
 0x462   :  { %6538 = vmatpush3.msra.mxu1 %v2490_v57 }
 0x463   :  { %6397 = vmatmul.mubr.msk.f32.gmra.mxu1 %vm1568_vm0, %v9556_v19  ;;  %6539 = vmatprep.subr.mxu1 %v12145_v33 }
 0x464   :  { %6399 = vmatprep.mubr.msk.f32.mxu1 %vm7435_vm1, %v12145_v33  ;;  %6540 = vmatpush3.msra.mxu1 %v2489_v58 }
 0x465   :  { %6541 = vmatprep.subr.mxu1 %v12145_v33 }
 0x466   :  { %6542 = vmatpush3.msra.mxu1 %v2488_v24 }
 0x467   :  { %6400 = vmatmul.mubr.msk.f32.gmra.mxu1 %vm1568_vm0, %v9572_v9  ;;  %6543 = vmatprep.subr.mxu1 %v12145_v33 }
 0x468   :  { %6402 = vmatprep.mubr.msk.f32.mxu1 %vm7435_vm1, %v12145_v33  ;;  %6544 = vmatpush3.msra.mxu1 %v2487_v30 }
 0x469   :  { %6545 = vmatprep.subr.mxu1 %v12145_v33 }
 0x46a   :  { %6546 = vmatpush3.msra.mxu1 %v2486_v63 }
 0x46b   :  { %6403 = vmatmul.mubr.msk.f32.gmra.mxu1 %vm1568_vm0, %v9588_v12  ;;  %6547 = vmatprep.subr.mxu1 %v12145_v33 }
 0x46c   :  { %6405 = vmatprep.mubr.msk.f32.mxu1 %vm7435_vm1, %v12145_v33  ;;  %6548 = vmatpush3.msra.mxu1 %v2485_v45 }
 0x46d   :  { %6549 = vmatprep.subr.mxu1 %v12145_v33 }
 0x46e   :  { %6550 = vmatpush3.msra.mxu1 %v2484_v5 }
 0x46f   :  { %6406 = vmatmul.mubr.msk.f32.gmra.mxu1 %vm1568_vm0, %v9604_v61  ;;  %6693 = vmatprep.subr.mxu1 %v12145_v33 }
 0x470   :  { %6408 = vmatprep.mubr.msk.f32.mxu1 %vm7435_vm1, %v12145_v33 }
 0x473   :  { %6409 = vmatmul.mubr.msk.f32.gmra.mxu1 %vm1568_vm0, %v9620_v15 }
 0x474   :  { %6411 = vmatprep.mubr.msk.f32.mxu1 %vm7435_vm1, %v12145_v33 }
 0x477   :  { %6412 = vmatmul.mubr.msk.f32.gmra.mxu1 %vm1568_vm0, %v9636_v7 }
 0x478   :  { %6414 = vmatprep.mubr.msk.f32.mxu1 %vm7435_vm1, %v12145_v33 }
 0x47b   :  { %6415 = vmatmul.mubr.msk.f32.gmra.mxu1 %vm1568_vm0, %v9649_v23 }
 0x47c   :  { %6417 = vmatprep.mubr.msk.f32.mxu1 %vm7435_vm1, %v12145_v33 }
 0x47f   :  { %6418 = vmatmul.mubr.msk.f32.gmra.mxu1 %vm1568_vm0, %v9662_v17 }
 0x480   :  { %6420 = vmatprep.mubr.msk.f32.mxu1 %vm7435_vm1, %v12145_v33 }
 0x483   :  { %6421 = vmatmul.mubr.msk.f32.gmra.mxu1 %vm1568_vm0, %v9674_v26 }
 0x484   :  { %6423 = vmatprep.mubr.msk.f32.mxu1 %vm7435_vm1, %v12145_v33 }
 0x487   :  { %6424 = vmatmul.mubr.msk.f32.gmra.mxu1 %vm1568_vm0, %v9686_v32 }
 0x488   :  { %6426 = vmatprep.mubr.msk.f32.mxu1 %vm7435_vm1, %v12145_v33 }
 0x48b   :  { %6427 = vmatmul.mubr.msk.f32.gmra.mxu1 %vm1568_vm0, %v9698_v39 }
 0x48c   :  { %6429 = vmatprep.mubr.msk.f32.mxu1 %vm7435_vm1, %v12145_v33 }
 0x48f   :  { %6430 = vmatmul.mubr.msk.f32.gmra.mxu1 %vm1568_vm0, %v9710_v54 }
 0x490   :  { %6432 = vmatprep.mubr.msk.f32.mxu1 %vm7435_vm1, %v12145_v33 }
 0x493   :  { %6433 = vmatmul.mubr.msk.f32.gmra.mxu1 %vm1568_vm0, %v9722_v29 }
 0x494   :  { %6435 = vmatprep.mubr.msk.f32.mxu1 %vm7435_vm1, %v12145_v33 }
 0x497   :  { %6436 = vmatmul.mubr.msk.f32.gmra.mxu1 %vm1568_vm0, %v9734_v41 }
 0x498   :  { %6438 = vmatprep.mubr.msk.f32.mxu1 %vm7435_vm1, %v12145_v33 }
 0x49b   :  { %6439 = vmatmul.mubr.msk.f32.gmra.mxu1 %vm1568_vm0, %v9746_v52 }
 0x49c   :  { %6441 = vmatprep.mubr.msk.f32.mxu1 %vm7435_vm1, %v12145_v33 }
 0x49f   :  { %6442 = vmatmul.mubr.msk.f32.gmra.mxu1 %vm1568_vm0, %v9760_v40 }
 0x4a0   :  { %6444 = vmatprep.mubr.msk.f32.mxu1 %vm7435_vm1, %v12145_v33 }
 0x4a3   :  { %6445 = vmatmul.mubr.msk.f32.gmra.mxu1 %vm1568_vm0, %v9772_v55 }
 0x4a4   :  { %6447 = vmatprep.mubr.msk.f32.mxu1 %vm7435_vm1, %v12145_v33 }
 0x4a7   :  { %6448 = vmatmul.mubr.msk.f32.gmra.mxu1 %vm1568_vm0, %v9784_v20 }
 0x4a8   :  { %6450 = vmatprep.mubr.msk.f32.mxu1 %vm7435_vm1, %v12145_v33 }
 0x4ab   :  { %6451 = vmatmul.mubr.msk.f32.gmra.mxu1 %vm1568_vm0, %v9798_v0 }
 0x4ac   :  { %6453 = vmatprep.mubr.msk.f32.mxu1 %vm7435_vm1, %v12145_v33 }
 0x4af   :  { %6454 = vmatmul.mubr.f32.gmra.mxu1 %v12145_v33 }
 0x4b0   :  { %6551 = vmatprep.mubr.msk.f32.mxu1 %vm7435_vm1, %v12145_v33 }
 0x4b3   :  { %6552 = vmatmul.mubr.f32.vlgmr.msra.gmra.mxu1 %v12145_v33 }
 0x4b4   :  { %6554 = vmatprep.mubr.msk.f32.mxu1 %vm7435_vm1, %v12145_v33 }
 0x4cb   :  { %v9952_v16 = vpop.f32.mrf.mxu1  ;;  %v2136_v18 = vpop.f32.mrf.mxu0 }
 0x4cd   :  { %v6237_v37 = vpop.f32.mrf.mxu1  ;;  %v6319_v56 = vpop.f32.mrf.mxu0 }
 0x4cf   :  { %v1963_v4 = vpop.f32.mrf.mxu1  ;;  %v2141_v28 = vpop.f32.mrf.mxu0 }
 0x4d0   :  { %v9954_v42 = vadd.f32 %v2136_v18, %v1963_v4 }
 0x4d1   :  { %v6240_v6 = vpop.f32.mrf.mxu1  ;;  %v6322_v35 = vpop.f32.mrf.mxu0 }
 0x4d3   :  { %v1968_v43 = vpop.f32.mrf.mxu1  ;;  %v2146_v1 = vpop.f32.mrf.mxu0 }
 0x4d4   :  { %v9956_v44 = vadd.f32 %v2141_v28, %v1968_v43 }
 0x4d5   :  { %v6243_v59 = vpop.f32.mrf.mxu1  ;;  %v6325_v13 = vpop.f32.mrf.mxu0 }
 0x4d7   :  { %v1973_v50 = vpop.f32.mrf.mxu1  ;;  %v2151_v36 = vpop.f32.mrf.mxu0 }
 0x4d8   :  { %v9958_v47 = vadd.f32 %v2146_v1, %v1973_v50 }
 0x4d9   :  { %v6246_v53 = vpop.f32.mrf.mxu1  ;;  %v6328_v3 = vpop.f32.mrf.mxu0 }
 0x4db   :  { %v1978_v62 = vpop.f32.mrf.mxu1  ;;  %v2156_v14 = vpop.f32.mrf.mxu0 }
 0x4dc   :  { %v9960_v19 = vadd.f32 %v2151_v36, %v1978_v62 }
 0x4dd   :  { %v6249_v38 = vpop.f32.mrf.mxu1  ;;  %v6331_v9 = vpop.f32.mrf.mxu0 }
 0x4df   :  { %v1983_v21 = vpop.f32.mrf.mxu1  ;;  %v2161_v12 = vpop.f32.mrf.mxu0 }
 0x4e0   :  { %v9962_v22 = vadd.f32 %v2156_v14, %v1983_v21 }
 0x4e1   :  { %v6252_v61 = vpop.f32.mrf.mxu1  ;;  %v6334_v31 = vpop.f32.mrf.mxu0 }
 0x4e3   :  { %v1988_v15 = vpop.f32.mrf.mxu1  ;;  %v2166_v48 = vpop.f32.mrf.mxu0 }
 0x4e4   :  { %v9964_v7 = vadd.f32 %v2161_v12, %v1988_v15 }
 0x4e5   :  { %v6255_v23 = vpop.f32.mrf.mxu1  ;;  %v6337_v17 = vpop.f32.mrf.mxu0 }
 0x4e7   :  { %v1993_v26 = vpop.f32.mrf.mxu1  ;;  %v2171_v32 = vpop.f32.mrf.mxu0 }
 0x4e8   :  { %v9966_v39 = vadd.f32 %v2166_v48, %v1993_v26 }
 0x4e9   :  { %v6258_v54 = vpop.f32.mrf.mxu1  ;;  %v6340_v29 = vpop.f32.mrf.mxu0 }
 0x4eb   :  { %v1998_v41 = vpop.f32.mrf.mxu1  ;;  %v2176_v52 = vpop.f32.mrf.mxu0 }
 0x4ec   :  { %v9968_v40 = vadd.f32 %v2171_v32, %v1998_v41 }
 0x4ed   :  { %v6261_v25 = vpop.f32.mrf.mxu1  ;;  %v6343_v55 = vpop.f32.mrf.mxu0 }
 0x4ef   :  { %v2003_v20 = vpop.f32.mrf.mxu1  ;;  %v2181_v27 = vpop.f32.mrf.mxu0 }
 0x4f0   :  { %v9970_v0 = vadd.f32 %v2176_v52, %v2003_v20 }
 0x4f1   :  { %v6264_v10 = vpop.f32.mrf.mxu1  ;;  %v6346_v8 = vpop.f32.mrf.mxu0 }
 0x4f3   :  { %v2008_v51 = vpop.f32.mrf.mxu1  ;;  %v2186_v34 = vpop.f32.mrf.mxu0 }
 0x4f4   :  { %v9972_v46 = vadd.f32 %v2181_v27, %v2008_v51 }
 0x4f5   :  { %v6267_v49 = vpop.f32.mrf.mxu1  ;;  %v6349_v60 = vpop.f32.mrf.mxu0 }
 0x4f6   :  { %v9999_v60 = vld [vmem:[%s12019_s4] ss:$0 sm:$0xff] }
 0x4f7   :  { %v2013_v57 = vpop.f32.mrf.mxu1  ;;  %v2191_v58 = vpop.f32.mrf.mxu0 }
 0x4f8   :  { %v9974_v24 = vadd.f32 %v2186_v34, %v2013_v57  ;;  %v2132_v34 = vadd.f32 %v9752_v2, %v9952_v16 }
 0x4f9   :  { %v6270_v30 = vpop.f32.mrf.mxu1  ;;  %v6352_v11 = vpop.f32.mrf.mxu0 }
 0x4fb   :  { %v2018_v63 = vpop.f32.mrf.mxu1  ;;  %v2196_v45 = vpop.f32.mrf.mxu0 }
 0x4fc   :  { %v9976_v5 = vadd.f32 %v2191_v58, %v2018_v63 }
 0x4fd   :  { %v6273_v18 = vpop.f32.mrf.mxu1  ;;  %v6355_v37 = vpop.f32.mrf.mxu0 }
 0x4fe   :  { %v5623_v18 = vld [vmem:[%s12018_s5 + $0xb8] sm:$0xff]  ;;  %v5622_v37 = vld [vmem:[%s12018_s5 + $0xb0] sm:$0xff] }
 0x4ff   :  { %v2023_v56 = vpop.f32.mrf.mxu1  ;;  %v2201_v4 = vpop.f32.mrf.mxu0 }
 0x500   :  { %v9978_v28 = vadd.f32 %v2196_v45, %v2023_v56 }
 0x501   :  { %v6276_v6 = vpop.f32.mrf.mxu1  ;;  %v6358_v35 = vpop.f32.mrf.mxu0 }
 0x503   :  { %v2028_v43 = vpop.f32.mrf.mxu1  ;;  %v2206_v1 = vpop.f32.mrf.mxu0 }
 0x504   :  { %v9980_v59 = vadd.f32 %v2201_v4, %v2028_v43  ;;  %v5621_v43 = vld [vmem:[%s12018_s5 + $0xa8] sm:$0xff] }
 0x505   :  { %v6279_v13 = vpop.f32.mrf.mxu1  ;;  %v6361_v50 = vpop.f32.mrf.mxu0 }
 0x507   :  { %v2033_v36 = vpop.f32.mrf.mxu1  ;;  %v2211_v53 = vpop.f32.mrf.mxu0 }
 0x508   :  { %v9982_v3 = vadd.f32 %v2206_v1, %v2033_v36 }
 0x509   :  { %v6282_v62 = vpop.f32.mrf.mxu1  ;;  %v6364_v14 = vpop.f32.mrf.mxu0 }
 0x50b   :  { %v2038_v38 = vpop.f32.mrf.mxu1  ;;  %v2216_v9 = vpop.f32.mrf.mxu0 }
 0x50c   :  { %v9984_v21 = vadd.f32 %v2211_v53, %v2038_v38  ;;  %v5620_v53 = vld [vmem:[%s12018_s5 + $0xa0] sm:$0xff] }
 0x50d   :  { %v6285_v12 = vpop.f32.mrf.mxu1  ;;  %v6367_v61 = vpop.f32.mrf.mxu0 }
 0x50e   :  { %v5619_v12 = vld [vmem:[%s12018_s5 + $0x98] sm:$0xff] }
 0x50f   :  { %v2043_v31 = vpop.f32.mrf.mxu1  ;;  %v2221_v15 = vpop.f32.mrf.mxu0 }
 0x510   :  { %v9986_v48 = vadd.f32 %v2216_v9, %v2043_v31 }
 0x511   :  { %v6288_v23 = vpop.f32.mrf.mxu1  ;;  %v6370_v17 = vpop.f32.mrf.mxu0 }
 0x512   :  { %v5618_v17 = vld [vmem:[%s12018_s5 + $0x90] sm:$0xff] }
 0x513   :  { %v2048_v26 = vpop.f32.mrf.mxu1  ;;  %v2226_v32 = vpop.f32.mrf.mxu0 }
 0x514   :  { %v9988_v54 = vadd.f32 %v2221_v15, %v2048_v26 }
 0x515   :  { %v6291_v29 = vpop.f32.mrf.mxu1  ;;  %v6373_v41 = vpop.f32.mrf.mxu0 }
 0x517   :  { %v2053_v52 = vpop.f32.mrf.mxu1  ;;  %v2231_v25 = vpop.f32.mrf.mxu0 }
 0x518   :  { %v9990_v55 = vadd.f32 %v2226_v32, %v2053_v52  ;;  %v5617_v52 = vld [vmem:[%s12018_s5 + $0x88] sm:$0xff] }
 0x519   :  { %v6294_v20 = vpop.f32.mrf.mxu1  ;;  %v6376_v27 = vpop.f32.mrf.mxu0 }
 0x51b   :  { %v2058_v10 = vpop.f32.mrf.mxu1 }
 0x51c   :  { %v9992_v8 = vadd.f32 %v2231_v25, %v2058_v10 }
 0x51d   :  { %v6297_v51 = vpop.f32.mrf.mxu1 }
 0x51e   :  { %v5616_v51 = vld [vmem:[%s12018_s5 + $0x80] sm:$0xff] }
 0x51f   :  { %v2310_v49 = vpop.f32.mrf.mxu1 }
 0x520   :  { %v2414_v57 = vadd.f32 %v2310_v49, %v2132_v34 }
 0x521   :  { %v6395_v58 = vpop.f32.mrf.mxu1 }
 0x522   :  { %v2442_v30 = vadd.f32 %v9999_v60, %v2414_v57 }
 0x523   :  { %v2315_v11 = vpop.f32.mrf.mxu1 }
 0x524   :  { %v10002_v63 = vmax.f32 %v2442_v30, 0.0  ;;  %v2415_v45 = vadd.f32 %v2315_v11, %v9954_v42 }
 0x525   :  { %v6398_v2 = vpop.f32.mrf.mxu1 }
 0x526   :  { %v2443_v16 = vadd.f32 %v9999_v60, %v2415_v45  ;;  %6473 = vmatmul.mubr.msk.f32.vlgmr.msra.gmra.mxu0 %vm1568_vm0, %v10002_v63  ;;  %6555 = vmatmul.mubr.msk.f32.gmra.mxu1 %vm1568_vm0, %v10002_v63 }
 0x527   :  { %v2320_v56 = vpop.f32.mrf.mxu1  ;;  %6615 = vmatpush3.msra.mxu0 %v5623_v18  ;;  %6475 = vmatprep.mubr.msk.f32.mxu0 %vm7435_vm1, %v12145_v33 }
 0x528   :  { %v10018_v42 = vmax.f32 %v2443_v16, 0.0  ;;  %v2416_v4 = vadd.f32 %v2320_v56, %v9956_v44  ;;  %6557 = vmatprep.mubr.msk.f32.mxu1 %vm7435_vm1, %v12145_v33  ;;  %6616 = vmatprep.subr.mxu0 %v12145_v33 }
 0x529   :  { %v6401_v6 = vpop.f32.mrf.mxu1  ;;  %6617 = vmatpush3.msra.mxu0 %v5622_v37 }
 0x52a   :  { %v2444_v35 = vadd.f32 %v9999_v60, %v2416_v4  ;;  %6476 = vmatmul.mubr.msk.f32.gmra.mxu0 %vm1568_vm0, %v10018_v42  ;;  %6558 = vmatmul.mubr.msk.f32.gmra.mxu1 %vm1568_vm0, %v10018_v42 }
 0x52b   :  { %v2325_v44 = vpop.f32.mrf.mxu1  ;;  %6478 = vmatprep.mubr.msk.f32.mxu0 %vm7435_vm1, %v12145_v33  ;;  %6560 = vmatprep.mubr.msk.f32.mxu1 %vm7435_vm1, %v12145_v33 }
 0x52c   :  { %v10036_v1 = vmax.f32 %v2444_v35, 0.0  ;;  %v2417_v13 = vadd.f32 %v2325_v44, %v9958_v47  ;;  %6618 = vmatprep.subr.mxu0 %v12145_v33 }
 0x52d   :  { %v6404_v50 = vpop.f32.mrf.mxu1  ;;  %6619 = vmatpush3.msra.mxu0 %v5621_v43 }
 0x52e   :  { %v2445_v36 = vadd.f32 %v9999_v60, %v2417_v13  ;;  %6479 = vmatmul.mubr.msk.f32.gmra.mxu0 %vm1568_vm0, %v10036_v1  ;;  %6561 = vmatmul.mubr.msk.f32.gmra.mxu1 %vm1568_vm0, %v10036_v1 }
 0x52f   :  { %v2330_v62 = vpop.f32.mrf.mxu1  ;;  %6481 = vmatprep.mubr.msk.f32.mxu0 %vm7435_vm1, %v12145_v33  ;;  %6563 = vmatprep.mubr.msk.f32.mxu1 %vm7435_vm1, %v12145_v33 }
 0x530   :  { %v10052_v47 = vmax.f32 %v2445_v36, 0.0  ;;  %v2418_v14 = vadd.f32 %v2330_v62, %v9960_v19  ;;  %6620 = vmatprep.subr.mxu0 %v12145_v33 }
 0x531   :  { %v6407_v38 = vpop.f32.mrf.mxu1  ;;  %6621 = vmatpush3.msra.mxu0 %v5620_v53 }
 0x532   :  { %v2446_v9 = vadd.f32 %v9999_v60, %v2418_v14  ;;  %6482 = vmatmul.mubr.msk.f32.gmra.mxu0 %vm1568_vm0, %v10052_v47  ;;  %6564 = vmatmul.mubr.msk.f32.gmra.mxu1 %vm1568_vm0, %v10052_v47 }
 0x533   :  { %v2335_v61 = vpop.f32.mrf.mxu1  ;;  %6484 = vmatprep.mubr.msk.f32.mxu0 %vm7435_vm1, %v12145_v33  ;;  %6566 = vmatprep.mubr.msk.f32.mxu1 %vm7435_vm1, %v12145_v33 }
 0x534   :  { %v10068_v19 = vmax.f32 %v2446_v9, 0.0  ;;  %v2419_v31 = vadd.f32 %v2335_v61, %v9962_v22  ;;  %6622 = vmatprep.subr.mxu0 %v12145_v33 }
 0x535   :  { %v6410_v15 = vpop.f32.mrf.mxu1  ;;  %6623 = vmatpush3.msra.mxu0 %v5619_v12 }
 0x536   :  { %v2447_v23 = vadd.f32 %v9999_v60, %v2419_v31  ;;  %6485 = vmatmul.mubr.msk.f32.gmra.mxu0 %vm1568_vm0, %v10068_v19  ;;  %6567 = vmatmul.mubr.msk.f32.gmra.mxu1 %vm1568_vm0, %v10068_v19 }
 0x537   :  { %v2340_v26 = vpop.f32.mrf.mxu1  ;;  %6487 = vmatprep.mubr.msk.f32.mxu0 %vm7435_vm1, %v12145_v33  ;;  %6569 = vmatprep.mubr.msk.f32.mxu1 %vm7435_vm1, %v12145_v33 }
 0x538   :  { %v10084_v22 = vmax.f32 %v2447_v23, 0.0  ;;  %v2420_v32 = vadd.f32 %v2340_v26, %v9964_v7  ;;  %6624 = vmatprep.subr.mxu0 %v12145_v33 }
 0x539   :  { %v6413_v29 = vpop.f32.mrf.mxu1  ;;  %6625 = vmatpush3.msra.mxu0 %v5618_v17 }
 0x53a   :  { %v2448_v41 = vadd.f32 %v9999_v60, %v2420_v32  ;;  %6488 = vmatmul.mubr.msk.f32.gmra.mxu0 %vm1568_vm0, %v10084_v22  ;;  %6570 = vmatmul.mubr.msk.f32.gmra.mxu1 %vm1568_vm0, %v10084_v22 }
 0x53b   :  { %v2345_v25 = vpop.f32.mrf.mxu1  ;;  %6490 = vmatprep.mubr.msk.f32.mxu0 %vm7435_vm1, %v12145_v33  ;;  %6572 = vmatprep.mubr.msk.f32.mxu1 %vm7435_vm1, %v12145_v33 }
 0x53c   :  { %v10100_v7 = vmax.f32 %v2448_v41, 0.0  ;;  %v2421_v20 = vadd.f32 %v2345_v25, %v9966_v39  ;;  %6626 = vmatprep.subr.mxu0 %v12145_v33 }
 0x53d   :  { %v6416_v27 = vpop.f32.mrf.mxu1  ;;  %6627 = vmatpush3.msra.mxu0 %v5617_v52 }
 0x53e   :  { %v2449_v10 = vadd.f32 %v9999_v60, %v2421_v20  ;;  %6491 = vmatmul.mubr.msk.f32.gmra.mxu0 %vm1568_vm0, %v10100_v7  ;;  %6573 = vmatmul.mubr.msk.f32.gmra.mxu1 %vm1568_vm0, %v10100_v7 }
 0x53f   :  { %v2350_v34 = vpop.f32.mrf.mxu1  ;;  %6493 = vmatprep.mubr.msk.f32.mxu0 %vm7435_vm1, %v12145_v33  ;;  %6575 = vmatprep.mubr.msk.f32.mxu1 %vm7435_vm1, %v12145_v33 }
 0x540   :  { %v10116_v39 = vmax.f32 %v2449_v10, 0.0  ;;  %v2422_v49 = vadd.f32 %v2350_v34, %v9968_v40  ;;  %6628 = vmatprep.subr.mxu0 %v12145_v33 }
 0x541   :  { %v6419_v57 = vpop.f32.mrf.mxu1  ;;  %6629 = vmatpush3.msra.mxu0 %v5616_v51 }
 0x542   :  { %v2450_v58 = vadd.f32 %v9999_v60, %v2422_v49  ;;  %6494 = vmatmul.mubr.msk.f32.gmra.mxu0 %vm1568_vm0, %v10116_v39  ;;  %6576 = vmatmul.mubr.msk.f32.gmra.mxu1 %vm1568_vm0, %v10116_v39 }
 0x543   :  { %v2355_v30 = vpop.f32.mrf.mxu1  ;;  %6496 = vmatprep.mubr.msk.f32.mxu0 %vm7435_vm1, %v12145_v33  ;;  %6578 = vmatprep.mubr.msk.f32.mxu1 %vm7435_vm1, %v12145_v33 }
 0x544   :  { %v10129_v40 = vmax.f32 %v2450_v58, 0.0  ;;  %v2423_v11 = vadd.f32 %v2355_v30, %v9970_v0  ;;  %6772 = vmatprep.subr.mxu0 %v12145_v33 }
 0x545   :  { %v6422_v45 = vpop.f32.mrf.mxu1 }
 0x546   :  { %v2451_v18 = vadd.f32 %v9999_v60, %v2423_v11  ;;  %6497 = vmatmul.mubr.msk.f32.gmra.mxu0 %vm1568_vm0, %v10129_v40  ;;  %6579 = vmatmul.mubr.msk.f32.gmra.mxu1 %vm1568_vm0, %v10129_v40 }
 0x547   :  { %v2360_v2 = vpop.f32.mrf.mxu1  ;;  %6499 = vmatprep.mubr.msk.f32.mxu0 %vm7435_vm1, %v12145_v33  ;;  %6581 = vmatprep.mubr.msk.f32.mxu1 %vm7435_vm1, %v12145_v33 }
 0x548   :  { %v10142_v16 = vmax.f32 %v2451_v18, 0.0  ;;  %v2424_v0 = vadd.f32 %v2360_v2, %v9972_v46 }
 0x549   :  { %v6425_v37 = vpop.f32.mrf.mxu1 }
 0x54a   :  { %v2452_v56 = vadd.f32 %v9999_v60, %v2424_v0  ;;  %6500 = vmatmul.mubr.msk.f32.gmra.mxu0 %vm1568_vm0, %v10142_v16  ;;  %6582 = vmatmul.mubr.msk.f32.gmra.mxu1 %vm1568_vm0, %v10142_v16  ;;  %v3181_v37 = vld [vmem:[%s12020_s7 + $0x38] sm:$0xff] }
 0x54b   :  { %v2365_v4 = vpop.f32.mrf.mxu1  ;;  %6502 = vmatprep.mubr.msk.f32.mxu0 %vm7435_vm1, %v12145_v33  ;;  %6584 = vmatprep.mubr.msk.f32.mxu1 %vm7435_vm1, %v12145_v33 }
 0x54c   :  { %v10154_v6 = vmax.f32 %v2452_v56, 0.0  ;;  %v2425_v46 = vadd.f32 %v2365_v4, %v9974_v24  ;;  %6694 = vmatpush3.msra.mxu1 %v3181_v37 }
 0x54d   :  { %v6428_v35 = vpop.f32.mrf.mxu1  ;;  %6695 = vmatprep.subr.mxu1 %v12145_v33 }
 0x54e   :  { %v2453_v43 = vadd.f32 %v9999_v60, %v2425_v46  ;;  %6503 = vmatmul.mubr.msk.f32.gmra.mxu0 %vm1568_vm0, %v10154_v6  ;;  %6585 = vmatmul.mubr.msk.f32.gmra.mxu1 %vm1568_vm0, %v10154_v6  ;;  %v3180_v46 = vld [vmem:[%s12020_s7 + $0x30] sm:$0xff]  ;;  %v3179_v35 = vld [vmem:[%s12020_s7 + $0x28] sm:$0xff] }
 0x54f   :  { %v2370_v44 = vpop.f32.mrf.mxu1  ;;  %6505 = vmatprep.mubr.msk.f32.mxu0 %vm7435_vm1, %v12145_v33  ;;  %6587 = vmatprep.mubr.msk.f32.mxu1 %vm7435_vm1, %v12145_v33 }
 0x550   :  { %v10166_v13 = vmax.f32 %v2453_v43, 0.0  ;;  %v2426_v24 = vadd.f32 %v2370_v44, %v9976_v5  ;;  %6696 = vmatpush3.msra.mxu1 %v3180_v46  ;;  %v3178_v43 = vld [vmem:[%s12020_s7 + $0x20] sm:$0xff]  ;;  %v3177_v44 = vld [vmem:[%s12020_s7 + $0x18] sm:$0xff] }
 0x551   :  { %v6431_v50 = vpop.f32.mrf.mxu1  ;;  %6697 = vmatprep.subr.mxu1 %v12145_v33 }
 0x552   :  { %v2454_v36 = vadd.f32 %v9999_v60, %v2426_v24  ;;  %6506 = vmatmul.mubr.msk.f32.gmra.mxu0 %vm1568_vm0, %v10166_v13  ;;  %6588 = vmatmul.mubr.msk.f32.gmra.mxu1 %vm1568_vm0, %v10166_v13  ;;  %v5675_v24 = vld [vmem:[%s12020_s7 + $0x78] sm:$0xff]  ;;  %v3176_v50 = vld [vmem:[%s12020_s7 + $0x10] sm:$0xff] }
 0x553   :  { %v2375_v53 = vpop.f32.mrf.mxu1  ;;  %6508 = vmatprep.mubr.msk.f32.mxu0 %vm7435_vm1, %v12145_v33  ;;  %6590 = vmatprep.mubr.msk.f32.mxu1 %vm7435_vm1, %v12145_v33 }
 0x554   :  { %v10178_v62 = vmax.f32 %v2454_v36, 0.0  ;;  %v2427_v5 = vadd.f32 %v2375_v53, %v9978_v28  ;;  %6698 = vmatpush3.msra.mxu1 %v3179_v35  ;;  %v5674_v36 = vld [vmem:[%s12020_s7 + $0x70] sm:$0xff]  ;;  %v3175_v53 = vld [vmem:[%s12020_s7 + $0x8] sm:$0xff] }
 0x555   :  { %v6434_v14 = vpop.f32.mrf.mxu1  ;;  %6699 = vmatprep.subr.mxu1 %v12145_v33 }
 0x556   :  { %v2455_v38 = vadd.f32 %v9999_v60, %v2427_v5  ;;  %6509 = vmatmul.mubr.msk.f32.gmra.mxu0 %vm1568_vm0, %v10178_v62  ;;  %6591 = vmatmul.mubr.msk.f32.gmra.mxu1 %vm1568_vm0, %v10178_v62  ;;  %v5673_v5 = vld [vmem:[%s12020_s7 + $0x68] sm:$0xff]  ;;  %v3174_v14 = vld [vmem:[%s12020_s7] sm:$0xff] }
 0x557   :  { %v2380_v9 = vpop.f32.mrf.mxu1  ;;  %6511 = vmatprep.mubr.msk.f32.mxu0 %vm7435_vm1, %v12145_v33  ;;  %6593 = vmatprep.mubr.msk.f32.mxu1 %vm7435_vm1, %v12145_v33 }
 0x558   :  { %v10190_v12 = vmax.f32 %v2455_v38, 0.0  ;;  %v2428_v28 = vadd.f32 %v2380_v9, %v9980_v59  ;;  %6700 = vmatpush3.msra.mxu1 %v3178_v43  ;;  %v5672_v38 = vld [vmem:[%s12020_s7 + $0x60] sm:$0xff]  ;;  %v5671_v9 = vld [vmem:[%s12020_s7 + $0x58] sm:$0xff] }
 0x559   :  { %v6437_v61 = vpop.f32.mrf.mxu1  ;;  %6701 = vmatprep.subr.mxu1 %v12145_v33 }
 0x55a   :  { %v2456_v31 = vadd.f32 %v9999_v60, %v2428_v28  ;;  %6512 = vmatmul.mubr.msk.f32.gmra.mxu0 %vm1568_vm0, %v10190_v12  ;;  %6594 = vmatmul.mubr.msk.f32.gmra.mxu1 %vm1568_vm0, %v10190_v12  ;;  %v5670_v28 = vld [vmem:[%s12020_s7 + $0x50] sm:$0xff]  ;;  %v5669_v61 = vld [vmem:[%s12020_s7 + $0x48] sm:$0xff] }
 0x55b   :  { %v2385_v15 = vpop.f32.mrf.mxu1  ;;  %6514 = vmatprep.mubr.msk.f32.mxu0 %vm7435_vm1, %v12145_v33  ;;  %6596 = vmatprep.mubr.msk.f32.mxu1 %vm7435_vm1, %v12145_v33 }
 0x55c   :  { %v10202_v23 = vmax.f32 %v2456_v31, 0.0  ;;  %v2429_v59 = vadd.f32 %v2385_v15, %v9982_v3  ;;  %6702 = vmatpush3.msra.mxu1 %v3177_v44  ;;  %v5668_v31 = vld [vmem:[%s12020_s7 + $0x40] sm:$0xff] }
 0x55d   :  { %v6440_v17 = vpop.f32.mrf.mxu1  ;;  %6703 = vmatprep.subr.mxu1 %v12145_v33 }
 0x55e   :  { %v2457_v26 = vadd.f32 %v9999_v60, %v2429_v59  ;;  %6515 = vmatmul.mubr.msk.f32.gmra.mxu0 %vm1568_vm0, %v10202_v23  ;;  %6597 = vmatmul.mubr.msk.f32.gmra.mxu1 %vm1568_vm0, %v10202_v23 }
 0x55f   :  { %v2390_v32 = vpop.f32.mrf.mxu1  ;;  %6517 = vmatprep.mubr.msk.f32.mxu0 %vm7435_vm1, %v12145_v33  ;;  %6599 = vmatprep.mubr.msk.f32.mxu1 %vm7435_vm1, %v12145_v33 }
 0x560   :  { %v10214_v29 = vmax.f32 %v2457_v26, 0.0  ;;  %v2430_v3 = vadd.f32 %v2390_v32, %v9984_v21  ;;  %6704 = vmatpush3.msra.mxu1 %v3176_v50 }
 0x561   :  { %v6443_v41 = vpop.f32.mrf.mxu1  ;;  %6705 = vmatprep.subr.mxu1 %v12145_v33 }
 0x562   :  { %v2458_v52 = vadd.f32 %v9999_v60, %v2430_v3  ;;  %6518 = vmatmul.mubr.msk.f32.gmra.mxu0 %vm1568_vm0, %v10214_v29  ;;  %6600 = vmatmul.mubr.msk.f32.gmra.mxu1 %vm1568_vm0, %v10214_v29 }
 0x563   :  { %v2395_v25 = vpop.f32.mrf.mxu1  ;;  %6520 = vmatprep.mubr.msk.f32.mxu0 %vm7435_vm1, %v12145_v33  ;;  %6602 = vmatprep.mubr.msk.f32.mxu1 %vm7435_vm1, %v12145_v33 }
 0x564   :  { %v10226_v20 = vmax.f32 %v2458_v52, 0.0  ;;  %v2431_v21 = vadd.f32 %v2395_v25, %v9986_v48  ;;  %6706 = vmatpush3.msra.mxu1 %v3175_v53 }
 0x565   :  { %v6446_v27 = vpop.f32.mrf.mxu1  ;;  %6707 = vmatprep.subr.mxu1 %v12145_v33 }
 0x566   :  { %v2459_v10 = vadd.f32 %v9999_v60, %v2431_v21  ;;  %6521 = vmatmul.mubr.msk.f32.gmra.mxu0 %vm1568_vm0, %v10226_v20  ;;  %6603 = vmatmul.mubr.msk.f32.gmra.mxu1 %vm1568_vm0, %v10226_v20 }
 0x567   :  { %v2400_v51 = vpop.f32.mrf.mxu1  ;;  %6523 = vmatprep.mubr.msk.f32.mxu0 %vm7435_vm1, %v12145_v33  ;;  %6605 = vmatprep.mubr.msk.f32.mxu1 %vm7435_vm1, %v12145_v33 }
 0x568   :  { %v10238_v34 = vmax.f32 %v2459_v10, 0.0  ;;  %v2432_v48 = vadd.f32 %v2400_v51, %v9988_v54  ;;  %6708 = vmatpush3.msra.mxu1 %v3174_v14 }
 0x569   :  { %v6449_v49 = vpop.f32.mrf.mxu1  ;;  %6851 = vmatprep.subr.mxu1 %v12145_v33 }
 0x56a   :  { %v2460_v57 = vadd.f32 %v9999_v60, %v2432_v48  ;;  %6524 = vmatmul.mubr.msk.f32.gmra.mxu0 %vm1568_vm0, %v10238_v34  ;;  %6606 = vmatmul.mubr.msk.f32.gmra.mxu1 %vm1568_vm0, %v10238_v34 }
 0x56b   :  { %v2405_v58 = vpop.f32.mrf.mxu1  ;;  %6526 = vmatprep.mubr.msk.f32.mxu0 %vm7435_vm1, %v12145_v33  ;;  %6608 = vmatprep.mubr.msk.f32.mxu1 %vm7435_vm1, %v12145_v33 }
 0x56c   :  { %v10250_v30 = vmax.f32 %v2460_v57, 0.0  ;;  %v2433_v54 = vadd.f32 %v2405_v58, %v9990_v55 }
 0x56d   :  { %v6452_v11 = vpop.f32.mrf.mxu1 }
 0x56e   :  { %v2461_v45 = vadd.f32 %v9999_v60, %v2433_v54  ;;  %6527 = vmatmul.mubr.msk.f32.gmra.mxu0 %vm1568_vm0, %v10250_v30  ;;  %6609 = vmatmul.mubr.msk.f32.gmra.mxu1 %vm1568_vm0, %v10250_v30 }
 0x56f   :  { %v2410_v18 = vpop.f32.mrf.mxu1  ;;  %6529 = vmatprep.mubr.msk.f32.mxu0 %vm7435_vm1, %v12145_v33  ;;  %6611 = vmatprep.mubr.msk.f32.mxu1 %vm7435_vm1, %v12145_v33 }
 0x570   :  { %v10262_v2 = vmax.f32 %v2461_v45, 0.0  ;;  %v2434_v55 = vadd.f32 %v2410_v18, %v9992_v8 }
 0x571   :  { %v6455_v0 = vpop.f32.mrf.mxu1 }
 0x572   :  { %v2462_v56 = vadd.f32 %v9999_v60, %v2434_v55  ;;  %6530 = vmatmul.mubr.msk.f32.gmra.mxu0 %vm1568_vm0, %v10262_v2  ;;  %6612 = vmatmul.mubr.msk.f32.gmra.mxu1 %vm1568_vm0, %v10262_v2 }
 0x573   :  { %6532 = vmatprep.mubr.msk.f32.mxu0 %vm7435_vm1, %v12145_v33  ;;  %v10275_v4 = vpop.f32.mrf.mxu1  ;;  %6709 = vmatprep.mubr.msk.f32.mxu1 %vm7435_vm1, %v12145_v33 }
 0x574   :  { %v10277_v8 = vmax.f32 %v2462_v56, 0.0 }
 0x575   :  { %v6553_v60 = vpop.f32.mrf.mxu1 }
 0x576   :  { %6533 = vmatmul.mubr.msk.f32.gmra.mxu0 %vm1568_vm0, %v10277_v8 }
 0x577   :  { %6630 = vmatprep.mubr.msk.f32.mxu0 %vm7435_vm1, %v12145_v33 }
 0x57a   :  { %6631 = vmatmul.mubr.msk.f32.vlgmr.msra.gmra.mxu0 %vm1568_vm0, %v10018_v42 }
 0x57b   :  { %6633 = vmatprep.mubr.msk.f32.mxu0 %vm7435_vm1, %v12145_v33  ;;  %6773 = vmatpush3.msra.mxu0 %v5675_v24 }
 0x57c   :  { %6774 = vmatprep.subr.mxu0 %v12145_v33 }
 0x57d   :  { %6775 = vmatpush3.msra.mxu0 %v5674_v36 }
 0x57e   :  { %6634 = vmatmul.mubr.msk.f32.gmra.mxu0 %vm1568_vm0, %v10036_v1  ;;  %6776 = vmatprep.subr.mxu0 %v12145_v33 }
 0x57f   :  { %6636 = vmatprep.mubr.msk.f32.mxu0 %vm7435_vm1, %v12145_v33  ;;  %6777 = vmatpush3.msra.mxu0 %v5673_v5 }
 0x580   :  { %6778 = vmatprep.subr.mxu0 %v12145_v33 }
 0x581   :  { %6779 = vmatpush3.msra.mxu0 %v5672_v38 }
 0x582   :  { %6637 = vmatmul.mubr.msk.f32.gmra.mxu0 %vm1568_vm0, %v10052_v47  ;;  %6780 = vmatprep.subr.mxu0 %v12145_v33 }
 0x583   :  { %6639 = vmatprep.mubr.msk.f32.mxu0 %vm7435_vm1, %v12145_v33  ;;  %6781 = vmatpush3.msra.mxu0 %v5671_v9 }
 0x584   :  { %6782 = vmatprep.subr.mxu0 %v12145_v33 }
 0x585   :  { %6783 = vmatpush3.msra.mxu0 %v5670_v28 }
 0x586   :  { %6640 = vmatmul.mubr.msk.f32.gmra.mxu0 %vm1568_vm0, %v10068_v19  ;;  %6784 = vmatprep.subr.mxu0 %v12145_v33 }
 0x587   :  { %6642 = vmatprep.mubr.msk.f32.mxu0 %vm7435_vm1, %v12145_v33  ;;  %6785 = vmatpush3.msra.mxu0 %v5669_v61 }
 0x588   :  { %6786 = vmatprep.subr.mxu0 %v12145_v33 }
 0x589   :  { %6787 = vmatpush3.msra.mxu0 %v5668_v31 }
 0x58a   :  { %6643 = vmatmul.mubr.msk.f32.gmra.mxu0 %vm1568_vm0, %v10084_v22  ;;  %6930 = vmatprep.subr.mxu0 %v12145_v33 }
 0x58b   :  { %6645 = vmatprep.mubr.msk.f32.mxu0 %vm7435_vm1, %v12145_v33 }
 0x58e   :  { %6646 = vmatmul.mubr.msk.f32.gmra.mxu0 %vm1568_vm0, %v10100_v7 }
 0x58f   :  { %6648 = vmatprep.mubr.msk.f32.mxu0 %vm7435_vm1, %v12145_v33 }
 0x592   :  { %6649 = vmatmul.mubr.msk.f32.gmra.mxu0 %vm1568_vm0, %v10116_v39 }
 0x593   :  { %6651 = vmatprep.mubr.msk.f32.mxu0 %vm7435_vm1, %v12145_v33 }
 0x596   :  { %6652 = vmatmul.mubr.msk.f32.gmra.mxu0 %vm1568_vm0, %v10129_v40 }
 0x597   :  { %6654 = vmatprep.mubr.msk.f32.mxu0 %vm7435_vm1, %v12145_v33 }
 0x59a   :  { %6655 = vmatmul.mubr.msk.f32.gmra.mxu0 %vm1568_vm0, %v10142_v16 }
 0x59b   :  { %6657 = vmatprep.mubr.msk.f32.mxu0 %vm7435_vm1, %v12145_v33 }
 0x59e   :  { %6658 = vmatmul.mubr.msk.f32.gmra.mxu0 %vm1568_vm0, %v10154_v6 }
 0x59f   :  { %6660 = vmatprep.mubr.msk.f32.mxu0 %vm7435_vm1, %v12145_v33 }
 0x5a2   :  { %6661 = vmatmul.mubr.msk.f32.gmra.mxu0 %vm1568_vm0, %v10166_v13 }
 0x5a3   :  { %6663 = vmatprep.mubr.msk.f32.mxu0 %vm7435_vm1, %v12145_v33 }
 0x5a6   :  { %6664 = vmatmul.mubr.msk.f32.gmra.mxu0 %vm1568_vm0, %v10178_v62 }
 0x5a7   :  { %6666 = vmatprep.mubr.msk.f32.mxu0 %vm7435_vm1, %v12145_v33 }
 0x5aa   :  { %6667 = vmatmul.mubr.msk.f32.gmra.mxu0 %vm1568_vm0, %v10190_v12 }
 0x5ab   :  { %6669 = vmatprep.mubr.msk.f32.mxu0 %vm7435_vm1, %v12145_v33 }
 0x5ae   :  { %6670 = vmatmul.mubr.msk.f32.gmra.mxu0 %vm1568_vm0, %v10202_v23 }
 0x5af   :  { %6672 = vmatprep.mubr.msk.f32.mxu0 %vm7435_vm1, %v12145_v33 }
 0x5b2   :  { %6673 = vmatmul.mubr.msk.f32.gmra.mxu0 %vm1568_vm0, %v10214_v29 }
 0x5b3   :  { %6675 = vmatprep.mubr.msk.f32.mxu0 %vm7435_vm1, %v12145_v33 }
 0x5b6   :  { %6676 = vmatmul.mubr.msk.f32.gmra.mxu0 %vm1568_vm0, %v10226_v20 }
 0x5b7   :  { %6678 = vmatprep.mubr.msk.f32.mxu0 %vm7435_vm1, %v12145_v33 }
 0x5ba   :  { %6679 = vmatmul.mubr.msk.f32.gmra.mxu0 %vm1568_vm0, %v10238_v34 }
 0x5bb   :  { %6681 = vmatprep.mubr.msk.f32.mxu0 %vm7435_vm1, %v12145_v33 }
 0x5be   :  { %6682 = vmatmul.mubr.msk.f32.gmra.mxu0 %vm1568_vm0, %v10250_v30 }
 0x5bf   :  { %6684 = vmatprep.mubr.msk.f32.mxu0 %vm7435_vm1, %v12145_v33 }
 0x5c2   :  { %6685 = vmatmul.mubr.msk.f32.gmra.mxu0 %vm1568_vm0, %v10262_v2 }
 0x5c3   :  { %6687 = vmatprep.mubr.msk.f32.mxu0 %vm7435_vm1, %v12145_v33 }
 0x5c6   :  { %6688 = vmatmul.mubr.msk.f32.gmra.mxu0 %vm1568_vm0, %v10277_v8 }
 0x5c7   :  { %6690 = vmatprep.mubr.msk.f32.mxu0 %vm7435_vm1, %v12145_v33 }
 0x5ca   :  { %6691 = vmatmul.mubr.f32.gmra.mxu0 %v12145_v33 }
 0x5cb   :  { %6788 = vmatprep.mubr.msk.f32.mxu0 %vm7435_vm1, %v12145_v33 }
 0x5e6   :  { %v10429_v15 = vpop.f32.mrf.mxu0  ;;  %v2805_v59 = vpop.f32.mrf.mxu1 }
 0x5e8   :  { %v6474_v17 = vpop.f32.mrf.mxu0  ;;  %v6556_v26 = vpop.f32.mrf.mxu1 }
 0x5ea   :  { %v2635_v32 = vpop.f32.mrf.mxu0  ;;  %v2810_v3 = vpop.f32.mrf.mxu1 }
 0x5eb   :  { %v10431_v41 = vadd.f32 %v2805_v59, %v2635_v32 }
 0x5ec   :  { %v6477_v52 = vpop.f32.mrf.mxu0  ;;  %v6559_v25 = vpop.f32.mrf.mxu1 }
 0x5ee   :  { %v2640_v21 = vpop.f32.mrf.mxu0  ;;  %v2815_v27 = vpop.f32.mrf.mxu1 }
 0x5ef   :  { %v10433_v10 = vadd.f32 %v2810_v3, %v2640_v21 }
 0x5f0   :  { %v6480_v51 = vpop.f32.mrf.mxu0  ;;  %v6562_v48 = vpop.f32.mrf.mxu1 }
 0x5f2   :  { %v2645_v49 = vpop.f32.mrf.mxu0  ;;  %v2820_v57 = vpop.f32.mrf.mxu1 }
 0x5f3   :  { %v10435_v58 = vadd.f32 %v2815_v27, %v2645_v49 }
 0x5f4   :  { %v6483_v54 = vpop.f32.mrf.mxu0  ;;  %v6565_v11 = vpop.f32.mrf.mxu1 }
 0x5f6   :  { %v2650_v45 = vpop.f32.mrf.mxu0  ;;  %v2825_v18 = vpop.f32.mrf.mxu1 }
 0x5f7   :  { %v10437_v55 = vadd.f32 %v2820_v57, %v2650_v45 }
 0x5f8   :  { %v6486_v0 = vpop.f32.mrf.mxu0  ;;  %v6568_v37 = vpop.f32.mrf.mxu1 }
 0x5fa   :  { %v2655_v56 = vpop.f32.mrf.mxu0  ;;  %v2830_v60 = vpop.f32.mrf.mxu1 }
 0x5fb   :  { %v10439_v46 = vadd.f32 %v2825_v18, %v2655_v56 }
 0x5fc   :  { %v6489_v35 = vpop.f32.mrf.mxu0  ;;  %v6571_v43 = vpop.f32.mrf.mxu1 }
 0x5fe   :  { %v2660_v44 = vpop.f32.mrf.mxu0  ;;  %v2835_v24 = vpop.f32.mrf.mxu1 }
 0x5ff   :  { %v10441_v50 = vadd.f32 %v2830_v60, %v2660_v44 }
 0x600   :  { %v6492_v36 = vpop.f32.mrf.mxu0  ;;  %v6574_v53 = vpop.f32.mrf.mxu1 }
 0x602   :  { %v2665_v5 = vpop.f32.mrf.mxu0  ;;  %v2840_v14 = vpop.f32.mrf.mxu1 }
 0x603   :  { %v10443_v38 = vadd.f32 %v2835_v24, %v2665_v5 }
 0x604   :  { %v6495_v9 = vpop.f32.mrf.mxu0  ;;  %v6577_v28 = vpop.f32.mrf.mxu1 }
 0x606   :  { %v2670_v61 = vpop.f32.mrf.mxu0  ;;  %v2845_v31 = vpop.f32.mrf.mxu1 }
 0x607   :  { %v10445_v59 = vadd.f32 %v2840_v14, %v2670_v61 }
 0x608   :  { %v6498_v17 = vpop.f32.mrf.mxu0  ;;  %v6580_v26 = vpop.f32.mrf.mxu1 }
 0x60a   :  { %v2675_v32 = vpop.f32.mrf.mxu0  ;;  %v2850_v3 = vpop.f32.mrf.mxu1 }
 0x60b   :  { %v10447_v52 = vadd.f32 %v2845_v31, %v2675_v32 }
 0x60c   :  { %v6501_v25 = vpop.f32.mrf.mxu0  ;;  %v6583_v21 = vpop.f32.mrf.mxu1 }
 0x60e   :  { %v2680_v27 = vpop.f32.mrf.mxu0  ;;  %v2855_v51 = vpop.f32.mrf.mxu1 }
 0x60f   :  { %v10449_v48 = vadd.f32 %v2850_v3, %v2680_v27 }
 0x610   :  { %v6504_v49 = vpop.f32.mrf.mxu0  ;;  %v6586_v57 = vpop.f32.mrf.mxu1 }
 0x612   :  { %v2685_v54 = vpop.f32.mrf.mxu0  ;;  %v2860_v11 = vpop.f32.mrf.mxu1 }
 0x613   :  { %v10451_v45 = vadd.f32 %v2855_v51, %v2685_v54 }
 0x614   :  { %v6507_v18 = vpop.f32.mrf.mxu0  ;;  %v6589_v0 = vpop.f32.mrf.mxu1 }
 0x616   :  { %v2690_v37 = vpop.f32.mrf.mxu0  ;;  %v2865_v56 = vpop.f32.mrf.mxu1 }
 0x617   :  { %v10453_v60 = vadd.f32 %v2860_v11, %v2690_v37 }
 0x618   :  { %v6510_v35 = vpop.f32.mrf.mxu0  ;;  %v6592_v43 = vpop.f32.mrf.mxu1 }
 0x61a   :  { %v2695_v44 = vpop.f32.mrf.mxu0  ;;  %v2870_v24 = vpop.f32.mrf.mxu1 }
 0x61b   :  { %v10455_v36 = vadd.f32 %v2865_v56, %v2695_v44 }
 0x61c   :  { %v6513_v53 = vpop.f32.mrf.mxu0  ;;  %v6595_v5 = vpop.f32.mrf.mxu1 }
 0x61e   :  { %v2700_v14 = vpop.f32.mrf.mxu0  ;;  %v2875_v9 = vpop.f32.mrf.mxu1 }
 0x61f   :  { %v10457_v28 = vadd.f32 %v2870_v24, %v2700_v14 }
 0x620   :  { %v6516_v61 = vpop.f32.mrf.mxu0  ;;  %v6598_v31 = vpop.f32.mrf.mxu1 }
 0x622   :  { %v2705_v17 = vpop.f32.mrf.mxu0  ;;  %v2880_v26 = vpop.f32.mrf.mxu1 }
 0x623   :  { %v10459_v32 = vadd.f32 %v2875_v9, %v2705_v17 }
 0x624   :  { %v6519_v3 = vpop.f32.mrf.mxu0  ;;  %v6601_v25 = vpop.f32.mrf.mxu1 }
 0x625   :  { %v2801_v3 = vadd.f32 %v10275_v4, %v10429_v15  ;;  %v5708_v15 = vld [vmem:[%s12020_s7 + $0xb8] sm:$0xff] }
 0x626   :  { %v2710_v21 = vpop.f32.mrf.mxu0  ;;  %v2885_v27 = vpop.f32.mrf.mxu1 }
 0x627   :  { %v10461_v51 = vadd.f32 %v2880_v26, %v2710_v21  ;;  %v10476_v21 = vld [vmem:[%s12021_s6] ss:$0 sm:$0xff] }
 0x628   :  { %v6522_v49 = vpop.f32.mrf.mxu0  ;;  %v6604_v57 = vpop.f32.mrf.mxu1 }
 0x62a   :  { %v2715_v54 = vpop.f32.mrf.mxu0  ;;  %v2890_v11 = vpop.f32.mrf.mxu1 }
 0x62b   :  { %v10463_v18 = vadd.f32 %v2885_v27, %v2715_v54 }
 0x62c   :  { %v6525_v0 = vpop.f32.mrf.mxu0  ;;  %v6607_v37 = vpop.f32.mrf.mxu1 }
 0x62e   :  { %v2720_v56 = vpop.f32.mrf.mxu0  ;;  %v2895_v35 = vpop.f32.mrf.mxu1 }
 0x62f   :  { %v10465_v43 = vadd.f32 %v2890_v11, %v2720_v56 }
 0x630   :  { %v6528_v44 = vpop.f32.mrf.mxu0  ;;  %v6610_v24 = vpop.f32.mrf.mxu1 }
 0x632   :  { %v2725_v53 = vpop.f32.mrf.mxu0  ;;  %v2900_v5 = vpop.f32.mrf.mxu1 }
 0x633   :  { %v10467_v14 = vadd.f32 %v2895_v35, %v2725_v53 }
 0x634   :  { %v6531_v9 = vpop.f32.mrf.mxu0  ;;  %v6613_v61 = vpop.f32.mrf.mxu1 }
 0x636   :  { %v2730_v31 = vpop.f32.mrf.mxu0 }
 0x637   :  { %v10469_v17 = vadd.f32 %v2900_v5, %v2730_v31  ;;  %v5706_v31 = vld [vmem:[%s12020_s7 + $0xa8] sm:$0xff] }
 0x638   :  { %v6534_v26 = vpop.f32.mrf.mxu0 }
 0x639   :  { %v5738_v26 = vld [vmem:[%s12020_s7 + $0xf0] sm:$0xff] }
 0x63a   :  { %v2979_v25 = vpop.f32.mrf.mxu0 }
 0x63b   :  { %v3083_v27 = vadd.f32 %v2979_v25, %v2801_v3 }
 0x63c   :  { %v6632_v49 = vpop.f32.mrf.mxu0 }
 0x63d   :  { %v3111_v57 = vadd.f32 %v10476_v21, %v3083_v27 }
 0x63e   :  { %v2984_v54 = vpop.f32.mrf.mxu0 }
 0x63f   :  { %v3132_v11 = vadd.f32 %v3111_v57, %v10002_v63  ;;  %v3084_v0 = vadd.f32 %v2984_v54, %v10431_v41  ;;  %v5707_v63 = vld [vmem:[%s12020_s7 + $0xb0] sm:$0xff]  ;;  %v5739_v41 = vld [vmem:[%s12020_s7 + $0xf8] sm:$0xff]  ;;  %v5705_v57 = vld [vmem:[%s12020_s7 + $0xa0] sm:$0xff] }
 0x640   :  { %v6635_v37 = vpop.f32.mrf.mxu0  ;;  %v5737_v54 = vld [vmem:[%s12020_s7 + $0xe8] sm:$0xff] }
 0x641   :  { %v10481_v56 = vmax.f32 %v3132_v11, 0.0  ;;  %v3112_v4 = vadd.f32 %v10476_v21, %v3084_v0 }
 0x642   :  { %v2989_v35 = vpop.f32.mrf.mxu0 }
 0x643   :  { %v3133_v44 = vadd.f32 %v3112_v4, %v10018_v42  ;;  %v3085_v24 = vadd.f32 %v2989_v35, %v10433_v10  ;;  %6710 = vmatmul.mubr.msk.f32.vlgmr.msra.gmra.mxu1 %vm1568_vm0, %v10481_v56  ;;  %6789 = vmatmul.mubr.msk.f32.vlgmr.msra.gmra.mxu0 %vm1568_vm0, %v10481_v56  ;;  %v5736_v35 = vld [vmem:[%s12020_s7 + $0xe0] sm:$0xff] }
 0x644   :  { %v6638_v53 = vpop.f32.mrf.mxu0  ;;  %6852 = vmatpush3.msra.mxu1 %v5708_v15  ;;  %6712 = vmatprep.mubr.msk.f32.mxu1 %vm7435_vm1, %v12145_v33  ;;  %v5704_v15 = vld [vmem:[%s12020_s7 + $0x98] sm:$0xff] }
 0x645   :  { %v10501_v42 = vmax.f32 %v3133_v44, 0.0  ;;  %v3113_v10 = vadd.f32 %v10476_v21, %v3085_v24  ;;  %6791 = vmatprep.mubr.msk.f32.mxu0 %vm7435_vm1, %v12145_v33  ;;  %6853 = vmatprep.subr.mxu1 %v12145_v33  ;;  %v5703_v53 = vld [vmem:[%s12020_s7 + $0x90] sm:$0xff] }
 0x646   :  { %v2994_v5 = vpop.f32.mrf.mxu0  ;;  %6854 = vmatpush3.msra.mxu1 %v5707_v63  ;;  %6931 = vmatpush3.msra.mxu0 %v5739_v41 }
 0x647   :  { %v3134_v9 = vadd.f32 %v3113_v10, %v10036_v1  ;;  %v3086_v61 = vadd.f32 %v2994_v5, %v10435_v58  ;;  %6713 = vmatmul.mubr.msk.f32.gmra.mxu1 %vm1568_vm0, %v10501_v42  ;;  %6792 = vmatmul.mubr.msk.f32.gmra.mxu0 %vm1568_vm0, %v10501_v42  ;;  %v5735_v10 = vld [vmem:[%s12020_s7 + $0xd8] sm:$0xff] }
 0x648   :  { %v6641_v3 = vpop.f32.mrf.mxu0  ;;  %6715 = vmatprep.mubr.msk.f32.mxu1 %vm7435_vm1, %v12145_v33  ;;  %6794 = vmatprep.mubr.msk.f32.mxu0 %vm7435_vm1, %v12145_v33 }
 0x649   :  { %v10523_v1 = vmax.f32 %v3134_v9, 0.0  ;;  %v3114_v58 = vadd.f32 %v10476_v21, %v3086_v61  ;;  %6855 = vmatprep.subr.mxu1 %v12145_v33  ;;  %6932 = vmatprep.subr.mxu0 %v12145_v33  ;;  %v5734_v3 = vld [vmem:[%s12020_s7 + $0xd0] sm:$0xff] }
 0x64a   :  { %v2999_v25 = vpop.f32.mrf.mxu0  ;;  %6856 = vmatpush3.msra.mxu1 %v5706_v31  ;;  %6933 = vmatpush3.msra.mxu0 %v5738_v26  ;;  %v5702_v26 = vld [vmem:[%s12020_s7 + $0x88] sm:$0xff] }
 0x64b   :  { %v3135_v27 = vadd.f32 %v3114_v58, %v10052_v47  ;;  %v3087_v49 = vadd.f32 %v2999_v25, %v10437_v55  ;;  %6716 = vmatmul.mubr.msk.f32.gmra.mxu1 %vm1568_vm0, %v10523_v1  ;;  %6795 = vmatmul.mubr.msk.f32.gmra.mxu0 %vm1568_vm0, %v10523_v1 }
 0x64c   :  { %v6644_v11 = vpop.f32.mrf.mxu0  ;;  %6718 = vmatprep.mubr.msk.f32.mxu1 %vm7435_vm1, %v12145_v33  ;;  %6797 = vmatprep.mubr.msk.f32.mxu0 %vm7435_vm1, %v12145_v33 }
 0x64d   :  { %v10544_v47 = vmax.f32 %v3135_v27, 0.0  ;;  %v3115_v55 = vadd.f32 %v10476_v21, %v3087_v49  ;;  %6857 = vmatprep.subr.mxu1 %v12145_v33  ;;  %6934 = vmatprep.subr.mxu0 %v12145_v33 }
 0x64e   :  { %v3004_v0 = vpop.f32.mrf.mxu0  ;;  %6858 = vmatpush3.msra.mxu1 %v5705_v57  ;;  %6935 = vmatpush3.msra.mxu0 %v5737_v54  ;;  %v5701_v57 = vld [vmem:[%s12020_s7 + $0x80] sm:$0xff]  ;;  %v5733_v54 = vld [vmem:[%s12020_s7 + $0xc8] sm:$0xff] }
 0x64f   :  { %v3136_v37 = vadd.f32 %v3115_v55, %v10068_v19  ;;  %v3088_v4 = vadd.f32 %v3004_v0, %v10439_v46  ;;  %6719 = vmatmul.mubr.msk.f32.gmra.mxu1 %vm1568_vm0, %v10544_v47  ;;  %6798 = vmatmul.mubr.msk.f32.gmra.mxu0 %vm1568_vm0, %v10544_v47 }
 0x650   :  { %v6647_v44 = vpop.f32.mrf.mxu0  ;;  %6721 = vmatprep.mubr.msk.f32.mxu1 %vm7435_vm1, %v12145_v33  ;;  %6800 = vmatprep.mubr.msk.f32.mxu0 %vm7435_vm1, %v12145_v33 }
 0x651   :  { %v10565_v19 = vmax.f32 %v3136_v37, 0.0  ;;  %v3116_v46 = vadd.f32 %v10476_v21, %v3088_v4  ;;  %6859 = vmatprep.subr.mxu1 %v12145_v33  ;;  %6936 = vmatprep.subr.mxu0 %v12145_v33  ;;  %v5732_v4 = vld [vmem:[%s12020_s7 + $0xc0] sm:$0xff] }
 0x652   :  { %v3009_v24 = vpop.f32.mrf.mxu0  ;;  %6860 = vmatpush3.msra.mxu1 %v5704_v15  ;;  %6937 = vmatpush3.msra.mxu0 %v5736_v35 }
 0x653   :  { %v3137_v63 = vadd.f32 %v3116_v46, %v10084_v22  ;;  %v3089_v41 = vadd.f32 %v3009_v24, %v10441_v50  ;;  %6722 = vmatmul.mubr.msk.f32.gmra.mxu1 %vm1568_vm0, %v10565_v19  ;;  %6801 = vmatmul.mubr.msk.f32.gmra.mxu0 %vm1568_vm0, %v10565_v19 }
 0x654   :  { %v6650_v5 = vpop.f32.mrf.mxu0  ;;  %6724 = vmatprep.mubr.msk.f32.mxu1 %vm7435_vm1, %v12145_v33  ;;  %6803 = vmatprep.mubr.msk.f32.mxu0 %vm7435_vm1, %v12145_v33 }
 0x655   :  { %v10586_v22 = vmax.f32 %v3137_v63, 0.0  ;;  %v3117_v50 = vadd.f32 %v10476_v21, %v3089_v41  ;;  %6861 = vmatprep.subr.mxu1 %v12145_v33  ;;  %6938 = vmatprep.subr.mxu0 %v12145_v33 }
 0x656   :  { %v3014_v9 = vpop.f32.mrf.mxu0  ;;  %6862 = vmatpush3.msra.mxu1 %v5703_v53  ;;  %6939 = vmatpush3.msra.mxu0 %v5735_v10 }
 0x657   :  { %v3138_v61 = vadd.f32 %v3117_v50, %v10100_v7  ;;  %v3090_v31 = vadd.f32 %v3014_v9, %v10443_v38  ;;  %6725 = vmatmul.mubr.msk.f32.gmra.mxu1 %vm1568_vm0, %v10586_v22  ;;  %6804 = vmatmul.mubr.msk.f32.gmra.mxu0 %vm1568_vm0, %v10586_v22 }
 0x658   :  { %v6653_v58 = vpop.f32.mrf.mxu0  ;;  %6727 = vmatprep.mubr.msk.f32.mxu1 %vm7435_vm1, %v12145_v33  ;;  %6806 = vmatprep.mubr.msk.f32.mxu0 %vm7435_vm1, %v12145_v33 }
 0x659   :  { %v10607_v7 = vmax.f32 %v3138_v61, 0.0  ;;  %v3118_v38 = vadd.f32 %v10476_v21, %v3090_v31  ;;  %6863 = vmatprep.subr.mxu1 %v12145_v33  ;;  %6940 = vmatprep.subr.mxu0 %v12145_v33 }
 0x65a   :  { %v3019_v25 = vpop.f32.mrf.mxu0  ;;  %6864 = vmatpush3.msra.mxu1 %v5702_v26  ;;  %6941 = vmatpush3.msra.mxu0 %v5734_v3 }
 0x65b   :  { %v3139_v27 = vadd.f32 %v3118_v38, %v10116_v39  ;;  %v3091_v49 = vadd.f32 %v3019_v25, %v10445_v59  ;;  %6728 = vmatmul.mubr.msk.f32.gmra.mxu1 %vm1568_vm0, %v10607_v7  ;;  %6807 = vmatmul.mubr.msk.f32.gmra.mxu0 %vm1568_vm0, %v10607_v7 }
 0x65c   :  { %v6656_v11 = vpop.f32.mrf.mxu0  ;;  %6730 = vmatprep.mubr.msk.f32.mxu1 %vm7435_vm1, %v12145_v33  ;;  %6809 = vmatprep.mubr.msk.f32.mxu0 %vm7435_vm1, %v12145_v33 }
 0x65d   :  { %v10628_v39 = vmax.f32 %v3139_v27, 0.0  ;;  %v3119_v59 = vadd.f32 %v10476_v21, %v3091_v49  ;;  %6865 = vmatprep.subr.mxu1 %v12145_v33  ;;  %6942 = vmatprep.subr.mxu0 %v12145_v33 }
 0x65e   :  { %v3024_v55 = vpop.f32.mrf.mxu0  ;;  %6866 = vmatpush3.msra.mxu1 %v5701_v57  ;;  %6943 = vmatpush3.msra.mxu0 %v5733_v54 }
 0x65f   :  { %v3140_v0 = vadd.f32 %v3119_v59, %v10129_v40  ;;  %v3092_v37 = vadd.f32 %v3024_v55, %v10447_v52  ;;  %6731 = vmatmul.mubr.msk.f32.gmra.mxu1 %vm1568_vm0, %v10628_v39  ;;  %6810 = vmatmul.mubr.msk.f32.gmra.mxu0 %vm1568_vm0, %v10628_v39 }
 0x660   :  { %v6659_v15 = vpop.f32.mrf.mxu0  ;;  %6733 = vmatprep.mubr.msk.f32.mxu1 %vm7435_vm1, %v12145_v33  ;;  %6812 = vmatprep.mubr.msk.f32.mxu0 %vm7435_vm1, %v12145_v33 }
 0x661   :  { %v10646_v40 = vmax.f32 %v3140_v0, 0.0  ;;  %v3120_v52 = vadd.f32 %v10476_v21, %v3092_v37  ;;  %6944 = vmatprep.subr.mxu0 %v12145_v33  ;;  %7009 = vmatprep.subr.mxu1 %v12145_v33 }
 0x662   :  { %v3029_v35 = vpop.f32.mrf.mxu0  ;;  %6945 = vmatpush3.msra.mxu0 %v5732_v4 }
 0x663   :  { %v3141_v44 = vadd.f32 %v3120_v52, %v10142_v16  ;;  %v3093_v46 = vadd.f32 %v3029_v35, %v10449_v48  ;;  %6734 = vmatmul.mubr.msk.f32.gmra.mxu1 %vm1568_vm0, %v10646_v40  ;;  %6813 = vmatmul.mubr.msk.f32.gmra.mxu0 %vm1568_vm0, %v10646_v40 }
 0x664   :  { %v6662_v24 = vpop.f32.mrf.mxu0  ;;  %6736 = vmatprep.mubr.msk.f32.mxu1 %vm7435_vm1, %v12145_v33  ;;  %6815 = vmatprep.mubr.msk.f32.mxu0 %vm7435_vm1, %v12145_v33 }
 0x665   :  { %v10661_v63 = vmax.f32 %v3141_v44, 0.0  ;;  %v3121_v41 = vadd.f32 %v10476_v21, %v3093_v46 }
 0x666   :  { %v3034_v16 = vpop.f32.mrf.mxu0 }
 0x667   :  { %v3142_v48 = vadd.f32 %v3121_v41, %v10154_v6  ;;  %v3094_v53 = vadd.f32 %v3034_v16, %v10451_v45  ;;  %6737 = vmatmul.mubr.msk.f32.gmra.mxu1 %vm1568_vm0, %v10661_v63  ;;  %6816 = vmatmul.mubr.msk.f32.gmra.mxu0 %vm1568_vm0, %v10661_v63 }
 0x668   :  { %v6665_v10 = vpop.f32.mrf.mxu0  ;;  %6739 = vmatprep.mubr.msk.f32.mxu1 %vm7435_vm1, %v12145_v33  ;;  %6818 = vmatprep.mubr.msk.f32.mxu0 %vm7435_vm1, %v12145_v33 }
 0x669   :  { %v10674_v5 = vmax.f32 %v3142_v48, 0.0  ;;  %v3122_v50 = vadd.f32 %v10476_v21, %v3094_v53 }
 0x66a   :  { %v3039_v6 = vpop.f32.mrf.mxu0 }
 0x66b   :  { %v3143_v45 = vadd.f32 %v3122_v50, %v10166_v13  ;;  %v3095_v9 = vadd.f32 %v3039_v6, %v10453_v60  ;;  %6740 = vmatmul.mubr.msk.f32.gmra.mxu1 %vm1568_vm0, %v10674_v5  ;;  %6819 = vmatmul.mubr.msk.f32.gmra.mxu0 %vm1568_vm0, %v10674_v5 }
 0x66c   :  { %v6668_v61 = vpop.f32.mrf.mxu0  ;;  %6742 = vmatprep.mubr.msk.f32.mxu1 %vm7435_vm1, %v12145_v33  ;;  %6821 = vmatprep.mubr.msk.f32.mxu0 %vm7435_vm1, %v12145_v33 }
 0x66d   :  { %v10687_v31 = vmax.f32 %v3143_v45, 0.0  ;;  %v3123_v26 = vadd.f32 %v10476_v21, %v3095_v9 }
 0x66e   :  { %v3044_v13 = vpop.f32.mrf.mxu0 }
 0x66f   :  { %v3144_v60 = vadd.f32 %v3123_v26, %v10178_v62  ;;  %v3096_v3 = vadd.f32 %v3044_v13, %v10455_v36  ;;  %6743 = vmatmul.mubr.msk.f32.gmra.mxu1 %vm1568_vm0, %v10687_v31  ;;  %6822 = vmatmul.mubr.msk.f32.gmra.mxu0 %vm1568_vm0, %v10687_v31 }
 0x670   :  { %v6671_v58 = vpop.f32.mrf.mxu0  ;;  %6745 = vmatprep.mubr.msk.f32.mxu1 %vm7435_vm1, %v12145_v33  ;;  %6824 = vmatprep.mubr.msk.f32.mxu0 %vm7435_vm1, %v12145_v33 }
 0x671   :  { %v10700_v38 = vmax.f32 %v3144_v60, 0.0  ;;  %v3124_v25 = vadd.f32 %v10476_v21, %v3096_v3  ;;  %v5789_v60 = vld [vmem:[%s12020_s7 + $0x128] sm:$0xff]  ;;  %v5788_v3 = vld [vmem:[%s12020_s7 + $0x120] sm:$0xff]  ;;  %v5787_v58 = vld [vmem:[%s12020_s7 + $0x118] sm:$0xff] }
 0x672   :  { %v3049_v62 = vpop.f32.mrf.mxu0 }
 0x673   :  { %v3145_v36 = vadd.f32 %v3124_v25, %v10190_v12  ;;  %v3097_v27 = vadd.f32 %v3049_v62, %v10457_v28  ;;  %6746 = vmatmul.mubr.msk.f32.gmra.mxu1 %vm1568_vm0, %v10700_v38  ;;  %6825 = vmatmul.mubr.msk.f32.gmra.mxu0 %vm1568_vm0, %v10700_v38  ;;  %v5786_v25 = vld [vmem:[%s12020_s7 + $0x110] sm:$0xff]  ;;  %v5785_v62 = vld [vmem:[%s12020_s7 + $0x108] sm:$0xff] }
 0x674   :  { %v6674_v49 = vpop.f32.mrf.mxu0  ;;  %6748 = vmatprep.mubr.msk.f32.mxu1 %vm7435_vm1, %v12145_v33  ;;  %6827 = vmatprep.mubr.msk.f32.mxu0 %vm7435_vm1, %v12145_v33 }
 0x675   :  { %v10713_v57 = vmax.f32 %v3145_v36, 0.0  ;;  %v3125_v54 = vadd.f32 %v10476_v21, %v3097_v27  ;;  %v5784_v36 = vld [vmem:[%s12020_s7 + $0x100] sm:$0xff] }
 0x676   :  { %v3054_v12 = vpop.f32.mrf.mxu0  ;;  %v10902_v27 = vld [vmem:[%s12022_s10 + $0x2] ss:$0 sm:$0xff] }
 0x677   :  { %v3146_v28 = vadd.f32 %v3125_v54, %v10202_v23  ;;  %v3098_v11 = vadd.f32 %v3054_v12, %v10459_v32  ;;  %6749 = vmatmul.mubr.msk.f32.gmra.mxu1 %vm1568_vm0, %v10713_v57  ;;  %6828 = vmatmul.mubr.msk.f32.gmra.mxu0 %vm1568_vm0, %v10713_v57 }
 0x678   :  { %v6677_v59 = vpop.f32.mrf.mxu0  ;;  %6751 = vmatprep.mubr.msk.f32.mxu1 %vm7435_vm1, %v12145_v33  ;;  %6830 = vmatprep.mubr.msk.f32.mxu0 %vm7435_vm1, %v12145_v33 }
 0x679   :  { %v10726_v55 = vmax.f32 %v3146_v28, 0.0  ;;  %v3126_v0 = vadd.f32 %v10476_v21, %v3098_v11 }
 0x67a   :  { %v3059_v23 = vpop.f32.mrf.mxu0 }
 0x67b   :  { %v3147_v32 = vadd.f32 %v3126_v0, %v10214_v29  ;;  %v3099_v37 = vadd.f32 %v3059_v23, %v10461_v51  ;;  %6752 = vmatmul.mubr.msk.f32.gmra.mxu1 %vm1568_vm0, %v10726_v55  ;;  %6831 = vmatmul.mubr.msk.f32.gmra.mxu0 %vm1568_vm0, %v10726_v55 }
 0x67c   :  { %v6680_v4 = vpop.f32.mrf.mxu0  ;;  %6754 = vmatprep.mubr.msk.f32.mxu1 %vm7435_vm1, %v12145_v33  ;;  %6833 = vmatprep.mubr.msk.f32.mxu0 %vm7435_vm1, %v12145_v33 }
 0x67d   :  { %v10739_v15 = vmax.f32 %v3147_v32, 0.0  ;;  %v3127_v52 = vadd.f32 %v10476_v21, %v3099_v37 }
 0x67e   :  { %v3064_v29 = vpop.f32.mrf.mxu0 }
 0x67f   :  { %v3148_v51 = vadd.f32 %v3127_v52, %v10226_v20  ;;  %v3100_v35 = vadd.f32 %v3064_v29, %v10463_v18  ;;  %6755 = vmatmul.mubr.msk.f32.gmra.mxu1 %vm1568_vm0, %v10739_v15  ;;  %6834 = vmatmul.mubr.msk.f32.gmra.mxu0 %vm1568_vm0, %v10739_v15 }
 0x680   :  { %v6683_v44 = vpop.f32.mrf.mxu0  ;;  %6757 = vmatprep.mubr.msk.f32.mxu1 %vm7435_vm1, %v12145_v33  ;;  %6836 = vmatprep.mubr.msk.f32.mxu0 %vm7435_vm1, %v12145_v33 }
 0x681   :  { %v10752_v46 = vmax.f32 %v3148_v51, 0.0  ;;  %v3128_v24 = vadd.f32 %v10476_v21, %v3100_v35 }
 0x682   :  { %v3069_v20 = vpop.f32.mrf.mxu0 }
 0x683   :  { %v3149_v18 = vadd.f32 %v3128_v24, %v10238_v34  ;;  %v3101_v41 = vadd.f32 %v3069_v20, %v10465_v43  ;;  %6758 = vmatmul.mubr.msk.f32.gmra.mxu1 %vm1568_vm0, %v10752_v46  ;;  %6837 = vmatmul.mubr.msk.f32.gmra.mxu0 %vm1568_vm0, %v10752_v46 }
 0x684   :  { %v6686_v16 = vpop.f32.mrf.mxu0  ;;  %6760 = vmatprep.mubr.msk.f32.mxu1 %vm7435_vm1, %v12145_v33  ;;  %6839 = vmatprep.mubr.msk.f32.mxu0 %vm7435_vm1, %v12145_v33 }
 0x685   :  { %v10765_v48 = vmax.f32 %v3149_v18, 0.0  ;;  %v3129_v53 = vadd.f32 %v10476_v21, %v3101_v41 }
 0x686   :  { %v3074_v34 = vpop.f32.mrf.mxu0 }
 0x687   :  { %v3150_v43 = vadd.f32 %v3129_v53, %v10250_v30  ;;  %v3102_v10 = vadd.f32 %v3074_v34, %v10467_v14  ;;  %6761 = vmatmul.mubr.msk.f32.gmra.mxu1 %vm1568_vm0, %v10765_v48  ;;  %6840 = vmatmul.mubr.msk.f32.gmra.mxu0 %vm1568_vm0, %v10765_v48 }
 0x688   :  { %v6689_v50 = vpop.f32.mrf.mxu0  ;;  %6763 = vmatprep.mubr.msk.f32.mxu1 %vm7435_vm1, %v12145_v33  ;;  %6842 = vmatprep.mubr.msk.f32.mxu0 %vm7435_vm1, %v12145_v33 }
 0x689   :  { %v10778_v6 = vmax.f32 %v3150_v43, 0.0  ;;  %v3130_v45 = vadd.f32 %v10476_v21, %v3102_v10 }
 0x68a   :  { %v3079_v30 = vpop.f32.mrf.mxu0 }
 0x68b   :  { %v3151_v14 = vadd.f32 %v3130_v45, %v10262_v2  ;;  %v3103_v9 = vadd.f32 %v3079_v30, %v10469_v17  ;;  %6764 = vmatmul.mubr.msk.f32.gmra.mxu1 %vm1568_vm0, %v10778_v6  ;;  %6843 = vmatmul.mubr.msk.f32.gmra.mxu0 %vm1568_vm0, %v10778_v6 }
 0x68c   :  { %v6692_v61 = vpop.f32.mrf.mxu0  ;;  %6766 = vmatprep.mubr.msk.f32.mxu1 %vm7435_vm1, %v12145_v33  ;;  %6845 = vmatprep.mubr.msk.f32.mxu0 %vm7435_vm1, %v12145_v33 }
 0x68d   :  { %v10791_v26 = vmax.f32 %v3151_v14, 0.0  ;;  %v3131_v13 = vadd.f32 %v10476_v21, %v3103_v9  ;;  %v5790_v21 = vld [vmem:[%s12020_s7 + $0x130] sm:$0xff] }
 0x68f   :  { %v3152_v2 = vadd.f32 %v3131_v13, %v10277_v8  ;;  %6767 = vmatmul.mubr.msk.f32.gmra.mxu1 %vm1568_vm0, %v10791_v26  ;;  %6846 = vmatmul.mubr.msk.f32.gmra.mxu0 %vm1568_vm0, %v10791_v26  ;;  %v5791_v8 = vld [vmem:[%s12020_s7 + $0x138] sm:$0xff] }
 0x690   :  { %6769 = vmatprep.mubr.msk.f32.mxu1 %vm7435_vm1, %v12145_v33  ;;  %6848 = vmatprep.mubr.msk.f32.mxu0 %vm7435_vm1, %v12145_v33 }
 0x691   :  { %v10803_v17 = vmax.f32 %v3152_v2, 0.0 }
 0x693   :  { %6770 = vmatmul.mubr.msk.f32.gmra.mxu1 %vm1568_vm0, %v10803_v17  ;;  %6849 = vmatmul.mubr.msk.f32.gmra.mxu0 %vm1568_vm0, %v10803_v17 }
 0x694   :  { %6867 = vmatprep.mubr.msk.f32.mxu1 %vm7435_vm1, %v12145_v33  ;;  %6946 = vmatprep.mubr.msk.f32.mxu0 %vm7435_vm1, %v12145_v33 }
 0x697   :  { %6868 = vmatmul.mubr.msk.f32.vlgmr.msra.gmra.mxu1 %vm1568_vm0, %v10481_v56  ;;  %6947 = vmatmul.mubr.msk.f32.vlgmr.msra.gmra.mxu0 %vm1568_vm0, %v10481_v56 }
 0x698   :  { %7010 = vmatpush3.msra.mxu1 %v5791_v8  ;;  %6870 = vmatprep.mubr.msk.f32.mxu1 %vm7435_vm1, %v12145_v33 }
 0x699   :  { %6949 = vmatprep.mubr.msk.f32.mxu0 %vm7435_vm1, %v12145_v33  ;;  %7011 = vmatprep.subr.mxu1 %v12145_v33 }
 0x69a   :  { %7012 = vmatpush3.msra.mxu1 %v5790_v21 }
 0x69b   :  { %6871 = vmatmul.mubr.msk.f32.gmra.mxu1 %vm1568_vm0, %v10501_v42  ;;  %6950 = vmatmul.mubr.msk.f32.gmra.mxu0 %vm1568_vm0, %v10501_v42 }
 0x69c   :  { %6873 = vmatprep.mubr.msk.f32.mxu1 %vm7435_vm1, %v12145_v33  ;;  %6952 = vmatprep.mubr.msk.f32.mxu0 %vm7435_vm1, %v12145_v33 }
 0x69d   :  { %7013 = vmatprep.subr.mxu1 %v12145_v33 }
 0x69e   :  { %7014 = vmatpush3.msra.mxu1 %v5789_v60 }
 0x69f   :  { %6874 = vmatmul.mubr.msk.f32.gmra.mxu1 %vm1568_vm0, %v10523_v1  ;;  %6953 = vmatmul.mubr.msk.f32.gmra.mxu0 %vm1568_vm0, %v10523_v1 }
 0x6a0   :  { %6876 = vmatprep.mubr.msk.f32.mxu1 %vm7435_vm1, %v12145_v33  ;;  %6955 = vmatprep.mubr.msk.f32.mxu0 %vm7435_vm1, %v12145_v33 }
 0x6a1   :  { %7015 = vmatprep.subr.mxu1 %v12145_v33 }
 0x6a2   :  { %7016 = vmatpush3.msra.mxu1 %v5788_v3 }
 0x6a3   :  { %6877 = vmatmul.mubr.msk.f32.gmra.mxu1 %vm1568_vm0, %v10544_v47  ;;  %6956 = vmatmul.mubr.msk.f32.gmra.mxu0 %vm1568_vm0, %v10544_v47 }
 0x6a4   :  { %6879 = vmatprep.mubr.msk.f32.mxu1 %vm7435_vm1, %v12145_v33  ;;  %6958 = vmatprep.mubr.msk.f32.mxu0 %vm7435_vm1, %v12145_v33 }
 0x6a5   :  { %7017 = vmatprep.subr.mxu1 %v12145_v33 }
 0x6a6   :  { %7018 = vmatpush3.msra.mxu1 %v5787_v58 }
 0x6a7   :  { %6880 = vmatmul.mubr.msk.f32.gmra.mxu1 %vm1568_vm0, %v10565_v19  ;;  %6959 = vmatmul.mubr.msk.f32.gmra.mxu0 %vm1568_vm0, %v10565_v19 }
 0x6a8   :  { %6882 = vmatprep.mubr.msk.f32.mxu1 %vm7435_vm1, %v12145_v33  ;;  %6961 = vmatprep.mubr.msk.f32.mxu0 %vm7435_vm1, %v12145_v33 }
 0x6a9   :  { %7019 = vmatprep.subr.mxu1 %v12145_v33 }
 0x6aa   :  { %7020 = vmatpush3.msra.mxu1 %v5786_v25 }
 0x6ab   :  { %6883 = vmatmul.mubr.msk.f32.gmra.mxu1 %vm1568_vm0, %v10586_v22  ;;  %6962 = vmatmul.mubr.msk.f32.gmra.mxu0 %vm1568_vm0, %v10586_v22 }
 0x6ac   :  { %6885 = vmatprep.mubr.msk.f32.mxu1 %vm7435_vm1, %v12145_v33  ;;  %6964 = vmatprep.mubr.msk.f32.mxu0 %vm7435_vm1, %v12145_v33 }
 0x6ad   :  { %7021 = vmatprep.subr.mxu1 %v12145_v33 }
 0x6ae   :  { %7022 = vmatpush3.msra.mxu1 %v5785_v62 }
 0x6af   :  { %6886 = vmatmul.mubr.msk.f32.gmra.mxu1 %vm1568_vm0, %v10607_v7  ;;  %6965 = vmatmul.mubr.msk.f32.gmra.mxu0 %vm1568_vm0, %v10607_v7 }
 0x6b0   :  { %6888 = vmatprep.mubr.msk.f32.mxu1 %vm7435_vm1, %v12145_v33  ;;  %6967 = vmatprep.mubr.msk.f32.mxu0 %vm7435_vm1, %v12145_v33 }
 0x6b1   :  { %7023 = vmatprep.subr.mxu1 %v12145_v33 }
 0x6b2   :  { %7024 = vmatpush3.msra.mxu1 %v5784_v36 }
 0x6b3   :  { %6889 = vmatmul.mubr.msk.f32.gmra.mxu1 %vm1568_vm0, %v10628_v39  ;;  %6968 = vmatmul.mubr.msk.f32.gmra.mxu0 %vm1568_vm0, %v10628_v39 }
 0x6b4   :  { %6891 = vmatprep.mubr.msk.f32.mxu1 %vm7435_vm1, %v12145_v33  ;;  %6970 = vmatprep.mubr.msk.f32.mxu0 %vm7435_vm1, %v12145_v33 }
 0x6b7   :  { %6892 = vmatmul.mubr.msk.f32.gmra.mxu1 %vm1568_vm0, %v10646_v40  ;;  %6971 = vmatmul.mubr.msk.f32.gmra.mxu0 %vm1568_vm0, %v10646_v40 }
 0x6b8   :  { %6894 = vmatprep.mubr.msk.f32.mxu1 %vm7435_vm1, %v12145_v33  ;;  %6973 = vmatprep.mubr.msk.f32.mxu0 %vm7435_vm1, %v12145_v33 }
 0x6bb   :  { %6895 = vmatmul.mubr.msk.f32.gmra.mxu1 %vm1568_vm0, %v10661_v63  ;;  %6974 = vmatmul.mubr.msk.f32.gmra.mxu0 %vm1568_vm0, %v10661_v63 }
 0x6bc   :  { %6897 = vmatprep.mubr.msk.f32.mxu1 %vm7435_vm1, %v12145_v33  ;;  %6976 = vmatprep.mubr.msk.f32.mxu0 %vm7435_vm1, %v12145_v33 }
 0x6bf   :  { %6898 = vmatmul.mubr.msk.f32.gmra.mxu1 %vm1568_vm0, %v10674_v5  ;;  %6977 = vmatmul.mubr.msk.f32.gmra.mxu0 %vm1568_vm0, %v10674_v5 }
 0x6c0   :  { %6900 = vmatprep.mubr.msk.f32.mxu1 %vm7435_vm1, %v12145_v33  ;;  %6979 = vmatprep.mubr.msk.f32.mxu0 %vm7435_vm1, %v12145_v33 }
 0x6c3   :  { %6901 = vmatmul.mubr.msk.f32.gmra.mxu1 %vm1568_vm0, %v10687_v31  ;;  %6980 = vmatmul.mubr.msk.f32.gmra.mxu0 %vm1568_vm0, %v10687_v31 }
 0x6c4   :  { %6903 = vmatprep.mubr.msk.f32.mxu1 %vm7435_vm1, %v12145_v33  ;;  %6982 = vmatprep.mubr.msk.f32.mxu0 %vm7435_vm1, %v12145_v33 }
 0x6c7   :  { %6904 = vmatmul.mubr.msk.f32.gmra.mxu1 %vm1568_vm0, %v10700_v38  ;;  %6983 = vmatmul.mubr.msk.f32.gmra.mxu0 %vm1568_vm0, %v10700_v38 }
 0x6c8   :  { %6906 = vmatprep.mubr.msk.f32.mxu1 %vm7435_vm1, %v12145_v33  ;;  %6985 = vmatprep.mubr.msk.f32.mxu0 %vm7435_vm1, %v12145_v33 }
 0x6cb   :  { %6907 = vmatmul.mubr.msk.f32.gmra.mxu1 %vm1568_vm0, %v10713_v57  ;;  %6986 = vmatmul.mubr.msk.f32.gmra.mxu0 %vm1568_vm0, %v10713_v57 }
 0x6cc   :  { %6909 = vmatprep.mubr.msk.f32.mxu1 %vm7435_vm1, %v12145_v33  ;;  %6988 = vmatprep.mubr.msk.f32.mxu0 %vm7435_vm1, %v12145_v33 }
 0x6cf   :  { %6910 = vmatmul.mubr.msk.f32.gmra.mxu1 %vm1568_vm0, %v10726_v55  ;;  %6989 = vmatmul.mubr.msk.f32.gmra.mxu0 %vm1568_vm0, %v10726_v55 }
 0x6d0   :  { %6912 = vmatprep.mubr.msk.f32.mxu1 %vm7435_vm1, %v12145_v33  ;;  %6991 = vmatprep.mubr.msk.f32.mxu0 %vm7435_vm1, %v12145_v33 }
 0x6d3   :  { %6913 = vmatmul.mubr.msk.f32.gmra.mxu1 %vm1568_vm0, %v10739_v15  ;;  %6992 = vmatmul.mubr.msk.f32.gmra.mxu0 %vm1568_vm0, %v10739_v15 }
 0x6d4   :  { %6915 = vmatprep.mubr.msk.f32.mxu1 %vm7435_vm1, %v12145_v33  ;;  %6994 = vmatprep.mubr.msk.f32.mxu0 %vm7435_vm1, %v12145_v33 }
 0x6d7   :  { %6916 = vmatmul.mubr.msk.f32.gmra.mxu1 %vm1568_vm0, %v10752_v46  ;;  %6995 = vmatmul.mubr.msk.f32.gmra.mxu0 %vm1568_vm0, %v10752_v46 }
 0x6d8   :  { %6918 = vmatprep.mubr.msk.f32.mxu1 %vm7435_vm1, %v12145_v33  ;;  %6997 = vmatprep.mubr.msk.f32.mxu0 %vm7435_vm1, %v12145_v33 }
 0x6db   :  { %6919 = vmatmul.mubr.msk.f32.gmra.mxu1 %vm1568_vm0, %v10765_v48  ;;  %6998 = vmatmul.mubr.msk.f32.gmra.mxu0 %vm1568_vm0, %v10765_v48 }
 0x6dc   :  { %6921 = vmatprep.mubr.msk.f32.mxu1 %vm7435_vm1, %v12145_v33  ;;  %7000 = vmatprep.mubr.msk.f32.mxu0 %vm7435_vm1, %v12145_v33 }
 0x6df   :  { %6922 = vmatmul.mubr.msk.f32.gmra.mxu1 %vm1568_vm0, %v10778_v6  ;;  %7001 = vmatmul.mubr.msk.f32.gmra.mxu0 %vm1568_vm0, %v10778_v6 }
 0x6e0   :  { %6924 = vmatprep.mubr.msk.f32.mxu1 %vm7435_vm1, %v12145_v33  ;;  %7003 = vmatprep.mubr.msk.f32.mxu0 %vm7435_vm1, %v12145_v33 }
 0x6e3   :  { %6925 = vmatmul.mubr.msk.f32.gmra.mxu1 %vm1568_vm0, %v10791_v26  ;;  %7004 = vmatmul.mubr.msk.f32.gmra.mxu0 %vm1568_vm0, %v10791_v26 }
 0x6e4   :  { %6927 = vmatprep.mubr.msk.f32.mxu1 %vm7435_vm1, %v12145_v33  ;;  %7006 = vmatprep.mubr.msk.f32.mxu0 %vm7435_vm1, %v12145_v33 }
 0x6e7   :  { %6928 = vmatmul.mubr.msk.f32.gmra.mxu1 %vm1568_vm0, %v10803_v17  ;;  %7007 = vmatmul.mubr.msk.f32.gmra.mxu0 %vm1568_vm0, %v10803_v17 }
 0x6e8   :  { %7025 = vmatprep.mubr.msk.f32.mxu1 %vm7435_vm1, %v12145_v33 }
 0x6eb   :  { %7026 = vmatmul.mubr.msk.f32.vlgmr.msra.gmra.mxu1 %vm1568_vm0, %v10481_v56  ;;  %v11042_v56 = vld [vmem:[%s12023_s8] ss:$0 sm:$0xff] }
 0x6ec   :  { %7028 = vmatprep.mubr.msk.f32.mxu1 %vm7435_vm1, %v12145_v33 }
 0x6ef   :  { %7029 = vmatmul.mubr.msk.f32.gmra.mxu1 %vm1568_vm0, %v10501_v42  ;;  %v11047_v42 = vld [vmem:[%s12023_s8 + $0x1] ss:$0 sm:$0xff] }
 0x6f0   :  { %7031 = vmatprep.mubr.msk.f32.mxu1 %vm7435_vm1, %v12145_v33 }
 0x6f3   :  { %7032 = vmatmul.mubr.msk.f32.gmra.mxu1 %vm1568_vm0, %v10523_v1 }
 0x6f4   :  { %7034 = vmatprep.mubr.msk.f32.mxu1 %vm7435_vm1, %v12145_v33 }
 0x6f7   :  { %7035 = vmatmul.mubr.msk.f32.gmra.mxu1 %vm1568_vm0, %v10544_v47  ;;  %v11052_v47 = vld [vmem:[%s12022_s10] ss:$0 sm:$0xff] }
 0x6f8   :  { %7037 = vmatprep.mubr.msk.f32.mxu1 %vm7435_vm1, %v12145_v33 }
 0x6fb   :  { %7038 = vmatmul.mubr.msk.f32.gmra.mxu1 %vm1568_vm0, %v10565_v19 }
 0x6fc   :  { %7040 = vmatprep.mubr.msk.f32.mxu1 %vm7435_vm1, %v12145_v33 }
 0x6ff   :  { %7041 = vmatmul.mubr.msk.f32.gmra.mxu1 %vm1568_vm0, %v10586_v22  ;;  %v11057_v22 = vld [vmem:[%s12022_s10 + $0x1] ss:$0 sm:$0xff] }
 0x700   :  { %7043 = vmatprep.mubr.msk.f32.mxu1 %vm7435_vm1, %v12145_v33 }
 0x703   :  { %v3318_v1 = vpop.f32.mrf.mxu1  ;;  %v3555_v19 = vpop.f32.mrf.mxu0  ;;  %7044 = vmatmul.mubr.msk.f32.gmra.mxu1 %vm1568_vm0, %v10607_v7 }
 0x704   :  { %v3319_v49 = vadd.f32 %v11042_v56, %v3318_v1  ;;  %v3556_v54 = vadd.f32 %v11047_v42, %v3555_v19  ;;  %7046 = vmatprep.mubr.msk.f32.mxu1 %vm7435_vm1, %v12145_v33 }
 0x705   :  { %v6711_v12 = vpop.f32.mrf.mxu1  ;;  %v6790_v28 = vpop.f32.mrf.mxu0 }
 0x706   :  { %v3429_v11 = vadd.f32 %v11052_v47, %v3319_v49  ;;  %v3667_v59 = vadd.f32 %v11057_v22, %v3556_v54 }
 0x707   :  { %v3323_v0 = vpop.f32.mrf.mxu1  ;;  %v3560_v23 = vpop.f32.mrf.mxu0  ;;  %7047 = vmatmul.mubr.msk.f32.gmra.mxu1 %vm1568_vm0, %v10628_v39 }
 0x708   :  { %3451 = vst.msk [vmem:[#allocation2] sm:$0xff] %vm3450_vm4, %v3429_v11  ;;  %3688 = vst.msk [vmem:[#allocation3] sm:$0xff] %vm3450_vm4, %v3667_v59  ;;  %v3324_v7 = vadd.f32 %v11042_v56, %v3323_v0  ;;  %v3561_v32 = vadd.f32 %v11047_v42, %v3560_v23  ;;  %7049 = vmatprep.mubr.msk.f32.mxu1 %vm7435_vm1, %v12145_v33 }
 0x709   :  { %v6714_v37 = vpop.f32.mrf.mxu1  ;;  %v6793_v4 = vpop.f32.mrf.mxu0 }
 0x70a   :  { %v3430_v52 = vadd.f32 %v11052_v47, %v3324_v7  ;;  %v3668_v29 = vadd.f32 %v11057_v22, %v3561_v32 }
 0x70b   :  { %v3328_v51 = vpop.f32.mrf.mxu1  ;;  %v3565_v35 = vpop.f32.mrf.mxu0  ;;  %7050 = vmatmul.mubr.msk.f32.gmra.mxu1 %vm1568_vm0, %v10646_v40 }
 0x70c   :  { %3452 = vst.msk [vmem:[#allocation2 + $0x8] sm:$0xff] %vm3450_vm4, %v3430_v52  ;;  %3689 = vst.msk [vmem:[#allocation3 + $0x8] sm:$0xff] %vm3450_vm4, %v3668_v29  ;;  %v3329_v39 = vadd.f32 %v11042_v56, %v3328_v51  ;;  %v3566_v44 = vadd.f32 %v11047_v42, %v3565_v35  ;;  %7052 = vmatprep.mubr.msk.f32.mxu1 %vm7435_vm1, %v12145_v33 }
 0x70d   :  { %v6717_v24 = vpop.f32.mrf.mxu1  ;;  %v6796_v20 = vpop.f32.mrf.mxu0 }
 0x70e   :  { %v3431_v18 = vadd.f32 %v11052_v47, %v3329_v39  ;;  %v3669_v41 = vadd.f32 %v11057_v22, %v3566_v44 }
 0x70f   :  { %v3333_v16 = vpop.f32.mrf.mxu1  ;;  %v3570_v53 = vpop.f32.mrf.mxu0  ;;  %7053 = vmatmul.mubr.msk.f32.gmra.mxu1 %vm1568_vm0, %v10661_v63 }
 0x710   :  { %3453 = vst.msk [vmem:[#allocation2 + $0x10] sm:$0xff] %vm3450_vm4, %v3431_v18  ;;  %3690 = vst.msk [vmem:[#allocation3 + $0x10] sm:$0xff] %vm3450_vm4, %v3669_v41  ;;  %v3334_v40 = vadd.f32 %v11042_v56, %v3333_v16  ;;  %v3571_v34 = vadd.f32 %v11047_v42, %v3570_v53  ;;  %7055 = vmatprep.mubr.msk.f32.mxu1 %vm7435_vm1, %v12145_v33 }
 0x711   :  { %v6720_v43 = vpop.f32.mrf.mxu1  ;;  %v6799_v10 = vpop.f32.mrf.mxu0 }
 0x712   :  { %v3432_v50 = vadd.f32 %v11052_v47, %v3334_v40  ;;  %v3670_v45 = vadd.f32 %v11057_v22, %v3571_v34 }
 0x713   :  { %v3338_v30 = vpop.f32.mrf.mxu1  ;;  %v3575_v14 = vpop.f32.mrf.mxu0  ;;  %7056 = vmatmul.mubr.msk.f32.gmra.mxu1 %vm1568_vm0, %v10674_v5 }
 0x714   :  { %3454 = vst.msk [vmem:[#allocation2 + $0x18] sm:$0xff] %vm3450_vm4, %v3432_v50  ;;  %3691 = vst.msk [vmem:[#allocation3 + $0x18] sm:$0xff] %vm3450_vm4, %v3670_v45  ;;  %v3339_v63 = vadd.f32 %v11042_v56, %v3338_v30  ;;  %v3576_v9 = vadd.f32 %v11047_v42, %v3575_v14  ;;  %7058 = vmatprep.mubr.msk.f32.mxu1 %vm7435_vm1, %v12145_v33 }
 0x715   :  { %v6723_v61 = vpop.f32.mrf.mxu1  ;;  %v6802_v13 = vpop.f32.mrf.mxu0 }
 0x716   :  { %v3433_v2 = vadd.f32 %v11052_v47, %v3339_v63  ;;  %v3671_v8 = vadd.f32 %v11057_v22, %v3576_v9 }
 0x717   :  { %v3343_v21 = vpop.f32.mrf.mxu1  ;;  %v3580_v60 = vpop.f32.mrf.mxu0  ;;  %7059 = vmatmul.mubr.msk.f32.gmra.mxu1 %vm1568_vm0, %v10687_v31 }
 0x718   :  { %3455 = vst.msk [vmem:[#allocation2 + $0x20] sm:$0xff] %vm3450_vm4, %v3433_v2  ;;  %3692 = vst.msk [vmem:[#allocation3 + $0x20] sm:$0xff] %vm3450_vm4, %v3671_v8  ;;  %v3344_v5 = vadd.f32 %v11042_v56, %v3343_v21  ;;  %v3581_v3 = vadd.f32 %v11047_v42, %v3580_v60  ;;  %7061 = vmatprep.mubr.msk.f32.mxu1 %vm7435_vm1, %v12145_v33 }
 0x719   :  { %v6726_v58 = vpop.f32.mrf.mxu1  ;;  %v6805_v25 = vpop.f32.mrf.mxu0 }
 0x71a   :  { %v3434_v62 = vadd.f32 %v11052_v47, %v3344_v5  ;;  %v3672_v36 = vadd.f32 %v11057_v22, %v3581_v3 }
 0x71b   :  { %v3348_v1 = vpop.f32.mrf.mxu1  ;;  %v3585_v19 = vpop.f32.mrf.mxu0  ;;  %7062 = vmatmul.mubr.msk.f32.gmra.mxu1 %vm1568_vm0, %v10700_v38 }
 0x71c   :  { %3456 = vst.msk [vmem:[#allocation2 + $0x28] sm:$0xff] %vm3450_vm4, %v3434_v62  ;;  %3693 = vst.msk [vmem:[#allocation3 + $0x28] sm:$0xff] %vm3450_vm4, %v3672_v36  ;;  %v3349_v31 = vadd.f32 %v11042_v56, %v3348_v1  ;;  %v3586_v49 = vadd.f32 %v11047_v42, %v3585_v19  ;;  %7064 = vmatprep.mubr.msk.f32.mxu1 %vm7435_vm1, %v12145_v33 }
 0x71d   :  { %v6729_v54 = vpop.f32.mrf.mxu1  ;;  %v6808_v12 = vpop.f32.mrf.mxu0 }
 0x71e   :  { %v3435_v28 = vadd.f32 %v11052_v47, %v3349_v31  ;;  %v3673_v11 = vadd.f32 %v11057_v22, %v3586_v49 }
 0x71f   :  { %v3353_v59 = vpop.f32.mrf.mxu1  ;;  %v3590_v0 = vpop.f32.mrf.mxu0  ;;  %7065 = vmatmul.mubr.msk.f32.gmra.mxu1 %vm1568_vm0, %v10713_v57 }
 0x720   :  { %3457 = vst.msk [vmem:[#allocation2 + $0x30] sm:$0xff] %vm3450_vm4, %v3435_v28  ;;  %3694 = vst.msk [vmem:[#allocation3 + $0x30] sm:$0xff] %vm3450_vm4, %v3673_v11  ;;  %v3354_v38 = vadd.f32 %v11042_v56, %v3353_v59  ;;  %v3591_v23 = vadd.f32 %v11047_v42, %v3590_v0  ;;  %7067 = vmatprep.mubr.msk.f32.mxu1 %vm7435_vm1, %v12145_v33 }
 0x721   :  { %v6732_v7 = vpop.f32.mrf.mxu1  ;;  %v6811_v32 = vpop.f32.mrf.mxu0 }
 0x722   :  { %v3436_v37 = vadd.f32 %v11052_v47, %v3354_v38  ;;  %v3674_v4 = vadd.f32 %v11057_v22, %v3591_v23 }
 0x723   :  { %v3358_v52 = vpop.f32.mrf.mxu1  ;;  %v3595_v29 = vpop.f32.mrf.mxu0  ;;  %7068 = vmatmul.mubr.msk.f32.gmra.mxu1 %vm1568_vm0, %v10726_v55 }
 0x724   :  { %3458 = vst.msk [vmem:[#allocation2 + $0x38] sm:$0xff] %vm3450_vm4, %v3436_v37  ;;  %3695 = vst.msk [vmem:[#allocation3 + $0x38] sm:$0xff] %vm3450_vm4, %v3674_v4  ;;  %v3359_v57 = vadd.f32 %v11042_v56, %v3358_v52  ;;  %v3596_v51 = vadd.f32 %v11047_v42, %v3595_v29  ;;  %7070 = vmatprep.mubr.msk.f32.mxu1 %vm7435_vm1, %v12145_v33 }
 0x725   :  { %v6735_v35 = vpop.f32.mrf.mxu1  ;;  %v6814_v39 = vpop.f32.mrf.mxu0 }
 0x726   :  { %v3437_v44 = vadd.f32 %v11052_v47, %v3359_v57  ;;  %v3675_v24 = vadd.f32 %v11057_v22, %v3596_v51 }
 0x727   :  { %v3363_v20 = vpop.f32.mrf.mxu1  ;;  %v3600_v18 = vpop.f32.mrf.mxu0  ;;  %7071 = vmatmul.mubr.msk.f32.gmra.mxu1 %vm1568_vm0, %v10739_v15 }
 0x728   :  { %3459 = vst.msk [vmem:[#allocation2 + $0x40] sm:$0xff] %vm3450_vm4, %v3437_v44  ;;  %3696 = vst.msk [vmem:[#allocation3 + $0x40] sm:$0xff] %vm3450_vm4, %v3675_v24  ;;  %v3364_v55 = vadd.f32 %v11042_v56, %v3363_v20  ;;  %v3601_v41 = vadd.f32 %v11047_v42, %v3600_v18  ;;  %7073 = vmatprep.mubr.msk.f32.mxu1 %vm7435_vm1, %v12145_v33 }
 0x729   :  { %v6738_v16 = vpop.f32.mrf.mxu1  ;;  %v6817_v53 = vpop.f32.mrf.mxu0 }
 0x72a   :  { %v3438_v40 = vadd.f32 %v11052_v47, %v3364_v55  ;;  %v3676_v34 = vadd.f32 %v11057_v22, %v3601_v41 }
 0x72b   :  { %v3368_v43 = vpop.f32.mrf.mxu1  ;;  %v3605_v10 = vpop.f32.mrf.mxu0  ;;  %7074 = vmatmul.mubr.msk.f32.gmra.mxu1 %vm1568_vm0, %v10752_v46 }
 0x72c   :  { %3460 = vst.msk [vmem:[#allocation2 + $0x48] sm:$0xff] %vm3450_vm4, %v3438_v40  ;;  %3697 = vst.msk [vmem:[#allocation3 + $0x48] sm:$0xff] %vm3450_vm4, %v3676_v34  ;;  %v3369_v15 = vadd.f32 %v11042_v56, %v3368_v43  ;;  %v3606_v50 = vadd.f32 %v11047_v42, %v3605_v10  ;;  %7076 = vmatprep.mubr.msk.f32.mxu1 %vm7435_vm1, %v12145_v33 }
 0x72d   :  { %v6741_v45 = vpop.f32.mrf.mxu1  ;;  %v6820_v30 = vpop.f32.mrf.mxu0 }
 0x72e   :  { %v3439_v14 = vadd.f32 %v11052_v47, %v3369_v15  ;;  %v3677_v63 = vadd.f32 %v11057_v22, %v3606_v50 }
 0x72f   :  { %v3373_v9 = vpop.f32.mrf.mxu1  ;;  %v3610_v61 = vpop.f32.mrf.mxu0  ;;  %7077 = vmatmul.mubr.msk.f32.gmra.mxu1 %vm1568_vm0, %v10765_v48 }
 0x730   :  { %3461 = vst.msk [vmem:[#allocation2 + $0x50] sm:$0xff] %vm3450_vm4, %v3439_v14  ;;  %3698 = vst.msk [vmem:[#allocation3 + $0x50] sm:$0xff] %vm3450_vm4, %v3677_v63  ;;  %v3374_v46 = vadd.f32 %v11042_v56, %v3373_v9  ;;  %v3611_v13 = vadd.f32 %v11047_v42, %v3610_v61  ;;  %7079 = vmatprep.mubr.msk.f32.mxu1 %vm7435_vm1, %v12145_v33 }
 0x731   :  { %v6744_v2 = vpop.f32.mrf.mxu1  ;;  %v6823_v8 = vpop.f32.mrf.mxu0 }
 0x732   :  { %v3440_v21 = vadd.f32 %v11052_v47, %v3374_v46  ;;  %v3678_v60 = vadd.f32 %v11057_v22, %v3611_v13 }
 0x733   :  { %v3378_v5 = vpop.f32.mrf.mxu1  ;;  %v3615_v3 = vpop.f32.mrf.mxu0  ;;  %7080 = vmatmul.mubr.msk.f32.gmra.mxu1 %vm1568_vm0, %v10778_v6 }
 0x734   :  { %3462 = vst.msk [vmem:[#allocation2 + $0x58] sm:$0xff] %vm3450_vm4, %v3440_v21  ;;  %3699 = vst.msk [vmem:[#allocation3 + $0x58] sm:$0xff] %vm3450_vm4, %v3678_v60  ;;  %v3379_v48 = vadd.f32 %v11042_v56, %v3378_v5  ;;  %v3616_v58 = vadd.f32 %v11047_v42, %v3615_v3  ;;  %7082 = vmatprep.mubr.msk.f32.mxu1 %vm7435_vm1, %v12145_v33 }
 0x735   :  { %v6747_v25 = vpop.f32.mrf.mxu1  ;;  %v6826_v62 = vpop.f32.mrf.mxu0 }
 0x736   :  { %v3441_v36 = vadd.f32 %v11052_v47, %v3379_v48  ;;  %v3679_v1 = vadd.f32 %v11057_v22, %v3616_v58 }
 0x737   :  { %v3383_v19 = vpop.f32.mrf.mxu1  ;;  %v3620_v31 = vpop.f32.mrf.mxu0  ;;  %7083 = vmatmul.mubr.msk.f32.gmra.mxu1 %vm1568_vm0, %v10791_v26 }
 0x738   :  { %3463 = vst.msk [vmem:[#allocation2 + $0x60] sm:$0xff] %vm3450_vm4, %v3441_v36  ;;  %3700 = vst.msk [vmem:[#allocation3 + $0x60] sm:$0xff] %vm3450_vm4, %v3679_v1  ;;  %v3384_v6 = vadd.f32 %v11042_v56, %v3383_v19  ;;  %v3621_v49 = vadd.f32 %v11047_v42, %v3620_v31  ;;  %7085 = vmatprep.mubr.msk.f32.mxu1 %vm7435_vm1, %v12145_v33 }
 0x739   :  { %v6750_v54 = vpop.f32.mrf.mxu1  ;;  %v6829_v12 = vpop.f32.mrf.mxu0 }
 0x73a   :  { %v3442_v28 = vadd.f32 %v11052_v47, %v3384_v6  ;;  %v3680_v11 = vadd.f32 %v11057_v22, %v3621_v49  ;;  %v11242_v49 = vld [vmem:[%s12023_s8 + $0x2] ss:$0 sm:$0xff]  ;;  %v11247_v54 = vld [vmem:[%s12023_s8 + $0x3] ss:$0 sm:$0xff] }
 0x73b   :  { %v3388_v59 = vpop.f32.mrf.mxu1  ;;  %v3625_v0 = vpop.f32.mrf.mxu0  ;;  %7086 = vmatmul.mubr.msk.f32.gmra.mxu1 %vm1568_vm0, %v10803_v17 }
 0x73c   :  { %3464 = vst.msk [vmem:[#allocation2 + $0x68] sm:$0xff] %vm3450_vm4, %v3442_v28  ;;  %3701 = vst.msk [vmem:[#allocation3 + $0x68] sm:$0xff] %vm3450_vm4, %v3680_v11  ;;  %v3389_v26 = vadd.f32 %v11042_v56, %v3388_v59  ;;  %v3626_v38 = vadd.f32 %v11047_v42, %v3625_v0 }
 0x73d   :  { %v6753_v33 = vpop.f32.mrf.mxu1  ;;  %v6832_v23 = vpop.f32.mrf.mxu0 }
 0x73e   :  { %v3443_v7 = vadd.f32 %v11052_v47, %v3389_v26  ;;  %v3681_v32 = vadd.f32 %v11057_v22, %v3626_v38 }
 0x73f   :  { %v3393_v37 = vpop.f32.mrf.mxu1  ;;  %v3630_v4 = vpop.f32.mrf.mxu0 }
 0x740   :  { %3465 = vst.msk [vmem:[#allocation2 + $0x70] sm:$0xff] %vm3450_vm4, %v3443_v7  ;;  %3702 = vst.msk [vmem:[#allocation3 + $0x70] sm:$0xff] %vm3450_vm4, %v3681_v32  ;;  %v3394_v17 = vadd.f32 %v11042_v56, %v3393_v37  ;;  %v3631_v52 = vadd.f32 %v11047_v42, %v3630_v4 }
 0x741   :  { %v6756_v29 = vpop.f32.mrf.mxu1  ;;  %v6835_v57 = vpop.f32.mrf.mxu0 }
 0x742   :  { %v3444_v51 = vadd.f32 %v11052_v47, %v3394_v17  ;;  %v3682_v35 = vadd.f32 %v11057_v22, %v3631_v52 }
 0x743   :  { %v3398_v39 = vpop.f32.mrf.mxu1  ;;  %v3635_v44 = vpop.f32.mrf.mxu0 }
 0x744   :  { %3466 = vst.msk [vmem:[#allocation2 + $0x78] sm:$0xff] %vm3450_vm4, %v3444_v51  ;;  %3703 = vst.msk [vmem:[#allocation3 + $0x78] sm:$0xff] %vm3450_vm4, %v3682_v35  ;;  %v3399_v24 = vadd.f32 %v11042_v56, %v3398_v39  ;;  %v3636_v20 = vadd.f32 %v11047_v42, %v3635_v44 }
 0x745   :  { %v6759_v18 = vpop.f32.mrf.mxu1  ;;  %v6838_v55 = vpop.f32.mrf.mxu0 }
 0x746   :  { %v3445_v41 = vadd.f32 %v11052_v47, %v3399_v24  ;;  %v3683_v16 = vadd.f32 %v11057_v22, %v3636_v20 }
 0x747   :  { %v3403_v53 = vpop.f32.mrf.mxu1  ;;  %v3640_v40 = vpop.f32.mrf.mxu0 }
 0x748   :  { %3467 = vst.msk [vmem:[#allocation2 + $0x80] sm:$0xff] %vm3450_vm4, %v3445_v41  ;;  %3704 = vst.msk [vmem:[#allocation3 + $0x80] sm:$0xff] %vm3450_vm4, %v3683_v16  ;;  %v3404_v34 = vadd.f32 %v11042_v56, %v3403_v53  ;;  %v3641_v43 = vadd.f32 %v11047_v42, %v3640_v40 }
 0x749   :  { %v6762_v10 = vpop.f32.mrf.mxu1  ;;  %v6841_v15 = vpop.f32.mrf.mxu0 }
 0x74a   :  { %v3446_v50 = vadd.f32 %v11052_v47, %v3404_v34  ;;  %v3684_v45 = vadd.f32 %v11057_v22, %v3641_v43 }
 0x74b   :  { %v3408_v30 = vpop.f32.mrf.mxu1  ;;  %v3645_v14 = vpop.f32.mrf.mxu0 }
 0x74c   :  { %3468 = vst.msk [vmem:[#allocation2 + $0x88] sm:$0xff] %vm3450_vm4, %v3446_v50  ;;  %3705 = vst.msk [vmem:[#allocation3 + $0x88] sm:$0xff] %vm3450_vm4, %v3684_v45  ;;  %v3409_v63 = vadd.f32 %v11042_v56, %v3408_v30  ;;  %v3646_v9 = vadd.f32 %v11047_v42, %v3645_v14 }
 0x74d   :  { %v6765_v61 = vpop.f32.mrf.mxu1  ;;  %v6844_v46 = vpop.f32.mrf.mxu0 }
 0x74e   :  { %v3447_v13 = vadd.f32 %v11052_v47, %v3409_v63  ;;  %v3685_v2 = vadd.f32 %v11057_v22, %v3646_v9 }
 0x74f   :  { %v3413_v8 = vpop.f32.mrf.mxu1  ;;  %v3650_v21 = vpop.f32.mrf.mxu0 }
 0x750   :  { %3469 = vst.msk [vmem:[#allocation2 + $0x90] sm:$0xff] %vm3450_vm4, %v3447_v13  ;;  %3706 = vst.msk [vmem:[#allocation3 + $0x90] sm:$0xff] %vm3450_vm4, %v3685_v2  ;;  %v3414_v60 = vadd.f32 %v11042_v56, %v3413_v8  ;;  %v3651_v5 = vadd.f32 %v11047_v42, %v3650_v21 }
 0x751   :  { %v6768_v3 = vpop.f32.mrf.mxu1  ;;  %v6847_v48 = vpop.f32.mrf.mxu0 }
 0x752   :  { %v3448_v58 = vadd.f32 %v11052_v47, %v3414_v60  ;;  %v3686_v25 = vadd.f32 %v11057_v22, %v3651_v5 }
 0x753   :  { %v3418_v62 = vpop.f32.mrf.mxu1  ;;  %v3655_v36 = vpop.f32.mrf.mxu0 }
 0x754   :  { %3470 = vst.msk [vmem:[#allocation2 + $0x98] sm:$0xff] %vm3450_vm4, %v3448_v58  ;;  %3707 = vst.msk [vmem:[#allocation3 + $0x98] sm:$0xff] %vm3450_vm4, %v3686_v25  ;;  %v3419_v1 = vadd.f32 %v11042_v56, %v3418_v62  ;;  %v3656_v19 = vadd.f32 %v11047_v42, %v3655_v36 }
 0x755   :  { %v6771_v31 = vpop.f32.mrf.mxu1  ;;  %v6850_v6 = vpop.f32.mrf.mxu0 }
 0x756   :  { %v3449_v12 = vadd.f32 %v11052_v47, %v3419_v1  ;;  %v3687_v28 = vadd.f32 %v11057_v22, %v3656_v19 }
 0x757   :  { %v3792_v11 = vpop.f32.mrf.mxu1  ;;  %v4000_v56 = vpop.f32.mrf.mxu0 }
 0x758   :  { %3471 = vst.msk [vmem:[#allocation2 + $0xa0] sm:$0xff] %vm3450_vm4, %v3449_v12  ;;  %3708 = vst.msk [vmem:[#allocation3 + $0xa0] sm:$0xff] %vm3450_vm4, %v3687_v28  ;;  %v3793_v42 = vadd.f32 %v11242_v49, %v3792_v11  ;;  %v4001_v59 = vadd.f32 %v11247_v54, %v4000_v56 }
 0x759   :  { %v6869_v0 = vpop.f32.mrf.mxu1  ;;  %v6948_v26 = vpop.f32.mrf.mxu0 }
 0x75a   :  { %3896 = vst.msk [vmem:[#allocation4] sm:$0xff] %vm3450_vm4, %v3793_v42  ;;  %v5763_v38 = vmul.f32 -1.442695, %v4001_v59 }
 0x75b   :  { %v3797_v33 = vpop.f32.mrf.mxu1  ;;  %v4005_v23 = vpop.f32.mrf.mxu0 }
 0x75c   :  { %7278 = vpow2.f32 %v5763_v38  ;;  %v3798_v47 = vadd.f32 %v11242_v49, %v3797_v33  ;;  %v4006_v22 = vadd.f32 %v11247_v54, %v4005_v23 }
 0x75d   :  { %v6872_v7 = vpop.f32.mrf.mxu1  ;;  %v6951_v32 = vpop.f32.mrf.mxu0 }
 0x75e   :  { %3897 = vst.msk [vmem:[#allocation4 + $0x8] sm:$0xff] %vm3450_vm4, %v3798_v47  ;;  %v5764_v37 = vmul.f32 -1.442695, %v4006_v22 }
 0x75f   :  { %v3802_v4 = vpop.f32.mrf.mxu1  ;;  %v4010_v17 = vpop.f32.mrf.mxu0 }
 0x760   :  { %7280 = vpow2.f32 %v5764_v37  ;;  %v3803_v52 = vadd.f32 %v11242_v49, %v3802_v4  ;;  %v4011_v29 = vadd.f32 %v11247_v54, %v4010_v17 }
 0x761   :  { %v6875_v57 = vpop.f32.mrf.mxu1  ;;  %v6954_v51 = vpop.f32.mrf.mxu0 }
 0x762   :  { %3898 = vst.msk [vmem:[#allocation4 + $0x10] sm:$0xff] %vm3450_vm4, %v3803_v52  ;;  %v5765_v35 = vmul.f32 -1.442695, %v4011_v29 }
 0x763   :  { %v3807_v39 = vpop.f32.mrf.mxu1  ;;  %v4015_v44 = vpop.f32.mrf.mxu0 }
 0x764   :  { %7282 = vpow2.f32 %v5765_v35  ;;  %v3808_v24 = vadd.f32 %v11242_v49, %v3807_v39  ;;  %v4016_v20 = vadd.f32 %v11247_v54, %v4015_v44 }
 0x765   :  { %v6878_v18 = vpop.f32.mrf.mxu1  ;;  %v6957_v55 = vpop.f32.mrf.mxu0 }
 0x766   :  { %3899 = vst.msk [vmem:[#allocation4 + $0x18] sm:$0xff] %vm3450_vm4, %v3808_v24  ;;  %v5766_v41 = vmul.f32 -1.442695, %v4016_v20 }
 0x767   :  { %v3812_v16 = vpop.f32.mrf.mxu1  ;;  %v4020_v53 = vpop.f32.mrf.mxu0 }
 0x768   :  { %7284 = vpow2.f32 %v5766_v41  ;;  %v3813_v40 = vadd.f32 %v11242_v49, %v3812_v16  ;;  %v4021_v34 = vadd.f32 %v11247_v54, %v4020_v53  ;;  %v11296_v41 = vld [vmem:[%s12024_s9] sm:$0xff]  ;;  %v11301_v16 = vld [vmem:[%s12024_s9 + $0x8] sm:$0xff]  ;;  %v11306_v53 = vld [vmem:[%s12024_s9 + $0x10] sm:$0xff] }
 0x769   :  { %v7279_v43 = vpop.eup %7278  ;;  %v6881_v10 = vpop.f32.mrf.mxu1 }
 0x76a   :  { %v6960_v15 = vpop.f32.mrf.mxu0  ;;  %v4167_v50 = vadd.f32 1.0, %v7279_v43  ;;  %3900 = vst.msk [vmem:[#allocation4 + $0x20] sm:$0xff] %vm3450_vm4, %v3813_v40  ;;  %v5767_v45 = vmul.f32 -1.442695, %v4021_v34  ;;  %v11313_v10 = vld [vmem:[%s12024_s9 + $0x18] sm:$0xff] }
 0x76b   :  { %v3817_v30 = vpop.f32.mrf.mxu1  ;;  %v11318_v15 = vld [vmem:[%s12024_s9 + $0x20] sm:$0xff] }
 0x76c   :  { %v4025_v14 = vpop.f32.mrf.mxu0  ;;  %7286 = vrcp.f32 %v4167_v50  ;;  %v3818_v63 = vadd.f32 %v11242_v49, %v3817_v30  ;;  %v11323_v50 = vld [vmem:[%s12024_s9 + $0x28] sm:$0xff] }
 0x76d   :  { %v4026_v9 = vadd.f32 %v11247_v54, %v4025_v14  ;;  %v7281_v61 = vpop.eup %7280  ;;  %7288 = vpow2.f32 %v5767_v45  ;;  %v6884_v46 = vpop.f32.mrf.mxu1  ;;  %v11331_v14 = vld [vmem:[%s12024_s9 + $0x30] sm:$0xff] }
 0x76e   :  { %v6963_v13 = vpop.f32.mrf.mxu0  ;;  %v4168_v2 = vadd.f32 1.0, %v7281_v61  ;;  %3901 = vst.msk [vmem:[#allocation4 + $0x28] sm:$0xff] %vm3450_vm4, %v3818_v63  ;;  %v11336_v63 = vld [vmem:[%s12024_s9 + $0x38] sm:$0xff] }
 0x76f   :  { %v5768_v8 = vmul.f32 -1.442695, %v4026_v9  ;;  %v3822_v21 = vpop.f32.mrf.mxu1  ;;  %v11341_v9 = vld [vmem:[%s12024_s9 + $0x40] sm:$0xff] }
 0x770   :  { %v4030_v60 = vpop.f32.mrf.mxu0  ;;  %7290 = vrcp.f32 %v4168_v2  ;;  %v3823_v5 = vadd.f32 %v11242_v49, %v3822_v21  ;;  %v11346_v2 = vld [vmem:[%s12024_s9 + $0x48] sm:$0xff]  ;;  %v11356_v21 = vld [vmem:[%s12024_s9 + $0x58] sm:$0xff] }
 0x771   :  { %v4031_v3 = vadd.f32 %v11247_v54, %v4030_v60  ;;  %v7283_v48 = vpop.eup %7282  ;;  %7292 = vpow2.f32 %v5768_v8  ;;  %v6887_v58 = vpop.f32.mrf.mxu1  ;;  %v11351_v8 = vld [vmem:[%s12024_s9 + $0x50] sm:$0xff] }
 0x772   :  { %v6966_v25 = vpop.f32.mrf.mxu0  ;;  %v4169_v62 = vadd.f32 1.0, %v7283_v48  ;;  %3902 = vst.msk [vmem:[#allocation4 + $0x30] sm:$0xff] %vm3450_vm4, %v3823_v5 }
 0x773   :  { %v5769_v36 = vmul.f32 -1.442695, %v4031_v3  ;;  %v3827_v1 = vpop.f32.mrf.mxu1 }
 0x774   :  { %v4035_v19 = vpop.f32.mrf.mxu0  ;;  %7294 = vrcp.f32 %v4169_v62  ;;  %v3828_v31 = vadd.f32 %v11242_v49, %v3827_v1 }
 0x775   :  { %v4036_v6 = vadd.f32 %v11247_v54, %v4035_v19  ;;  %v7285_v12 = vpop.eup %7284  ;;  %7296 = vpow2.f32 %v5769_v36  ;;  %v6890_v28 = vpop.f32.mrf.mxu1 }
 0x776   :  { %v6969_v11 = vpop.f32.mrf.mxu0  ;;  %v4170_v56 = vadd.f32 1.0, %v7285_v12  ;;  %3903 = vst.msk [vmem:[#allocation4 + $0x38] sm:$0xff] %vm3450_vm4, %v3828_v31 }
 0x777   :  { %v5770_v42 = vmul.f32 -1.442695, %v4036_v6  ;;  %v3832_v59 = vpop.f32.mrf.mxu1 }
 0x778   :  { %v4040_v0 = vpop.f32.mrf.mxu0  ;;  %7298 = vrcp.f32 %v4170_v56  ;;  %v3833_v26 = vadd.f32 %v11242_v49, %v3832_v59 }
 0x779   :  { %v4041_v38 = vadd.f32 %v11247_v54, %v4040_v0  ;;  %v11279_v33 = vpop.eup %7286  ;;  %7300 = vpow2.f32 %v5770_v42  ;;  %v6893_v23 = vpop.f32.mrf.mxu1 }
 0x77a   :  { %v6972_v47 = vpop.f32.mrf.mxu0  ;;  %v7289_v22 = vpop.eup %7288  ;;  %4417 = vst.msk [vmem:[#allocation5] sm:$0xff] %vm3450_vm4, %v11279_v33  ;;  %3904 = vst.msk [vmem:[#allocation4 + $0x40] sm:$0xff] %vm3450_vm4, %v3833_v26 }
 0x77b   :  { %v5771_v7 = vmul.f32 -1.442695, %v4041_v38  ;;  %v4171_v32 = vadd.f32 1.0, %v7289_v22  ;;  %v3837_v37 = vpop.f32.mrf.mxu1 }
 0x77c   :  { %v4045_v4 = vpop.f32.mrf.mxu0  ;;  %v3838_v17 = vadd.f32 %v11242_v49, %v3837_v37 }
 0x77d   :  { %7302 = vpow2.f32 %v5771_v7  ;;  %v4046_v52 = vadd.f32 %v11247_v54, %v4045_v4  ;;  %v11286_v29 = vpop.eup %7290  ;;  %v6896_v57 = vpop.f32.mrf.mxu1 }
 0x77e   :  { %7304 = vrcp.f32 %v4171_v32  ;;  %v6975_v51 = vpop.f32.mrf.mxu0  ;;  %v7293_v35 = vpop.eup %7292  ;;  %4418 = vst.msk [vmem:[#allocation5 + $0x8] sm:$0xff] %vm3450_vm4, %v11286_v29  ;;  %3905 = vst.msk [vmem:[#allocation4 + $0x48] sm:$0xff] %vm3450_vm4, %v3838_v17 }
 0x77f   :  { %v5772_v39 = vmul.f32 -1.442695, %v4046_v52  ;;  %v4172_v44 = vadd.f32 1.0, %v7293_v35  ;;  %v3842_v24 = vpop.f32.mrf.mxu1 }
 0x780   :  { %v4050_v20 = vpop.f32.mrf.mxu0  ;;  %v3843_v18 = vadd.f32 %v11242_v49, %v3842_v24 }
 0x781   :  { %7306 = vpow2.f32 %v5772_v39  ;;  %v4051_v55 = vadd.f32 %v11247_v54, %v4050_v20  ;;  %v11308_v40 = vpop.eup %7294  ;;  %v6899_v34 = vpop.f32.mrf.mxu1 }
 0x782   :  { %7308 = vrcp.f32 %v4172_v44  ;;  %v6978_v43 = vpop.f32.mrf.mxu0  ;;  %v7297_v45 = vpop.eup %7296  ;;  %4419 = vst.msk [vmem:[#allocation5 + $0x10] sm:$0xff] %vm3450_vm4, %v11308_v40  ;;  %3906 = vst.msk [vmem:[#allocation4 + $0x50] sm:$0xff] %vm3450_vm4, %v3843_v18 }
 0x783   :  { %v5773_v30 = vmul.f32 -1.442695, %v4051_v55  ;;  %v4173_v61 = vadd.f32 1.0, %v7297_v45  ;;  %v3847_v46 = vpop.f32.mrf.mxu1 }
 0x784   :  { %v4055_v13 = vpop.f32.mrf.mxu0  ;;  %v3848_v60 = vadd.f32 %v11242_v49, %v3847_v46 }
 0x785   :  { %7310 = vpow2.f32 %v5773_v30  ;;  %v4056_v5 = vadd.f32 %v11247_v54, %v4055_v13  ;;  %v11360_v3 = vpop.eup %7298  ;;  %v6902_v48 = vpop.f32.mrf.mxu1 }
 0x786   :  { %7312 = vrcp.f32 %v4173_v61  ;;  %v6981_v58 = vpop.f32.mrf.mxu0  ;;  %v7301_v25 = vpop.eup %7300  ;;  %4420 = vst.msk [vmem:[#allocation5 + $0x18] sm:$0xff] %vm3450_vm4, %v11360_v3  ;;  %3907 = vst.msk [vmem:[#allocation4 + $0x58] sm:$0xff] %vm3450_vm4, %v3848_v60 }
 0x787   :  { %v5774_v62 = vmul.f32 -1.442695, %v4056_v5  ;;  %v4174_v36 = vadd.f32 1.0, %v7301_v25  ;;  %v3852_v1 = vpop.f32.mrf.mxu1 }
 0x788   :  { %v4060_v19 = vpop.f32.mrf.mxu0  ;;  %v3853_v31 = vadd.f32 %v11242_v49, %v3852_v1 }
 0x789   :  { %7314 = vpow2.f32 %v5774_v62  ;;  %v4061_v6 = vadd.f32 %v11247_v54, %v4060_v19  ;;  %v6905_v28 = vpop.f32.mrf.mxu1 }
 0x78a   :  { %v7303_v12 = vpop.eup %7302  ;;  %7316 = vrcp.f32 %v4174_v36  ;;  %v6984_v11 = vpop.f32.mrf.mxu0  ;;  %3908 = vst.msk [vmem:[#allocation4 + $0x60] sm:$0xff] %vm3450_vm4, %v3853_v31 }
 0x78b   :  { %v11367_v56 = vpop.eup %7304  ;;  %v4175_v42 = vadd.f32 1.0, %v7303_v12  ;;  %v5775_v59 = vmul.f32 -1.442695, %v4061_v6  ;;  %v3857_v0 = vpop.f32.mrf.mxu1 }
 0x78c   :  { %4421 = vst.msk [vmem:[#allocation5 + $0x20] sm:$0xff] %vm3450_vm4, %v11367_v56  ;;  %v4065_v26 = vpop.f32.mrf.mxu0  ;;  %v3858_v38 = vadd.f32 %v11242_v49, %v3857_v0 }
 0x78d   :  { %7318 = vrcp.f32 %v4175_v42  ;;  %v4066_v23 = vadd.f32 %v11247_v54, %v4065_v26  ;;  %v6908_v22 = vpop.f32.mrf.mxu1 }
 0x78e   :  { %v7307_v47 = vpop.eup %7306  ;;  %7320 = vpow2.f32 %v5775_v59  ;;  %v6987_v7 = vpop.f32.mrf.mxu0  ;;  %3909 = vst.msk [vmem:[#allocation4 + $0x68] sm:$0xff] %vm3450_vm4, %v3858_v38 }
 0x78f   :  { %v11374_v32 = vpop.eup %7308  ;;  %v4176_v37 = vadd.f32 1.0, %v7307_v47  ;;  %v5776_v4 = vmul.f32 -1.442695, %v4066_v23  ;;  %v3862_v17 = vpop.f32.mrf.mxu1 }
 0x790   :  { %4422 = vst.msk [vmem:[#allocation5 + $0x28] sm:$0xff] %vm3450_vm4, %v11374_v32  ;;  %v4070_v52 = vpop.f32.mrf.mxu0  ;;  %v3863_v57 = vadd.f32 %v11242_v49, %v3862_v17 }
 0x791   :  { %7322 = vrcp.f32 %v4176_v37  ;;  %v4071_v51 = vadd.f32 %v11247_v54, %v4070_v52  ;;  %v6911_v39 = vpop.f32.mrf.mxu1 }
 0x792   :  { %v7311_v35 = vpop.eup %7310  ;;  %7324 = vpow2.f32 %v5776_v4  ;;  %v6990_v44 = vpop.f32.mrf.mxu0  ;;  %3910 = vst.msk [vmem:[#allocation4 + $0x70] sm:$0xff] %vm3450_vm4, %v3863_v57 }
 0x793   :  { %v11381_v24 = vpop.eup %7312  ;;  %v4177_v20 = vadd.f32 1.0, %v7311_v35  ;;  %v5777_v18 = vmul.f32 -1.442695, %v4071_v51  ;;  %v3867_v55 = vpop.f32.mrf.mxu1 }
 0x794   :  { %4423 = vst.msk [vmem:[#allocation5 + $0x30] sm:$0xff] %vm3450_vm4, %v11381_v24  ;;  %v4075_v34 = vpop.f32.mrf.mxu0  ;;  %v3868_v43 = vadd.f32 %v11242_v49, %v3867_v55 }
 0x795   :  { %7326 = vrcp.f32 %v4177_v20  ;;  %v4076_v45 = vadd.f32 %v11247_v54, %v4075_v34  ;;  %v6914_v61 = vpop.f32.mrf.mxu1 }
 0x796   :  { %v7315_v30 = vpop.eup %7314  ;;  %7328 = vpow2.f32 %v5777_v18  ;;  %v6993_v46 = vpop.f32.mrf.mxu0  ;;  %3911 = vst.msk [vmem:[#allocation4 + $0x78] sm:$0xff] %vm3450_vm4, %v3868_v43 }
 0x797   :  { %v11388_v13 = vpop.eup %7316  ;;  %v4178_v60 = vadd.f32 1.0, %v7315_v30  ;;  %v5778_v5 = vmul.f32 -1.442695, %v4076_v45  ;;  %v3872_v48 = vpop.f32.mrf.mxu1 }
 0x798   :  { %4424 = vst.msk [vmem:[#allocation5 + $0x38] sm:$0xff] %vm3450_vm4, %v11388_v13  ;;  %v4080_v58 = vpop.f32.mrf.mxu0  ;;  %v3873_v25 = vadd.f32 %v11242_v49, %v3872_v48 }
 0x799   :  { %7330 = vrcp.f32 %v4178_v60  ;;  %v4081_v62 = vadd.f32 %v11247_v54, %v4080_v58  ;;  %v6917_v1 = vpop.f32.mrf.mxu1 }
 0x79a   :  { %v11395_v36 = vpop.eup %7318  ;;  %7332 = vpow2.f32 %v5778_v5  ;;  %v6996_v19 = vpop.f32.mrf.mxu0  ;;  %3912 = vst.msk [vmem:[#allocation4 + $0x80] sm:$0xff] %vm3450_vm4, %v3873_v25 }
 0x79b   :  { %v7321_v31 = vpop.eup %7320  ;;  %4425 = vst.msk [vmem:[#allocation5 + $0x40] sm:$0xff] %vm3450_vm4, %v11395_v36  ;;  %v5779_v6 = vmul.f32 -1.442695, %v4081_v62  ;;  %v3877_v28 = vpop.f32.mrf.mxu1 }
 0x79c   :  { %v4179_v12 = vadd.f32 1.0, %v7321_v31  ;;  %v4085_v11 = vpop.f32.mrf.mxu0  ;;  %v3878_v42 = vadd.f32 %v11242_v49, %v3877_v28  ;;  %v11426_v31 = vld [vmem:[%s12023_s8 + $0x4] ss:$0 sm:$0xff]  ;;  %s11530_s8 = smov 0  }
 0x79d   :  { %7334 = vpow2.f32 %v5779_v6  ;;  %v4086_v59 = vadd.f32 %v11247_v54, %v4085_v11  ;;  %v6920_v26 = vpop.f32.mrf.mxu1  ;;  %v4438_v11 = vsub.f32 1.0, %v11279_v33 }
 0x79e   :  { %v11402_v0 = vpop.eup %7322  ;;  %7336 = vrcp.f32 %v4179_v12  ;;  %v6999_v38 = vpop.f32.mrf.mxu0  ;;  %3913 = vst.msk [vmem:[#allocation4 + $0x88] sm:$0xff] %vm3450_vm4, %v3878_v42 }
 0x79f   :  { %v7325_v23 = vpop.eup %7324  ;;  %4426 = vst.msk [vmem:[#allocation5 + $0x48] sm:$0xff] %vm3450_vm4, %v11402_v0  ;;  %v5780_v47 = vmul.f32 -1.442695, %v4086_v59  ;;  %v3882_v7 = vpop.f32.mrf.mxu1 }
 0x7a0   :  { %v4180_v22 = vadd.f32 1.0, %v7325_v23  ;;  %v4090_v37 = vpop.f32.mrf.mxu0  ;;  %v3883_v4 = vadd.f32 %v11242_v49, %v3882_v7  ;;  %v4439_v7 = vsub.f32 1.0, %v11286_v29 }
 0x7a1   :  { %7338 = vpow2.f32 %v5780_v47  ;;  %v4091_v17 = vadd.f32 %v11247_v54, %v4090_v37  ;;  %v6923_v57 = vpop.f32.mrf.mxu1 }
 0x7a2   :  { %v11409_v52 = vpop.eup %7326  ;;  %7340 = vrcp.f32 %v4180_v22  ;;  %v7002_v51 = vpop.f32.mrf.mxu0  ;;  %3914 = vst.msk [vmem:[#allocation4 + $0x90] sm:$0xff] %vm3450_vm4, %v3883_v4 }
 0x7a3   :  { %v7329_v35 = vpop.eup %7328  ;;  %4427 = vst.msk [vmem:[#allocation5 + $0x50] sm:$0xff] %vm3450_vm4, %v11409_v52  ;;  %v5781_v39 = vmul.f32 -1.442695, %v4091_v17  ;;  %v3887_v20 = vpop.f32.mrf.mxu1 }
 0x7a4   :  { %v4181_v44 = vadd.f32 1.0, %v7329_v35  ;;  %v4095_v18 = vpop.f32.mrf.mxu0  ;;  %v3888_v55 = vadd.f32 %v11242_v49, %v3887_v20 }
 0x7a5   :  { %7342 = vpow2.f32 %v5781_v39  ;;  %v4096_v34 = vadd.f32 %v11247_v54, %v4095_v18  ;;  %v6926_v45 = vpop.f32.mrf.mxu1  ;;  %v4440_v39 = vsub.f32 1.0, %v11308_v40 }
 0x7a6   :  { %v11416_v43 = vpop.eup %7330  ;;  %7344 = vrcp.f32 %v4181_v44  ;;  %v7005_v30 = vpop.f32.mrf.mxu0  ;;  %3915 = vst.msk [vmem:[#allocation4 + $0x98] sm:$0xff] %vm3450_vm4, %v3888_v55 }
 0x7a7   :  { %v7333_v61 = vpop.eup %7332  ;;  %4428 = vst.msk [vmem:[#allocation5 + $0x58] sm:$0xff] %vm3450_vm4, %v11416_v43  ;;  %v5782_v46 = vmul.f32 -1.442695, %v4096_v34  ;;  %v3892_v5 = vpop.f32.mrf.mxu1  ;;  %v4441_v30 = vsub.f32 1.0, %v11360_v3 }
 0x7a8   :  { %v4182_v60 = vadd.f32 1.0, %v7333_v61  ;;  %v4100_v48 = vpop.f32.mrf.mxu0  ;;  %v3893_v58 = vadd.f32 %v11242_v49, %v3892_v5 }
 0x7a9   :  { %7346 = vpow2.f32 %v5782_v46  ;;  %v4101_v25 = vadd.f32 %v11247_v54, %v4100_v48  ;;  %v6929_v1 = vpop.f32.mrf.mxu1 }
 0x7aa   :  { %v7335_v62 = vpop.eup %7334  ;;  %7348 = vrcp.f32 %v4182_v60  ;;  %v7008_v19 = vpop.f32.mrf.mxu0  ;;  %3916 = vst.msk [vmem:[#allocation4 + $0xa0] sm:$0xff] %vm3450_vm4, %v3893_v58 }
 0x7ab   :  { %v11428_v6 = vpop.eup %7336  ;;  %v4183_v12 = vadd.f32 1.0, %v7335_v62  ;;  %v5783_v28 = vmul.f32 -1.442695, %v4101_v25  ;;  %v4313_v49 = vpop.f32.mrf.mxu1  ;;  %v4442_v25 = vsub.f32 1.0, %v11367_v56 }
 0x7ac   :  { %4429 = vst.msk [vmem:[#allocation5 + $0x60] sm:$0xff] %vm3450_vm4, %v11428_v6  ;;  %v4314_v54 = vadd.f32 %v11426_v31, %v4313_v49 }
 0x7ad   :  { %7350 = vrcp.f32 %v4183_v12  ;;  %v7027_v59 = vpop.f32.mrf.mxu1 }
 0x7ae   :  { %v7339_v42 = vpop.eup %7338  ;;  %7352 = vpow2.f32 %v5783_v28  ;;  %v4459_v23 = vmul.f32 %v4438_v11, %v4314_v54  ;;  %v4443_v28 = vsub.f32 1.0, %v11374_v32  ;;  %v4444_v59 = vsub.f32 1.0, %v11381_v24 }
 0x7af   :  { %v11435_v26 = vpop.eup %7340  ;;  %v4184_v38 = vadd.f32 1.0, %v7339_v42  ;;  %v4318_v47 = vpop.f32.mrf.mxu1 }
 0x7b0   :  { %4430 = vst.msk [vmem:[#allocation5 + $0x68] sm:$0xff] %vm3450_vm4, %v11435_v26  ;;  %4480 = vst.msk [vmem:[#allocation6] sm:$0xff] %vm3450_vm4, %v4459_v23  ;;  %v4319_v22 = vadd.f32 %v11426_v31, %v4318_v47 }
 0x7b1   :  { %7354 = vrcp.f32 %v4184_v38  ;;  %v7030_v33 = vpop.f32.mrf.mxu1 }
 0x7b2   :  { %v7343_v37 = vpop.eup %7342  ;;  %v4460_v57 = vmul.f32 %v4439_v7, %v4319_v22  ;;  %v4445_v7 = vsub.f32 1.0, %v11388_v13 }
 0x7b3   :  { %v11442_v4 = vpop.eup %7344  ;;  %v4185_v17 = vadd.f32 1.0, %v7343_v37  ;;  %v4323_v51 = vpop.f32.mrf.mxu1 }
 0x7b4   :  { %4431 = vst.msk [vmem:[#allocation5 + $0x70] sm:$0xff] %vm3450_vm4, %v11442_v4  ;;  %4481 = vst.msk [vmem:[#allocation6 + $0x8] sm:$0xff] %vm3450_vm4, %v4460_v57  ;;  %v4324_v35 = vadd.f32 %v11426_v31, %v4323_v51  ;;  %v4446_v51 = vsub.f32 1.0, %v11395_v36 }
 0x7b5   :  { %7356 = vrcp.f32 %v4185_v17  ;;  %v7033_v20 = vpop.f32.mrf.mxu1 }
 0x7b6   :  { %v7347_v44 = vpop.eup %7346  ;;  %v4461_v55 = vmul.f32 %v4440_v39, %v4324_v35  ;;  %v4447_v20 = vsub.f32 1.0, %v11402_v0 }
 0x7b7   :  { %v11449_v29 = vpop.eup %7348  ;;  %v4186_v18 = vadd.f32 1.0, %v7347_v44  ;;  %v4328_v34 = vpop.f32.mrf.mxu1 }
 0x7b8   :  { %4432 = vst.msk [vmem:[#allocation5 + $0x78] sm:$0xff] %vm3450_vm4, %v11449_v29  ;;  %4482 = vst.msk [vmem:[#allocation6 + $0x10] sm:$0xff] %vm3450_vm4, %v4461_v55  ;;  %v4329_v45 = vadd.f32 %v11426_v31, %v4328_v34 }
 0x7b9   :  { %7358 = vrcp.f32 %v4186_v18  ;;  %v7036_v40 = vpop.f32.mrf.mxu1 }
 0x7ba   :  { %v11456_v61 = vpop.eup %7350  ;;  %v4462_v60 = vmul.f32 %v4441_v30, %v4329_v45  ;;  %v4448_v30 = vsub.f32 1.0, %v11409_v52 }
 0x7bb   :  { %v7353_v46 = vpop.eup %7352  ;;  %4433 = vst.msk [vmem:[#allocation5 + $0x80] sm:$0xff] %vm3450_vm4, %v11456_v61  ;;  %v4333_v48 = vpop.f32.mrf.mxu1 }
 0x7bc   :  { %v4187_v5 = vadd.f32 1.0, %v7353_v46  ;;  %4483 = vst.msk [vmem:[#allocation6 + $0x18] sm:$0xff] %vm3450_vm4, %v4462_v60  ;;  %v4334_v58 = vadd.f32 %v11426_v31, %v4333_v48 }
 0x7bd   :  { %v7039_v3 = vpop.f32.mrf.mxu1 }
 0x7be   :  { %v11463_v62 = vpop.eup %7354  ;;  %7360 = vrcp.f32 %v4187_v5  ;;  %v4463_v1 = vmul.f32 %v4442_v25, %v4334_v58  ;;  %v4449_v5 = vsub.f32 1.0, %v11416_v43  ;;  %v4450_v3 = vsub.f32 1.0, %v11428_v6 }
 0x7bf   :  { %4434 = vst.msk [vmem:[#allocation5 + $0x88] sm:$0xff] %vm3450_vm4, %v11463_v62  ;;  %v4338_v19 = vpop.f32.mrf.mxu1 }
 0x7c0   :  { %4484 = vst.msk [vmem:[#allocation6 + $0x20] sm:$0xff] %vm3450_vm4, %v4463_v1  ;;  %v4339_v12 = vadd.f32 %v11426_v31, %v4338_v19 }
 0x7c1   :  { %v7042_v54 = vpop.f32.mrf.mxu1 }
 0x7c2   :  { %v11470_v49 = vpop.eup %7356  ;;  %v4464_v56 = vmul.f32 %v4443_v28, %v4339_v12  ;;  %v4451_v28 = vsub.f32 1.0, %v11435_v26 }
 0x7c3   :  { %4435 = vst.msk [vmem:[#allocation5 + $0x90] sm:$0xff] %vm3450_vm4, %v11470_v49  ;;  %v4343_v11 = vpop.f32.mrf.mxu1 }
 0x7c4   :  { %4485 = vst.msk [vmem:[#allocation6 + $0x28] sm:$0xff] %vm3450_vm4, %v4464_v56  ;;  %v4344_v42 = vadd.f32 %v11426_v31, %v4343_v11 }
 0x7c5   :  { %v7045_v23 = vpop.f32.mrf.mxu1 }
 0x7c6   :  { %v11477_v38 = vpop.eup %7358  ;;  %v4465_v32 = vmul.f32 %v4444_v59, %v4344_v42  ;;  %v4452_v42 = vsub.f32 1.0, %v11442_v4 }
 0x7c7   :  { %4436 = vst.msk [vmem:[#allocation5 + $0x98] sm:$0xff] %vm3450_vm4, %v11477_v38  ;;  %v4348_v47 = vpop.f32.mrf.mxu1 }
 0x7c8   :  { %4486 = vst.msk [vmem:[#allocation6 + $0x30] sm:$0xff] %vm3450_vm4, %v4465_v32  ;;  %v4349_v22 = vadd.f32 %v11426_v31, %v4348_v47  ;;  %v4453_v47 = vsub.f32 1.0, %v11449_v29 }
 0x7c9   :  { %v7048_v37 = vpop.f32.mrf.mxu1 }
 0x7ca   :  { %v4466_v17 = vmul.f32 %v4445_v7, %v4349_v22 }
 0x7cb   :  { %v11484_v33 = vpop.eup %7360  ;;  %v4353_v24 = vpop.f32.mrf.mxu1 }
 0x7cc   :  { %4437 = vst.msk [vmem:[#allocation5 + $0xa0] sm:$0xff] %vm3450_vm4, %v11484_v33  ;;  %4487 = vst.msk [vmem:[#allocation6 + $0x38] sm:$0xff] %vm3450_vm4, %v4466_v17  ;;  %v4354_v57 = vadd.f32 %v11426_v31, %v4353_v24  ;;  %v4454_v17 = vsub.f32 1.0, %v11456_v61 }
 0x7cd   :  { %v7051_v35 = vpop.f32.mrf.mxu1 }
 0x7ce   :  { %v4467_v39 = vmul.f32 %v4446_v51, %v4354_v57  ;;  %v4455_v35 = vsub.f32 1.0, %v11463_v62 }
 0x7cf   :  { %v4358_v44 = vpop.f32.mrf.mxu1 }
 0x7d0   :  { %4488 = vst.msk [vmem:[#allocation6 + $0x40] sm:$0xff] %vm3450_vm4, %v4467_v39  ;;  %v4359_v13 = vadd.f32 %v11426_v31, %v4358_v44 }
 0x7d1   :  { %v7054_v18 = vpop.f32.mrf.mxu1 }
 0x7d2   :  { %v4468_v55 = vmul.f32 %v4447_v20, %v4359_v13  ;;  %v4456_v20 = vsub.f32 1.0, %v11470_v49 }
 0x7d3   :  { %v4363_v34 = vpop.f32.mrf.mxu1 }
 0x7d4   :  { %4489 = vst.msk [vmem:[#allocation6 + $0x48] sm:$0xff] %vm3450_vm4, %v4468_v55  ;;  %v4364_v45 = vadd.f32 %v11426_v31, %v4363_v34 }
 0x7d5   :  { %v7057_v40 = vpop.f32.mrf.mxu1 }
 0x7d6   :  { %v4469_v36 = vmul.f32 %v4448_v30, %v4364_v45  ;;  %v4457_v45 = vsub.f32 1.0, %v11477_v38 }
 0x7d7   :  { %v4368_v46 = vpop.f32.mrf.mxu1 }
 0x7d8   :  { %4490 = vst.msk [vmem:[#allocation6 + $0x50] sm:$0xff] %vm3450_vm4, %v4469_v36  ;;  %v4369_v60 = vadd.f32 %v11426_v31, %v4368_v46  ;;  %v4458_v46 = vsub.f32 1.0, %v11484_v33 }
 0x7d9   :  { %v7060_v48 = vpop.f32.mrf.mxu1 }
 0x7da   :  { %v4470_v0 = vmul.f32 %v4449_v5, %v4369_v60  ;;  %v11528_v5 = vmov 0.0  }
 0x7db   :  { %v4373_v58 = vpop.f32.mrf.mxu1 }
 0x7dc   :  { %4491 = vst.msk [vmem:[#allocation6 + $0x58] sm:$0xff] %vm3450_vm4, %v4470_v0  ;;  %v4374_v25 = vadd.f32 %v11426_v31, %v4373_v58 }
 0x7dd   :  { %v7063_v1 = vpop.f32.mrf.mxu1 }
 0x7de   :  { %v4471_v52 = vmul.f32 %v4450_v3, %v4374_v25 }
 0x7df   :  { %v4378_v19 = vpop.f32.mrf.mxu1 }
 0x7e0   :  { %4492 = vst.msk [vmem:[#allocation6 + $0x60] sm:$0xff] %vm3450_vm4, %v4471_v52  ;;  %v4379_v12 = vadd.f32 %v11426_v31, %v4378_v19 }
 0x7e1   :  { %v7066_v54 = vpop.f32.mrf.mxu1 }
 0x7e2   :  { %v4472_v43 = vmul.f32 %v4451_v28, %v4379_v12 }
 0x7e3   :  { %v4383_v56 = vpop.f32.mrf.mxu1 }
 0x7e4   :  { %4493 = vst.msk [vmem:[#allocation6 + $0x68] sm:$0xff] %vm3450_vm4, %v4472_v43  ;;  %v4384_v11 = vadd.f32 %v11426_v31, %v4383_v56 }
 0x7e5   :  { %v7069_v59 = vpop.f32.mrf.mxu1 }
 0x7e6   :  { %v4473_v6 = vmul.f32 %v4452_v42, %v4384_v11 }
 0x7e7   :  { %v4388_v23 = vpop.f32.mrf.mxu1 }
 0x7e8   :  { %4494 = vst.msk [vmem:[#allocation6 + $0x70] sm:$0xff] %vm3450_vm4, %v4473_v6  ;;  %v4389_v32 = vadd.f32 %v11426_v31, %v4388_v23 }
 0x7e9   :  { %v7072_v22 = vpop.f32.mrf.mxu1 }
 0x7ea   :  { %v4474_v26 = vmul.f32 %v4453_v47, %v4389_v32 }
 0x7eb   :  { %v4393_v7 = vpop.f32.mrf.mxu1 }
 0x7ec   :  { %4495 = vst.msk [vmem:[#allocation6 + $0x78] sm:$0xff] %vm3450_vm4, %v4474_v26  ;;  %v4394_v37 = vadd.f32 %v11426_v31, %v4393_v7 }
 0x7ed   :  { %v7075_v24 = vpop.f32.mrf.mxu1 }
 0x7ee   :  { %v4475_v4 = vmul.f32 %v4454_v17, %v4394_v37 }
 0x7ef   :  { %v4398_v57 = vpop.f32.mrf.mxu1 }
 0x7f0   :  { %4496 = vst.msk [vmem:[#allocation6 + $0x80] sm:$0xff] %vm3450_vm4, %v4475_v4  ;;  %v4399_v51 = vadd.f32 %v11426_v31, %v4398_v57 }
 0x7f1   :  { %v7078_v39 = vpop.f32.mrf.mxu1 }
 0x7f2   :  { %v4476_v29 = vmul.f32 %v4455_v35, %v4399_v51 }
 0x7f3   :  { %v4403_v44 = vpop.f32.mrf.mxu1 }
 0x7f4   :  { %4497 = vst.msk [vmem:[#allocation6 + $0x88] sm:$0xff] %vm3450_vm4, %v4476_v29  ;;  %v4404_v13 = vadd.f32 %v11426_v31, %v4403_v44 }
 0x7f5   :  { %v7081_v18 = vpop.f32.mrf.mxu1 }
 0x7f6   :  { %v4477_v61 = vmul.f32 %v4456_v20, %v4404_v13 }
 0x7f7   :  { %v4408_v55 = vpop.f32.mrf.mxu1 }
 0x7f8   :  { %4498 = vst.msk [vmem:[#allocation6 + $0x90] sm:$0xff] %vm3450_vm4, %v4477_v61  ;;  %v4409_v34 = vadd.f32 %v11426_v31, %v4408_v55 }
 0x7f9   :  { %v7084_v30 = vpop.f32.mrf.mxu1 }
 0x7fa   :  { %v4478_v62 = vmul.f32 %v4457_v45, %v4409_v34 }
 0x7fb   :  { %v4413_v40 = vpop.f32.mrf.mxu1 }
 0x7fc   :  { %4499 = vst.msk [vmem:[#allocation6 + $0x98] sm:$0xff] %vm3450_vm4, %v4478_v62  ;;  %v4414_v36 = vadd.f32 %v11426_v31, %v4413_v40 }
 0x7fd   :  { %v7087_v60 = vpop.f32.mrf.mxu1 }
 0x7fe   :  { %v4479_v49 = vmul.f32 %v4458_v46, %v4414_v36 }
 0x800   :  { %4500 = vst.msk [vmem:[#allocation6 + $0xa0] sm:$0xff] %vm3450_vm4, %v4479_v49 }
 0x801 LB: > { %v7436_v38 = vmov 0.0   ;;  %vm7437_vm5 = vmmov 0   ;;  %s11560_s20 = sshll.u32 %s7432_s8, 3  ;;  %s4522_s8 = sadd.s32 1, %s7432_s8   ;;  %s7432_s8 = sphi %s11530_s8, %s4522_s8   ;;  %v7428_v5 = vphi %v11528_v5, %v4776_v5  }
 0x802   : > { %7088 = vmatprep.subr.mxu0 %v7436_v38  ;;  %7096 = vmatprep.mubr.msk.f32.mxu0 %vm7437_vm5, %v7436_v38  ;;  %s4744_s21 = scalar_lea.vmem [#allocation2], %s11560_s20  ;;  %s4753_s0 = scalar_lea.vmem [#allocation3], %s11560_s20 }
 0x803   : > { %7089 = vmatpush3.msra.mxu0 %v11313_v10  ;;  %7099 = vmatprep.subr.mxu1 %v7436_v38  ;;  %v4745_v31 = vld [vmem:[%s4744_s21] sm:$0xff]  ;;  %s4762_s22 = scalar_lea.vmem [#allocation4], %s11560_s20  ;;  %s4771_s23 = scalar_lea.vmem [#allocation5], %s11560_s20 }
 0x804   : > { %7090 = vmatprep.subr.mxu0 %v7436_v38  ;;  %7100 = vmatpush3.msra.mxu1 %v11336_v63  ;;  %v4754_v25 = vld [vmem:[%s4753_s0] sm:$0xff]  ;;  %s4774_s4 = scalar_lea.vmem [#allocation6], %s11560_s20  ;;  %s4777_s24 = scalar_lea.vmem [#allocation7], %s11560_s20 }
 0x805   : > { %7091 = vmatpush3.msra.mxu0 %v11306_v53  ;;  %7101 = vmatprep.subr.mxu1 %v7436_v38  ;;  %v4763_v6 = vld [vmem:[%s4762_s22] sm:$0xff]  ;;  %p4519_p0 = scmp.ge.s32.totalorder %s4522_s8, 21  }
 0x806   : > { %7092 = vmatprep.subr.mxu0 %v7436_v38  ;;  %7102 = vmatpush3.msra.mxu1 %v11331_v14  ;;  %v4772_v17 = vld [vmem:[%s4771_s23] sm:$0xff]  ;;  %v12146_v51 = vmov (%p4519_p0), 0.0   ;;  %v4803_v35 = vld [vmem:[%s12010_s11 + $0x18] sm:$0xff] (%p4519_p0)  ;;  %v4802_v39 = vld [vmem:[%s12010_s11 + $0x10] sm:$0xff] (%p4519_p0)  ;;  %v7438_v62 = vmov (%p4519_p0), 0   ;;  %vm5044_vm6 = vcmask (%p4519_p0), 7168  }
 0x807   : > { %7093 = vmatpush3.msra.mxu0 %v11301_v16  ;;  %7103 = vmatprep.subr.mxu1 %v7436_v38  ;;  %v4775_v4 = vld [vmem:[%s4774_s4] sm:$0xff]  ;;  %vm5463_vm7 = vcmask (%p4519_p0), 80896  }
 0x808   : > { %7094 = vmatprep.subr.mxu0 %v7436_v38  ;;  %7104 = vmatpush3.msra.mxu1 %v11323_v50 }
 0x809   : > { %7095 = vmatpush3.msra.mxu0 %v11296_v41  ;;  %7105 = vmatprep.subr.mxu1 %v7436_v38  ;;  %v4800_v41 = vld [vmem:[%s12010_s11] sm:$0xff] (%p4519_p0) }
 0x80a   : > { %7097 = vmatmul.mubr.msk.f32.vlgmr.msra.gmra.mxu0 %vm3450_vm4, %v7428_v5  ;;  %7106 = vmatpush3.msra.mxu1 %v11318_v15 }
 0x80b   : > { %7107 = vmatprep.mubr.msk.f32.mxu1 %vm7437_vm5, %v7436_v38  ;;  %7110 = vmatprep.subr.mxu0 %v7436_v38 }
 0x80c   : > { %7108 = vmatmul.mubr.msk.f32.vlgmr.msra.gmra.mxu1 %vm3450_vm4, %v7428_v5  ;;  %7111 = vmatpush3.msra.mxu0 %v11356_v21 }
 0x80d   : > { %7112 = vmatprep.subr.mxu0 %v7436_v38  ;;  %7118 = vmatprep.mubr.msk.f32.mxu0 %vm7437_vm5, %v7436_v38 }
 0x80e   : > { %7113 = vmatpush3.msra.mxu0 %v11351_v8  ;;  %7203 = vmatprep.subr.mxu1 (%p4519_p0), %v12146_v51 }
 0x80f   : > { %7114 = vmatprep.subr.mxu0 %v7436_v38  ;;  %7207 = vmatpush3.msra.mxu1 (%p4519_p0), %v4803_v35 }
 0x810   : > { %7115 = vmatpush3.msra.mxu0 %v11346_v2  ;;  %7204 = vmatprep.subr.mxu1 (%p4519_p0), %v12146_v51 }
 0x811   : > { %7116 = vmatprep.subr.mxu0 %v7436_v38  ;;  %7208 = vmatpush3.msra.mxu1 (%p4519_p0), %v4802_v39 }
 0x812   : > { %7117 = vmatpush3.msra.mxu0 %v11341_v9  ;;  %7205 = vmatprep.subr.mxu1 (%p4519_p0), %v12146_v51 }
 0x813   : > { %7119 = vmatmul.mubr.msk.f32.vlgmr.msra.gmra.mxu0 %vm3450_vm4, %v7428_v5  ;;  %7121 = vmatprep.subr.mxu0 (%p4519_p0), %v12146_v51 }
 0x814   :  { %7122 = vmatpush3.msra.mxu0 (%p4519_p0), %v4803_v35  ;;  %7129 = vmatprep.mubr.msk.f32.mxu0 (%p4519_p0), %vm7435_vm1, %v12146_v51 }
 0x815   :  { %7123 = vmatprep.subr.mxu0 (%p4519_p0), %v12146_v51  ;;  %7162 = vmatprep.mubr.msk.f32.mxu1 (%p4519_p0), %vm7435_vm1, %v12146_v51 }
 0x816   :  { %7124 = vmatpush3.msra.mxu0 (%p4519_p0), %v4802_v39  ;;  %7373 = vset.pattern.permute.xlu1 (%p4519_p0), %v7438_v62 }
 0x817   :  { %7125 = vmatprep.subr.mxu0 (%p4519_p0), %v12146_v51  ;;  %7372 = vset.pattern.permute.xlu0 (%p4519_p0), %v7438_v62 }
 0x8ca   : > { %v4594_v33 = vpop.f32.mrf.mxu0 }
 0x8cb   : > { %v4746_v48 = vadd.f32 %v4745_v31, %v4594_v33 }
 0x8cc   : > { %v7098_v0 = vpop.f32.mrf.mxu0  ;;  %v4664_v58 = vpop.f32.mrf.mxu1 }
 0x8cd   : > { %v5829_v3 = vmul.f32 -1.442695, %v4746_v48  ;;  %v4755_v52 = vadd.f32 %v4754_v25, %v4664_v58 }
 0x8ce   : > { %v7109_v1 = vpop.f32.mrf.mxu1 }
 0x8cf   : > { %7362 = vpow2.f32 %v5829_v3  ;;  %v5830_v19 = vmul.f32 -1.442695, %v4755_v52 }
 0x8d1   : > { %7364 = vpow2.f32 %v5830_v19 }
 0x8d3   : > { %v4740_v12 = vpop.f32.mrf.mxu0 }
 0x8d4   : > { %v4741_v42 = vadd.f32 %v10902_v27, %v4740_v12  ;;  %v4801_v27 = vld [vmem:[%s12010_s11 + $0x8] sm:$0xff] (%p4519_p0) }
 0x8d5   : > { %v7120_v28 = vpop.f32.mrf.mxu0  ;;  %7126 = vmatpush3.msra.mxu0 (%p4519_p0), %v4801_v27  ;;  %7209 = vmatpush3.msra.mxu1 (%p4519_p0), %v4801_v27 }
 0x8d6   :  { %7127 = vmatprep.subr.mxu0 (%p4519_p0), %v12146_v51  ;;  %7206 = vmatprep.subr.mxu1 (%p4519_p0), %v12146_v51 }
 0x8d7   :  { %7128 = vmatpush3.msra.mxu0 (%p4519_p0), %v4800_v41  ;;  %7210 = vmatpush3.msra.mxu1 (%p4519_p0), %v4800_v41 }
 0x8d8   :  { %7192 = vmatprep.subr.mxu1 (%p4519_p0), %v12146_v51 }
 0x8dc   : > { %v7363_v54 = vpop.eup %7362 }
 0x8dd   : > { %v4750_v43 = vadd.f32 1.0, %v7363_v54 }
 0x8de   : > { %v7365_v56 = vpop.eup %7364 }
 0x8df   : > { %7366 = vrcp.f32 %v4750_v43  ;;  %v4759_v11 = vadd.f32 1.0, %v7365_v56 }
 0x8e1   : > { %7368 = vrcp.f32 %v4759_v11 }
 0x8ec   : > { %v7367_v59 = vpop.eup %7366 }
 0x8ed   : > { %v4764_v23 = vmul.f32 %v7367_v59, %v4741_v42 }
 0x8ee   : > { %v7369_v47 = vpop.eup %7368 }
 0x8ef   : > { %v4765_v32 = vadd.f32 %v4764_v23, %v4763_v6  ;;  %v4767_v22 = vsub.f32 1.0, %v7369_v47  ;;  %v4769_v7 = vmul.f32 %v7428_v5, %v7369_v47  ;;  %v11725_v6 = vld [vmem:[#allocation8] ss:$0 sm:$0xff] (%p4519_p0) }
 0x8f1   : > { %7370 = vtanh.f32 %v4765_v32 }
 0x8fe   : > { %v7371_v26 = vpop.eup %7370 }
 0x8ff   : > { %v4768_v37 = vmul.f32 %v7371_v26, %v4767_v22 }
 0x901   : > { %v4770_v24 = vadd.f32 %v4769_v7, %v4768_v37 }
 0x903   : > { %v4773_v57 = vmul.f32 %v4772_v17, %v4770_v24  ;;  %4521 = sbr.rel (!%p4519_p0) target bundleno = 2049 (0x801), region = 109 }
 0x905   : > { %v4776_v5 = vadd.f32 %v4775_v4, %v4773_v57  }
 0x907   : > { %4778 = vst.msk [vmem:[%s4777_s24] sm:$0xff] %vm3450_vm4, %v4776_v5 }
 0x90e   :  { %v11594_v16 = vld [vmem:[#allocation7] sm:$0xff]  ;;  %v11600_v53 = vld [vmem:[#allocation7 + $0x58] sm:$0xff]  ;;  %v11608_v10 = vld [vmem:[#allocation7 + $0x8] sm:$0xff] }
 0x90f   :  { %7130 = vmatmul.mubr.msk.f32.vlgmr.msra.gmra.mxu0 %vm3450_vm4, %v11594_v16  ;;  %7163 = vmatmul.mubr.msk.f32.vlgmr.msra.gmra.mxu1 %vm3450_vm4, %v11600_v53  ;;  %v11615_v15 = vld [vmem:[#allocation7 + $0x60] sm:$0xff]  ;;  %v11621_v50 = vld [vmem:[#allocation7 + $0x10] sm:$0xff]  ;;  %v11627_v14 = vld [vmem:[#allocation7 + $0x68] sm:$0xff] }
 0x910   :  { %7132 = vmatprep.mubr.msk.f32.mxu0 %vm7435_vm1, %v12146_v51  ;;  %7165 = vmatprep.mubr.msk.f32.mxu1 %vm7435_vm1, %v12146_v51  ;;  %v11633_v63 = vld [vmem:[#allocation7 + $0x18] sm:$0xff]  ;;  %v11639_v9 = vld [vmem:[#allocation7 + $0x70] sm:$0xff]  ;;  %v11645_v2 = vld [vmem:[#allocation7 + $0x20] sm:$0xff] }
 0x911   :  { %v11651_v8 = vld [vmem:[#allocation7 + $0x78] sm:$0xff]  ;;  %v11657_v21 = vld [vmem:[#allocation7 + $0x28] sm:$0xff]  ;;  %v11663_v29 = vld [vmem:[#allocation7 + $0x80] sm:$0xff] }
 0x912   :  { %v11669_v44 = vld [vmem:[#allocation7 + $0x30] sm:$0xff]  ;;  %v11675_v13 = vld [vmem:[#allocation7 + $0x88] sm:$0xff]  ;;  %v11681_v20 = vld [vmem:[#allocation7 + $0x38] sm:$0xff] }
 0x913   :  { %7133 = vmatmul.mubr.msk.f32.gmra.mxu0 %vm3450_vm4, %v11608_v10  ;;  %7166 = vmatmul.mubr.msk.f32.gmra.mxu1 %vm3450_vm4, %v11615_v15  ;;  %v11687_v18 = vld [vmem:[#allocation7 + $0x90] sm:$0xff]  ;;  %v11693_v61 = vld [vmem:[#allocation7 + $0x40] sm:$0xff]  ;;  %v11699_v55 = vld [vmem:[#allocation7 + $0x98] sm:$0xff] }
 0x914   :  { %7135 = vmatprep.mubr.msk.f32.mxu0 %vm7435_vm1, %v12146_v51  ;;  %7168 = vmatprep.mubr.msk.f32.mxu1 %vm7435_vm1, %v12146_v51  ;;  %v11705_v34 = vld [vmem:[#allocation7 + $0x48] sm:$0xff]  ;;  %v11711_v45 = vld [vmem:[#allocation7 + $0xa0] sm:$0xff]  ;;  %v11717_v30 = vld [vmem:[#allocation7 + $0x50] sm:$0xff] }
 0x917   :  { %7136 = vmatmul.mubr.msk.f32.gmra.mxu0 %vm3450_vm4, %v11621_v50  ;;  %7169 = vmatmul.mubr.msk.f32.gmra.mxu1 %vm3450_vm4, %v11627_v14 }
 0x918   :  { %7138 = vmatprep.mubr.msk.f32.mxu0 %vm7435_vm1, %v12146_v51  ;;  %7171 = vmatprep.mubr.msk.f32.mxu1 %vm7435_vm1, %v12146_v51 }
 0x91b   :  { %7139 = vmatmul.mubr.msk.f32.gmra.mxu0 %vm3450_vm4, %v11633_v63  ;;  %7172 = vmatmul.mubr.msk.f32.gmra.mxu1 %vm3450_vm4, %v11639_v9 }
 0x91c   :  { %7141 = vmatprep.mubr.msk.f32.mxu0 %vm7435_vm1, %v12146_v51  ;;  %7174 = vmatprep.mubr.msk.f32.mxu1 %vm7435_vm1, %v12146_v51 }
 0x91f   :  { %7142 = vmatmul.mubr.msk.f32.gmra.mxu0 %vm3450_vm4, %v11645_v2  ;;  %7175 = vmatmul.mubr.msk.f32.gmra.mxu1 %vm3450_vm4, %v11651_v8 }
 0x920   :  { %7144 = vmatprep.mubr.msk.f32.mxu0 %vm7435_vm1, %v12146_v51  ;;  %7177 = vmatprep.mubr.msk.f32.mxu1 %vm7435_vm1, %v12146_v51 }
 0x923   :  { %7145 = vmatmul.mubr.msk.f32.gmra.mxu0 %vm3450_vm4, %v11657_v21  ;;  %7178 = vmatmul.mubr.msk.f32.gmra.mxu1 %vm3450_vm4, %v11663_v29 }
 0x924   :  { %7147 = vmatprep.mubr.msk.f32.mxu0 %vm7435_vm1, %v12146_v51  ;;  %7180 = vmatprep.mubr.msk.f32.mxu1 %vm7435_vm1, %v12146_v51 }
 0x927   :  { %7148 = vmatmul.mubr.msk.f32.gmra.mxu0 %vm3450_vm4, %v11669_v44  ;;  %7181 = vmatmul.mubr.msk.f32.gmra.mxu1 %vm3450_vm4, %v11675_v13 }
 0x928   :  { %7150 = vmatprep.mubr.msk.f32.mxu0 %vm7435_vm1, %v12146_v51  ;;  %7183 = vmatprep.mubr.msk.f32.mxu1 %vm7435_vm1, %v12146_v51 }
 0x92b   :  { %7151 = vmatmul.mubr.msk.f32.gmra.mxu0 %vm3450_vm4, %v11681_v20  ;;  %7184 = vmatmul.mubr.msk.f32.gmra.mxu1 %vm3450_vm4, %v11687_v18 }
 0x92c   :  { %7153 = vmatprep.mubr.msk.f32.mxu0 %vm7435_vm1, %v12146_v51  ;;  %7186 = vmatprep.mubr.msk.f32.mxu1 %vm7435_vm1, %v12146_v51 }
 0x92f   :  { %7154 = vmatmul.mubr.msk.f32.gmra.mxu0 %vm3450_vm4, %v11693_v61  ;;  %7187 = vmatmul.mubr.msk.f32.gmra.mxu1 %vm3450_vm4, %v11699_v55 }
 0x930   :  { %7156 = vmatprep.mubr.msk.f32.mxu0 %vm7435_vm1, %v12146_v51  ;;  %7189 = vmatprep.mubr.msk.f32.mxu1 %vm7435_vm1, %v12146_v51 }
 0x933   :  { %7157 = vmatmul.mubr.msk.f32.gmra.mxu0 %vm3450_vm4, %v11705_v34  ;;  %7190 = vmatmul.mubr.msk.f32.gmra.mxu1 %vm3450_vm4, %v11711_v45 }
 0x934   :  { %7159 = vmatprep.mubr.msk.f32.mxu0 %vm7435_vm1, %v12146_v51  ;;  %7200 = vmatprep.mubr.msk.f32.mxu1 %vm7435_vm1, %v12146_v51 }
 0x937   :  { %7160 = vmatmul.mubr.msk.f32.gmra.mxu0 %vm3450_vm4, %v11717_v30 }
 0x9cf   :  { %v4940_v40 = vpop.f32.mrf.mxu0  ;;  %v4995_v46 = vpop.f32.mrf.mxu1 }
 0x9d0   :  { %v11731_v22 = vadd.f32 %v11725_v6, %v4940_v40  ;;  %v11747_v62 = vadd.f32 %v11725_v6, %v4995_v46 }
 0x9d1   :  { %v7131_v36 = vpop.f32.mrf.mxu0  ;;  %v7164_v49 = vpop.f32.mrf.mxu1 }
 0x9d2   :  { %v5045_v39 = vsel %vm5044_vm6, %v11731_v22, -inf }
 0x9d3   :  { %v4945_v60 = vpop.f32.mrf.mxu0  ;;  %v5000_v38 = vpop.f32.mrf.mxu1 }
 0x9d4   :  { %v11750_v40 = vadd.f32 %v11725_v6, %v4945_v60 }
 0x9d5   :  { %v7134_v5 = vpop.f32.mrf.mxu0  ;;  %v7167_v33 = vpop.f32.mrf.mxu1 }
 0x9d6   :  { %v11758_v5 = vadd.f32 %v11725_v6, %v5000_v38 }
 0x9d7   :  { %v4950_v31 = vpop.f32.mrf.mxu0  ;;  %v5005_v0 = vpop.f32.mrf.mxu1 }
 0x9d8   :  { %v11761_v33 = vadd.f32 %v11725_v6, %v4950_v31 }
 0x9d9   :  { %v7137_v48 = vpop.f32.mrf.mxu0  ;;  %v7170_v25 = vpop.f32.mrf.mxu1 }
 0x9da   :  { %v11764_v48 = vadd.f32 %v11725_v6, %v5005_v0 }
 0x9db   :  { %v4955_v58 = vpop.f32.mrf.mxu0  ;;  %v5010_v1 = vpop.f32.mrf.mxu1 }
 0x9dc   :  { %v11737_v4 = vadd.f32 %v11725_v6, %v4955_v58 }
 0x9dd   :  { %v7140_v3 = vpop.f32.mrf.mxu0  ;;  %v7173_v19 = vpop.f32.mrf.mxu1 }
 0x9de   :  { %v5048_v60 = vsel %vm5044_vm6, %v11737_v4, -inf }
 0x9df   :  { %v4960_v52 = vpop.f32.mrf.mxu0  ;;  %v5015_v28 = vpop.f32.mrf.mxu1 }
 0x9e0   :  { %v11728_v47 = vadd.f32 %v11725_v6, %v4960_v52 }
 0x9e1   :  { %v7143_v12 = vpop.f32.mrf.mxu0  ;;  %v7176_v43 = vpop.f32.mrf.mxu1 }
 0x9e2   :  { %v5049_v57 = vsel %vm5044_vm6, %v11728_v47, -inf  ;;  %v5046_v43 = vsel %vm5044_vm6, %v11750_v40, -inf }
 0x9e3   :  { %v4965_v54 = vpop.f32.mrf.mxu0  ;;  %v5020_v11 = vpop.f32.mrf.mxu1  ;;  %v5050_v46 = vmax.f32 %v5045_v39, %v5049_v57  ;;  %v11789_v57 = vadd.f32 %v11725_v6, %v5015_v28 }
 0x9e4   :  { %v11742_v35 = vadd.f32 %v11725_v6, %v4965_v54  ;;  %v5063_v54 = vsel %vm5044_vm6, %v11747_v62, -inf  ;;  %v11792_v39 = vadd.f32 %v11725_v6, %v5020_v11 }
 0x9e5   :  { %v7146_v56 = vpop.f32.mrf.mxu0  ;;  %v7179_v59 = vpop.f32.mrf.mxu1 }
 0x9e6   :  { %v5051_v3 = vsel %vm5044_vm6, %v11742_v35, -inf  ;;  %v5047_v59 = vsel %vm5044_vm6, %v11761_v33, -inf }
 0x9e7   :  { %v4970_v42 = vpop.f32.mrf.mxu0  ;;  %v5025_v32 = vpop.f32.mrf.mxu1 }
 0x9e8   :  { %v11771_v52 = vadd.f32 %v11725_v6, %v4970_v42  ;;  %v5065_v42 = vsel %vm5044_vm6, %v11758_v5, -inf  ;;  %v11802_v28 = vadd.f32 %v11725_v6, %v5025_v32 }
 0x9e9   :  { %v7149_v23 = vpop.f32.mrf.mxu0  ;;  %v7182_v7 = vpop.f32.mrf.mxu1 }
 0x9ea   :  { %v5067_v23 = vsel %vm5044_vm6, %v11764_v48, -inf }
 0x9eb   :  { %v4975_v26 = vpop.f32.mrf.mxu0  ;;  %v5030_v24 = vpop.f32.mrf.mxu1 }
 0x9ec   :  { %v11734_v37 = vadd.f32 %v11725_v6, %v4975_v26  ;;  %v5052_v26 = vmax.f32 %v5046_v43, %v5051_v3  ;;  %v11816_v32 = vadd.f32 %v11725_v6, %v5030_v24 }
 0x9ed   :  { %v7152_v17 = vpop.f32.mrf.mxu0  ;;  %v7185_v41 = vpop.f32.mrf.mxu1 }
 0x9ee   :  { %v5055_v36 = vsel %vm5044_vm6, %v11734_v37, -inf  ;;  %v5077_v24 = vsel %vm5044_vm6, %v11816_v32, -inf }
 0x9ef   :  { %v4980_v27 = vpop.f32.mrf.mxu0  ;;  %v5035_v25 = vpop.f32.mrf.mxu1  ;;  %v5056_v31 = vmax.f32 %v5048_v60, %v5055_v36  ;;  %v11799_v36 = vadd.f32 %v11725_v6, %v5010_v1 }
 0x9f0   :  { %v11755_v49 = vadd.f32 %v11725_v6, %v4980_v27  ;;  %v5053_v27 = vsel %vm5044_vm6, %v11771_v52, -inf  ;;  %v11805_v11 = vadd.f32 %v11725_v6, %v5035_v25 }
 0x9f1   :  { %v7155_v58 = vpop.f32.mrf.mxu0  ;;  %v7188_v0 = vpop.f32.mrf.mxu1  ;;  %v5054_v43 = vmax.f32 %v5047_v59, %v5053_v27  ;;  %v5075_v59 = vsel %vm5044_vm6, %v11802_v28, -inf }
 0x9f2   :  { %v5057_v38 = vsel %vm5044_vm6, %v11755_v49, -inf }
 0x9f3   :  { %v5058_v19 = vmax.f32 %v5050_v46, %v5057_v38  ;;  %v4985_v12 = vpop.f32.mrf.mxu0  ;;  %v5040_v17 = vpop.f32.mrf.mxu1  ;;  %v5064_v46 = vmax.f32 %v5056_v31, %v5063_v54  ;;  %v5071_v31 = vsel %vm5044_vm6, %v11789_v57, -inf }
 0x9f4   :  { %v11780_v56 = vadd.f32 %v11725_v6, %v4985_v12  ;;  %v11808_v12 = vadd.f32 %v11725_v6, %v5040_v17  ;;  %v5069_v17 = vsel %vm5044_vm6, %v11799_v36, -inf }
 0x9f5   :  { %v7158_v7 = vpop.f32.mrf.mxu0  ;;  %v5066_v58 = vmax.f32 %v5058_v19, %v5065_v42  ;;  %v7191_v38 = vpop.f32.mrf.mxu1  ;;  %v5073_v19 = vsel %vm5044_vm6, %v11792_v39, -inf  ;;  %v5072_v54 = vmax.f32 %v5064_v46, %v5071_v31 }
 0x9f6   :  { %v5059_v41 = vsel %vm5044_vm6, %v11780_v56, -inf  ;;  %v5081_v27 = vsel %vm5044_vm6, %v11808_v12, -inf }
 0x9f7   :  { %v5060_v60 = vmax.f32 %v5052_v26, %v5059_v41  ;;  %v4990_v3 = vpop.f32.mrf.mxu0  ;;  %v5074_v42 = vmax.f32 %v5066_v58, %v5073_v19 }
 0x9f8   :  { %v4991_v0 = vadd.f32 %v11725_v6, %v4990_v3 }
 0x9f9   :  { %v5068_v7 = vmax.f32 %v5060_v60, %v5067_v23  ;;  %v7161_v1 = vpop.f32.mrf.mxu0  ;;  %v5079_v23 = vsel %vm5044_vm6, %v11805_v11, -inf  ;;  %v5082_v58 = vmax.f32 %v5074_v42, %v5081_v27 }
 0x9fa   :  { %v5061_v25 = vsel %vm5044_vm6, %v4991_v0, -inf  ;;  %v5080_v46 = vmax.f32 %v5072_v54, %v5079_v23 }
 0x9fb   :  { %v5062_v26 = vmax.f32 %v5054_v43, %v5061_v25  ;;  %v5076_v41 = vmax.f32 %v5068_v7, %v5075_v59 }
 0x9fd   :  { %v5070_v6 = vmax.f32 %v5062_v26, %v5069_v17  ;;  %v5083_v3 = vmax.f32 %v5082_v58, %v5076_v41 }
 0x9ff   :  { %v5078_v60 = vmax.f32 %v5070_v6, %v5077_v24 }
 0xa01   :  { %v5084_v38 = vmax.f32 %v5078_v60, %v5080_v46 }
 0xa03   :  { %v11829_v43 = vmax.f32 %v5083_v3, %v5084_v38 }
 0xa05   :  { %v5086_v1 = vsub.f32 %v11731_v22, %v11829_v43  ;;  %v5087_v31 = vsub.f32 %v11750_v40, %v11829_v43  ;;  %v5088_v7 = vsub.f32 %v11761_v33, %v11829_v43  ;;  %v5089_v19 = vsub.f32 %v11737_v4, %v11829_v43 }
 0xa06   :  { %v5090_v25 = vsub.f32 %v11728_v47, %v11829_v43  ;;  %v5091_v42 = vsub.f32 %v11742_v35, %v11829_v43  ;;  %v5092_v22 = vsub.f32 %v11771_v52, %v11829_v43  ;;  %v5093_v4 = vsub.f32 %v11734_v37, %v11829_v43 }
 0xa07   :  { %v5107_v54 = vmul.f32 1.442695, %v5086_v1  ;;  %v5109_v26 = vmul.f32 1.442695, %v5087_v31  ;;  %v5111_v17 = vmul.f32 1.442695, %v5088_v7  ;;  %v5094_v47 = vsub.f32 %v11755_v49, %v11829_v43 }
 0xa08   :  { %v5113_v59 = vmul.f32 1.442695, %v5089_v19  ;;  %v5115_v40 = vmul.f32 1.442695, %v5090_v25  ;;  %v5117_v33 = vmul.f32 1.442695, %v5091_v42  ;;  %v5095_v23 = vsub.f32 %v11780_v56, %v11829_v43 }
 0xa09   :  { %7374 = vpow2.f32 %v5107_v54  ;;  %v5119_v35 = vmul.f32 1.442695, %v5092_v22  ;;  %v5121_v27 = vmul.f32 1.442695, %v5093_v4  ;;  %v5096_v52 = vsub.f32 %v4991_v0, %v11829_v43 }
 0xa0a   :  { %7376 = vpow2.f32 %v5109_v26  ;;  %v5123_v41 = vmul.f32 1.442695, %v5094_v47  ;;  %v5097_v6 = vsub.f32 %v11747_v62, %v11829_v43  ;;  %v5125_v37 = vmul.f32 1.442695, %v5095_v23 }
 0xa0b   :  { %7378 = vpow2.f32 %v5111_v17  ;;  %v5127_v46 = vmul.f32 1.442695, %v5096_v52  ;;  %v5098_v49 = vsub.f32 %v11758_v5, %v11829_v43  ;;  %v5099_v60 = vsub.f32 %v11764_v48, %v11829_v43 }
 0xa0c   :  { %7380 = vpow2.f32 %v5113_v59  ;;  %v5129_v62 = vmul.f32 1.442695, %v5097_v6  ;;  %v5100_v5 = vsub.f32 %v11799_v36, %v11829_v43  ;;  %v5101_v48 = vsub.f32 %v11789_v57, %v11829_v43 }
 0xa0d   :  { %7382 = vpow2.f32 %v5115_v40  ;;  %v5131_v31 = vmul.f32 1.442695, %v5098_v49  ;;  %v5133_v54 = vmul.f32 1.442695, %v5099_v60  ;;  %v5102_v36 = vsub.f32 %v11792_v39, %v11829_v43 }
 0xa0e   :  { %7384 = vpow2.f32 %v5117_v33  ;;  %v5135_v59 = vmul.f32 1.442695, %v5100_v5  ;;  %v5103_v57 = vsub.f32 %v11802_v28, %v11829_v43  ;;  %v5137_v33 = vmul.f32 1.442695, %v5101_v48 }
 0xa0f   :  { %7386 = vpow2.f32 %v5119_v35  ;;  %v5104_v39 = vsub.f32 %v11816_v32, %v11829_v43  ;;  %v5105_v28 = vsub.f32 %v11805_v11, %v11829_v43  ;;  %v5106_v32 = vsub.f32 %v11808_v12, %v11829_v43 }
 0xa10   :  { %7388 = vpow2.f32 %v5121_v27  ;;  %v5139_v27 = vmul.f32 1.442695, %v5102_v36 }
 0xa11   :  { %7390 = vpow2.f32 %v5123_v41  ;;  %v5143_v60 = vmul.f32 1.442695, %v5104_v39  ;;  %v5145_v11 = vmul.f32 1.442695, %v5105_v28  ;;  %v5147_v12 = vmul.f32 1.442695, %v5106_v32 }
 0xa12   :  { %7392 = vpow2.f32 %v5125_v37  ;;  %v5141_v37 = vmul.f32 1.442695, %v5103_v57 }
 0xa13   :  { %7394 = vpow2.f32 %v5127_v46 }
 0xa14   :  { %7396 = vpow2.f32 %v5129_v62 }
 0xa15   :  { %7398 = vpow2.f32 %v5131_v31 }
 0xa16   :  { %v11854_v24 = vpop.eup %7374  ;;  %7400 = vpow2.f32 %v5133_v54 }
 0xa17   :  { %v11858_v58 = vpop.eup %7376  ;;  %v5149_v56 = vsel %vm5044_vm6, %v11854_v24, 0.0  ;;  %7402 = vpow2.f32 %v5135_v59 }
 0xa18   :  { %v11862_v0 = vpop.eup %7378  ;;  %v5150_v3 = vsel %vm5044_vm6, %v11858_v58, 0.0  ;;  %7404 = vpow2.f32 %v5137_v33 }
 0xa19   :  { %v11868_v38 = vpop.eup %7380  ;;  %v5151_v1 = vadd.f32 %v5150_v3, %v5149_v56  ;;  %v5152_v7 = vsel %vm5044_vm6, %v11862_v0, 0.0  ;;  %7406 = vpow2.f32 %v5139_v27 }
 0xa1a   :  { %v11874_v19 = vpop.eup %7382  ;;  %v5154_v42 = vsel %vm5044_vm6, %v11868_v38, 0.0  ;;  %7408 = vpow2.f32 %v5141_v37 }
 0xa1b   :  { %v5153_v25 = vadd.f32 %v5152_v7, %v5151_v1  ;;  %v11880_v26 = vpop.eup %7384  ;;  %v5156_v22 = vsel %vm5044_vm6, %v11874_v19, 0.0  ;;  %7410 = vpow2.f32 %v5143_v60 }
 0xa1c   :  { %v11886_v40 = vpop.eup %7386  ;;  %v5158_v47 = vsel %vm5044_vm6, %v11880_v26, 0.0  ;;  %7412 = vpow2.f32 %v5145_v11 }
 0xa1d   :  { %v5155_v17 = vadd.f32 %v5154_v42, %v5153_v25  ;;  %v11892_v35 = vpop.eup %7388  ;;  %v5160_v52 = vsel %vm5044_vm6, %v11886_v40, 0.0  ;;  %7414 = vpow2.f32 %v5147_v12 }
 0xa1e   :  { %v11898_v41 = vpop.eup %7390  ;;  %v5162_v46 = vsel %vm5044_vm6, %v11892_v35, 0.0 }
 0xa1f   :  { %v5157_v4 = vadd.f32 %v5156_v22, %v5155_v17  ;;  %v11904_v49 = vpop.eup %7392  ;;  %v5164_v62 = vsel %vm5044_vm6, %v11898_v41, 0.0 }
 0xa20   :  { %v11910_v3 = vpop.eup %7394  ;;  %v5166_v5 = vsel %vm5044_vm6, %v11904_v49, 0.0 }
 0xa21   :  { %v5159_v23 = vadd.f32 %v5158_v47, %v5157_v4  ;;  %v11914_v31 = vpop.eup %7396  ;;  %v5168_v25 = vsel %vm5044_vm6, %v11910_v3, 0.0 }
 0xa22   :  { %v11918_v43 = vpop.eup %7398  ;;  %v5170_v54 = vsel %vm5044_vm6, %v11914_v31, 0.0 }
 0xa23   :  { %v5161_v6 = vadd.f32 %v5160_v52, %v5159_v23  ;;  %v7401_v42 = vpop.eup %7400  ;;  %v5172_v36 = vsel %vm5044_vm6, %v11918_v43, 0.0 }
 0xa24   :  { %v7403_v59 = vpop.eup %7402  ;;  %v5174_v4 = vsel %vm5044_vm6, %v7401_v42, 0.0 }
 0xa25   :  { %v5163_v56 = vadd.f32 %v5162_v46, %v5161_v6  ;;  %v7405_v57 = vpop.eup %7404  ;;  %v5176_v47 = vsel %vm5044_vm6, %v7403_v59, 0.0 }
 0xa26   :  { %v7407_v23 = vpop.eup %7406  ;;  %v5178_v27 = vsel %vm5044_vm6, %v7405_v57, 0.0 }
 0xa27   :  { %v5165_v1 = vadd.f32 %v5164_v62, %v5163_v56  ;;  %v7409_v52 = vpop.eup %7408  ;;  %v5180_v28 = vsel %vm5044_vm6, %v7407_v23, 0.0 }
 0xa28   :  { %v7411_v37 = vpop.eup %7410  ;;  %v5182_v56 = vsel %vm5044_vm6, %v7409_v52, 0.0 }
 0xa29   :  { %v5167_v7 = vadd.f32 %v5166_v5, %v5165_v1  ;;  %v7413_v32 = vpop.eup %7412  ;;  %v5184_v62 = vsel %vm5044_vm6, %v7411_v37, 0.0 }
 0xa2a   :  { %v7415_v1 = vpop.eup %7414  ;;  %v5186_v5 = vsel %vm5044_vm6, %v7413_v32, 0.0 }
 0xa2b   :  { %v5169_v48 = vadd.f32 %v5168_v25, %v5167_v7  ;;  %v5188_v25 = vsel %vm5044_vm6, %v7415_v1, 0.0 }
 0xa2d   :  { %v5171_v17 = vadd.f32 %v5170_v54, %v5169_v48 }
 0xa2f   :  { %v5173_v22 = vadd.f32 %v5172_v36, %v5171_v17 }
 0xa31   :  { %v5175_v33 = vadd.f32 %v5174_v4, %v5173_v22  ;;  %v5382_v4 = vld [vmem:[%s12012_s13 + $0x18] sm:$0xff] }
 0xa32   :  { %7193 = vmatpush3.msra.mxu1 %v5382_v4 }
 0xa33   :  { %v5177_v39 = vadd.f32 %v5176_v47, %v5175_v33  ;;  %7194 = vmatprep.subr.mxu1 %v12146_v51 }
 0xa35   :  { %v5179_v6 = vadd.f32 %v5178_v27, %v5177_v39 }
 0xa37   :  { %v5181_v46 = vadd.f32 %v5180_v28, %v5179_v6 }
 0xa39   :  { %v5183_v60 = vadd.f32 %v5182_v56, %v5181_v46 }
 0xa3b   :  { %v5185_v11 = vadd.f32 %v5184_v62, %v5183_v60 }
 0xa3d   :  { %v5187_v7 = vadd.f32 %v5186_v5, %v5185_v11 }
 0xa3f   :  { %v5189_v12 = vadd.f32 %v5188_v25, %v5187_v7 }
 0xa41   :  { %7416 = vrcp.f32 %v5189_v12 }
 0xa4e   :  { %v7417_v48 = vpop.eup %7416 }
 0xa4f   :  { %v5193_v54 = vmul.f32 %v7417_v48, %v11862_v0  ;;  %v5191_v17 = vmul.f32 %v7417_v48, %v11854_v24  ;;  %v5194_v36 = vmul.f32 %v7417_v48, %v11868_v38  ;;  %v5192_v22 = vmul.f32 %v7417_v48, %v11858_v58 }
 0xa50   :  { %v5196_v33 = vmul.f32 %v7417_v48, %v11880_v26  ;;  %v5195_v47 = vmul.f32 %v7417_v48, %v11874_v19  ;;  %v5198_v24 = vmul.f32 %v7417_v48, %v11892_v35  ;;  %v5197_v0 = vmul.f32 %v7417_v48, %v11886_v40  ;;  %v5381_v19 = vld [vmem:[%s12012_s13 + $0x10] sm:$0xff] }
 0xa51   :  { %5224 = vperm.xlu1 %7373, %v5193_v54   ;;  %5214 = vperm.xlu0 %7372, %v5191_v17   ;;  %v5200_v58 = vmul.f32 %v7417_v48, %v11904_v49  ;;  %v5199_v38 = vmul.f32 %v7417_v48, %v11898_v41  ;;  %v5202_v26 = vmul.f32 %v7417_v48, %v11914_v31  ;;  %v5380_v41 = vld [vmem:[%s12012_s13 + $0x8] sm:$0xff] }
 0xa52   :  { %v5201_v39 = vmul.f32 %v7417_v48, %v11910_v3  ;;  %7195 = vmatpush3.msra.mxu1 %v5381_v19  ;;  %v5204_v40 = vmul.f32 %v7417_v48, %v7401_v42  ;;  %v5203_v35 = vmul.f32 %v7417_v48, %v11918_v43  ;;  %v5206_v49 = vmul.f32 %v7417_v48, %v7405_v57  ;;  %v5379_v43 = vld [vmem:[%s12012_s13] sm:$0xff] }
 0xa53   :  { %7196 = vmatprep.subr.mxu1 %v12146_v51  ;;  %v5205_v27 = vmul.f32 %v7417_v48, %v7403_v59  ;;  %v5208_v3 = vmul.f32 %v7417_v48, %v7409_v52  ;;  %v5207_v31 = vmul.f32 %v7417_v48, %v7407_v23  ;;  %v5210_v42 = vmul.f32 %v7417_v48, %v7413_v32 }
 0xa54   :  { %7197 = vmatpush3.msra.mxu1 %v5380_v41  ;;  %v5209_v6 = vmul.f32 %v7417_v48, %v7411_v37  ;;  %v5211_v28 = vmul.f32 %v7417_v48, %v7415_v1 }
 0xa55   :  { %5229 = vperm.xlu1 %7373, %v5194_v36   ;;  %5219 = vperm.xlu0 %7372, %v5192_v22  }
 0xa56   :  { %7198 = vmatprep.subr.mxu1 %v12146_v51 }
 0xa57   :  { %7199 = vmatpush3.msra.mxu1 %v5379_v43 }
 0xa59   :  { %5239 = vperm.xlu1 %7373, %v5196_v33   ;;  %5234 = vperm.xlu0 %7372, %v5195_v47  }
 0xa5d   :  { %5249 = vperm.xlu1 %7373, %v5198_v24   ;;  %5244 = vperm.xlu0 %7372, %v5197_v0  }
 0xa61   :  { %5259 = vperm.xlu1 %7373, %v5200_v58   ;;  %5254 = vperm.xlu0 %7372, %v5199_v38  }
 0xa65   :  { %5269 = vperm.xlu1 %7373, %v5202_v26   ;;  %5264 = vperm.xlu0 %7372, %v5201_v39  }
 0xa69   :  { %5279 = vperm.xlu1 %7373, %v5204_v40   ;;  %5274 = vperm.xlu0 %7372, %v5203_v35  }
 0xa6d   :  { %5289 = vperm.xlu1 %7373, %v5206_v49   ;;  %5284 = vperm.xlu0 %7372, %v5205_v27  }
 0xa71   :  { %5299 = vperm.xlu1 %7373, %v5208_v3   ;;  %5294 = vperm.xlu0 %7372, %v5207_v31  }
 0xa75   :  { %5309 = vperm.xlu1 %7373, %v5210_v42   ;;  %5304 = vperm.xlu0 %7372, %v5209_v6  }
 0xa79   :  { %5314 = vperm.xlu0 %7372, %v5211_v28  }
 0xacc   :  { %v5225_v59 = vpop.permute.xlu1 %5224  ;;  %v5215_v57 = vpop.permute.xlu0 %5214 }
 0xacd   :  { %v5317_v51 = vmul.f32 %v5215_v57, %v11594_v16  ;;  %v5319_v23 = vmul.f32 %v5225_v59, %v11621_v50 }
 0xacf   :  { %v5338_v37 = vsel %vm3450_vm4, %v5317_v51, 0.0  ;;  %v5341_v5 = vsel %vm3450_vm4, %v5319_v23, 0.0 }
 0xad0   :  { %v5230_v46 = vpop.permute.xlu1 %5229  ;;  %v5220_v52 = vpop.permute.xlu0 %5219 }
 0xad1   :  { %v5318_v56 = vmul.f32 %v5220_v52, %v11608_v10  ;;  %v5320_v32 = vmul.f32 %v5230_v46, %v11633_v63 }
 0xad3   :  { %v5339_v60 = vsel %vm3450_vm4, %v5318_v56, 0.0  ;;  %v5343_v25 = vsel %vm3450_vm4, %v5320_v32, 0.0 }
 0xad4   :  { %v5340_v62 = vadd.f32 %v5339_v60, %v5338_v37  ;;  %v5240_v1 = vpop.permute.xlu1 %5239  ;;  %v5235_v11 = vpop.permute.xlu0 %5234 }
 0xad5   :  { %v5321_v7 = vmul.f32 %v5235_v11, %v11645_v2  ;;  %v5322_v50 = vmul.f32 %v5240_v1, %v11657_v21 }
 0xad6   :  { %v5342_v16 = vadd.f32 %v5341_v5, %v5340_v62 }
 0xad7   :  { %v5345_v54 = vsel %vm3450_vm4, %v5321_v7, 0.0  ;;  %v5347_v36 = vsel %vm3450_vm4, %v5322_v50, 0.0 }
 0xad8   :  { %v5344_v12 = vadd.f32 %v5343_v25, %v5342_v16  ;;  %v5250_v10 = vpop.permute.xlu1 %5249  ;;  %v5245_v48 = vpop.permute.xlu0 %5244 }
 0xad9   :  { %v5323_v63 = vmul.f32 %v5245_v48, %v11669_v44  ;;  %v5324_v22 = vmul.f32 %v5250_v10, %v11681_v20 }
 0xada   :  { %v5346_v17 = vadd.f32 %v5345_v54, %v5344_v12 }
 0xadb   :  { %v5349_v47 = vsel %vm3450_vm4, %v5323_v63, 0.0  ;;  %v5351_v0 = vsel %vm3450_vm4, %v5324_v22, 0.0 }
 0xadc   :  { %v5348_v4 = vadd.f32 %v5347_v36, %v5346_v17  ;;  %v5260_v33 = vpop.permute.xlu1 %5259  ;;  %v5255_v2 = vpop.permute.xlu0 %5254 }
 0xadd   :  { %v5325_v24 = vmul.f32 %v5255_v2, %v11693_v61  ;;  %v5326_v58 = vmul.f32 %v5260_v33, %v11705_v34 }
 0xade   :  { %v5350_v21 = vadd.f32 %v5349_v47, %v5348_v4 }
 0xadf   :  { %v5353_v26 = vsel %vm3450_vm4, %v5325_v24, 0.0  ;;  %v5355_v40 = vsel %vm3450_vm4, %v5326_v58, 0.0 }
 0xae0   :  { %v5352_v38 = vadd.f32 %v5351_v0, %v5350_v21  ;;  %v5270_v19 = vpop.permute.xlu1 %5269  ;;  %v5265_v44 = vpop.permute.xlu0 %5264 }
 0xae1   :  { %v5327_v39 = vmul.f32 %v5265_v44, %v11717_v30  ;;  %v5328_v35 = vmul.f32 %v5270_v19, %v11600_v53 }
 0xae2   :  { %v5354_v20 = vadd.f32 %v5353_v26, %v5352_v38 }
 0xae3   :  { %v5357_v27 = vsel %vm3450_vm4, %v5327_v39, 0.0  ;;  %v5359_v31 = vsel %vm3450_vm4, %v5328_v35, 0.0 }
 0xae4   :  { %v5356_v41 = vadd.f32 %v5355_v40, %v5354_v20  ;;  %v5280_v49 = vpop.permute.xlu1 %5279  ;;  %v5275_v61 = vpop.permute.xlu0 %5274 }
 0xae5   :  { %v5329_v3 = vmul.f32 %v5275_v61, %v11615_v15  ;;  %v5330_v42 = vmul.f32 %v5280_v49, %v11627_v14 }
 0xae6   :  { %v5358_v34 = vadd.f32 %v5357_v27, %v5356_v41 }
 0xae7   :  { %v5361_v28 = vsel %vm3450_vm4, %v5329_v3, 0.0  ;;  %v5363_v57 = vsel %vm3450_vm4, %v5330_v42, 0.0 }
 0xae8   :  { %v5360_v6 = vadd.f32 %v5359_v31, %v5358_v34  ;;  %v5290_v43 = vpop.permute.xlu1 %5289  ;;  %v5285_v30 = vpop.permute.xlu0 %5284 }
 0xae9   :  { %v5331_v59 = vmul.f32 %v5285_v30, %v11639_v9  ;;  %v5332_v51 = vmul.f32 %v5290_v43, %v11651_v8 }
 0xaea   :  { %v5362_v53 = vadd.f32 %v5361_v28, %v5360_v6 }
 0xaeb   :  { %v5365_v23 = vsel %vm3450_vm4, %v5331_v59, 0.0  ;;  %v5367_v37 = vsel %vm3450_vm4, %v5332_v51, 0.0 }
 0xaec   :  { %v5364_v46 = vadd.f32 %v5363_v57, %v5362_v53  ;;  %v5300_v52 = vpop.permute.xlu1 %5299  ;;  %v5295_v15 = vpop.permute.xlu0 %5294 }
 0xaed   :  { %v5333_v56 = vmul.f32 %v5295_v15, %v11663_v29  ;;  %v5334_v32 = vmul.f32 %v5300_v52, %v11675_v13 }
 0xaee   :  { %v5366_v14 = vadd.f32 %v5365_v23, %v5364_v46 }
 0xaef   :  { %v5369_v1 = vsel %vm3450_vm4, %v5333_v56, 0.0  ;;  %v5371_v5 = vsel %vm3450_vm4, %v5334_v32, 0.0 }
 0xaf0   :  { %v5368_v60 = vadd.f32 %v5367_v37, %v5366_v14  ;;  %v5310_v62 = vpop.permute.xlu1 %5309  ;;  %v5305_v9 = vpop.permute.xlu0 %5304 }
 0xaf1   :  { %v5335_v11 = vmul.f32 %v5305_v9, %v11687_v18  ;;  %v5336_v7 = vmul.f32 %v5310_v62, %v11699_v55  ;;  %v5853_v18 = vld [vmem:[%s12013_s14] ss:$0 sm:$0xff] }
 0xaf2   :  { %v5370_v8 = vadd.f32 %v5369_v1, %v5368_v60 }
 0xaf3   :  { %v5373_v29 = vsel %vm3450_vm4, %v5335_v11, 0.0  ;;  %v5375_v13 = vsel %vm3450_vm4, %v5336_v7, 0.0 }
 0xaf4   :  { %v5372_v16 = vadd.f32 %v5371_v5, %v5370_v8  ;;  %v5315_v25 = vpop.permute.xlu0 %5314 }
 0xaf5   :  { %v5337_v50 = vmul.f32 %v5315_v25, %v11711_v45 }
 0xaf6   :  { %v5374_v12 = vadd.f32 %v5373_v29, %v5372_v16 }
 0xaf7   :  { %v5377_v48 = vsel %vm3450_vm4, %v5337_v50, 0.0 }
 0xaf8   :  { %v5376_v10 = vadd.f32 %v5375_v13, %v5374_v12 }
 0xafa   :  { %v5378_v54 = vadd.f32 %v5377_v48, %v5376_v10 }
 0xafc   :  { %7201 = vmatmul.mubr.msk.f32.vlgmr.msra.gmra.mxu1 %vm3450_vm4, %v5378_v54 }
 0xbbc   :  { %v5459_v55 = vpop.f32.mrf.mxu1 }
 0xbbd   :  { %v5460_v63 = vadd.f32 %v5853_v18, %v5459_v55 }
 0xbbe   :  { %v7202_v17 = vpop.f32.mrf.mxu1 }
 0xbbf   :  { %5464 = vst.msk [vmem:[%s12014_s15] sm:$0xff] %vm5463_vm7, %v5460_v63 }

</bundles_post_ra>
